<compile_context>
chip_gen: v5e
topology: v5e:2x2
jax: 0.10.0
libtpu: 0.0.40
codegen_flags: <defaults>
</compile_context>

<pallas_src>
import math
import functools

import numpy as np
import jax
import jax.numpy as jnp
from jax import lax
from jax.experimental import pallas as pl
from jax.experimental.pallas import tpu as pltpu


def _round_up(x, m):
    return (x + m - 1) // m * m


# ----------------------------------------------------------------------------
# AxialRoPE frequency buffer (matches PyTorch AxialRoPE.__init__)
# ----------------------------------------------------------------------------

def make_freqs(dim, n_heads, dtype=jnp.float32):
    log_min = math.log(math.pi)
    log_max = math.log(10.0 * math.pi)
    n = n_heads * dim // 4
    freqs = jnp.exp(jnp.linspace(log_min, log_max, n + 1, dtype=jnp.float32)[:-1])
    return freqs.reshape(dim // 4, n_heads).T.astype(dtype)   # (n_heads, dim // 4)


# ----------------------------------------------------------------------------
# Fused AxialRoPE + cosine-sim scaling + neighborhood attention kernel
# ----------------------------------------------------------------------------

def _nsa_fused_kernel(qkv_ref, pos_ref, fmat_ref, rot_ref, qcent_ref, kcoord_ref,
                      sscale_ref, o_ref, *, n_heads, d_head, win_r):
    """One grid step = bt_tile (b*t) rows over the full S = H*W token grid.

    qkv_ref    : (BTt, S, 3*nh*dh)  qkv GEMM output (m-major, head-major last dim)
    pos_ref    : (BTt, S, C)        positions
    fmat_ref   : (C, nh*dh)         theta_full = sum_c pos_c * fmat[c]
    rot_ref    : (nh*dh, nh*dh)     rotary partner/sign matrix: x @ rot = [-x2, x1, 0]
    qcent_ref  : (S, 2) int32       clamped window-center (row, col) per query
    kcoord_ref : (2, S) int32       (row, col) per key
    sscale_ref : (1, nh*dh)         sqrt(scale[h]) broadcast over each head's lanes
    o_ref      : (BTt, S, nh*dh)
    """
    J = n_heads * d_head
    eps = 1e-6
    btt, S = qkv_ref.shape[0], qkv_ref.shape[1]

    qkv = qkv_ref[...].astype(jnp.float32)
    q = qkv[..., :J]
    k = qkv[..., J:2 * J]
    v = qkv[..., 2 * J:]

    # ---- fused AxialRoPE: theta at full (nh*dh) lane width -----------------
    pos = pos_ref[...].astype(jnp.float32)                  # (BTt, S, C)
    fmat = fmat_ref[...]                                     # (C, J)
    theta = pos[:, :, 0:1] * fmat[0:1, :]
    for c in range(1, fmat.shape[0]):
        theta = theta + pos[:, :, c:c + 1] * fmat[c:c + 1, :]
    cosf = jnp.cos(theta)                                    # == 1 on pass-through lanes
    sinf = jnp.sin(theta)                                    # == 0 on pass-through lanes

    rot = rot_ref[...]                                       # (J, J) constant

    def rope(x):
        # Full-width rotation; no per-head sub-vreg slice/concat relayouts.
        xp = jnp.dot(x.reshape(btt * S, J), rot,
                     preferred_element_type=jnp.float32).reshape(btt, S, J)
        return x * cosf + xp * sinf

    q = rope(q)
    k = rope(k)

    # ---- neighborhood mask (natten clamped-window-center semantics) --------
    q_rc = qcent_ref[:, 0:1]                                 # (S, 1) clipped row center
    q_cc = qcent_ref[:, 1:2]                                 # (S, 1) clipped col center
    k_r = kcoord_ref[0:1, :]                                 # (1, S) key row
    k_c = kcoord_ref[1:2, :]                                 # (1, S) key col
    ok = ((k_r >= q_rc - win_r) & (k_r <= q_rc + win_r) &
          (k_c >= q_cc - win_r) & (k_c <= q_cc + win_r))
    bias = jnp.where(ok, 0.0, -1e9).astype(jnp.float32)      # (S, S)

    sscale = sscale_ref[...]                                  # (1, J)

    # ---- per-head cosine-sim attention (bt-batched on the MXU) -------------
    for h in range(n_heads):
        lo, hi = h * d_head, (h + 1) * d_head
        qh, kh, vh = q[..., lo:hi], k[..., lo:hi], v[..., lo:hi]
        ss_h = sscale[:, lo:hi][None]                         # (1, 1, dh)
        qh = qh * (ss_h * lax.rsqrt(jnp.sum(qh * qh, axis=-1, keepdims=True) + eps))
        kh = kh * (ss_h * lax.rsqrt(jnp.sum(kh * kh, axis=-1, keepdims=True) + eps))
        s = jnp.einsum("bqd,bkd->bqk", qh, kh,
                       preferred_element_type=jnp.float32) + bias
        m = jnp.max(s, axis=-1, keepdims=True)
        e = jnp.exp(s - m)
        l = jnp.sum(e, axis=-1, keepdims=True)
        p = e * pl.reciprocal(l, approx=True)                 # EUP, not VPU divide
        oh = jnp.einsum("bqk,bkd->bqd", p, vh,
                        preferred_element_type=jnp.float32)
        o_ref[:, :, lo:hi] = oh.astype(o_ref.dtype)           # direct per-head store


def _nsa_attention(qkv, pos_bt, freqs, scale, Hh, Ww, kernel_size, n_heads, d_head,
                   *, out_dtype, bt_tile=None):
    """qkv: (BT, S, 3*nh*dh); pos_bt: (BT, S, C). Returns (BT, S, nh*dh)."""
    BT, S, three_j = qkv.shape
    J = n_heads * d_head
    assert three_j == 3 * J and S == Hh * Ww
    C = pos_bt.shape[-1]
    D4 = freqs.shape[-1]
    d_rot = C * D4
    assert 2 * d_rot <= d_head
    assert kernel_size % 2 == 1 and kernel_size <= min(Hh, Ww)
    r = kernel_size // 2

    # Constant rotary partner/sign matrix: (x @ R) = per-head [-x2, x1, 0].
    R = np.zeros((J, J), np.float32)
    for h in range(n_heads):
        b0 = h * d_head
        for j in range(d_rot):
            R[b0 + d_rot + j, b0 + j] = -1.0
            R[b0 + j, b0 + d_rot + j] = 1.0
    rot = jnp.asarray(R)

    # theta_full = pos @ fmat; theta duplicated over both rotary halves,
    # zero on pass-through lanes (so cos -> 1 and sin -> 0 there).
    sel = jnp.eye(C, dtype=jnp.float32)
    core = (sel[:, None, :, None] *
            freqs.astype(jnp.float32)[None, :, None, :]).reshape(C, n_heads, d_rot)
    core = jnp.concatenate([core, core], axis=-1)             # (C, nh, 2*d_rot)
    fmat = jnp.pad(core, ((0, 0), (0, 0), (0, d_head - 2 * d_rot))).reshape(C, J)

    # Tiny neighborhood-window coordinate tables (replace the (S, S) mask DMA).
    rows = np.arange(S, dtype=np.int32) // Ww
    cols = np.arange(S, dtype=np.int32) % Ww
    qcent = jnp.asarray(np.stack([np.clip(rows, r, Hh - 1 - r),
                                  np.clip(cols, r, Ww - 1 - r)], axis=1))   # (S, 2)
    kcoord = jnp.asarray(np.stack([rows, cols], axis=0))                     # (2, S)

    sscale = jnp.repeat(jnp.sqrt(scale.astype(jnp.float32)), d_head).reshape(1, J)

    if bt_tile is None:
        # Keep the per-step working set well inside the default scoped VMEM limit
        # on every generation (v5e 16 MiB, v6e/v7x 32 MiB).
        per_bt = 4 * S * (14 * J + 2 * S + 256)
        bt_tile = max(1, (6 * 2 ** 20) // max(per_bt, 1))
    bt_tile = int(max(1, min(bt_tile, BT)))
    BTp = _round_up(BT, bt_tile)
    if BTp != BT:
        qkv = jnp.pad(qkv, ((0, BTp - BT), (0, 0), (0, 0)))
        pos_bt = jnp.pad(pos_bt, ((0, BTp - BT), (0, 0), (0, 0)))

    kernel = functools.partial(_nsa_fused_kernel, n_heads=n_heads, d_head=d_head,
                               win_r=r)

    out = pl.pallas_call(
        kernel,
        out_shape=jax.ShapeDtypeStruct((BTp, S, J), out_dtype),
        grid_spec=pl.GridSpec(
            grid=(BTp // bt_tile,),
            in_specs=[
                pl.BlockSpec((bt_tile, S, 3 * J), lambda i: (i, 0, 0)),
                pl.BlockSpec((bt_tile, S, C), lambda i: (i, 0, 0)),
                pl.BlockSpec((C, J), lambda i: (0, 0)),          # resident constants
                pl.BlockSpec((J, J), lambda i: (0, 0)),
                pl.BlockSpec((S, 2), lambda i: (0, 0)),
                pl.BlockSpec((2, S), lambda i: (0, 0)),
                pl.BlockSpec((1, J), lambda i: (0, 0)),
            ],
            out_specs=pl.BlockSpec((bt_tile, S, J), lambda i: (i, 0, 0)),
        ),
        compiler_params=pltpu.CompilerParams(dimension_semantics=("parallel",)),
    )(qkv, pos_bt, fmat, rot, qcent, kcoord, sscale)
    return out[:BT]


# ----------------------------------------------------------------------------
# Full block forward
# ----------------------------------------------------------------------------

def neighborhood_self_attention_block(x, pos, cond, params, kernel_size, *, bt_tile=None):
    """x: (B, C, T, H, W); pos: (B, H, W, 2); cond: (B, cond_features)."""
    B, Cm, T, Hh, Ww = x.shape
    nh, dh = params["n_heads"], params["d_head"]
    S = Hh * Ww
    eps = 1e-6
    skip = x

    xr = jnp.transpose(x, (0, 2, 3, 4, 1)).reshape(B * T, S, Cm)     # (b t) s c
    condr = jnp.repeat(cond, T, axis=0)

    # TODO(synk): AdaRMSNorm cond-linear left to XLA (dense GEMM + rsqrt).
    ada = condr @ params["w_map"].T + 1.0
    mean_sq = jnp.mean(xr.astype(jnp.float32) ** 2, axis=-1, keepdims=True)
    xn = xr * (ada[:, None, :] * lax.rsqrt(mean_sq + eps))

    # TODO(synk): qkv projection left to XLA (dense GEMM).  Its natural
    # (BT, S, 3*nh*dh) layout is consumed directly by the kernel (no to_heads
    # transposes / HBM round trips).
    qkv = xn @ params["w_qkv"].T

    pos_bt = jnp.repeat(pos.reshape(B, S, pos.shape[-1]), T, axis=0)  # tiny (C lanes)

    attn = _nsa_attention(qkv, pos_bt, params["freqs"], params["scale"],
                          Hh, Ww, kernel_size, nh, dh,
                          out_dtype=xr.dtype, bt_tile=bt_tile)        # (BT, S, nh*dh)

    # TODO(synk): dropout is identity at p=0 (eval); out_proj left to XLA.
    out = attn @ params["w_out"].T
    out = out.reshape(B, T, Hh, Ww, Cm).transpose(0, 4, 1, 2, 3)
    return out + skip


# ----------------------------------------------------------------------------
# Pure-JAX reference (mirrors the PyTorch module op-for-op)
# ----------------------------------------------------------------------------

def _reference_axial_rope(pos, freqs):
    C = pos.shape[-1]
    f = freqs.astype(pos.dtype)
    return jnp.concatenate([pos[..., None, c:c + 1] * f for c in range(C)], axis=-1)


def _neighborhood_additive_mask(H, W, kernel_size):
    assert kernel_size % 2 == 1 and kernel_size <= min(H, W)
    r = kernel_size // 2
    ii, jj = np.arange(H), np.arange(W)
    ci = np.clip(ii, r, H - 1 - r)
    cj = np.clip(jj, r, W - 1 - r)
    row_ok = np.abs(ii[None, :] - ci[:, None]) <= r
    col_ok = np.abs(jj[None, :] - cj[:, None]) <= r
    ok = (row_ok[:, None, :, None] & col_ok[None, :, None, :]).reshape(H * W, H * W)
    return jnp.asarray(np.where(ok, 0.0, -1e9), dtype=jnp.float32)


def _reference_block(x, pos, cond, params, kernel_size):
    B, Cm, T, Hh, Ww = x.shape
    nh, dh = params["n_heads"], params["d_head"]
    eps = 1e-6
    skip = x
    xr = jnp.transpose(x, (0, 2, 3, 4, 1)).reshape(B * T, Hh, Ww, Cm)
    condr = jnp.repeat(cond, T, axis=0)

    ada = condr @ params["w_map"].T + 1.0
    mean_sq = jnp.mean(xr.astype(jnp.float32) ** 2, axis=-1, keepdims=True)
    xn = xr * (ada[:, None, None, :] * jax.lax.rsqrt(mean_sq + eps))

    qkv = (xn @ params["w_qkv"].T).reshape(B * T, Hh, Ww, 3, nh, dh)
    q, k, v = qkv[..., 0, :, :], qkv[..., 1, :, :], qkv[..., 2, :, :]

    scale = params["scale"].astype(jnp.float32)
    q = q * (jnp.sqrt(scale)[:, None] *
             jax.lax.rsqrt(jnp.sum(q ** 2, axis=-1, keepdims=True) + 1e-6))
    k = k * (jnp.sqrt(scale)[:, None] *
             jax.lax.rsqrt(jnp.sum(k ** 2, axis=-1, keepdims=True) + 1e-6))

    theta = jnp.repeat(_reference_axial_rope(pos, params["freqs"]), T, axis=0)
    d4 = theta.shape[-1]
    cos, sin = jnp.cos(theta), jnp.sin(theta)

    def rope(t):
        t1, t2, t3 = t[..., :d4], t[..., d4:2 * d4], t[..., 2 * d4:]
        return jnp.concatenate([t1 * cos - t2 * sin, t2 * cos + t1 * sin, t3], axis=-1)

    q, k = rope(q), rope(k)

    S = Hh * Ww
    qf = q.reshape(B * T, S, nh, dh).transpose(0, 2, 1, 3)
    kf = k.reshape(B * T, S, nh, dh).transpose(0, 2, 1, 3)
    vf = v.reshape(B * T, S, nh, dh).transpose(0, 2, 1, 3)
    mask = _neighborhood_additive_mask(Hh, Ww, kernel_size)
    s = jnp.einsum("bhqd,bhkd->bhqk", qf, kf,
                   precision=jax.lax.Precision.HIGHEST) + mask
    m = jnp.max(s, axis=-1, keepdims=True)
    e = jnp.exp(s - m)
    p = e / jnp.sum(e, axis=-1, keepdims=True)
    o = jnp.einsum("bhqk,bhkd->bhqd", p, vf, precision=jax.lax.Precision.HIGHEST)
    o = o.transpose(0, 2, 1, 3).reshape(B * T, Hh, Ww, nh * dh)

    out = o @ params["w_out"].T
    out = out.reshape(B, T, Hh, Ww, Cm).transpose(0, 4, 1, 2, 3)
    return out + skip


if __name__ == "__main__":
    key = jax.random.PRNGKey(0)
    ks = jax.random.split(key, 12)

    def make_params(d_model, d_head, cond_features, k0, k1, k2):
        n_heads = d_model // d_head
        return {
            "n_heads": n_heads,
            "d_head": d_head,
            # NOTE: PyTorch zero-inits w_map / w_out; random values exercise the math.
            "w_map": 0.1 * jax.random.normal(k0, (d_model, cond_features), jnp.float32),
            "w_qkv": jax.random.normal(k1, (3 * d_model, d_model), jnp.float32) / math.sqrt(d_model),
            "w_out": jax.random.normal(k2, (d_model, d_model), jnp.float32) / math.sqrt(d_model),
            "scale": jnp.full((n_heads,), 10.0, jnp.float32),
            "freqs": make_freqs(d_head // 2, n_heads),
        }

    def make_pos(B, Hh, Ww):
        ys = jnp.linspace(-1.0, 1.0, Hh)
        xs = jnp.linspace(-1.0, 1.0, Ww)
        p = jnp.stack(jnp.meshgrid(ys, xs, indexing="ij"), axis=-1)
        return jnp.broadcast_to(p[None], (B, Hh, Ww, 2))

    # --- config 1: B=2, T=2, 8x8, d_model=32, d_head=16, kernel_size=3 -------
    B, T, Hh, Ww = 2, 2, 8, 8
    d_model, d_head, cond_features, kernel_size = 32, 16, 8, 3
    params = make_params(d_model, d_head, cond_features, ks[0], ks[1], ks[2])
    x = jax.random.normal(ks[3], (B, d_model, T, Hh, Ww), jnp.float32)
    cond = jax.random.normal(ks[4], (B, cond_features), jnp.float32)
    pos = make_pos(B, Hh, Ww)

    ref = _reference_block(x, pos, cond, params, kernel_size)
    for tile in (2, None):            # explicit multi-step grid, then auto tiling
        out = jax.block_until_ready(
            neighborhood_self_attention_block(x, pos, cond, params, kernel_size,
                                              bt_tile=tile))
        assert out.shape == x.shape, out.shape
        err = float(jnp.max(jnp.abs(out - ref)))
        assert jnp.allclose(out, ref, atol=5e-3, rtol=5e-3), (tile, err)

    # --- config 2: ragged (b*t) tiling (padding path), 4 heads, kernel_size=5 -
    B, T, Hh, Ww = 3, 1, 8, 8
    d_model, d_head, cond_features, kernel_size = 32, 8, 8, 5
    params = make_params(d_model, d_head, cond_features, ks[5], ks[6], ks[7])
    x = jax.random.normal(ks[8], (B, d_model, T, Hh, Ww), jnp.float32)
    cond = jax.random.normal(ks[9], (B, cond_features), jnp.float32)
    pos = make_pos(B, Hh, Ww)

    ref = _reference_block(x, pos, cond, params, kernel_size)
    out = jax.block_until_ready(
        neighborhood_self_attention_block(x, pos, cond, params, kernel_size, bt_tile=2))
    assert out.shape == x.shape, out.shape
    err = float(jnp.max(jnp.abs(out - ref)))
    assert jnp.allclose(out, ref, atol=5e-3, rtol=5e-3), err

    print("KERNEL_OK")
</pallas_src>

<mosaic_0001>
module attributes {stable_mosaic.version = 11 : i64} {
  func.func @_nsa_fused_kernel(%arg0: i32, %arg1: memref<2x64x96xf32, #tpu.memory_space<vmem>>, %arg2: memref<2x64x2xf32, #tpu.memory_space<vmem>>, %arg3: memref<2x32xf32, #tpu.memory_space<vmem>>, %arg4: memref<32x32xf32, #tpu.memory_space<vmem>>, %arg5: memref<64x2xi32, #tpu.memory_space<vmem>>, %arg6: memref<2x64xi32, #tpu.memory_space<vmem>>, %arg7: memref<1x32xf32, #tpu.memory_space<vmem>>, %arg8: memref<2x64x32xf32, #tpu.memory_space<vmem>>) attributes {dimension_semantics = [#tpu.dimension_semantics<parallel>], iteration_bounds = array<i64: 2>, scalar_prefetch = 0 : i64, scratch_operands = 0 : i64, tpu.core_type = #tpu.core_type<tc>, window_params = [{transform_indices = @transform_0, window_bounds = array<i64: 2, 64, 96>}, {transform_indices = @transform_1, window_bounds = array<i64: 2, 64, 2>}, {pipeline_mode = #tpu.pipeline_mode<synchronous>, transform_indices = @transform_2, window_bounds = array<i64: 2, 32>}, {pipeline_mode = #tpu.pipeline_mode<synchronous>, transform_indices = @transform_3, window_bounds = array<i64: 32, 32>}, {pipeline_mode = #tpu.pipeline_mode<synchronous>, transform_indices = @transform_4, window_bounds = array<i64: 64, 2>}, {pipeline_mode = #tpu.pipeline_mode<synchronous>, transform_indices = @transform_5, window_bounds = array<i64: 2, 64>}, {pipeline_mode = #tpu.pipeline_mode<synchronous>, transform_indices = @transform_6, window_bounds = array<i64: 1, 32>}, {transform_indices = @transform_7, window_bounds = array<i64: 2, 64, 32>}]} {
    %c0 = arith.constant 0 : index
    %c0_0 = arith.constant 0 : index
    %c0_1 = arith.constant 0 : index
    %0 = vector.load %arg1[%c0, %c0_0, %c0_1] : memref<2x64x96xf32, #tpu.memory_space<vmem>>, vector<2x64x96xf32>
    %1 = vector.extract_strided_slice %0 {offsets = [0, 0, 0], sizes = [2, 64, 32], strides = [1, 1, 1]} : vector<2x64x96xf32> to vector<2x64x32xf32>
    %2 = vector.extract_strided_slice %0 {offsets = [0, 0, 32], sizes = [2, 64, 32], strides = [1, 1, 1]} : vector<2x64x96xf32> to vector<2x64x32xf32>
    %3 = vector.extract_strided_slice %0 {offsets = [0, 0, 64], sizes = [2, 64, 32], strides = [1, 1, 1]} : vector<2x64x96xf32> to vector<2x64x32xf32>
    %c0_2 = arith.constant 0 : index
    %c0_3 = arith.constant 0 : index
    %c0_4 = arith.constant 0 : index
    %4 = vector.load %arg2[%c0_2, %c0_3, %c0_4] : memref<2x64x2xf32, #tpu.memory_space<vmem>>, vector<2x64x2xf32>
    %c0_5 = arith.constant 0 : index
    %c0_6 = arith.constant 0 : index
    %5 = vector.load %arg3[%c0_5, %c0_6] : memref<2x32xf32, #tpu.memory_space<vmem>>, vector<2x32xf32>
    %6 = vector.extract_strided_slice %4 {offsets = [0, 0, 0], sizes = [2, 64, 1], strides = [1, 1, 1]} : vector<2x64x2xf32> to vector<2x64x1xf32>
    %7 = vector.extract_strided_slice %5 {offsets = [0, 0], sizes = [1, 32], strides = [1, 1]} : vector<2x32xf32> to vector<1x32xf32>
    %8 = vector.shape_cast %7 : vector<1x32xf32> to vector<1x1x32xf32>
    %9 = vector.broadcast %6 : vector<2x64x1xf32> to vector<2x64x32xf32>
    %10 = vector.broadcast %8 : vector<1x1x32xf32> to vector<2x64x32xf32>
    %11 = arith.mulf %9, %10 : vector<2x64x32xf32>
    %12 = vector.extract_strided_slice %4 {offsets = [0, 0, 1], sizes = [2, 64, 1], strides = [1, 1, 1]} : vector<2x64x2xf32> to vector<2x64x1xf32>
    %13 = vector.extract_strided_slice %5 {offsets = [1, 0], sizes = [1, 32], strides = [1, 1]} : vector<2x32xf32> to vector<1x32xf32>
    %14 = vector.shape_cast %13 : vector<1x32xf32> to vector<1x1x32xf32>
    %15 = vector.broadcast %12 : vector<2x64x1xf32> to vector<2x64x32xf32>
    %16 = vector.broadcast %14 : vector<1x1x32xf32> to vector<2x64x32xf32>
    %17 = arith.mulf %15, %16 : vector<2x64x32xf32>
    %18 = arith.addf %11, %17 : vector<2x64x32xf32>
    %19 = math.cos %18 : vector<2x64x32xf32>
    %20 = math.sin %18 : vector<2x64x32xf32>
    %c0_7 = arith.constant 0 : index
    %c0_8 = arith.constant 0 : index
    %21 = vector.load %arg4[%c0_7, %c0_8] : memref<32x32xf32, #tpu.memory_space<vmem>>, vector<32x32xf32>
    %22 = vector.shape_cast %1 : vector<2x64x32xf32> to vector<128x32xf32>
    %cst = arith.constant dense<0.000000e+00> : vector<128x32xf32>
    %23 = tpu.matmul %22, %21, %cst {dimension_numbers = #tpu.dot_dimension_numbers<[1], [0], [0], [1], [0, 0, 1, 1], [], []>} : vector<128x32xf32>, vector<32x32xf32>, vector<128x32xf32> -> vector<128x32xf32>
    %24 = vector.shape_cast %23 : vector<128x32xf32> to vector<2x64x32xf32>
    %25 = arith.mulf %1, %19 : vector<2x64x32xf32>
    %26 = arith.mulf %24, %20 : vector<2x64x32xf32>
    %27 = arith.addf %25, %26 : vector<2x64x32xf32>
    %28 = vector.shape_cast %2 : vector<2x64x32xf32> to vector<128x32xf32>
    %cst_9 = arith.constant dense<0.000000e+00> : vector<128x32xf32>
    %29 = tpu.matmul %28, %21, %cst_9 {dimension_numbers = #tpu.dot_dimension_numbers<[1], [0], [0], [1], [0, 0, 1, 1], [], []>} : vector<128x32xf32>, vector<32x32xf32>, vector<128x32xf32> -> vector<128x32xf32>
    %30 = vector.shape_cast %29 : vector<128x32xf32> to vector<2x64x32xf32>
    %31 = arith.mulf %2, %19 : vector<2x64x32xf32>
    %32 = arith.mulf %30, %20 : vector<2x64x32xf32>
    %33 = arith.addf %31, %32 : vector<2x64x32xf32>
    %c0_10 = arith.constant 0 : index
    %c0_11 = arith.constant 0 : index
    %34 = vector.load %arg5[%c0_10, %c0_11] : memref<64x2xi32, #tpu.memory_space<vmem>>, vector<64x1xi32>
    %c0_12 = arith.constant 0 : index
    %c1 = arith.constant 1 : index
    %35 = vector.load %arg5[%c0_12, %c1] : memref<64x2xi32, #tpu.memory_space<vmem>>, vector<64x1xi32>
    %c0_13 = arith.constant 0 : index
    %c0_14 = arith.constant 0 : index
    %36 = vector.load %arg6[%c0_13, %c0_14] : memref<2x64xi32, #tpu.memory_space<vmem>>, vector<1x64xi32>
    %c1_15 = arith.constant 1 : index
    %c0_16 = arith.constant 0 : index
    %37 = vector.load %arg6[%c1_15, %c0_16] : memref<2x64xi32, #tpu.memory_space<vmem>>, vector<1x64xi32>
    %c1_i32 = arith.constant 1 : i32
    %38 = vector.broadcast %c1_i32 : i32 to vector<64x1xi32>
    %39 = arith.subi %34, %38 : vector<64x1xi32>
    %40 = vector.broadcast %36 : vector<1x64xi32> to vector<64x64xi32>
    %41 = vector.broadcast %39 : vector<64x1xi32> to vector<64x64xi32>
    %42 = arith.cmpi sge, %40, %41 : vector<64x64xi32>
    %c1_i32_17 = arith.constant 1 : i32
    %43 = vector.broadcast %c1_i32_17 : i32 to vector<64x1xi32>
    %44 = arith.addi %34, %43 : vector<64x1xi32>
    %45 = vector.broadcast %36 : vector<1x64xi32> to vector<64x64xi32>
    %46 = vector.broadcast %44 : vector<64x1xi32> to vector<64x64xi32>
    %47 = arith.cmpi sle, %45, %46 : vector<64x64xi32>
    %48 = arith.andi %42, %47 : vector<64x64xi1>
    %c1_i32_18 = arith.constant 1 : i32
    %49 = vector.broadcast %c1_i32_18 : i32 to vector<64x1xi32>
    %50 = arith.subi %35, %49 : vector<64x1xi32>
    %51 = vector.broadcast %37 : vector<1x64xi32> to vector<64x64xi32>
    %52 = vector.broadcast %50 : vector<64x1xi32> to vector<64x64xi32>
    %53 = arith.cmpi sge, %51, %52 : vector<64x64xi32>
    %54 = arith.andi %48, %53 : vector<64x64xi1>
    %c1_i32_19 = arith.constant 1 : i32
    %55 = vector.broadcast %c1_i32_19 : i32 to vector<64x1xi32>
    %56 = arith.addi %35, %55 : vector<64x1xi32>
    %57 = vector.broadcast %37 : vector<1x64xi32> to vector<64x64xi32>
    %58 = vector.broadcast %56 : vector<64x1xi32> to vector<64x64xi32>
    %59 = arith.cmpi sle, %57, %58 : vector<64x64xi32>
    %60 = arith.andi %54, %59 : vector<64x64xi1>
    %cst_20 = arith.constant 0.000000e+00 : f32
    %cst_21 = arith.constant -1.000000e+09 : f32
    %61 = vector.broadcast %cst_20 : f32 to vector<64x64xf32>
    %62 = vector.broadcast %cst_21 : f32 to vector<64x64xf32>
    %63 = arith.select %60, %61, %62 : vector<64x64xi1>, vector<64x64xf32>
    %c0_22 = arith.constant 0 : index
    %c0_23 = arith.constant 0 : index
    %64 = vector.load %arg7[%c0_22, %c0_23] : memref<1x32xf32, #tpu.memory_space<vmem>>, vector<1x32xf32>
    %65 = vector.extract_strided_slice %27 {offsets = [0, 0, 0], sizes = [2, 64, 16], strides = [1, 1, 1]} : vector<2x64x32xf32> to vector<2x64x16xf32>
    %66 = vector.extract_strided_slice %33 {offsets = [0, 0, 0], sizes = [2, 64, 16], strides = [1, 1, 1]} : vector<2x64x32xf32> to vector<2x64x16xf32>
    %67 = vector.extract_strided_slice %3 {offsets = [0, 0, 0], sizes = [2, 64, 16], strides = [1, 1, 1]} : vector<2x64x32xf32> to vector<2x64x16xf32>
    %68 = vector.extract_strided_slice %64 {offsets = [0, 0], sizes = [1, 16], strides = [1, 1]} : vector<1x32xf32> to vector<1x16xf32>
    %69 = vector.shape_cast %68 : vector<1x16xf32> to vector<1x1x16xf32>
    %70 = arith.mulf %65, %65 : vector<2x64x16xf32>
    %cst_24 = arith.constant dense<0.000000e+00> : vector<2x64xf32>
    %71 = vector.multi_reduction <add>, %70, %cst_24 [2] : vector<2x64x16xf32> to vector<2x64xf32>
    %72 = vector.shape_cast %71 : vector<2x64xf32> to vector<2x64x1xf32>
    %cst_25 = arith.constant 9.99999997E-7 : f32
    %73 = vector.broadcast %cst_25 : f32 to vector<2x64x1xf32>
    %74 = arith.addf %72, %73 : vector<2x64x1xf32>
    %75 = math.rsqrt %74 : vector<2x64x1xf32>
    %76 = vector.broadcast %69 : vector<1x1x16xf32> to vector<2x64x16xf32>
    %77 = vector.broadcast %75 : vector<2x64x1xf32> to vector<2x64x16xf32>
    %78 = arith.mulf %76, %77 : vector<2x64x16xf32>
    %79 = arith.mulf %65, %78 : vector<2x64x16xf32>
    %80 = arith.mulf %66, %66 : vector<2x64x16xf32>
    %cst_26 = arith.constant dense<0.000000e+00> : vector<2x64xf32>
    %81 = vector.multi_reduction <add>, %80, %cst_26 [2] : vector<2x64x16xf32> to vector<2x64xf32>
    %82 = vector.shape_cast %81 : vector<2x64xf32> to vector<2x64x1xf32>
    %cst_27 = arith.constant 9.99999997E-7 : f32
    %83 = vector.broadcast %cst_27 : f32 to vector<2x64x1xf32>
    %84 = arith.addf %82, %83 : vector<2x64x1xf32>
    %85 = math.rsqrt %84 : vector<2x64x1xf32>
    %86 = vector.broadcast %69 : vector<1x1x16xf32> to vector<2x64x16xf32>
    %87 = vector.broadcast %85 : vector<2x64x1xf32> to vector<2x64x16xf32>
    %88 = arith.mulf %86, %87 : vector<2x64x16xf32>
    %89 = arith.mulf %66, %88 : vector<2x64x16xf32>
    "tpu.trace_start"() <{level = 10 : i32, message = "bqd,bkd->bqk"}> : () -> ()
    %cst_28 = arith.constant dense<0.000000e+00> : vector<2x64x64xf32>
    %90 = tpu.matmul %79, %89, %cst_28 {dimension_numbers = #tpu.dot_dimension_numbers<[2], [2], [1], [1], [0, 0, 0, 1, 1, 1], [0], [0]>} : vector<2x64x16xf32>, vector<2x64x16xf32>, vector<2x64x64xf32> -> vector<2x64x64xf32>
    "tpu.trace_stop"() : () -> ()
    %91 = vector.shape_cast %63 : vector<64x64xf32> to vector<1x64x64xf32>
    %92 = vector.broadcast %91 : vector<1x64x64xf32> to vector<2x64x64xf32>
    %93 = arith.addf %90, %92 : vector<2x64x64xf32>
    %cst_29 = arith.constant dense<0xFF800000> : vector<2x64xf32>
    %94 = vector.multi_reduction <maximumf>, %93, %cst_29 [2] : vector<2x64x64xf32> to vector<2x64xf32>
    %95 = vector.shape_cast %94 : vector<2x64xf32> to vector<2x64x1xf32>
    %96 = vector.broadcast %95 : vector<2x64x1xf32> to vector<2x64x64xf32>
    %97 = arith.subf %93, %96 : vector<2x64x64xf32>
    %98 = math.exp %97 : vector<2x64x64xf32>
    %cst_30 = arith.constant dense<0.000000e+00> : vector<2x64xf32>
    %99 = vector.multi_reduction <add>, %98, %cst_30 [2] : vector<2x64x64xf32> to vector<2x64xf32>
    %100 = vector.shape_cast %99 : vector<2x64xf32> to vector<2x64x1xf32>
    %101 = tpu.reciprocal %100 {approx = true} : vector<2x64x1xf32> -> vector<2x64x1xf32>
    %102 = vector.broadcast %101 : vector<2x64x1xf32> to vector<2x64x64xf32>
    %103 = arith.mulf %98, %102 : vector<2x64x64xf32>
    "tpu.trace_start"() <{level = 10 : i32, message = "bqk,bkd->bqd"}> : () -> ()
    %cst_31 = arith.constant dense<0.000000e+00> : vector<2x64x16xf32>
    %104 = tpu.matmul %103, %67, %cst_31 {dimension_numbers = #tpu.dot_dimension_numbers<[2], [1], [1], [2], [0, 0, 0, 1, 1, 2], [0], [0]>} : vector<2x64x64xf32>, vector<2x64x16xf32>, vector<2x64x16xf32> -> vector<2x64x16xf32>
    "tpu.trace_stop"() : () -> ()
    %c0_32 = arith.constant 0 : index
    %c0_33 = arith.constant 0 : index
    %c0_34 = arith.constant 0 : index
    %105 = vector.load %arg8[%c0_32, %c0_33, %c0_34] : memref<2x64x32xf32, #tpu.memory_space<vmem>>, vector<2x64x16xf32>
    tpu.vector_store %arg8[%c0_32, %c0_33, %c0_34], %104 {strides = array<i32>} : memref<2x64x32xf32, #tpu.memory_space<vmem>>, vector<2x64x16xf32>,
    %106 = vector.extract_strided_slice %27 {offsets = [0, 0, 16], sizes = [2, 64, 16], strides = [1, 1, 1]} : vector<2x64x32xf32> to vector<2x64x16xf32>
    %107 = vector.extract_strided_slice %33 {offsets = [0, 0, 16], sizes = [2, 64, 16], strides = [1, 1, 1]} : vector<2x64x32xf32> to vector<2x64x16xf32>
    %108 = vector.extract_strided_slice %3 {offsets = [0, 0, 16], sizes = [2, 64, 16], strides = [1, 1, 1]} : vector<2x64x32xf32> to vector<2x64x16xf32>
    %109 = vector.extract_strided_slice %64 {offsets = [0, 16], sizes = [1, 16], strides = [1, 1]} : vector<1x32xf32> to vector<1x16xf32>
    %110 = vector.shape_cast %109 : vector<1x16xf32> to vector<1x1x16xf32>
    %111 = arith.mulf %106, %106 : vector<2x64x16xf32>
    %cst_35 = arith.constant dense<0.000000e+00> : vector<2x64xf32>
    %112 = vector.multi_reduction <add>, %111, %cst_35 [2] : vector<2x64x16xf32> to vector<2x64xf32>
    %113 = vector.shape_cast %112 : vector<2x64xf32> to vector<2x64x1xf32>
    %cst_36 = arith.constant 9.99999997E-7 : f32
    %114 = vector.broadcast %cst_36 : f32 to vector<2x64x1xf32>
    %115 = arith.addf %113, %114 : vector<2x64x1xf32>
    %116 = math.rsqrt %115 : vector<2x64x1xf32>
    %117 = vector.broadcast %110 : vector<1x1x16xf32> to vector<2x64x16xf32>
    %118 = vector.broadcast %116 : vector<2x64x1xf32> to vector<2x64x16xf32>
    %119 = arith.mulf %117, %118 : vector<2x64x16xf32>
    %120 = arith.mulf %106, %119 : vector<2x64x16xf32>
    %121 = arith.mulf %107, %107 : vector<2x64x16xf32>
    %cst_37 = arith.constant dense<0.000000e+00> : vector<2x64xf32>
    %122 = vector.multi_reduction <add>, %121, %cst_37 [2] : vector<2x64x16xf32> to vector<2x64xf32>
    %123 = vector.shape_cast %122 : vector<2x64xf32> to vector<2x64x1xf32>
    %cst_38 = arith.constant 9.99999997E-7 : f32
    %124 = vector.broadcast %cst_38 : f32 to vector<2x64x1xf32>
    %125 = arith.addf %123, %124 : vector<2x64x1xf32>
    %126 = math.rsqrt %125 : vector<2x64x1xf32>
    %127 = vector.broadcast %110 : vector<1x1x16xf32> to vector<2x64x16xf32>
    %128 = vector.broadcast %126 : vector<2x64x1xf32> to vector<2x64x16xf32>
    %129 = arith.mulf %127, %128 : vector<2x64x16xf32>
    %130 = arith.mulf %107, %129 : vector<2x64x16xf32>
    "tpu.trace_start"() <{level = 10 : i32, message = "bqd,bkd->bqk"}> : () -> ()
    %cst_39 = arith.constant dense<0.000000e+00> : vector<2x64x64xf32>
    %131 = tpu.matmul %120, %130, %cst_39 {dimension_numbers = #tpu.dot_dimension_numbers<[2], [2], [1], [1], [0, 0, 0, 1, 1, 1], [0], [0]>} : vector<2x64x16xf32>, vector<2x64x16xf32>, vector<2x64x64xf32> -> vector<2x64x64xf32>
    "tpu.trace_stop"() : () -> ()
    %132 = vector.shape_cast %63 : vector<64x64xf32> to vector<1x64x64xf32>
    %133 = vector.broadcast %132 : vector<1x64x64xf32> to vector<2x64x64xf32>
    %134 = arith.addf %131, %133 : vector<2x64x64xf32>
    %cst_40 = arith.constant dense<0xFF800000> : vector<2x64xf32>
    %135 = vector.multi_reduction <maximumf>, %134, %cst_40 [2] : vector<2x64x64xf32> to vector<2x64xf32>
    %136 = vector.shape_cast %135 : vector<2x64xf32> to vector<2x64x1xf32>
    %137 = vector.broadcast %136 : vector<2x64x1xf32> to vector<2x64x64xf32>
    %138 = arith.subf %134, %137 : vector<2x64x64xf32>
    %139 = math.exp %138 : vector<2x64x64xf32>
    %cst_41 = arith.constant dense<0.000000e+00> : vector<2x64xf32>
    %140 = vector.multi_reduction <add>, %139, %cst_41 [2] : vector<2x64x64xf32> to vector<2x64xf32>
    %141 = vector.shape_cast %140 : vector<2x64xf32> to vector<2x64x1xf32>
    %142 = tpu.reciprocal %141 {approx = true} : vector<2x64x1xf32> -> vector<2x64x1xf32>
    %143 = vector.broadcast %142 : vector<2x64x1xf32> to vector<2x64x64xf32>
    %144 = arith.mulf %139, %143 : vector<2x64x64xf32>
    "tpu.trace_start"() <{level = 10 : i32, message = "bqk,bkd->bqd"}> : () -> ()
    %cst_42 = arith.constant dense<0.000000e+00> : vector<2x64x16xf32>
    %145 = tpu.matmul %144, %108, %cst_42 {dimension_numbers = #tpu.dot_dimension_numbers<[2], [1], [1], [2], [0, 0, 0, 1, 1, 2], [0], [0]>} : vector<2x64x64xf32>, vector<2x64x16xf32>, vector<2x64x16xf32> -> vector<2x64x16xf32>
    "tpu.trace_stop"() : () -> ()
    %c0_43 = arith.constant 0 : index
    %c0_44 = arith.constant 0 : index
    %c16 = arith.constant 16 : index
    %146 = vector.load %arg8[%c0_43, %c0_44, %c16] : memref<2x64x32xf32, #tpu.memory_space<vmem>>, vector<2x64x16xf32>
    tpu.vector_store %arg8[%c0_43, %c0_44, %c16], %145 {strides = array<i32>} : memref<2x64x32xf32, #tpu.memory_space<vmem>>, vector<2x64x16xf32>,
    return
  }
  func.func @transform_0(%arg0: i32) -> (i32, i32, i32) {
    %c0_i32 = arith.constant 0 : i32
    %c0_i32_0 = arith.constant 0 : i32
    %c0_i32_1 = arith.constant 0 : i32
    return %arg0, %c0_i32, %c0_i32_0 : i32, i32, i32
  }
  func.func @transform_1(%arg0: i32) -> (i32, i32, i32) {
    %c0_i32 = arith.constant 0 : i32
    %c0_i32_0 = arith.constant 0 : i32
    %c0_i32_1 = arith.constant 0 : i32
    return %arg0, %c0_i32, %c0_i32_0 : i32, i32, i32
  }
  func.func @transform_2(%arg0: i32) -> (i32, i32) {
    %c0_i32 = arith.constant 0 : i32
    %c0_i32_0 = arith.constant 0 : i32
    %c0_i32_1 = arith.constant 0 : i32
    return %c0_i32, %c0_i32_0 : i32, i32
  }
  func.func @transform_3(%arg0: i32) -> (i32, i32) {
    %c0_i32 = arith.constant 0 : i32
    %c0_i32_0 = arith.constant 0 : i32
    %c0_i32_1 = arith.constant 0 : i32
    return %c0_i32, %c0_i32_0 : i32, i32
  }
  func.func @transform_4(%arg0: i32) -> (i32, i32) {
    %c0_i32 = arith.constant 0 : i32
    %c0_i32_0 = arith.constant 0 : i32
    %c0_i32_1 = arith.constant 0 : i32
    return %c0_i32, %c0_i32_0 : i32, i32
  }
  func.func @transform_5(%arg0: i32) -> (i32, i32) {
    %c0_i32 = arith.constant 0 : i32
    %c0_i32_0 = arith.constant 0 : i32
    %c0_i32_1 = arith.constant 0 : i32
    return %c0_i32, %c0_i32_0 : i32, i32
  }
  func.func @transform_6(%arg0: i32) -> (i32, i32) {
    %c0_i32 = arith.constant 0 : i32
    %c0_i32_0 = arith.constant 0 : i32
    %c0_i32_1 = arith.constant 0 : i32
    return %c0_i32, %c0_i32_0 : i32, i32
  }
  func.func @transform_7(%arg0: i32) -> (i32, i32, i32) {
    %c0_i32 = arith.constant 0 : i32
    %c0_i32_0 = arith.constant 0 : i32
    %c0_i32_1 = arith.constant 0 : i32
    return %arg0, %c0_i32, %c0_i32_0 : i32, i32, i32
  }
}

</mosaic_0001>

<bundles_post_ra>
// kernel: tpu_custom_call.1
= control target key start
LH: loop header
LB: loop body
LE: loop exit
PB: predicated region body
PF: predicated region fallthrough
CT: control target
= control target key end

     0   :  { %s9581_s24 = smov 0   ;;  %s15182_s0 = inlined_call_operand.vmem [shape: f32[4,64,96], index: 0, kind: input, shape index: {}]   ;;  %s15183_s1 = inlined_call_operand.vmem [shape: f32[4,64,2], index: 1, kind: input, shape index: {}]   ;;  %s15184_s2 = inlined_call_operand.vmem [shape: f32[2,32], index: 2, kind: input, shape index: {}]   ;;  %s15185_s3 = inlined_call_operand.vmem [shape: f32[32,32], index: 3, kind: input, shape index: {}]   ;;  %s15186_s4 = inlined_call_operand.vmem [shape: s32[64,2], index: 4, kind: input, shape index: {}]   ;;  %s15187_s5 = inlined_call_operand.vmem [shape: s32[2,64], index: 5, kind: input, shape index: {}]   ;;  %s15188_s6 = inlined_call_operand.vmem [shape: f32[1,32], index: 6, kind: input, shape index: {}]   ;;  %s15189_s7 = inlined_call_operand.vmem [shape: f32[4,64,32], index: 7, kind: output, shape index: {}]  }
   0x1 LB: > { %s8835_s25 = sadd.s32 4294967295, %s9523_s24   ;;  %p8839_p0 = scmp.ge.s32.totalorder %s9523_s24, 1  ;;  %s9523_s24 = sphi %s9581_s24, %s17_s24  }
   0x2   : > { %p251_p1 = scmp.lt.s32.totalorder %s9523_s24, 3 }
   0x4   : > { %p252_p2 = pnand %p8839_p0, %p251_p1 }
   0x6   : > { %255 = sbr.rel (%p252_p2) target bundleno = 3254 (0xcb6), region = 48 }
   0xb   : > { %s8840_s26 = sshll.u32 %s8835_s25, 1  ;;  %v5486_v0 = vld [vmem:[%s15185_s3 + $0x18] sm:$0xff]  ;;  %v15192_v1 = vmov 0   ;;  %v5485_v2 = vld [vmem:[%s15185_s3 + $0x10] sm:$0xff]  ;;  %v5484_v3 = vld [vmem:[%s15185_s3 + $0x8] sm:$0xff]  ;;  %vm5487_vm0 = vcmask 261120  }
   0xc   : > { %9128 = vset.pattern.permute.xlu2 %v15192_v1  ;;  %9127 = vset.pattern.permute.xlu1 %v15192_v1  ;;  %p292_p3 = scmp.lt.s32.totalorder %s8840_s26, 3  ;;  %v5483_v4 = vld [vmem:[%s15185_s3] sm:$0xff]  ;;  %v15190_v26 = vmov 1   ;;  %s9527_s19 = smov 96   ;;  %v9701_v39 = vld [vmem:[%s15186_s4 + $0x28] sm:$0xff]  ;;  %v5957_v46 = vld [vmem:[%s15186_s4 + $0x18] sm:$0xff] }
   0xd   : > { %9126 = vset.pattern.permute.xlu0 %v15192_v1  ;;  %5548 = vmatpush.msra.mxu0 %v5486_v0  ;;  %v5954_v36 = vld [vmem:[%s15186_s4] sm:$0xff]  ;;  %v9705_v40 = vadd.s32 4294967295, %v9701_v39  ;;  %v9730_v49 = vadd.s32 1, %v5957_v46  ;;  %v5960_v51 = vld [vmem:[%s15186_s4 + $0x30] sm:$0xff]  ;;  %v5955_v55 = vld [vmem:[%s15186_s4 + $0x8] sm:$0xff]  ;;  %s9534_s21 = smov 32  }
   0xe   : > { %s15914_s26 = smov (!%p292_p3, %s8840_s26), 3  ;;  %5725 = vmatpush.msra.mxu1 %v5486_v0  ;;  %v9693_v38 = vadd.s32 4294967295, %v5954_v36  ;;  %v9714_v43 = vadd.s32 1, %v5954_v36  ;;  %v5956_v52 = vld [vmem:[%s15186_s4 + $0x10] sm:$0xff]  ;;  %v9747_v56 = vadd.s32 1, %v5960_v51  ;;  %v9751_v58 = vadd.s32 4294967295, %v5955_v55 }
   0xf   : > { %5549 = vmatpush.msra.mxu0 %v5485_v2  ;;  %s9601_s10 = sshll.u32 %s15914_s26, 6  ;;  %15426 = vst [vmem:[#allocation2_spill] sm:$0xff] %v9705_v40  ;;  %v9749_v57 = vadd.s32 4294967295, %v5956_v52  ;;  %v5958_v59 = vld [vmem:[%s15186_s4 + $0x20] sm:$0xff]  ;;  %v9767_v0 = vadd.s32 4294967295, %v5957_v46  ;;  %s9535_s27 = smov 80  }
  0x10   : > { %5726 = vmatpush.msra.mxu1 %v5485_v2  ;;  %s9607_s13 = scalar_lea.vmem %s15183_s1, %s9601_s10  ;;  %s9621_s18 = scalar_lea.vmem %s15182_s0, %s9601_s10  ;;  %15427 = vst [vmem:[#allocation3_spill] sm:$0xff] %v9714_v43  ;;  %v9765_v63 = vadd.s32 4294967295, %v5958_v59  ;;  %v5961_v2 = vld [vmem:[%s15186_s4 + $0x38] sm:$0xff] }
  0x11   : > { %5550 = vmatpush.msra.mxu0 %v5484_v3  ;;  %v332_v5 = vld [vmem:[%s9607_s13 + $0x20] sm:$0xff]  ;;  %v9614_v6 = vld [vmem:[%s9607_s13 + $0x10] sm:$0xff]  ;;  %v333_v9 = vld [vmem:[%s9607_s13 + $0x28] sm:$0xff]  ;;  %15428 = vst [vmem:[#allocation4_spill] sm:$0xff] %v9730_v49  ;;  %s9536_s30 = smov 112   ;;  %s9538_s16 = smov 64  }
  0x12   : > { %v328_v7 = vld [vmem:[%s9607_s13] sm:$0xff]  ;;  %5727 = vmatpush.msra.mxu1 %v5484_v3  ;;  %367 = vperm.xlu2 %9128, %v332_v5   ;;  %v331_v10 = vld [vmem:[%s9607_s13 + $0x18] sm:$0xff]  ;;  %v329_v11 = vld [vmem:[%s9607_s13 + $0x8] sm:$0xff]  ;;  %15429 = vst [vmem:[#allocation5_spill] sm:$0xff] %v9747_v56 }
  0x13   : > { %357 = vperm.xlu1 %9127, %v9614_v6   ;;  %347 = vperm.xlu0 %9126, %v328_v7   ;;  %v312_v8 = vld [vmem:[%s9621_s18] sm:$0xff]  ;;  %v9630_v12 = vld [vmem:[%s9621_s18 + $0x8] sm:$0xff]  ;;  %v9636_v14 = vld [vmem:[%s9607_s13 + $0x38] sm:$0xff]  ;;  %15430 = vst [vmem:[#allocation6_spill] sm:$0xff] %v9749_v57 }
  0x14   : > { %5551 = vmatpush.msra.mxu0 %v5483_v4  ;;  %5728 = vmatpush.msra.mxu1 %v5483_v4  ;;  %v336_v13 = vld [vmem:[%s9607_s13 + $0x40] sm:$0xff]  ;;  %v334_v15 = vld [vmem:[%s9607_s13 + $0x30] sm:$0xff]  ;;  %v339_v17 = vld [vmem:[%s9607_s13 + $0x58] sm:$0xff]  ;;  %15431 = vst [vmem:[#allocation7_spill] sm:$0xff] %v9751_v58 }
  0x15   : > { %8945 = vmatmul.msk.f32.vlgmr.msra.gmra.mxu0 %vm5487_vm0, %v312_v8  ;;  %v314_v16 = vld [vmem:[%s9621_s18 + $0x10] sm:$0xff]  ;;  %v337_v19 = vld [vmem:[%s9607_s13 + $0x48] sm:$0xff]  ;;  %v315_v20 = vld [vmem:[%s9621_s18 + $0x18] sm:$0xff]  ;;  %15432 = vst [vmem:[#allocation8_spill] sm:$0xff] %v9765_v63 }
  0x16   : > { %v9644_v18 = vld [vmem:[%s9607_s13 + $0x50] sm:$0xff]  ;;  %v9652_v22 = vld [vmem:[%s9607_s13 + $0x68] sm:$0xff]  ;;  %v340_v23 = vld [vmem:[%s9607_s13 + $0x60] sm:$0xff]  ;;  %15433 = vst [vmem:[#allocation9_spill] sm:$0xff] %v9767_v0 }
  0x17   : > { %v342_v21 = vld [vmem:[%s9607_s13 + $0x70] sm:$0xff]  ;;  %v316_v24 = vld [vmem:[%s9621_s18 + $0x20] sm:$0xff]  ;;  %v343_v25 = vld [vmem:[%s9607_s13 + $0x78] sm:$0xff] }
  0x18   : > { %v317_v27 = vld [vmem:[%s9621_s18 + $0x28] sm:$0xff]  ;;  %v318_v28 = vld [vmem:[%s9621_s18 + $0x30] sm:$0xff]  ;;  %v319_v29 = vld [vmem:[%s9621_s18 + $0x38] sm:$0xff] }
  0x19   : > { %v320_v30 = vld [vmem:[%s9621_s18 + $0x40] sm:$0xff]  ;;  %v321_v31 = vld [vmem:[%s9621_s18 + $0x48] sm:$0xff]  ;;  %v322_v33 = vld [vmem:[%s9621_s18 + $0x50] sm:$0xff] }
  0x1a   : > { %372 = vperm.xlu2 %9128, %v333_v9   ;;  %v324_v32 = vld [vmem:[%s9621_s18 + $0x60] sm:$0xff]  ;;  %v327_v34 = vld [vmem:[%s9621_s18 + $0x78] sm:$0xff]  ;;  %v325_v42 = vld [vmem:[%s9621_s18 + $0x68] sm:$0xff] }
  0x1b   : > { %362 = vperm.xlu1 %9127, %v331_v10   ;;  %352 = vperm.xlu0 %9126, %v329_v11   ;;  %v323_v35 = vld [vmem:[%s9621_s18 + $0x58] sm:$0xff]  ;;  %v326_v48 = vld [vmem:[%s9621_s18 + $0x70] sm:$0xff]  ;;  %v344_v4 = vld [vmem:[%s15184_s2] sm:$0x3] }
  0x1d   : > { %8946 = vmatmul.msk.f32.gmra.mxu0 %vm5487_vm0, %v9630_v12 }
  0x22   : > { %387 = vperm.xlu2 %9128, %v336_v13  }
  0x23   : > { %382 = vperm.xlu1 %9127, %v9636_v14   ;;  %377 = vperm.xlu0 %9126, %v334_v15  }
  0x25   : > { %8947 = vmatmul.msk.f32.gmra.mxu0 %vm5487_vm0, %v314_v16 }
  0x2a   : > { %402 = vperm.xlu2 %9128, %v339_v17  }
  0x2b   : > { %397 = vperm.xlu1 %9127, %v9644_v18   ;;  %392 = vperm.xlu0 %9126, %v337_v19  }
  0x2d   : > { %8948 = vmatmul.msk.f32.gmra.mxu0 %vm5487_vm0, %v315_v20 }
  0x32   : > { %417 = vperm.xlu2 %9128, %v342_v21  }
  0x33   : > { %412 = vperm.xlu1 %9127, %v9652_v22   ;;  %407 = vperm.xlu0 %9126, %v340_v23  }
  0x35   : > { %8949 = vmatmul.msk.f32.gmra.mxu0 %vm5487_vm0, %v316_v24 }
  0x3a   : > { %9130 = vset.pattern.permute.xlu2 %v15190_v26 }
  0x3b   : > { %9129 = vset.pattern.permute.xlu1 %v15190_v26  ;;  %422 = vperm.xlu0 %9126, %v343_v25  }
  0x3c   : > { %447 = vperm.xlu2 %9130, %v329_v11   ;;  %443 = vperm.xlu1 %9129, %v328_v7   ;;  %v9783_v7 = vadd.s32 4294967295, %v5961_v2  ;;  %v15194_v2 = vmov 1326507024  }
  0x3d   : > { %8950 = vmatmul.msk.f32.gmra.mxu0 %vm5487_vm0, %v317_v27 }
  0x3e   : > { %15434 = vst [vmem:[#allocation10_spill] sm:$0xff] %v9783_v7 }
  0x43   : > { %5649 = vrot.lane.b32.xlu0 %v312_v8, %s9527_s19  ;;  %v9785_v8 = vperm.slane %v344_v4, 1 }
  0x44   : > { %459 = vperm.xlu2 %9130, %v332_v5   ;;  %455 = vperm.xlu1 %9129, %v331_v10  }
  0x45   : > { %8951 = vmatmul.msk.f32.gmra.mxu0 %vm5487_vm0, %v318_v28  ;;  %15435 = vst [vmem:[#allocation11_spill] sm:$0xff] %v9785_v8 }
  0x4b   : > { %5655 = vrot.lane.b32.xlu0 %v315_v20, %s9527_s19 }
  0x4c   : > { %467 = vperm.xlu2 %9130, %v334_v15   ;;  %463 = vperm.xlu1 %9129, %v333_v9   ;;  %v9787_v9 = vadd.s32 4294967295, %v5960_v51  ;;  %v9798_v15 = vadd.s32 1, %v5956_v52  ;;  %v15209_v52 = vmov 2131351028  }
  0x4d   : > { %8952 = vmatmul.msk.f32.gmra.mxu0 %vm5487_vm0, %v319_v29 }
  0x4e   : > { %15436 = vst [vmem:[#allocation12_spill] sm:$0xff] %v9787_v9 }
  0x4f   : > { %15437 = vst [vmem:[#allocation13_spill] sm:$0xff] %v9798_v15 }
  0x53   : > { %5661 = vrot.lane.b32.xlu0 %v318_v28, %s9527_s19 }
  0x54   : > { %479 = vperm.xlu2 %9130, %v337_v19   ;;  %475 = vperm.xlu1 %9129, %v336_v13  }
  0x55   : > { %8953 = vmatmul.msk.f32.gmra.mxu0 %vm5487_vm0, %v320_v30 }
  0x5b   : > { %5667 = vrot.lane.b32.xlu0 %v321_v31, %s9527_s19 }
  0x5c   : > { %491 = vperm.xlu2 %9130, %v340_v23   ;;  %487 = vperm.xlu1 %9129, %v339_v17  }
  0x5d   : > { %8954 = vmatmul.msk.f32.gmra.mxu0 %vm5487_vm0, %v321_v31 }
  0x63   : > { %5673 = vrot.lane.b32.xlu0 %v324_v32, %s9527_s19 }
  0x64   : > { %503 = vperm.xlu2 %9130, %v343_v25   ;;  %499 = vperm.xlu1 %9129, %v342_v21  }
  0x65   : > { %8955 = vmatmul.msk.f32.gmra.mxu0 %vm5487_vm0, %v322_v33 }
  0x6b   : > { %5679 = vrot.lane.b32.xlu0 %v327_v34, %s9527_s19 }
  0x6c   : > { %5653 = vrot.lane.b32.xlu2 %v314_v16, %s9527_s19  ;;  %5651 = vrot.lane.b32.xlu1 %v9630_v12, %s9527_s19  ;;  %v9691_v37 = vpop.permute.xlu2 %367 }
  0x6d   : > { %9132 = vset.pattern.permute.xlu2 %v15192_v1  ;;  %9131 = vset.pattern.permute.xlu1 %v15192_v1 }
  0x6e   : > { %8956 = vmatmul.msk.f32.gmra.mxu0 %vm5487_vm0, %v323_v35 }
  0x73   : > { %5974 = vperm.xlu0 %9126, %v9693_v38  }
  0x74   : > { %5659 = vrot.lane.b32.xlu2 %v317_v27, %s9527_s19  ;;  %5657 = vrot.lane.b32.xlu1 %v316_v24, %s9527_s19  ;;  %v9707_v41 = vpop.permute.xlu2 %372 }
  0x76   : > { %8957 = vmatmul.msk.f32.gmra.mxu0 %vm5487_vm0, %v324_v32 }
  0x7b   : > { %5989 = vperm.xlu0 %9126, %v9705_v40  }
  0x7c   : > { %5665 = vrot.lane.b32.xlu2 %v320_v30, %s9527_s19  ;;  %5663 = vrot.lane.b32.xlu1 %v319_v29, %s9527_s19  ;;  %v9716_v44 = vpop.permute.xlu2 %387 }
  0x7e   : > { %8958 = vmatmul.msk.f32.gmra.mxu0 %vm5487_vm0, %v325_v42 }
  0x83   : > { %6014 = vperm.xlu0 %9126, %v9714_v43  }
  0x84   : > { %5671 = vrot.lane.b32.xlu2 %v323_v35, %s9527_s19  ;;  %5669 = vrot.lane.b32.xlu1 %v322_v33, %s9527_s19  ;;  %v9741_v53 = vpop.permute.xlu2 %402  ;;  %v15196_v35 = vmov 920167782  }
  0x85   : > { %v9721_v45 = vpop.permute.xlu1 %357  ;;  %v9726_v47 = vpop.permute.xlu0 %347 }
  0x86   : > { %8959 = vmatmul.msk.f32.gmra.mxu0 %vm5487_vm0, %v326_v48 }
  0x8b   : > { %6023 = vperm.xlu0 %9126, %v9730_v49   ;;  %v15445_v49 = vmov 1326507024  }
  0x8c   : > { %5677 = vrot.lane.b32.xlu2 %v326_v48, %s9527_s19  ;;  %5675 = vrot.lane.b32.xlu1 %v325_v42, %s9527_s19  ;;  %v9763_v62 = vpop.permute.xlu2 %417 }
  0x8d   : > { %v363_v50 = vpop.permute.xlu1 %362  ;;  %v353_v54 = vpop.permute.xlu0 %352 }
  0x8e   : > { %8960 = vmatmul.msk.f32.gmra.mxu0 %vm5487_vm0, %v327_v34 }
  0x93   : > { %6032 = vperm.xlu0 %9126, %v9747_v56   ;;  %v15444_v56 = vmov 920167782  }
  0x94   : > { %5980 = vperm.xlu2 %9132, %v9749_v57   ;;  %5977 = vperm.xlu1 %9131, %v9751_v58  }
  0x95   : > { %v9759_v60 = vpop.permute.xlu0 %377  ;;  %v9761_v61 = vpop.permute.xlu1 %382 }
  0x96   : > { %v448_v10 = vpop.permute.xlu2 %447 }
  0x97   : > { %v508_v11 = vmul.f32 %v9785_v8, %v448_v10  ;;  %v15201_v10 = vmov 683565275  }
  0x9b   : > { %9133 = vset.pattern.permute.xlu0 %v15190_v26 }
  0x9c   : > { %5986 = vperm.xlu2 %9132, %v9765_v63   ;;  %5983 = vperm.xlu1 %9131, %v9767_v0  }
  0x9d   : > { %451 = vperm.xlu0 %9133, %v9614_v6   ;;  %v9776_v3 = vpop.permute.xlu0 %392  ;;  %v9781_v5 = vpop.permute.xlu1 %397  ;;  %v9790_v6 = vperm.slane %v344_v4, 0 }
  0x9f   : > { %v427_v13 = vmul.f32 %v9790_v6, %v353_v54  ;;  %v429_v28 = vmul.f32 %v9790_v6, %v363_v50  ;;  %v15205_v50 = vmov 2475754826  }
  0xa1   : > { %v9800_v16 = vadd.f32 %v508_v11, %v427_v13 }
  0xa3   : > { %15438 = vst [vmem:[#allocation14_spill] sm:$0xff] %v9800_v16  ;;  %v696_v19 = vand.u32 2139095040, %v9800_v16 }
  0xa4   : > { %5995 = vperm.xlu2 %9132, %v9783_v7   ;;  %5992 = vperm.xlu1 %9131, %v9787_v9  }
  0xa5   : > { %471 = vperm.xlu0 %9133, %v9636_v14   ;;  %v9795_v12 = vpop.permute.xlu0 %407  ;;  %v9802_v17 = vpop.permute.xlu1 %412  ;;  %v9810_v14 = vadd.s32 1, %v9701_v39  ;;  %v697_v21 = vshrl.u32 %v696_v19, 23  ;;  %v15212_v39 = vmov 2102212464  }
  0xa6   : > { %15439 = vst [vmem:[#allocation15_spill] sm:$0xff] %v9802_v17 }
  0xa7   : > { %15441 = vst [vmem:[#allocation17_spill] sm:$0xff] %v9810_v14  ;;  %v8852_v24 = vadd.s32 4294967169, %v697_v21 }
  0xa9   : > { %v703_v27 = vadd.s32 1, %v8852_v24 }
  0xab   : > { %vm704_vm1 = vcmp.gt.s32.totalorder %v703_v27, 0 }
  0xac   : > { %6020 = vperm.xlu2 %9132, %v9798_v15   ;;  %v705_v29 = vsel %vm704_vm1, %v703_v27, 0 }
  0xad   : > { %483 = vperm.xlu0 %9133, %v9644_v18   ;;  %v9807_v20 = vpop.permute.xlu0 %422  ;;  %v707_v31 = vand.u32 31, %v705_v29  ;;  %v9830_v48 = vshrl.u32 %v705_v29, 5 }
  0xae   : > { %15440 = vst [vmem:[#allocation16_spill] sm:$0xff] %v9807_v20  ;;  %v9812_v23 = vpop.permute.xlu1 %443 }
  0xaf   : > { %v9824_v33 = vsub.s32 32, %v707_v31  ;;  %v719_v42 = vshll.u32 %v15212_v39, %v707_v31  ;;  %v710_v11 = vshll.u32 %v15201_v10, %v707_v31  ;;  %v713_v13 = vshll.u32 %v15205_v50, %v707_v31 }
  0xb0   : > { %v716_v19 = vshll.u32 %v15209_v52, %v707_v31  ;;  %v722_v24 = vshll.u32 %v15196_v35, %v707_v31  ;;  %vm728_vm2 = vcmp.lt.s32.totalorder %v9830_v48, 4  ;;  %vm725_vm3 = vcmp.lt.s32.totalorder %v9830_v48, 1 }
  0xb1   : > { %v720_v36 = vshrl.u32 %v15196_v35, %v9824_v33  ;;  %v711_v51 = vshrl.u32 %v15205_v50, %v9824_v33  ;;  %v714_v54 = vshrl.u32 %v15209_v52, %v9824_v33  ;;  %v717_v55 = vshrl.u32 %v15212_v39, %v9824_v33 }
  0xb2   : > { %v723_v4 = vshrl.u32 %v15194_v2, %v9824_v33  ;;  %vm727_vm4 = vcmp.lt.s32.totalorder %v9830_v48, 3  ;;  %vm726_vm6 = vcmp.lt.s32.totalorder %v9830_v48, 2 }
  0xb3   : > { %v721_v59 = vor.u32 %v720_v36, %v719_v42  ;;  %v9846_v27 = vor.u32 %v711_v51, %v710_v11  ;;  %v460_v36 = vpop.permute.xlu2 %459  ;;  %v430_v51 = vmul.f32 %v9790_v6, %v9691_v37 }
  0xb4   : > { %6029 = vperm.xlu2 %9132, %v9810_v14   ;;  %v724_v29 = vor.u32 %v723_v4, %v722_v24 }
  0xb5   : > { %495 = vperm.xlu0 %9133, %v9652_v22   ;;  %v5650_v25 = vpop.permute.xlu0 %5649 }
  0xb6   : > { %8961 = vmatmul.msk.f32.vlgmr.msra.gmra.mxu1 %vm5487_vm0, %v5650_v25  ;;  %v456_v18 = vpop.permute.xlu1 %455  ;;  %v738_v42 = vsel %vm728_vm2, %v724_v29, 1326507024 }
  0xb7   : > { %v510_v30 = vmul.f32 %v9785_v8, %v456_v18  ;;  %v9848_v18 = vor.u32 %v714_v54, %v713_v13  ;;  %v739_v11 = vsel %vm727_vm4, %v721_v59, %v738_v42 }
  0xb9   : > { %v9821_v32 = vadd.f32 %v510_v30, %v429_v28  ;;  %v9850_v28 = vor.u32 %v717_v55, %v716_v19  ;;  %v734_v30 = vsel %vm728_vm2, %v721_v59, 920167782  ;;  %v733_v31 = vsel %vm725_vm3, %v9846_v27, %v9848_v18 }
  0xba   : > { %v511_v55 = vmul.f32 %v9785_v8, %v460_v36 }
  0xbb   : > { %15442 = vst [vmem:[#allocation18_spill] sm:$0xff] %v9821_v32  ;;  %v1004_v22 = vand.u32 2139095040, %v9821_v32  ;;  %v737_v4 = vsel %vm725_vm3, %v9848_v18, %v9850_v28 }
  0xbc   : > { %9134 = vset.pattern.permute.xlu2 %v15190_v26  ;;  %v740_v37 = vsel %vm726_vm6, %v737_v4, %v739_v11  ;;  %v9882_v24 = vadd.f32 %v511_v55, %v430_v51 }
  0xbd   : > { %6055 = vperm.xlu2 %9134, %v9693_v38   ;;  %v1005_v34 = vshrl.u32 %v1004_v22, 23  ;;  %v15191_v38 = vand.u32 2147483647, %v9800_v16 }
  0xbe   : > { %15443 = vst [vmem:[#allocation19_spill] sm:$0xff] %v9882_v24  ;;  %v15456_v17 = vand.u32 2147483647, %v9882_v24 }
  0xbf   : > { %v8858_v46 = vadd.s32 4294967169, %v1005_v34  ;;  %v700_v21 = vand.u32 8388607, %v15191_v38  ;;  %v735_v34 = vsel %vm727_vm4, %v9850_v28, %v734_v30  ;;  %v745_v30 = vshrl.u32 %v740_v37, 16 }
  0xc0   : > { %v736_v54 = vsel %vm726_vm6, %v733_v31, %v735_v34  ;;  %v1158_v34 = vand.u32 2139095040, %v9882_v24  ;;  %v1162_v16 = vand.u32 8388607, %v15456_v17 }
  0xc1   : > { %v1011_v25 = vadd.s32 1, %v8858_v46  ;;  %v701_v22 = vor.u32 8388608, %v700_v21  ;;  %v767_v21 = vshrl.u32 %v736_v54, 16  ;;  %v766_v36 = vand.u32 65535, %v736_v54 }
  0xc2   : > { %v1159_v40 = vshrl.u32 %v1158_v34, 23 }
  0xc3   : > { %vm1012_vm5 = vcmp.gt.s32.totalorder %v1011_v25, 0  ;;  %v9878_v13 = vshll.u32 %v701_v22, 8  ;;  %v744_v22 = vand.u32 65535, %v740_v37 }
  0xc4   : > { %v1013_v46 = vsel %vm1012_vm5, %v1011_v25, 0 }
  0xc5   : > { %v1015_v19 = vand.u32 31, %v1013_v46  ;;  %v742_v25 = vand.u32 65535, %v9878_v13  ;;  %v743_v59 = vshrl.u32 %v9878_v13, 16  ;;  %v9897_v11 = vshrl.u32 %v1013_v46, 5 }
  0xc7   : > { %v9885_v29 = vsub.s32 32, %v1015_v19  ;;  %v9887_v31 = vmul.u32 %v767_v21, %v742_v25  ;;  %v1027_v42 = vshll.u32 %v15212_v39, %v1015_v19  ;;  %v9894_v51 = vmul.u32 %v745_v30, %v742_v25 }
  0xc8   : > { %v1018_v38 = vshll.u32 %v15201_v10, %v1015_v19  ;;  %v1021_v54 = vshll.u32 %v15205_v50, %v1015_v19  ;;  %v1024_v2 = vshll.u32 %v15209_v52, %v1015_v19  ;;  %v1030_v46 = vshll.u32 %v15444_v56, %v1015_v19 }
  0xc9   : > { %v1028_v4 = vshrl.u32 %v15196_v35, %v9885_v29  ;;  %v772_v55 = vshll.u32 %v9887_v31, 16  ;;  %v1019_v1 = vshrl.u32 %v15205_v50, %v9885_v29  ;;  %v1022_v37 = vshrl.u32 %v15209_v52, %v9885_v29 }
  0xca   : > { %v1025_v35 = vshrl.u32 %v15212_v39, %v9885_v29  ;;  %v1031_v26 = vshrl.u32 %v15445_v49, %v9885_v29  ;;  %v768_v43 = vmul.u32 %v766_v36, %v742_v25  ;;  %v9912_v0 = vmul.u32 %v744_v22, %v743_v59 }
  0xcb   : > { %v1029_v10 = vor.u32 %v1028_v4, %v1027_v42  ;;  %v750_v50 = vshll.u32 %v9894_v51, 16  ;;  %v9915_v9 = vmul.u32 %v766_v36, %v743_v59  ;;  %v746_v58 = vmul.u32 %v744_v22, %v742_v25 }
  0xcc   : > { %vm776_vm7 = vc.u32 %v768_v43, %v772_v55  ;;  %v15446_v52 = vand.u32 2147483647, %v9821_v32  ;;  %v9919_v39 = vor.u32 %v1019_v1, %v1018_v38  ;;  %v9921_v19 = vor.u32 %v1022_v37, %v1021_v54 }
  0xcd   : > { %v9923_v15 = vor.u32 %v1025_v35, %v1024_v2  ;;  %v1032_v7 = vor.u32 %v1031_v26, %v1030_v46  ;;  %vm1036_vm8 = vcmp.lt.s32.totalorder %v9897_v11, 4  ;;  %v9926_v34 = vadd.s32 %v772_v55, %v768_v43  ;;  %v464_v46 = vpop.permute.xlu1 %463 }
  0xce   : > { %v1008_v14 = vand.u32 8388607, %v15446_v52  ;;  %v1042_v36 = vsel %vm1036_vm8, %v1029_v10, 920167782  ;;  %v8861_v42 = vadd.s32 4294967169, %v1159_v40  ;;  %v752_v25 = vshll.u32 %v9912_v0, 16 }
  0xcf   : > { %vm754_vm9 = vc.u32 %v746_v58, %v750_v50  ;;  %v756_v22 = vadd.s32 %v750_v50, %v746_v58  ;;  %v774_v1 = vshll.u32 %v9915_v9, 16  ;;  %v15447_v38 = vmov 0  }
  0xd0   : > { %v777_v52 = vsel %vm776_vm7, 1, %v15447_v38  ;;  %vm1033_vm10 = vcmp.lt.s32.totalorder %v9897_v11, 1  ;;  %vm1035_vm11 = vcmp.lt.s32.totalorder %v9897_v11, 3  ;;  %v1009_v26 = vor.u32 8388608, %v1008_v14 }
  0xd1   : > { %v1041_v43 = vsel %vm1033_vm10, %v9919_v39, %v9921_v19  ;;  %v1043_v40 = vsel %vm1035_vm11, %v9923_v15, %v1042_v36  ;;  %v1046_v58 = vsel %vm1036_vm8, %v1032_v7, 1326507024  ;;  %v755_v35 = vsel %vm754_vm9, 1, %v15447_v38 }
  0xd2   : > { %v771_v50 = vmul.u32 %v767_v21, %v743_v59  ;;  %vm780_vm12 = vc.u32 %v9926_v34, %v774_v1  ;;  %v749_v2 = vmul.u32 %v745_v30, %v743_v59  ;;  %vm758_vm13 = vc.u32 %v756_v22, %v752_v25 }
  0xd3   : > { %vm1034_vm14 = vcmp.lt.s32.totalorder %v9897_v11, 2  ;;  %v1045_v55 = vsel %vm1033_vm10, %v9921_v19, %v9923_v15  ;;  %v1047_v7 = vsel %vm1035_vm11, %v1029_v10, %v1046_v58  ;;  %v1165_v21 = vadd.s32 1, %v8861_v42 }
  0xd4   : > { %v779_v14 = vadd.s32 %v777_v52, %v771_v50  ;;  %v9949_v4 = vsel %vm1034_vm14, %v1041_v43, %v1043_v40  ;;  %v757_v54 = vadd.s32 %v755_v35, %v749_v2  ;;  %v781_v30 = vsel %vm780_vm12, 1, %v15447_v38 }
  0xd5   : > { %v9958_v59 = vshll.u32 %v1009_v26, 8  ;;  %v759_v37 = vsel %vm758_vm13, 1, %v15447_v38  ;;  %v1048_v36 = vsel %vm1034_vm14, %v1045_v55, %v1047_v7  ;;  %v1075_v25 = vshrl.u32 %v9949_v4, 16 }
  0xd6   : > { %v431_v22 = vmul.f32 %v9790_v6, %v9707_v41  ;;  %v783_v52 = vadd.s32 %v781_v30, %v779_v14  ;;  %vm1166_vm15 = vcmp.gt.s32.totalorder %v1165_v21, 0  ;;  %v761_v10 = vadd.s32 %v759_v37, %v757_v54 }
  0xd7   : > { %v512_v42 = vmul.f32 %v9785_v8, %v464_v46  ;;  %v1050_v43 = vand.u32 65535, %v9958_v59  ;;  %v773_v26 = vshrl.u32 %v9887_v31, 16  ;;  %v1053_v40 = vshrl.u32 %v1048_v36, 16 }
  0xd8   : > { %v751_v58 = vshrl.u32 %v9894_v51, 16  ;;  %v1167_v50 = vsel %vm1166_vm15, %v1165_v21, 0  ;;  %v730_v41 = vsel %vm728_vm2, %v9850_v28, 2102212464  ;;  %v1074_v7 = vand.u32 65535, %v9949_v4 }
  0xd9   : > { %v9970_v35 = vmul.u32 %v1075_v25, %v1050_v43  ;;  %v784_v2 = vadd.s32 %v783_v52, %v773_v26  ;;  %v9975_v55 = vadd.f32 %v512_v42, %v431_v22  ;;  %v15449_v54 = vmov 683565275  }
  0xda   : > { %v762_v14 = vadd.s32 %v761_v10, %v751_v58  ;;  %v709_v30 = vshrl.u32 %v15449_v54, %v9824_v33  ;;  %v775_v31 = vshrl.u32 %v9915_v9, 16  ;;  %v9981_v37 = vmul.u32 %v1053_v40, %v1050_v43  ;;  %v468_v58 = vpop.permute.xlu2 %467 }
  0xdb   : > { %15448 = vst [vmem:[#allocation20_spill] sm:$0xff] %v9975_v55  ;;  %v1169_v51 = vand.u32 31, %v1167_v50  ;;  %v753_v21 = vshrl.u32 %v9912_v0, 16  ;;  %v1051_v46 = vshrl.u32 %v9958_v59, 16  ;;  %v1080_v52 = vshll.u32 %v9970_v35, 16 }
  0xdc   : > { %v729_v28 = vsel %vm725_vm3, %v709_v30, %v9846_v27  ;;  %v731_v4 = vsel %vm727_vm4, %v9848_v18, %v730_v41  ;;  %v785_v33 = vadd.s32 %v784_v2, %v775_v31  ;;  %v1052_v22 = vand.u32 65535, %v1048_v36 }
  0xdd   : > { %v9992_v9 = vadd.s32 %v762_v14, %v753_v21  ;;  %v1312_v10 = vand.u32 2139095040, %v9975_v55  ;;  %v1076_v42 = vmul.u32 %v1074_v7, %v1050_v43  ;;  %v9995_v0 = vmul.u32 %v1074_v7, %v1051_v46 }
  0xde   : > { %v1058_v26 = vshll.u32 %v9981_v37, 16  ;;  %v732_v63 = vsel %vm726_vm6, %v729_v28, %v731_v4  ;;  %v10001_v27 = vadd.s32 %v9926_v34, %v774_v1  ;;  %v789_v18 = vadd.s32 1, %v785_v33 }
  0xdf   : > { %15450 = vst [vmem:[#allocation21_spill] sm:$0xff] %v9992_v9  ;;  %v10003_v30 = vadd.s32 %v1080_v52, %v1076_v42  ;;  %v1054_v36 = vmul.u32 %v1052_v22, %v1050_v43  ;;  %v10005_v2 = vmul.u32 %v1052_v22, %v1051_v46  ;;  %vm1084_vm1 = vc.u32 %v1076_v42, %v1080_v52 }
  0xe0   : > { %15451 = vst [vmem:[#allocation22_spill] sm:$0xff] %v10001_v27  ;;  %v10007_v41 = vsub.s32 32, %v1169_v51  ;;  %vm788_vm2 = vc.u32 %v9992_v9, %v10001_v27  ;;  %v1313_v14 = vshrl.u32 %v1312_v10, 23  ;;  %v15217_v7 = vshll.u32 %v9995_v0, 16 }
  0xe1   : > { %v10012_v48 = vshrl.u32 %v1167_v50, 5  ;;  %v513_v34 = vmul.f32 %v9785_v8, %v468_v58  ;;  %v1064_v1 = vadd.s32 %v1058_v26, %v1054_v36  ;;  %v786_v31 = vmul.u32 %v9878_v13, %v732_v63 }
  0xe2   : > { %15452 = vst [vmem:[#allocation23_spill] sm:$0xff] %v10007_v41  ;;  %vm1062_vm3 = vc.u32 %v1054_v36, %v1058_v26  ;;  %v1085_v43 = vsel %vm1084_vm1, 1, %v15447_v38  ;;  %vm1088_vm4 = vc.u32 %v10003_v30, %v15217_v7  ;;  %v790_v21 = vsel %vm788_vm2, %v789_v18, %v785_v33 }
  0xe3   : > { %v1060_v52 = vshll.u32 %v10005_v2, 16  ;;  %v1079_v28 = vmul.u32 %v1075_v25, %v1051_v46  ;;  %v8864_v50 = vadd.s32 4294967169, %v1313_v14  ;;  %v1057_v22 = vmul.u32 %v1053_v40, %v1051_v46 }
  0xe4   : > { %v15453_v10 = vmov 2102212464   ;;  %v1182_v63 = vshrl.u32 %v15444_v56, %v10007_v41  ;;  %v1063_v13 = vsel %vm1062_vm3, 1, %v15447_v38  ;;  %v1089_v58 = vsel %vm1088_vm4, 1, %v15447_v38 }
  0xe5   : > { %v1181_v42 = vshll.u32 %v15453_v10, %v1169_v51  ;;  %vm1066_vm5 = vc.u32 %v1064_v1, %v1060_v52  ;;  %v1087_v26 = vadd.s32 %v1085_v43, %v1079_v28  ;;  %v1172_v33 = vshll.u32 %v15449_v54, %v1169_v51 }
  0xe6   : > { %v15454_v18 = vmov 2475754826   ;;  %v15455_v40 = vmov 2131351028   ;;  %v1179_v7 = vshrl.u32 %v15453_v10, %v10007_v41  ;;  %v1184_v1 = vshll.u32 %v15444_v56, %v1169_v51 }
  0xe7   : > { %v1173_v25 = vshrl.u32 %v15454_v18, %v10007_v41  ;;  %v1175_v36 = vshll.u32 %v15454_v18, %v1169_v51  ;;  %v1176_v46 = vshrl.u32 %v15455_v40, %v10007_v41  ;;  %v1178_v14 = vshll.u32 %v15455_v40, %v1169_v51 }
  0xe8   : > { %v1185_v43 = vshrl.u32 %v15445_v49, %v10007_v41  ;;  %v432_v52 = vmul.f32 %v9790_v6, %v9759_v60  ;;  %v1065_v28 = vadd.s32 %v1063_v13, %v1057_v22  ;;  %v1183_v4 = vor.u32 %v1182_v63, %v1181_v42 }
  0xe9   : > { %v10041_v57 = vadd.s32 %v790_v21, %v786_v31  ;;  %v1067_v32 = vsel %vm1066_vm5, 1, %v15447_v38  ;;  %vm1190_vm6 = vcmp.lt.s32.totalorder %v10012_v48, 4  ;;  %v1319_v51 = vadd.s32 1, %v8864_v50 }
  0xea   : > { %v10047_v27 = vadd.f32 %v513_v34, %v432_v52  ;;  %v1081_v9 = vshrl.u32 %v9970_v35, 16  ;;  %v1091_v41 = vadd.s32 %v1089_v58, %v1087_v26  ;;  %v10050_v20 = vor.u32 %v1173_v25, %v1172_v33  ;;  %v480_v58 = vpop.permute.xlu2 %479 }
  0xeb   : > { %v10052_v60 = vor.u32 %v1176_v46, %v1175_v36  ;;  %v10054_v22 = vor.u32 %v1179_v7, %v1178_v14  ;;  %v1186_v31 = vor.u32 %v1185_v43, %v1184_v1  ;;  %v1069_v21 = vadd.s32 %v1067_v32, %v1065_v28 }
  0xec   : > { %15457 = vst [vmem:[#allocation24_spill] sm:$0xff] %v10047_v27  ;;  %vm1187_vm7 = vcmp.lt.s32.totalorder %v10012_v48, 1  ;;  %vm1189_vm9 = vcmp.lt.s32.totalorder %v10012_v48, 3  ;;  %v1196_v17 = vsel %vm1190_vm6, %v1183_v4, 920167782  ;;  %v792_v34 = vadd.s32 536870912, %v10041_v57 }
  0xed   : > { %v1163_v50 = vor.u32 8388608, %v1162_v16  ;;  %v1059_v35 = vshrl.u32 %v9981_v37, 16  ;;  %v1092_v42 = vadd.s32 %v1091_v41, %v1081_v9  ;;  %vm1188_vm12 = vcmp.lt.s32.totalorder %v10012_v48, 2 }
  0xee   : > { %v1195_v32 = vsel %vm1187_vm7, %v10050_v20, %v10052_v60  ;;  %v1197_v7 = vsel %vm1189_vm9, %v10054_v22, %v1196_v17  ;;  %v1200_v63 = vsel %vm1190_vm6, %v1186_v31, 1326507024  ;;  %v1466_v13 = vand.u32 2139095040, %v10047_v27 }
  0xef   : > { %vm1320_vm13 = vcmp.gt.s32.totalorder %v1319_v51, 0  ;;  %v1070_v16 = vadd.s32 %v1069_v21, %v1059_v35  ;;  %v10073_v37 = vshrl.u32 %v792_v34, 30  ;;  %v1017_v9 = vshrl.u32 %v15449_v54, %v9885_v29 }
  0xf0   : > { %v1083_v41 = vshrl.u32 %v9995_v0, 16  ;;  %v10078_v26 = vshll.u32 %v1163_v50, 8  ;;  %v1061_v33 = vshrl.u32 %v10005_v2, 16  ;;  %v10083_v25 = vsel %vm1188_vm12, %v1195_v32, %v1197_v7 }
  0xf1   : > { %15458 = vst [vmem:[#allocation25_spill] sm:$0xff] %v10073_v37  ;;  %v1199_v36 = vsel %vm1187_vm7, %v10052_v60, %v10054_v22  ;;  %v1201_v46 = vsel %vm1189_vm9, %v1183_v4, %v1200_v63  ;;  %v1038_v29 = vsel %vm1036_vm8, %v9923_v15, 2102212464  ;;  %v1467_v1 = vshrl.u32 %v1466_v13, 23 }
  0xf2   : > { %v1093_v14 = vadd.s32 %v1092_v42, %v1083_v41  ;;  %v1321_v43 = vsel %vm1320_vm13, %v1319_v51, 0  ;;  %v10094_v2 = vadd.s32 %v1070_v16, %v1061_v33  ;;  %v516_v52 = vmul.f32 %v9785_v8, %v480_v58 }
  0xf3   : > { %v10099_v28 = vsel %vm1188_vm12, %v1199_v36, %v1201_v46  ;;  %v1204_v31 = vand.u32 65535, %v10078_v26  ;;  %v1229_v21 = vshrl.u32 %v10083_v25, 16  ;;  %v794_v4 = vshll.u32 %v10073_v37, 30 }
  0xf4   : > { %v1037_v15 = vsel %vm1033_vm10, %v1017_v9, %v9919_v39  ;;  %v1039_v51 = vsel %vm1035_vm11, %v9921_v19, %v1038_v29  ;;  %v15459_v17 = vshll.u32 %v9995_v0, 16  ;;  %v435_v50 = vmul.f32 %v9790_v6, %v9776_v3 }
  0xf5   : > { %v1323_v35 = vand.u32 31, %v1321_v43  ;;  %v1097_v42 = vadd.s32 1, %v1093_v14  ;;  %v10119_v32 = vmul.f32 %v9790_v6, %v9716_v44  ;;  %v8867_v7 = vadd.s32 4294967169, %v1467_v1 }
  0xf6   : > { %v10113_v34 = vadd.s32 %v10003_v30, %v15459_v17  ;;  %v1207_v39 = vshrl.u32 %v10099_v28, 16  ;;  %v10124_v19 = vadd.f32 %v516_v52, %v435_v50  ;;  %v1040_v0 = vsel %vm1034_vm14, %v1037_v15, %v1039_v51 }
  0xf7   : > { %v1228_v30 = vand.u32 65535, %v10083_v25  ;;  %v10129_v3 = vmul.u32 %v1229_v21, %v1204_v31  ;;  %v10133_v63 = vmul.f32 %v9790_v6, %v9726_v47  ;;  %v10137_v44 = vmul.f32 %v9790_v6, %v9741_v53 }
  0xf8   : > { %15460 = vst [vmem:[#allocation26_spill] sm:$0xff] %v10113_v34  ;;  %vm1096_vm8 = vc.u32 %v10094_v2, %v10113_v34  ;;  %v10141_v13 = vmul.f32 %v9790_v6, %v9721_v45  ;;  %v10144_v16 = vsub.s32 %v10041_v57, %v794_v4  ;;  %v10148_v11 = vmul.f32 %v9790_v6, %v9763_v62 }
  0xf9   : > { %15461 = vst [vmem:[#allocation27_spill] sm:$0xff] %v10124_v19  ;;  %v10152_v9 = vmul.f32 %v9785_v8, %v9812_v23  ;;  %v10154_v47 = vsub.s32 32, %v1323_v35  ;;  %v1098_v41 = vsel %vm1096_vm8, %v1097_v42, %v1093_v14  ;;  %v1094_v53 = vmul.u32 %v9958_v59, %v1040_v0 }
  0xfa   : > { %15462 = vst [vmem:[#allocation28_spill] sm:$0xff] %v10137_v44  ;;  %v1205_v58 = vshrl.u32 %v10078_v26, 16  ;;  %v1206_v45 = vand.u32 65535, %v10099_v28  ;;  %v10159_v33 = vmul.u32 %v1207_v39, %v1204_v31  ;;  %v10161_v57 = vadd.s32 1, %v8867_v7 }
  0xfb   : > { %15463 = vst [vmem:[#allocation29_spill] sm:$0xff] %v10141_v13  ;;  %v1928_v62 = vand.u32 2139095040, %v10124_v19  ;;  %v1230_v25 = vmul.u32 %v1228_v30, %v1204_v31  ;;  %v1234_v36 = vshll.u32 %v10129_v3, 16  ;;  %vm796_vm10 = vcmp.lt.s32.totalorder %v10144_v16, 0 }
  0xfc   : > { %15464 = vst [vmem:[#allocation30_spill] sm:$0xff] %v10148_v11  ;;  %v797_v23 = vsub.s32 0, %v10144_v16  ;;  %v10167_v46 = vshrl.u32 %v1321_v43, 5  ;;  %v10169_v59 = vadd.s32 %v1098_v41, %v1094_v53  ;;  %v1335_v29 = vshll.u32 %v15453_v10, %v1323_v35 }
  0xfd   : > { %v1336_v14 = vshrl.u32 %v15444_v56, %v10154_v47  ;;  %v1338_v1 = vshll.u32 %v15444_v56, %v1323_v35  ;;  %v1339_v52 = vshrl.u32 %v15445_v49, %v10154_v47  ;;  %v1208_v28 = vmul.u32 %v1206_v45, %v1204_v31 }
  0xfe   : > { %v10177_v4 = vmul.u32 %v1206_v45, %v1205_v58  ;;  %v1212_v15 = vshll.u32 %v10159_v33, 16  ;;  %v10180_v51 = vmul.u32 %v1228_v30, %v1205_v58  ;;  %vm10182_vm11 = vc.u32 %v1230_v25, %v1234_v36 }
  0xff   : > { %v1326_v50 = vshll.u32 %v15449_v54, %v1323_v35  ;;  %v1327_v42 = vshrl.u32 %v15454_v18, %v10154_v47  ;;  %v1329_v7 = vshll.u32 %v15454_v18, %v1323_v35  ;;  %v1330_v31 = vshrl.u32 %v15455_v40, %v10154_v47 }
 0x100   : > { %v1332_v0 = vshll.u32 %v15455_v40, %v1323_v35  ;;  %v1333_v30 = vshrl.u32 %v15453_v10, %v10154_v47  ;;  %v798_v41 = vsel %vm796_vm10, %v797_v23, %v10144_v16  ;;  %v1100_v53 = vadd.s32 536870912, %v10169_v59 }
 0x101   : > { %v1337_v45 = vor.u32 %v1336_v14, %v1335_v29  ;;  %v1340_v17 = vor.u32 %v1339_v52, %v1338_v1  ;;  %v1214_v13 = vshll.u32 %v10177_v4, 16  ;;  %v1218_v19 = vadd.s32 %v1212_v15, %v1208_v28 }
 0x102   : > { %v1236_v11 = vshll.u32 %v10180_v51, 16  ;;  %v10202_v24 = vadd.s32 %v1234_v36, %v1230_v25  ;;  %vm1216_vm14 = vc.u32 %v1208_v28, %v1212_v15  ;;  %v1233_v35 = vmul.u32 %v1229_v21, %v1205_v58 }
 0x103   : > { %v1239_v44 = vsel %vm10182_vm11, 1, %v15447_v38  ;;  %v15467_v37 = vand.u32 2147483647, %v9975_v55  ;;  %v10209_v34 = vor.u32 %v1327_v42, %v1326_v50  ;;  %v10211_v29 = vor.u32 %v1330_v31, %v1329_v7 }
 0x104   : > { %v10213_v14 = vor.u32 %v1333_v30, %v1332_v0  ;;  %vm1344_vm15 = vcmp.lt.s32.totalorder %v10167_v46, 4  ;;  %v799_v1 = vclz %v798_v41  ;;  %v1211_v25 = vmul.u32 %v1207_v39, %v1205_v58 }
 0x105   : > { %v1316_v23 = vand.u32 8388607, %v15467_v37  ;;  %v1350_v21 = vsel %vm1344_vm15, %v1337_v45, 920167782  ;;  %v1354_v36 = vsel %vm1344_vm15, %v1340_v17, 1326507024  ;;  %vm10223_vm1 = vc.u32 %v1218_v19, %v1214_v13 }
 0x106   : > { %v10220_v52 = vshrl.u32 %v1100_v53, 30  ;;  %v1217_v37 = vsel %vm1216_vm14, 1, %v15447_v38  ;;  %vm1242_vm2 = vc.u32 %v10202_v24, %v1236_v11  ;;  %v1241_v15 = vadd.s32 %v1239_v44, %v1233_v35 }
 0x107   : > { %v1317_v39 = vor.u32 8388608, %v1316_v23  ;;  %vm1341_vm3 = vcmp.lt.s32.totalorder %v10167_v46, 1  ;;  %vm1343_vm4 = vcmp.lt.s32.totalorder %v10167_v46, 3  ;;  %v1929_v43 = vshrl.u32 %v1928_v62, 23 }
 0x108   : > { %v1349_v58 = vsel %vm1341_vm3, %v10209_v34, %v10211_v29  ;;  %v1351_v19 = vsel %vm1343_vm4, %v10213_v14, %v1350_v21  ;;  %v1353_v13 = vsel %vm1341_vm3, %v10211_v29, %v10213_v14  ;;  %v1355_v44 = vsel %vm1343_vm4, %v1337_v45, %v1354_v36 }
 0x109   : > { %v10247_v17 = vadd.f32 %v10152_v9, %v10133_v63  ;;  %v1219_v50 = vadd.s32 %v1217_v37, %v1211_v25  ;;  %v1243_v42 = vsel %vm1242_vm2, 1, %v15447_v38  ;;  %v10252_v7 = vmul.f32 %v9790_v6, %v9761_v61  ;;  %v15473_v25 = vld [vmem:[#allocation16_spill] sm:$0xff] }
 0x10a   : > { %v10256_v31 = vmul.f32 %v9790_v6, %v9781_v5  ;;  %v1221_v0 = vsel %vm10223_vm1, 1, %v15447_v38  ;;  %vm1342_vm5 = vcmp.lt.s32.totalorder %v10167_v46, 2  ;;  %v8853_v62 = vadd.s32 4294967294, %v799_v1 }
 0x10b   : > { %15470 = vst [vmem:[#allocation31_spill] sm:$0xff] %v10247_v17  ;;  %v1102_v63 = vshll.u32 %v10220_v52, 30  ;;  %v10265_v9 = vsel %vm1342_vm5, %v1349_v58, %v1351_v19  ;;  %v10269_v61 = vsel %vm1342_vm5, %v1353_v13, %v1355_v44  ;;  %vm1474_vm13 = vcmp.gt.s32.totalorder %v10161_v57, 0 }
 0x10c   : > { %15471 = vst [vmem:[#allocation32_spill] sm:$0xff] %v10252_v7  ;;  %v1235_v5 = vshrl.u32 %v10129_v3, 16  ;;  %v1245_v30 = vadd.s32 %v1243_v42, %v1241_v15  ;;  %v10273_v41 = vshll.u32 %v1317_v39, 8  ;;  %v8876_v53 = vadd.s32 4294967169, %v1929_v43  ;;  %v15474_v15 = vld [vmem:[#allocation23_spill] sm:$0xff] }
 0x10d   : > { %15472 = vst [vmem:[#allocation33_spill] sm:$0xff] %v10256_v31  ;;  %v542_v45 = vand.u32 2139095040, %v10247_v17  ;;  %v1213_v35 = vshrl.u32 %v10159_v33, 16  ;;  %v1223_v23 = vadd.s32 %v1221_v0, %v1219_v50  ;;  %v438_v1 = vmul.f32 %v9790_v6, %v9795_v12 }
 0x10e   : > { %v10281_v21 = vmul.f32 %v9790_v6, %v15473_v25  ;;  %v15234_v36 = vshrl.u32 %v10269_v61, 16  ;;  %v15233_v3 = vshrl.u32 %v10265_v9, 16  ;;  %v1475_v37 = vsel %vm1474_vm13, %v10161_v57, 0 }
 0x10f   : > { %vm8854_vm8 = vcmp.lt.s32.totalorder %v8853_v62, 0  ;;  %v10287_v28 = vsub.s32 %v10169_v59, %v1102_v63  ;;  %v1171_v33 = vshrl.u32 %v15449_v54, %v15474_v15  ;;  %v1192_v12 = vsel %vm1190_vm6, %v10054_v22, 2102212464  ;;  %v492_v63 = vpop.permute.xlu2 %491 }
 0x110   : > { %v1237_v39 = vshrl.u32 %v10180_v51, 16  ;;  %v1246_v58 = vadd.s32 %v1245_v30, %v1235_v5  ;;  %v1358_v19 = vand.u32 65535, %v10273_v41  ;;  %v1935_v13 = vadd.s32 1, %v8876_v53 }
 0x111   : > { %v543_v44 = vshrl.u32 %v542_v45, 23  ;;  %v1215_v57 = vshrl.u32 %v10177_v4, 16  ;;  %v1224_v43 = vadd.s32 %v1223_v23, %v1213_v35  ;;  %v10297_v50 = vshrl.u32 %v1475_v37, 5 }
 0x112   : > { %v10299_v59 = vand.u32 31, %v1475_v37  ;;  %v10303_v42 = vmul.u32 %v15234_v36, %v1358_v19  ;;  %v10307_v22 = vmul.u32 %v15233_v3, %v1358_v19  ;;  %v10309_v0 = vsel %vm8854_vm8, 0, %v8853_v62 }
 0x113   : > { %v1105_v5 = vsub.s32 0, %v10287_v28  ;;  %v1191_v4 = vsel %vm1187_vm7, %v1171_v33, %v10050_v20  ;;  %v1193_v30 = vsel %vm1189_vm9, %v10052_v60, %v1192_v12  ;;  %vm1104_vm6 = vcmp.lt.s32.totalorder %v10287_v28, 0 }
 0x114   : > { %v1247_v53 = vadd.s32 %v1246_v58, %v1237_v39  ;;  %v1360_v45 = vand.u32 65535, %v10269_v61  ;;  %v1382_v35 = vand.u32 65535, %v10265_v9  ;;  %vm1936_vm10 = vcmp.gt.s32.totalorder %v1935_v13, 0 }
 0x115   : > { %v8849_v62 = vadd.s32 4294967169, %v543_v44  ;;  %v10321_v23 = vadd.s32 %v1224_v43, %v1215_v57  ;;  %v10326_v25 = vadd.s32 %v10202_v24, %v1236_v11  ;;  %v519_v20 = vmul.f32 %v9785_v8, %v492_v63 }
 0x116   : > { %v1359_v60 = vshrl.u32 %v10273_v41, 16  ;;  %v1366_v37 = vshll.u32 %v10303_v42, 16  ;;  %v1388_v15 = vshll.u32 %v10307_v22, 16  ;;  %v10333_v33 = vsub.s32 32, %v10299_v59 }
 0x117   : > { %v807_v12 = vsub.s32 4294967266, %v10309_v0  ;;  %v1106_v39 = vsel %vm1104_vm6, %v1105_v5, %v10287_v28  ;;  %v1194_v51 = vsel %vm1188_vm12, %v1191_v4, %v1193_v30  ;;  %v1251_v24 = vadd.s32 1, %v1247_v53  ;;  %v476_v5 = vpop.permute.xlu1 %475  ;;  %v15477_v4 = vld [vmem:[#allocation22_spill] sm:$0xff] }
 0x118   : > { %v1362_v11 = vmul.u32 %v1360_v45, %v1358_v19  ;;  %v1384_v58 = vmul.u32 %v1382_v35, %v1358_v19  ;;  %v10339_v44 = vmul.u32 %v1382_v35, %v1359_v60  ;;  %v10342_v57 = vsel %vm1936_vm10, %v1935_v13, 0  ;;  %v15476_v19 = vld [vmem:[#allocation21_spill] sm:$0xff] }
 0x119   : > { %v10344_v43 = vadd.s32 1, %v8849_v62  ;;  %vm1250_vm7 = vc.u32 %v10321_v23, %v10326_v25  ;;  %v10348_v63 = vmul.u32 %v1360_v45, %v1359_v60  ;;  %v10350_v3 = vadd.f32 %v519_v20, %v438_v1 }
 0x11a   : > { %vm1370_vm9 = vc.u32 %v1362_v11, %v1366_v37  ;;  %vm1392_vm12 = vc.u32 %v1384_v58, %v1388_v15  ;;  %v10352_v48 = vadd.s32 %v1388_v15, %v1384_v58  ;;  %v787_v30 = vadd.s32 %v15477_v4, %v15476_v19 }
 0x11b   : > { %15475 = vst [vmem:[#allocation16_spill] sm:$0xff] %v10350_v3  ;;  %v1107_v35 = vclz %v1106_v39  ;;  %v1248_v13 = vmul.u32 %v10078_v26, %v1194_v51  ;;  %v1372_v62 = vadd.s32 %v1366_v37, %v1362_v11  ;;  %v803_v36 = vsub.s32 32, %v10309_v0 }
 0x11c   : > { %v808_v31 = vadd.s32 127, %v807_v12  ;;  %v1252_v7 = vsel %vm1250_vm7, %v1251_v24, %v1247_v53  ;;  %v15235_v45 = vshll.u32 %v10339_v44, 16  ;;  %v515_v1 = vmul.f32 %v9785_v8, %v476_v5 }
 0x11d   : > { %v1368_v20 = vshll.u32 %v10348_v63, 16  ;;  %v1371_v15 = vsel %vm1370_vm9, 1, %v15447_v38  ;;  %v1393_v58 = vsel %vm1392_vm12, 1, %v15447_v38  ;;  %v804_v39 = vshll.u32 %v10144_v16, %v10309_v0 }
 0x11e   : > { %v15478_v26 = vshrl.u32 %v10269_v61, 16  ;;  %v15479_v51 = vshrl.u32 %v10265_v9, 16  ;;  %vm1396_vm11 = vc.u32 %v10352_v48, %v15235_v45  ;;  %v8859_v53 = vadd.s32 4294967294, %v1107_v35 }
 0x11f   : > { %v10372_v24 = vadd.s32 %v1252_v7, %v1248_v13  ;;  %vm1374_vm14 = vc.u32 %v1372_v62, %v1368_v20  ;;  %v1490_v11 = vshrl.u32 %v15444_v56, %v10333_v33  ;;  %v805_v5 = vshrl.u32 %v787_v30, %v803_v36 }
 0x120   : > { %v1365_v37 = vmul.u32 %v15478_v26, %v1359_v60  ;;  %v1387_v12 = vmul.u32 %v15479_v51, %v1359_v60  ;;  %v809_v19 = vshll.u32 %v808_v31, 23  ;;  %v1397_v61 = vsel %vm1396_vm11, 1, %v15447_v38 }
 0x121   : > { %v15238_v9 = vand.u32 2147483647, %v10047_v27  ;;  %v1489_v60 = vshll.u32 %v15453_v10, %v10299_v59  ;;  %v1493_v4 = vshrl.u32 %v15445_v49, %v10333_v33  ;;  %v1375_v7 = vsel %vm1374_vm14, 1, %v15447_v38 }
 0x122   : > { %v1373_v16 = vadd.s32 %v1371_v15, %v1365_v37  ;;  %v1395_v0 = vadd.s32 %v1393_v58, %v1387_v12  ;;  %v1481_v35 = vshrl.u32 %v15454_v18, %v10333_v33  ;;  %v1484_v31 = vshrl.u32 %v15455_v40, %v10333_v33 }
 0x123   : > { %v1487_v36 = vshrl.u32 %v15453_v10, %v10333_v33  ;;  %vm8860_vm1 = vcmp.lt.s32.totalorder %v8859_v53, 0  ;;  %v1254_v30 = vadd.s32 536870912, %v10372_v24  ;;  %v1491_v13 = vor.u32 %v1490_v11, %v1489_v60 }
 0x124   : > { %v1492_v62 = vshll.u32 %v15444_v56, %v10299_v59  ;;  %v1399_v20 = vadd.s32 %v1397_v61, %v1395_v0  ;;  %v1480_v15 = vshll.u32 %v15449_v54, %v10299_v59  ;;  %v1483_v58 = vshll.u32 %v15454_v18, %v10299_v59 }
 0x125   : > { %v1486_v26 = vshll.u32 %v15455_v40, %v10299_v59  ;;  %v1377_v37 = vadd.s32 %v1375_v7, %v1373_v16  ;;  %v1389_v51 = vshrl.u32 %v10307_v22, 16  ;;  %v1470_v12 = vand.u32 8388607, %v15238_v9 }
 0x126   : > { %v1494_v11 = vor.u32 %v1493_v4, %v1492_v62  ;;  %v10401_v60 = vor.u32 %v1481_v35, %v1480_v15  ;;  %v10403_v45 = vor.u32 %v1484_v31, %v1483_v58  ;;  %vm1498_vm2 = vcmp.lt.s32.totalorder %v10297_v50, 4 }
 0x127   : > { %v10405_v0 = vor.u32 %v1487_v36, %v1486_v26  ;;  %v810_v61 = vor.u32 4788187, %v809_v19  ;;  %v10409_v17 = vadd.f32 %v515_v1, %v10119_v32  ;;  %v1367_v59 = vshrl.u32 %v10303_v42, 16  ;;  %v504_v1 = vpop.permute.xlu2 %503 }
 0x128   : > { %v1504_v22 = vsel %vm1498_vm2, %v1491_v13, 920167782  ;;  %v806_v16 = vor.u32 %v805_v5, %v804_v39  ;;  %v10415_v4 = vsel %vm8860_vm1, 0, %v8859_v53  ;;  %v10417_v7 = vshrl.u32 %v1254_v30, 30 }
 0x129   : > { %15480 = vst [vmem:[#allocation23_spill] sm:$0xff] %v10409_v17  ;;  %v1400_v35 = vadd.s32 %v1399_v20, %v1389_v51  ;;  %v1378_v31 = vadd.s32 %v1377_v37, %v1367_v59  ;;  %vm1495_vm13 = vcmp.lt.s32.totalorder %v10297_v50, 1  ;;  %vm1497_vm8 = vcmp.lt.s32.totalorder %v10297_v50, 3 }
 0x12a   : > { %15481 = vst [vmem:[#allocation21_spill] sm:$0xff] %v10417_v7  ;;  %v1508_v32 = vsel %vm1498_vm2, %v1494_v11, 1326507024  ;;  %v1391_v42 = vshrl.u32 %v10339_v44, 16  ;;  %v1471_v19 = vor.u32 8388608, %v1470_v12  ;;  %v1503_v39 = vsel %vm1495_vm13, %v10401_v60, %v10403_v45 }
 0x12b   : > { %v1505_v53 = vsel %vm1497_vm8, %v10405_v0, %v1504_v22  ;;  %v811_v5 = vand.u32 2147483647, %v810_v61  ;;  %v1325_v36 = vshrl.u32 %v15449_v54, %v10154_v47  ;;  %v1346_v30 = vsel %vm1344_vm15, %v10213_v14, 2102212464  ;;  %v15482_v61 = vld [vmem:[#allocation14_spill] sm:$0xff] }
 0x12c   : > { %v1369_v62 = vshrl.u32 %v10348_v63, 16  ;;  %v1401_v20 = vadd.s32 %v1400_v35, %v1391_v42  ;;  %vm1496_vm6 = vcmp.lt.s32.totalorder %v10297_v50, 2  ;;  %v1507_v15 = vsel %vm1495_vm13, %v10403_v45, %v10405_v0 }
 0x12d   : > { %v1509_v58 = vsel %vm1497_vm8, %v1491_v13, %v1508_v32  ;;  %v522_v26 = vmul.f32 %v9785_v8, %v504_v1  ;;  %v1115_v47 = vsub.s32 4294967266, %v10415_v4  ;;  %v10450_v14 = vsel %vm1496_vm6, %v1503_v39, %v1505_v53 }
 0x12e   : > { %v10446_v37 = vadd.s32 %v1378_v31, %v1369_v62  ;;  %v813_v63 = vcvt.s32.f32 %v806_v16  ;;  %v1774_v51 = vand.u32 2139095040, %v10409_v17  ;;  %v1256_v12 = vshll.u32 %v10417_v7, 30 }
 0x12f   : > { %v10454_v11 = vshll.u32 %v1471_v19, 8  ;;  %vm695_vm15 = vcmp.lt.s32.totalorder %v15482_v61, 0  ;;  %v1345_v13 = vsel %vm1341_vm3, %v1325_v36, %v10209_v34  ;;  %v1347_v59 = vsel %vm1343_vm4, %v10211_v29, %v1346_v30  ;;  %v15484_v34 = vld [vmem:[#allocation15_spill] sm:$0xff] }
 0x130   : > { %v15483_v22 = vshll.u32 %v10339_v44, 16  ;;  %v10470_v35 = vsel %vm1496_vm6, %v1507_v15, %v1509_v58  ;;  %v814_v31 = vmul.f32 %v813_v63, %v811_v5  ;;  %v2390_v32 = vand.u32 2139095040, %v10350_v3 }
 0x131   : > { %v1405_v1 = vadd.s32 1, %v1401_v20  ;;  %v15240_v42 = vshrl.u32 %v10450_v14, 16  ;;  %v10476_v19 = vmul.f32 %v9790_v6, %v15484_v34  ;;  %v10479_v29 = vadd.f32 %v522_v26, %v10281_v21 }
 0x132   : > { %v10466_v16 = vadd.s32 %v10352_v48, %v15483_v22  ;;  %v1116_v44 = vadd.s32 127, %v1115_v47  ;;  %v15487_v48 = vand.u32 2147483647, %v15482_v61  ;;  %v10490_v53 = vsub.s32 %v10372_v24, %v1256_v12  ;;  %v15490_v47 = vld [vmem:[#allocation26_spill] sm:$0xff] }
 0x133   : > { %15485 = vst [vmem:[#allocation22_spill] sm:$0xff] %v10476_v19  ;;  %v1348_v6 = vsel %vm1342_vm5, %v1345_v13, %v1347_v59  ;;  %v1512_v5 = vand.u32 65535, %v10454_v11  ;;  %v15239_v21 = vshrl.u32 %v10470_v35, 16  ;;  %v10497_v36 = vand.u32 31, %v10342_v57 }
 0x134   : > { %15486 = vst [vmem:[#allocation15_spill] sm:$0xff] %v10479_v29  ;;  %vm1404_vm3 = vc.u32 %v10446_v37, %v10466_v16  ;;  %vm10485_vm4 = vcmp.le.f32.partialorder %v15487_v48, 0.7853982  ;;  %vm550_vm10 = vcmp.gt.s32.totalorder %v10344_v43, 0  ;;  %v1111_v30 = vsub.s32 32, %v10415_v4 }
 0x135   : > { %v1775_v62 = vshrl.u32 %v1774_v51, 23  ;;  %v815_v15 = vxor.u32 2147483648, %v814_v31  ;;  %v2391_v58 = vshrl.u32 %v2390_v32, 23  ;;  %v1406_v26 = vsel %vm1404_vm3, %v1405_v1, %v1401_v20  ;;  %v10511_v51 = vpop.permute.xlu1 %487 }
 0x136   : > { %v10503_v24 = vmul.u32 %v15240_v42, %v1512_v5  ;;  %v2852_v46 = vand.u32 2139095040, %v10479_v29  ;;  %v1095_v63 = vadd.s32 %v15490_v47, %v10094_v2  ;;  %v1117_v12 = vshll.u32 %v1116_v44, 23 }
 0x137   : > { %v1402_v13 = vmul.u32 %v10273_v41, %v1348_v6  ;;  %v551_v59 = vsel %vm550_vm10, %v10344_v43, 0  ;;  %v1259_v22 = vsub.s32 0, %v10490_v53  ;;  %v10515_v20 = vmul.u32 %v15239_v21, %v1512_v5 }
 0x138   : > { %v1536_v32 = vand.u32 65535, %v10450_v14  ;;  %v1113_v1 = vshrl.u32 %v1095_v63, %v1111_v30  ;;  %v8873_v34 = vadd.s32 4294967169, %v1775_v62  ;;  %vm1258_vm5 = vcmp.lt.s32.totalorder %v10490_v53, 0 }
 0x139   : > { %v10519_v2 = vadd.s32 %v1406_v26, %v1402_v13  ;;  %v816_v41 = vsel %vm695_vm15, %v815_v15, %v814_v31  ;;  %v1513_v43 = vshrl.u32 %v10454_v11, 16  ;;  %v1514_v44 = vand.u32 65535, %v10470_v35 }
 0x13a   : > { %v1542_v48 = vshll.u32 %v10503_v24, 16  ;;  %v8885_v6 = vadd.s32 4294967169, %v2391_v58  ;;  %v2853_v47 = vshrl.u32 %v2852_v46, 23  ;;  %v1112_v9 = vshll.u32 %v10287_v28, %v10415_v4 }
 0x13b   : > { %v1118_v30 = vor.u32 4788187, %v1117_v12  ;;  %v1260_v62 = vsel %vm1258_vm5, %v1259_v22, %v10490_v53  ;;  %v1520_v26 = vshll.u32 %v10515_v20, 16  ;;  %v1538_v63 = vmul.u32 %v1536_v32, %v1512_v5 }
 0x13c   : > { %v10530_v13 = vmul.u32 %v1536_v32, %v1513_v43  ;;  %v10535_v31 = vsel %vm10485_vm4, %v15482_v61, %v816_v41  ;;  %v1114_v15 = vor.u32 %v1113_v1, %v1112_v9  ;;  %v1781_v21 = vadd.s32 1, %v8873_v34 }
 0x13d   : > { %v1408_v58 = vadd.s32 536870912, %v10519_v2  ;;  %v1516_v46 = vmul.u32 %v1514_v44, %v1512_v5  ;;  %v10538_v42 = vmul.u32 %v1514_v44, %v1513_v43  ;;  %vm1546_vm7 = vc.u32 %v1538_v63, %v1542_v48  ;;  %v10552_v44 = vpop.permute.xlu1 %499 }
 0x13e   : > { %v10540_v28 = vadd.s32 %v1542_v48, %v1538_v63  ;;  %v10542_v4 = vand.u32 31, %v551_v59  ;;  %v2397_v12 = vadd.s32 1, %v8885_v6  ;;  %v8894_v22 = vadd.s32 4294967169, %v2853_v47 }
 0x13f   : > { %v1261_v32 = vclz %v1260_v62  ;;  %v1119_v19 = vand.u32 2147483647, %v1118_v30  ;;  %vm1524_vm9 = vc.u32 %v1516_v46, %v1520_v26  ;;  %v1526_v29 = vadd.s32 %v1520_v26, %v1516_v46 }
 0x140   : > { %15491 = vst [vmem:[#allocation26_spill] sm:$0xff] %v10542_v4  ;;  %v15247_v41 = vshll.u32 %v10530_v13, 16  ;;  %v10547_v9 = vmul.f32 %v10535_v31, %v10535_v31  ;;  %vm1782_vm12 = vcmp.gt.s32.totalorder %v1781_v21, 0  ;;  %v10549_v5 = vshrl.u32 %v1408_v58, 30 }
 0x141   : > { %v1547_v1 = vsel %vm1546_vm7, 1, %v15447_v38  ;;  %v1121_v34 = vcvt.s32.f32 %v1114_v15  ;;  %v1522_v48 = vshll.u32 %v10538_v42, 16  ;;  %v15493_v6 = vshrl.u32 %v10450_v14, 16 }
 0x142   : > { %15492 = vst [vmem:[#allocation34_spill] sm:$0xff] %v10549_v5  ;;  %vm1550_vm11 = vc.u32 %v10540_v28, %v15247_v41  ;;  %vm2398_vm14 = vcmp.gt.s32.totalorder %v2397_v12, 0  ;;  %v2859_v30 = vadd.s32 1, %v8894_v22  ;;  %v8862_v62 = vadd.s32 4294967294, %v1261_v32 }
 0x143   : > { %v1541_v47 = vmul.u32 %v15493_v6, %v1513_v43  ;;  %v1525_v26 = vsel %vm1524_vm9, 1, %v15447_v38  ;;  %v1122_v63 = vmul.f32 %v1121_v34, %v1119_v19  ;;  %v15494_v58 = vshrl.u32 %v10470_v35, 16 }
 0x144   : > { %vm1528_vm1 = vc.u32 %v1526_v29, %v1522_v48  ;;  %v822_v3 = vmul.f32 -0.001358992, %v10547_v9  ;;  %v1783_v14 = vsel %vm1782_vm12, %v1781_v21, 0  ;;  %v1410_v6 = vshll.u32 %v10549_v5, 30  ;;  %v15498_v48 = vld [vmem:[#allocation18_spill] sm:$0xff] }
 0x145   : > { %v1519_v15 = vmul.u32 %v15494_v58, %v1513_v43  ;;  %v1549_v46 = vadd.s32 %v1547_v1, %v1541_v47  ;;  %v1551_v27 = vsel %vm1550_vm11, 1, %v15447_v38  ;;  %v10568_v41 = vshrl.u32 %v10342_v57, 5 }
 0x146   : > { %v10570_v22 = vshrl.u32 %v551_v59, 5  ;;  %v829_v19 = vmul.f32 -0.00019511016, %v10547_v9  ;;  %v10574_v35 = vsub.s32 32, %v10497_v36  ;;  %v2399_v29 = vsel %vm2398_vm14, %v2397_v12, 0 }
 0x147   : > { %15495 = vst [vmem:[#allocation35_spill] sm:$0xff] %v10568_v41  ;;  %v1527_v32 = vadd.s32 %v1525_v26, %v1519_v15  ;;  %vm8863_vm3 = vcmp.lt.s32.totalorder %v8862_v62, 0  ;;  %v1529_v21 = vsel %vm1528_vm1, 1, %v15447_v38  ;;  %vm2860_vm10 = vcmp.gt.s32.totalorder %v2859_v30, 0 }
 0x148   : > { %15496 = vst [vmem:[#allocation36_spill] sm:$0xff] %v10570_v22  ;;  %v1123_v43 = vxor.u32 2147483648, %v1122_v63  ;;  %v1785_v1 = vand.u32 31, %v1783_v14  ;;  %v1553_v34 = vadd.s32 %v1551_v27, %v1549_v46  ;;  %v10579_v57 = vsub.s32 32, %v10542_v4 }
 0x149   : > { %v823_v59 = vadd.f32 0.041655596, %v822_v3  ;;  %v15499_v47 = vand.u32 2147483647, %v15498_v48  ;;  %v10588_v58 = vsub.s32 %v10519_v2, %v1410_v6  ;;  %v830_v12 = vadd.f32 0.008332121, %v829_v19  ;;  %v5652_v6 = vpop.permute.xlu1 %5651 }
 0x14a   : > { %15497 = vst [vmem:[#allocation37_spill] sm:$0xff] %v10579_v57  ;;  %v10590_v15 = vsel %vm8863_vm3, 0, %v8862_v62  ;;  %v1531_v22 = vadd.s32 %v1529_v21, %v1527_v32  ;;  %v1543_v5 = vshrl.u32 %v10503_v24, 16  ;;  %v10593_v27 = vshrl.u32 %v2399_v29, 5  ;;  %8962 = vmatmul.msk.f32.gmra.mxu1 %vm5487_vm0, %v5652_v6 }
 0x14b   : > { %vm10583_vm5 = vcmp.le.f32.partialorder %v15499_v47, 0.7853982  ;;  %v10595_v46 = vand.u32 31, %v2399_v29  ;;  %v10597_v3 = vsel %vm2860_vm10, %v2859_v30, 0  ;;  %vm1003_vm7 = vcmp.lt.s32.totalorder %v15498_v48, 0 }
 0x14c   : > { %15502 = vst [vmem:[#allocation38_spill] sm:$0xff] %v10593_v27  ;;  %v1124_v47 = vsel %vm1003_vm7, %v1123_v43, %v1122_v63  ;;  %v10602_v4 = vsub.s32 32, %v1785_v1  ;;  %v1521_v2 = vshrl.u32 %v10515_v20, 16  ;;  %v1554_v62 = vadd.s32 %v1553_v34, %v1543_v5 }
 0x14d   : > { %15503 = vst [vmem:[#allocation39_spill] sm:$0xff] %v10595_v46  ;;  %v10606_v19 = vmul.f32 %v823_v59, %v10547_v9  ;;  %v10608_v24 = vshrl.u32 %v1783_v14, 5  ;;  %v1269_v32 = vsub.s32 4294967266, %v10590_v15  ;;  %v1413_v30 = vsub.s32 0, %v10588_v58 }
 0x14e   : > { %v831_v29 = vmul.f32 %v830_v12, %v10547_v9  ;;  %vm1412_vm9 = vcmp.lt.s32.totalorder %v10588_v58, 0  ;;  %v1532_v63 = vadd.s32 %v1531_v22, %v1521_v2  ;;  %v1545_v20 = vshrl.u32 %v10530_v13, 16 }
 0x14f   : > { %v10619_v5 = vsel %vm10583_vm5, %v15498_v48, %v1124_v47  ;;  %v1249_v14 = vadd.s32 %v10326_v25, %v10321_v23  ;;  %v1479_v21 = vshrl.u32 %v15449_v54, %v10333_v33  ;;  %v1500_v43 = vsel %vm1498_vm2, %v10405_v0, 2102212464 }
 0x150   : > { %v1265_v34 = vsub.s32 32, %v10590_v15  ;;  %v1523_v22 = vshrl.u32 %v10538_v42, 16  ;;  %v1555_v59 = vadd.s32 %v1554_v62, %v1545_v20  ;;  %v1798_v12 = vshrl.u32 %v15444_v56, %v10602_v4  ;;  %v5654_v20 = vpop.permute.xlu2 %5653 }
 0x151   : > { %v1270_v47 = vadd.s32 127, %v1269_v32  ;;  %v1414_v2 = vsel %vm1412_vm9, %v1413_v30, %v10588_v58  ;;  %v1499_v23 = vsel %vm1495_vm13, %v1479_v21, %v10401_v60  ;;  %v1801_v25 = vshrl.u32 %v15445_v49, %v10602_v4 }
 0x152   : > { %v1501_v33 = vsel %vm1497_vm8, %v10403_v45, %v1500_v43  ;;  %v10641_v0 = vadd.s32 %v1532_v63, %v1523_v22  ;;  %v1797_v62 = vshll.u32 %v15453_v10, %v1785_v1  ;;  %v1789_v6 = vshrl.u32 %v15454_v18, %v10602_v4  ;;  %8963 = vmatmul.msk.f32.gmra.mxu1 %vm5487_vm0, %v5654_v20 }
 0x153   : > { %v1792_v32 = vshrl.u32 %v15455_v40, %v10602_v4  ;;  %v1795_v60 = vshrl.u32 %v15453_v10, %v10602_v4  ;;  %v1800_v30 = vshll.u32 %v15444_v56, %v1785_v1  ;;  %v1415_v21 = vclz %v1414_v2 }
 0x154   : > { %v15504_v45 = vshll.u32 %v10530_v13, 16  ;;  %v1559_v43 = vadd.s32 1, %v1555_v59  ;;  %v1799_v22 = vor.u32 %v1798_v12, %v1797_v62  ;;  %v1788_v42 = vshll.u32 %v15449_v54, %v1785_v1 }
 0x155   : > { %v1791_v57 = vshll.u32 %v15454_v18, %v1785_v1  ;;  %v1794_v27 = vshll.u32 %v15455_v40, %v1785_v1  ;;  %v1802_v7 = vor.u32 %v1801_v25, %v1800_v30  ;;  %v1271_v41 = vshll.u32 %v1270_v47, 23 }
 0x156   : > { %v10655_v63 = vadd.s32 %v10540_v28, %v15504_v45  ;;  %v1502_v2 = vsel %vm1496_vm6, %v1499_v23, %v1501_v33  ;;  %v15505_v13 = vand.u32 2147483647, %v10409_v17  ;;  %v10667_v12 = vor.u32 %v1789_v6, %v1788_v42 }
 0x157   : > { %v10669_v62 = vor.u32 %v1792_v32, %v1791_v57  ;;  %v10671_v20 = vor.u32 %v1795_v60, %v1794_v27  ;;  %vm1806_vm13 = vcmp.lt.s32.totalorder %v10608_v24, 4  ;;  %v832_v1 = vadd.f32 -0.16666654, %v831_v29  ;;  %v15507_v60 = vld [vmem:[#allocation28_spill] sm:$0xff] }
 0x158   : > { %vm1558_vm2 = vc.u32 %v10641_v0, %v10655_v63  ;;  %v1778_v28 = vand.u32 8388607, %v15505_v13  ;;  %v10676_v47 = vmul.f32 %v10619_v5, %v10619_v5  ;;  %v518_v50 = vmul.f32 %v9785_v8, %v10511_v51 }
 0x159   : > { %v1812_v23 = vsel %vm1806_vm13, %v1799_v22, 920167782  ;;  %v1267_v25 = vshrl.u32 %v1249_v14, %v1265_v34  ;;  %v8865_v33 = vadd.s32 4294967294, %v1415_v21  ;;  %v1560_v42 = vsel %vm1558_vm2, %v1559_v43, %v1555_v59  ;;  %v15506_v34 = vld [vmem:[#allocation25_spill] sm:$0xff] }
 0x15a   : > { %v1816_v57 = vsel %vm1806_vm13, %v1802_v7, 1326507024  ;;  %v1266_v27 = vshll.u32 %v10490_v53, %v10590_v15  ;;  %v1556_v29 = vmul.u32 %v10454_v11, %v1502_v2  ;;  %vm1803_vm8 = vcmp.lt.s32.totalorder %v10608_v24, 1  ;;  %v5656_v53 = vpop.permute.xlu0 %5655 }
 0x15b   : > { %vm1805_vm6 = vcmp.lt.s32.totalorder %v10608_v24, 3  ;;  %v1272_v6 = vor.u32 4788187, %v1271_v41  ;;  %v1779_v51 = vor.u32 8388608, %v1778_v28  ;;  %v1811_v14 = vsel %vm1803_vm8, %v10667_v12, %v10669_v62  ;;  %8964 = vmatmul.msk.f32.gmra.mxu1 %vm5487_vm0, %v5656_v53 }
 0x15c   : > { %v1813_v7 = vsel %vm1805_vm6, %v10671_v20, %v1812_v23  ;;  %v817_v59 = vsub.s32 4, %v15506_v34  ;;  %v10697_v15 = vadd.s32 %v1560_v42, %v1556_v29  ;;  %v1815_v11 = vsel %vm1803_vm8, %v10669_v62, %v10671_v20 }
 0x15d   : > { %v1817_v41 = vsel %vm1805_vm6, %v1799_v22, %v1816_v57  ;;  %v1268_v32 = vor.u32 %v1267_v25, %v1266_v27  ;;  %v10706_v30 = vadd.f32 %v518_v50, %v15507_v60  ;;  %vm8866_vm12 = vcmp.lt.s32.totalorder %v8865_v33, 0  ;;  %v5658_v60 = vpop.permute.xlu1 %5657 }
 0x15e   : > { %vm1804_vm11 = vcmp.lt.s32.totalorder %v10608_v24, 2  ;;  %v825_v21 = vadd.f32 -0.4999988, %v10606_v19  ;;  %v10712_v45 = vand.u32 31, %v10597_v3  ;;  %v1137_v43 = vmul.f32 -0.00019511016, %v10676_v47 }
 0x15f   : > { %15508 = vst [vmem:[#allocation25_spill] sm:$0xff] %v10706_v30  ;;  %v10717_v2 = vsel %vm1804_vm11, %v1811_v14, %v1813_v7  ;;  %v833_v22 = vmul.f32 %v832_v1, %v10547_v9  ;;  %v1273_v13 = vand.u32 2147483647, %v1272_v6  ;;  %v10722_v28 = vsel %vm1804_vm11, %v1815_v11, %v1817_v41 }
 0x160   : > { %15509 = vst [vmem:[#allocation28_spill] sm:$0xff] %v10712_v45  ;;  %v10724_v50 = vshll.u32 %v1779_v51, 8  ;;  %v818_v19 = vsel %vm695_vm15, %v817_v59, %v15506_v34  ;;  %v1125_v23 = vsub.s32 4, %v10220_v52  ;;  %v10730_v25 = vsel %vm8866_vm12, 0, %v8865_v33 }
 0x161   : > { %v1562_v42 = vadd.s32 536870912, %v10697_v15  ;;  %v1130_v57 = vmul.f32 -0.001358992, %v10676_v47  ;;  %v1275_v1 = vcvt.s32.f32 %v1268_v32  ;;  %v2236_v27 = vand.u32 2139095040, %v10706_v30 }
 0x162   : > { %v15258_v29 = vshrl.u32 %v10717_v2, 16  ;;  %v826_v6 = vmul.f32 %v825_v21, %v10547_v9  ;;  %v10738_v51 = vsub.s32 32, %v10595_v46  ;;  %v1138_v14 = vadd.f32 0.008332121, %v1137_v43 }
 0x163   : > { %v15259_v7 = vshrl.u32 %v10722_v28, 16  ;;  %v834_v34 = vadd.f32 1.0, %v833_v22  ;;  %v1276_v33 = vmul.f32 %v1275_v1, %v1273_v13  ;;  %v1423_v59 = vsub.s32 4294967266, %v10730_v25  ;;  %8965 = vmatmul.msk.f32.gmra.mxu1 %vm5487_vm0, %v5658_v60 }
 0x164   : > { %15510 = vst [vmem:[#allocation40_spill] sm:$0xff] %v10738_v51  ;;  %v1820_v53 = vand.u32 65535, %v10724_v50  ;;  %v10745_v11 = vsel %vm10485_vm4, 0, %v818_v19  ;;  %v10748_v41 = vshrl.u32 %v10597_v3, 5  ;;  %v10751_v9 = vsub.s32 32, %v10712_v45  ;;  %v15516_v19 = vld [vmem:[#allocation19_spill] sm:$0xff] }
 0x165   : > { %15511 = vst [vmem:[#allocation41_spill] sm:$0xff] %v10745_v11  ;;  %v10753_v32 = vshrl.u32 %v1562_v42, 30  ;;  %v1126_v21 = vsel %vm1003_vm7, %v1125_v23, %v10220_v52  ;;  %v1131_v43 = vadd.f32 0.041655596, %v1130_v57  ;;  %v2237_v22 = vshrl.u32 %v2236_v27, 23 }
 0x166   : > { %15512 = vst [vmem:[#allocation42_spill] sm:$0xff] %v10748_v41  ;;  %v10760_v39 = vmul.u32 %v15258_v29, %v1820_v53  ;;  %v10763_v3 = vadd.f32 1.0, %v826_v6  ;;  %v1139_v13 = vmul.f32 %v1138_v14, %v10676_v47  ;;  %v15517_v42 = vand.u32 2147483647, %v15516_v19 }
 0x167   : > { %15513 = vst [vmem:[#allocation43_spill] sm:$0xff] %v10751_v9  ;;  %vm1157_vm4 = vcmp.lt.s32.totalorder %v15516_v19, 0  ;;  %v10775_v52 = vmul.u32 %v15259_v7, %v1820_v53  ;;  %v10778_v23 = vmul.f32 %v834_v34, %v10535_v31  ;;  %v1277_v57 = vxor.u32 2147483648, %v1276_v33 }
 0x168   : > { %15514 = vst [vmem:[#allocation44_spill] sm:$0xff] %v10753_v32  ;;  %vm10768_vm15 = vcmp.le.f32.partialorder %v15517_v42, 0.7853982  ;;  %v1424_v27 = vadd.s32 127, %v1423_v59  ;;  %v1844_v6 = vand.u32 65535, %v10717_v2  ;;  %v10783_v14 = vsel %vm10583_vm5, 0, %v1126_v21 }
 0x169   : > { %15515 = vst [vmem:[#allocation45_spill] sm:$0xff] %v10763_v3  ;;  %v1419_v60 = vsub.s32 32, %v10730_v25  ;;  %v1564_v42 = vshll.u32 %v10753_v32, 30  ;;  %v1822_v29 = vand.u32 65535, %v10722_v28  ;;  %v1132_v7 = vmul.f32 %v1131_v43, %v10676_v47 }
 0x16a   : > { %15520 = vst [vmem:[#allocation46_spill] sm:$0xff] %v10778_v23  ;;  %v8882_v41 = vadd.s32 4294967169, %v2237_v22  ;;  %v1821_v31 = vshrl.u32 %v10724_v50, 16  ;;  %v1850_v34 = vshll.u32 %v10760_v39, 16  ;;  %v1140_v59 = vadd.f32 -0.16666654, %v1139_v13  ;;  %v5660_v22 = vpop.permute.xlu2 %5659 }
 0x16b   : > { %15521 = vst [vmem:[#allocation47_spill] sm:$0xff] %v10783_v14  ;;  %v1403_v45 = vadd.s32 %v10466_v16, %v10446_v37  ;;  %v521_v26 = vmul.f32 %v9785_v8, %v10552_v44  ;;  %v1828_v21 = vshll.u32 %v10775_v52, 16  ;;  %v1278_v9 = vsel %vm1157_vm4, %v1277_v57, %v1276_v33  ;;  %8966 = vmatmul.msk.f32.gmra.mxu1 %vm5487_vm0, %v5660_v22  ;;  %v15522_v57 = vld [vmem:[#allocation30_spill] sm:$0xff]  ;;  %v5662_v22 = vpop.permute.xlu0 %5661 }
 0x16c   : > { %v1425_v17 = vshll.u32 %v1424_v27, 23  ;;  %v1846_v46 = vmul.u32 %v1844_v6, %v1820_v53  ;;  %v10798_v43 = vmul.u32 %v1844_v6, %v1821_v31  ;;  %v10801_v30 = vsub.s32 %v10697_v15, %v1564_v42 }
 0x16d   : > { %v1421_v51 = vshrl.u32 %v1403_v45, %v1419_v60  ;;  %v1824_v13 = vmul.u32 %v1822_v29, %v1820_v53  ;;  %v10803_v32 = vmul.u32 %v1822_v29, %v1821_v31  ;;  %v1133_v37 = vadd.f32 -0.4999988, %v1132_v7 }
 0x16e   : > { %v2243_v16 = vadd.s32 1, %v8882_v41  ;;  %vm1854_vm14 = vc.u32 %v1846_v46, %v1850_v34  ;;  %v10805_v44 = vadd.s32 %v1850_v34, %v1846_v46  ;;  %v1420_v33 = vshll.u32 %v10588_v58, %v10730_v25 }
 0x16f   : > { %v10811_v27 = vadd.f32 %v521_v26, %v15522_v57  ;;  %vm1832_vm1 = vc.u32 %v1824_v13, %v1828_v21  ;;  %v1834_v45 = vadd.s32 %v1828_v21, %v1824_v13  ;;  %v1141_v15 = vmul.f32 %v1140_v59, %v10676_v47  ;;  %v5664_v59 = vpop.permute.xlu1 %5663 }
 0x170   : > { %v10817_v29 = vsel %vm10768_vm15, %v15516_v19, %v1278_v9  ;;  %v1426_v7 = vor.u32 4788187, %v1425_v17  ;;  %v15273_v46 = vshll.u32 %v10798_v43, 16  ;;  %v1422_v53 = vor.u32 %v1421_v51, %v1420_v33 }
 0x171   : > { %15523 = vst [vmem:[#allocation30_spill] sm:$0xff] %v10811_v27  ;;  %v1567_v41 = vsub.s32 0, %v10801_v30  ;;  %v1830_v58 = vshll.u32 %v10803_v32, 16  ;;  %v1855_v25 = vsel %vm1854_vm14, 1, %v15447_v38  ;;  %vm1566_vm3 = vcmp.lt.s32.totalorder %v10801_v30, 0 }
 0x172   : > { %v1833_v6 = vsel %vm1832_vm1, 1, %v15447_v38  ;;  %v15524_v60 = vshrl.u32 %v10717_v2, 16  ;;  %vm1858_vm10 = vc.u32 %v10805_v44, %v15273_v46  ;;  %v10832_v17 = vmul.f32 %v10817_v29, %v10817_v29 }
 0x173   : > { %v2698_v51 = vand.u32 2139095040, %v10811_v27  ;;  %v15525_v9 = vshrl.u32 %v10722_v28, 16  ;;  %vm1836_vm5 = vc.u32 %v1834_v45, %v1830_v58  ;;  %vm2244_vm7 = vcmp.gt.s32.totalorder %v2243_v16, 0  ;;  %8967 = vmatmul.msk.f32.gmra.mxu1 %vm5487_vm0, %v5662_v22 }
 0x174   : > { %v1849_v42 = vmul.u32 %v15524_v60, %v1821_v31  ;;  %v1427_v26 = vand.u32 2147483647, %v1426_v7  ;;  %v3612_v21 = vadd.s32 3, %v10783_v14  ;;  %v1568_v13 = vsel %vm1566_vm3, %v1567_v41, %v10801_v30 }
 0x175   : > { %v1827_v34 = vmul.u32 %v15525_v9, %v1821_v31  ;;  %v1859_v57 = vsel %vm1858_vm10, 1, %v15447_v38  ;;  %v1134_v60 = vmul.f32 %v1133_v37, %v10676_v47  ;;  %v1142_v46 = vadd.f32 1.0, %v1141_v15 }
 0x176   : > { %v1857_v2 = vadd.s32 %v1855_v25, %v1849_v42  ;;  %v1429_v8 = vcvt.s32.f32 %v1422_v53  ;;  %v1837_v28 = vsel %vm1836_vm5, 1, %v15447_v38  ;;  %v1284_v45 = vmul.f32 -0.001358992, %v10832_v17  ;;  %v10848_v25 = vpop.f32.mrf.mxu0  ;;  %v15527_v53 = vld [vmem:[#allocation27_spill] sm:$0xff] }
 0x177   : > { %v1835_v33 = vadd.s32 %v1833_v6, %v1827_v34  ;;  %v10846_v7 = vsel %vm2244_vm7, %v2243_v16, 0  ;;  %v2699_v58 = vshrl.u32 %v2698_v51, 23  ;;  %15526 = vst [vmem:[#allocation48_spill] sm:$0xff] %v10848_v25  ;;  %v1291_v41 = vmul.f32 -0.00019511016, %v10832_v17 }
 0x178   : > { %v1430_v6 = vmul.f32 %v1429_v8, %v1427_v26  ;;  %v1569_v42 = vclz %v1568_v13  ;;  %v1861_v47 = vadd.s32 %v1859_v57, %v1857_v2  ;;  %v10851_v37 = vand.u32 3, %v3612_v21 }
 0x179   : > { %vm1311_vm9 = vcmp.lt.s32.totalorder %v9975_v55, 0  ;;  %v1839_v15 = vadd.s32 %v1837_v28, %v1835_v33  ;;  %v15276_v9 = vand.u32 2147483647, %v15527_v53  ;;  %v10855_v34 = vadd.f32 1.0, %v1134_v60 }
 0x17a   : > { %v10858_v16 = vmul.f32 %v1142_v46, %v10619_v5  ;;  %v10861_v51 = vshrl.u32 %v10846_v7, 5  ;;  %v1851_v22 = vshrl.u32 %v10760_v39, 16  ;;  %v1285_v8 = vadd.f32 0.041655596, %v1284_v45 }
 0x17b   : > { %15528 = vst [vmem:[#allocation49_spill] sm:$0xff] %v10855_v34  ;;  %v8891_v26 = vadd.s32 4294967169, %v2699_v58  ;;  %v1829_v2 = vshrl.u32 %v10775_v52, 16  ;;  %v1955_v21 = vshrl.u32 %v15445_v49, %v10574_v35  ;;  %v1292_v13 = vadd.f32 0.008332121, %v1291_v41  ;;  %8968 = vmatmul.msk.f32.gmra.mxu1 %vm5487_vm0, %v5664_v59 }
 0x17c   : > { %15529 = vst [vmem:[#allocation50_spill] sm:$0xff] %v10858_v16  ;;  %v15530_v33 = vand.u32 2147483647, %v9975_v55  ;;  %v1431_v5 = vxor.u32 2147483648, %v1430_v6  ;;  %v8868_v46 = vadd.s32 4294967294, %v1569_v42  ;;  %v1862_v60 = vadd.s32 %v1861_v47, %v1851_v22 }
 0x17d   : > { %v1840_v28 = vadd.s32 %v1839_v15, %v1829_v2  ;;  %v1932_v39 = vand.u32 8388607, %v15276_v9  ;;  %v1946_v52 = vshrl.u32 %v15455_v40, %v10574_v35  ;;  %v1954_v45 = vshll.u32 %v15444_v56, %v10497_v36 }
 0x17e   : > { %vm10869_vm2 = vcmp.le.f32.partialorder %v15530_v33, 0.7853982  ;;  %v1853_v58 = vshrl.u32 %v10798_v43, 16  ;;  %v1945_v41 = vshll.u32 %v15454_v18, %v10497_v36  ;;  %v1949_v42 = vshrl.u32 %v15453_v10, %v10574_v35 }
 0x17f   : > { %v1952_v47 = vshrl.u32 %v15444_v56, %v10574_v35  ;;  %v1831_v15 = vshrl.u32 %v10803_v32, 16  ;;  %v1948_v22 = vshll.u32 %v15455_v40, %v10497_v36  ;;  %v1951_v2 = vshll.u32 %v15453_v10, %v10497_v36 }
 0x180   : > { %v1956_v33 = vor.u32 %v1955_v21, %v1954_v45  ;;  %vm8869_vm12 = vcmp.lt.s32.totalorder %v8868_v46, 0  ;;  %v1787_v9 = vshrl.u32 %v15449_v54, %v10602_v4  ;;  %v1808_v31 = vsel %vm1806_vm13, %v10671_v20, 2102212464  ;;  %v10905_v21 = vpop.f32.mrf.mxu0 }
 0x181   : > { %v1863_v25 = vadd.s32 %v1862_v60, %v1853_v58  ;;  %v1432_v59 = vsel %vm1311_vm9, %v1431_v5, %v1430_v6  ;;  %v10899_v32 = vadd.s32 %v1840_v28, %v1831_v15  ;;  %v1943_v14 = vshrl.u32 %v15454_v18, %v10574_v35  ;;  %15533 = vst [vmem:[#allocation51_spill] sm:$0xff] %v10905_v21  ;;  %v15534_v60 = vld [vmem:[#allocation35_spill] sm:$0xff] }
 0x182   : > { %v10903_v53 = vor.u32 %v1946_v52, %v1945_v41  ;;  %v1807_v4 = vsel %vm1803_vm8, %v1787_v9, %v10667_v12  ;;  %v10910_v45 = vor.u32 %v1949_v42, %v1948_v22  ;;  %v1953_v20 = vor.u32 %v1952_v47, %v1951_v2 }
 0x183   : > { %vm1960_vm13 = vcmp.lt.s32.totalorder %v15534_v60, 4  ;;  %vm3615_vm14 = vcmp.eq.s32.totalorder %v10851_v37, 0  ;;  %vm3618_vm1 = vcmp.eq.s32.totalorder %v10851_v37, 2  ;;  %v10915_v6 = vsel %vm8869_vm12, 0, %v8868_v46 }
 0x184   : > { %v1809_v5 = vsel %vm1805_vm6, %v10669_v62, %v1808_v31  ;;  %v15535_v28 = vshll.u32 %v10798_v43, 16  ;;  %v1970_v12 = vsel %vm1960_vm13, %v1956_v33, 1326507024  ;;  %v1293_v9 = vmul.f32 %v1292_v13, %v10832_v17  ;;  %v5666_v62 = vpop.permute.xlu2 %5665 }
 0x185   : > { %v1867_v58 = vadd.s32 1, %v1863_v25  ;;  %v1933_v41 = vor.u32 8388608, %v1932_v39  ;;  %v1942_v46 = vshll.u32 %v15449_v54, %v10497_v36  ;;  %v10933_v42 = vsel %vm10869_vm2, %v9975_v55, %v1432_v59  ;;  %8969 = vmatmul.msk.f32.gmra.mxu1 %vm5487_vm0, %v5666_v62 }
 0x186   : > { %v10923_v52 = vadd.s32 %v10805_v44, %v15535_v28  ;;  %vm1957_vm6 = vcmp.lt.s32.totalorder %v15534_v60, 1  ;;  %vm1959_vm3 = vcmp.lt.s32.totalorder %v15534_v60, 3  ;;  %vm3614_vm10 = vcmp.lt.s32.totalorder %v10851_v37, 2  ;;  %v15537_v28 = vld [vmem:[#allocation34_spill] sm:$0xff] }
 0x187   : > { %v1577_v43 = vsub.s32 4294967266, %v10915_v6  ;;  %v1810_v36 = vsel %vm1804_vm11, %v1807_v4, %v1809_v5  ;;  %v1969_v44 = vsel %vm1957_vm6, %v10903_v53, %v10910_v45  ;;  %v1971_v31 = vsel %vm1959_vm3, %v1953_v20, %v1970_v12 }
 0x188   : > { %vm1866_vm8 = vc.u32 %v10899_v32, %v10923_v52  ;;  %v15279_v13 = vxor.u32 2147483648, %v10858_v16  ;;  %v15280_v39 = vxor.u32 2147483648, %v10855_v34  ;;  %v2705_v47 = vadd.s32 1, %v8891_v26 }
 0x189   : > { %v10952_v15 = vor.u32 %v1943_v14, %v1942_v46  ;;  %v1286_v24 = vmul.f32 %v1285_v8, %v10832_v17  ;;  %v1868_v22 = vsel %vm1866_vm8, %v1867_v58, %v1863_v25  ;;  %vm1958_vm11 = vcmp.lt.s32.totalorder %v15534_v60, 2  ;;  %v15536_v14 = vld [vmem:[#allocation21_spill] sm:$0xff]  ;;  %v10984_v46 = vpop.f32.mrf.mxu0 }
 0x18a   : > { %v1966_v2 = vsel %vm1960_vm13, %v1953_v20, 920167782  ;;  %v1294_v33 = vadd.f32 -0.16666654, %v1293_v9  ;;  %v10960_v59 = vmul.f32 %v10933_v42, %v10933_v42  ;;  %v1864_v4 = vmul.u32 %v10724_v50, %v1810_v36  ;;  %15538 = vst [vmem:[#allocation35_spill] sm:$0xff] %v10984_v46 }
 0x18b   : > { %v10965_v26 = vsel %vm1958_vm11, %v1969_v44, %v1971_v31  ;;  %vm1144_vm5 = vweird.f32 %v15498_v48  ;;  %v1279_v25 = vsub.s32 4, %v15536_v14  ;;  %v10970_v8 = vand.u32 31, %v10846_v7  ;;  %v5668_v31 = vpop.permute.xlu0 %5667 }
 0x18c   : > { %v1578_v5 = vadd.s32 127, %v1577_v43  ;;  %v10972_v20 = vshll.u32 %v1933_v41, 8  ;;  %v1433_v12 = vsub.s32 4, %v15537_v28  ;;  %v10975_v9 = vadd.s32 %v1868_v22, %v1864_v4 }
 0x18d   : > { %v1965_v50 = vsel %vm1957_vm6, %v10952_v15, %v10903_v53  ;;  %v1967_v58 = vsel %vm1959_vm3, %v10910_v45, %v1966_v2  ;;  %v3617_v7 = vsel %vm3615_vm14, %v10855_v34, %v15279_v13  ;;  %v3620_v41 = vsel %vm3618_vm1, %v15280_v39, %v10858_v16  ;;  %8970 = vmatmul.msk.f32.gmra.mxu1 %vm5487_vm0, %v5668_v31 }
 0x18e   : > { %v1573_v62 = vsub.s32 32, %v10915_v6  ;;  %v15281_v43 = vshrl.u32 %v10965_v26, 16  ;;  %v1287_v36 = vadd.f32 -0.4999988, %v1286_v24  ;;  %v1295_v44 = vmul.f32 %v1294_v33, %v10832_v17 }
 0x18f   : > { %v1445_v22 = vmul.f32 -0.00019511016, %v10960_v59  ;;  %vm2706_vm7 = vcmp.gt.s32.totalorder %v2705_v47, 0  ;;  %v1557_v2 = vadd.s32 %v10655_v63, %v10641_v0  ;;  %v1579_v4 = vshll.u32 %v1578_v5, 23 }
 0x190   : > { %v11004_v13 = vsel %vm1958_vm11, %v1965_v50, %v1967_v58  ;;  %v1974_v39 = vand.u32 65535, %v10972_v20  ;;  %v3621_v24 = vsel %vm3614_vm10, %v3617_v7, %v3620_v41  ;;  %v1280_v33 = vsel %vm1157_vm4, %v1279_v25, %v15536_v14 }
 0x191   : > { %v1434_v0 = vsel %vm1311_vm9, %v1433_v12, %v15537_v28  ;;  %v1870_v63 = vadd.s32 536870912, %v10975_v9  ;;  %v1438_v5 = vmul.f32 -0.001358992, %v10960_v59  ;;  %v2707_v50 = vsel %vm2706_vm7, %v2705_v47, 0 }
 0x192   : > { %v1575_v58 = vshrl.u32 %v1557_v2, %v1573_v62  ;;  %v11020_v31 = vmul.u32 %v15281_v43, %v1974_v39  ;;  %v1288_v37 = vmul.f32 %v1287_v36, %v10832_v17  ;;  %v1296_v7 = vadd.f32 1.0, %v1295_v44 }
 0x193   : > { %v1446_v41 = vadd.f32 0.008332121, %v1445_v22  ;;  %v1999_v14 = vshrl.u32 %v11004_v13, 16  ;;  %v11026_v25 = vsel %vm10869_vm2, 0, %v1434_v0  ;;  %v1574_v28 = vshll.u32 %v10801_v30, %v10915_v6 }
 0x194   : > { %15539 = vst [vmem:[#allocation21_spill] sm:$0xff] %v11026_v25  ;;  %v1580_v12 = vor.u32 4788187, %v1579_v4  ;;  %v1976_v47 = vand.u32 65535, %v10965_v26  ;;  %v11033_v62 = vsel %vm1144_vm5, nan, %v3621_v24  ;;  %v11037_v17 = vsel %vm10768_vm15, 0, %v1280_v33  ;;  %v5562_v33 = vpop.f32.mrf.mxu0 }
 0x195   : > { %15540 = vst [vmem:[#allocation34_spill] sm:$0xff] %v11033_v62  ;;  %v11040_v36 = vsub.s32 32, %v10970_v8  ;;  %v11042_v57 = vshrl.u32 %v1870_v63, 30  ;;  %v1439_v44 = vadd.f32 0.041655596, %v1438_v5  ;;  %v11044_v22 = vand.u32 31, %v2707_v50 }
 0x196   : > { %15541 = vst [vmem:[#allocation52_spill] sm:$0xff] %v11037_v17  ;;  %v1576_v30 = vor.u32 %v1575_v58, %v1574_v28  ;;  %v1982_v6 = vshll.u32 %v11020_v31, 16  ;;  %v11047_v2 = vadd.f32 1.0, %v1288_v37  ;;  %v1447_v4 = vmul.f32 %v1446_v41, %v10960_v59 }
 0x197   : > { %15542 = vst [vmem:[#allocation53_spill] sm:$0xff] %v11044_v22  ;;  %v3922_v24 = vadd.s32 3, %v11026_v25  ;;  %v11051_v1 = vmul.u32 %v1999_v14, %v1974_v39  ;;  %v11054_v0 = vmul.f32 %v1296_v7, %v10817_v29  ;;  %v1581_v63 = vand.u32 2147483647, %v1580_v12 }
 0x198   : > { %15543 = vst [vmem:[#allocation54_spill] sm:$0xff] %v11047_v2  ;;  %v1978_v43 = vmul.u32 %v1976_v47, %v1974_v39  ;;  %v1998_v5 = vand.u32 65535, %v11004_v13  ;;  %v11058_v58 = vmul.f32 %v5562_v33, %v11033_v62  ;;  %v11060_v28 = vshrl.u32 %v2707_v50, 5 }
 0x199   : > { %15544 = vst [vmem:[#allocation55_spill] sm:$0xff] %v11054_v0  ;;  %v1872_v37 = vshll.u32 %v11042_v57, 30  ;;  %v1975_v41 = vshrl.u32 %v10972_v20, 16  ;;  %v1440_v21 = vmul.f32 %v1439_v44, %v10960_v59  ;;  %v11066_v46 = vsub.s32 32, %v11044_v22 }
 0x19a   : > { %15545 = vst [vmem:[#allocation56_spill] sm:$0xff] %v11058_v58  ;;  %v1583_v29 = vcvt.s32.f32 %v1576_v30  ;;  %vm1986_vm15 = vc.u32 %v1978_v43, %v1982_v6  ;;  %v1448_v12 = vadd.f32 -0.16666654, %v1447_v4  ;;  %v2004_v33 = vshll.u32 %v11051_v1, 16 }
 0x19b   : > { %15546 = vst [vmem:[#allocation57_spill] sm:$0xff] %v11060_v28  ;;  %v11069_v13 = vmul.u32 %v1976_v47, %v1975_v41  ;;  %vm15342_vm4 = vweird.f32 %v15482_v61  ;;  %v11074_v62 = vand.u32 3, %v3922_v24  ;;  %v2000_v44 = vmul.u32 %v1998_v5, %v1974_v39  ;;  %v15572_v28 = vld [vmem:[#allocation38_spill] sm:$0xff] }
 0x19c   : > { %15547 = vst [vmem:[#allocation58_spill] sm:$0xff] %v11066_v46  ;;  %v11076_v25 = vmul.f32 %v1583_v29, %v1581_v63  ;;  %v11079_v58 = vsub.s32 %v10975_v9, %v1872_v37  ;;  %v1987_v30 = vsel %vm1986_vm15, 1, %v15447_v38  ;;  %v1988_v7 = vadd.s32 %v1982_v6, %v1978_v43  ;;  %v15549_v9 = vld [vmem:[#allocation44_spill] sm:$0xff]  ;;  %v5670_v43 = vpop.permute.xlu1 %5669  ;;  %v5672_v6 = vpop.permute.xlu2 %5671 }
 0x19d   : > { %v11082_v4 = vmul.u32 %v1998_v5, %v1975_v41  ;;  %v11084_v47 = vadd.f32 -0.4999988, %v1440_v21  ;;  %v1941_v48 = vshrl.u32 %v15449_v54, %v10574_v35  ;;  %v15548_v50 = vshrl.u32 %v10965_v26, 16  ;;  %8971 = vmatmul.msk.f32.gmra.mxu1 %vm5487_vm0, %v5670_v43 }
 0x19e   : > { %v837_v63 = vand.u32 3, %v10745_v11  ;;  %v11092_v39 = vmul.f32 %v1448_v12, %v10960_v59  ;;  %v1984_v29 = vshll.u32 %v11069_v13, 16  ;;  %vm2008_vm9 = vc.u32 %v2000_v44, %v2004_v33 }
 0x19f   : > { %v1981_v24 = vmul.u32 %v15548_v50, %v1975_v41  ;;  %v11100_v21 = vsel %vm1957_vm6, %v1941_v48, %v10952_v15  ;;  %v2003_v26 = vmul.u32 %v1999_v14, %v1975_v41  ;;  %vm1874_vm2 = vcmp.lt.s32.totalorder %v11079_v58, 0 }
 0x1a0   : > { %vm11103_vm12 = vc.u32 %v1988_v7, %v1984_v29  ;;  %v15285_v5 = vshll.u32 %v11082_v4, 16  ;;  %v11108_v12 = vadd.s32 %v2004_v33, %v2000_v44  ;;  %v2009_v50 = vsel %vm2008_vm9, 1, %v15447_v38  ;;  %v9475_v33 = vld [vmem:[%s15186_s4 + $0x8] sm:$0xff] }
 0x1a1   : > { %v1989_v35 = vadd.s32 %v1987_v30, %v1981_v24  ;;  %vm839_vm14 = vcmp.eq.s32.totalorder %v837_v63, 0  ;;  %vm842_vm1 = vcmp.eq.s32.totalorder %v837_v63, 2  ;;  %v2263_v48 = vshrl.u32 %v15445_v49, %v11040_v36  ;;  %v15555_v24 = vld [vmem:[#allocation25_spill] sm:$0xff] }
 0x1a2   : > { %vm838_vm8 = vcmp.lt.s32.totalorder %v837_v63, 2  ;;  %v15552_v15 = vxor.u32 2147483648, %v10778_v23  ;;  %v15553_v41 = vxor.u32 2147483648, %v10763_v3  ;;  %v11122_v44 = vadd.s32 1, %v9475_v33 }
 0x1a3   : > { %v2260_v63 = vshrl.u32 %v15444_v56, %v11040_v36  ;;  %vm11133_vm6 = vc.u32 %v11108_v12, %v15285_v5  ;;  %v2254_v43 = vshrl.u32 %v15455_v40, %v11040_v36  ;;  %v2011_v37 = vadd.s32 %v2009_v50, %v2003_v26 }
 0x1a4   : > { %v841_v14 = vsel %vm839_vm14, %v10763_v3, %v15552_v15  ;;  %v844_v7 = vsel %vm842_vm1, %v15553_v41, %v10778_v23  ;;  %15554 = vst [vmem:[#allocation44_spill] sm:$0xff] %v11122_v44  ;;  %v2262_v15 = vshll.u32 %v15444_v56, %v10970_v8  ;;  %6017 = vperm.xlu1 %9131, %v11122_v44   ;;  %v1299_v3 = vand.u32 3, %v11037_v17  ;;  %v15560_v23 = vld [vmem:[#allocation24_spill] sm:$0xff] }
 0x1a5   : > { %v845_v30 = vsel %vm838_vm8, %v841_v14, %v844_v7  ;;  %v2257_v14 = vshrl.u32 %v15453_v10, %v11040_v36  ;;  %v1875_v7 = vsub.s32 0, %v11079_v58  ;;  %v2259_v5 = vshll.u32 %v15453_v10, %v10970_v8  ;;  %8972 = vmatmul.msk.f32.gmra.mxu1 %vm5487_vm0, %v5672_v6 }
 0x1a6   : > { %v11139_v33 = vsel %vm15342_vm4, nan, %v845_v30  ;;  %v2264_v30 = vor.u32 %v2263_v48, %v2262_v15  ;;  %v2251_v29 = vshrl.u32 %v15454_v18, %v11040_v36  ;;  %v2253_v61 = vshll.u32 %v15454_v18, %v10970_v8 }
 0x1a7   : > { %15558 = vst [vmem:[#allocation59_spill] sm:$0xff] %v11139_v33  ;;  %5796 = vrot.lane.b32.xlu2 %v11139_v33, %s9534_s21  ;;  %v2256_v44 = vshll.u32 %v15455_v40, %v10970_v8  ;;  %vm15341_vm10 = vweird.f32 %v15516_v19  ;;  %v1991_v26 = vsel %vm11103_vm12, 1, %v15447_v38  ;;  %v2013_v50 = vsel %vm11133_vm6, 1, %v15447_v38 }
 0x1a8   : > { %v15559_v48 = vand.u32 2147483647, %v15555_v24  ;;  %v2261_v33 = vor.u32 %v2260_v63, %v2259_v5  ;;  %vm1465_vm7 = vcmp.lt.s32.totalorder %v15560_v23, 0  ;;  %v2250_v11 = vshll.u32 %v15449_v54, %v10970_v8 }
 0x1a9   : > { %v11170_v17 = vor.u32 %v2254_v43, %v2253_v61  ;;  %v11172_v34 = vor.u32 %v2257_v14, %v2256_v44  ;;  %vm2268_vm15 = vcmp.lt.s32.totalorder %v10861_v51, 4  ;;  %v1876_v41 = vsel %vm1874_vm2, %v1875_v7, %v11079_v58 }
 0x1aa   : > { %v2240_v15 = vand.u32 8388607, %v15559_v48  ;;  %v1962_v5 = vsel %vm1960_vm13, %v10910_v45, 2102212464  ;;  %v1983_v63 = vshrl.u32 %v11020_v31, 16  ;;  %v1993_v61 = vadd.s32 %v1991_v26, %v1989_v35 }
 0x1ab   : > { %v2278_v8 = vsel %vm2268_vm15, %v2264_v30, 1326507024  ;;  %v2015_v43 = vadd.s32 %v2013_v50, %v2011_v37  ;;  %v11184_v44 = vor.u32 %v2251_v29, %v2250_v11  ;;  %vm1301_vm9 = vcmp.eq.s32.totalorder %v1299_v3, 0 }
 0x1ac   : > { %vm2265_vm12 = vcmp.lt.s32.totalorder %v10861_v51, 1  ;;  %vm2267_vm2 = vcmp.lt.s32.totalorder %v10861_v51, 3  ;;  %v2274_v14 = vsel %vm2268_vm15, %v2261_v33, 920167782  ;;  %v15561_v45 = vxor.u32 2147483648, %v11054_v0 }
 0x1ad   : > { %v2241_v7 = vor.u32 8388608, %v2240_v15  ;;  %v2277_v11 = vsel %vm2265_vm12, %v11170_v17, %v11172_v34  ;;  %v2279_v37 = vsel %vm2267_vm2, %v2261_v33, %v2278_v8  ;;  %vm1304_vm13 = vcmp.eq.s32.totalorder %v1299_v3, 2 }
 0x1ae   : > { %v1303_v31 = vsel %vm1301_vm9, %v11047_v2, %v15561_v45  ;;  %v2005_v35 = vshrl.u32 %v11051_v1, 16  ;;  %vm2266_vm14 = vcmp.lt.s32.totalorder %v10861_v51, 2  ;;  %vm1300_vm1 = vcmp.lt.s32.totalorder %v1299_v3, 2  ;;  %v9476_v1 = vld [vmem:[%s15186_s4 + $0x20] sm:$0xff] }
 0x1af   : > { %v15562_v29 = vxor.u32 2147483648, %v11047_v2  ;;  %v2273_v26 = vsel %vm2265_vm12, %v11184_v44, %v11170_v17  ;;  %v2275_v50 = vsel %vm2267_vm2, %v11172_v34, %v2274_v14  ;;  %v11215_v48 = vadd.s32 1, %v9476_v1 }
 0x1b0   : > { %v1877_v3 = vclz %v1876_v41  ;;  %v1963_v15 = vsel %vm1959_vm3, %v10903_v53, %v1962_v5  ;;  %v1994_v6 = vadd.s32 %v1993_v61, %v1983_v63  ;;  %v11222_v8 = vsel %vm2266_vm14, %v2277_v11, %v2279_v37  ;;  %v5674_v41 = vpop.permute.xlu0 %5673 }
 0x1b1   : > { %v1306_v30 = vsel %vm1304_vm13, %v15562_v29, %v11054_v0  ;;  %15563 = vst [vmem:[#allocation60_spill] sm:$0xff] %v11215_v48  ;;  %v11226_v14 = vmul.f32 %v11084_v47, %v10960_v59  ;;  %v2016_v45 = vadd.s32 %v2015_v43, %v2005_v35  ;;  %6026 = vperm.xlu1 %9131, %v11215_v48   ;;  %v11236_v53 = vadd.f32 1.0, %v11092_v39  ;;  %v5676_v0 = vpop.permute.xlu1 %5675 }
 0x1b2   : > { %v1307_v33 = vsel %vm1300_vm1, %v1303_v31, %v1306_v30  ;;  %v11228_v31 = vshll.u32 %v2241_v7, 8  ;;  %v15565_v5 = vsub.s32 4, %v15549_v9  ;;  %v1985_v47 = vshrl.u32 %v11069_v13, 16  ;;  %8973 = vmatmul.msk.f32.gmra.mxu1 %vm5487_vm0, %v5674_v41 }
 0x1b3   : > { %v11232_v29 = vsel %vm15341_vm10, nan, %v1307_v33  ;;  %v11248_v63 = vsel %vm2266_vm14, %v2273_v26, %v2275_v50  ;;  %v15566_v39 = vxor.u32 2147483648, %v11076_v25  ;;  %v2007_v13 = vshrl.u32 %v11082_v4, 16  ;;  %v15569_v50 = vld [vmem:[#allocation40_spill] sm:$0xff] }
 0x1b4   : > { %15564 = vst [vmem:[#allocation61_spill] sm:$0xff] %v11232_v29  ;;  %v11243_v59 = vsel %vm1465_vm7, %v15565_v5, %v15549_v9  ;;  %5802 = vrot.lane.b32.xlu2 %v11232_v29, %s9534_s21  ;;  %v11262_v9 = vsel %vm1958_vm11, %v11100_v21, %v1963_v15  ;;  %v15297_v43 = vshrl.u32 %v11222_v8, 16  ;;  %v8874_v7 = vadd.s32 4294967294, %v1877_v3 }
 0x1b5   : > { %v11257_v61 = vsel %vm1465_vm7, %v15566_v39, %v11076_v25  ;;  %v11267_v11 = vadd.s32 %v1994_v6, %v1985_v47  ;;  %v15567_v37 = vshll.u32 %v11082_v4, 16  ;;  %v15568_v25 = vld [vmem:[#allocation16_spill] sm:$0xff]  ;;  %v2017_v26 = vadd.s32 %v2016_v45, %v2007_v13  ;;  %v15570_v4 = vld [vmem:[#allocation39_spill] sm:$0xff] }
 0x1b6   : > { %v2282_v60 = vand.u32 65535, %v11228_v31  ;;  %v15309_v21 = vshrl.u32 %v11248_v63, 16  ;;  %v2405_v33 = vshrl.u32 %v15454_v18, %v15569_v50  ;;  %v2408_v1 = vshrl.u32 %v15455_v40, %v15569_v50 }
 0x1b7   : > { %v11272_v35 = vadd.s32 %v11108_v12, %v15567_v37  ;;  %v2411_v3 = vshrl.u32 %v15453_v10, %v15569_v50  ;;  %v2413_v12 = vshll.u32 %v15453_v10, %v15570_v4  ;;  %v2414_v15 = vshrl.u32 %v15444_v56, %v15569_v50 }
 0x1b8   : > { %v2284_v6 = vand.u32 65535, %v11222_v8  ;;  %v11290_v45 = vmul.u32 %v15297_v43, %v2282_v60  ;;  %v2416_v41 = vshll.u32 %v15444_v56, %v15570_v4  ;;  %v2417_v5 = vshrl.u32 %v15445_v49, %v15569_v50 }
 0x1b9   : > { %v2404_v47 = vshll.u32 %v15449_v54, %v15570_v4  ;;  %v2407_v39 = vshll.u32 %v15454_v18, %v15570_v4  ;;  %v2410_v13 = vshll.u32 %v15455_v40, %v15570_v4  ;;  %v2415_v37 = vor.u32 %v2414_v15, %v2413_v12 }
 0x1ba   : > { %v2283_v30 = vshrl.u32 %v11228_v31, 16  ;;  %v11305_v43 = vmul.u32 %v15309_v21, %v2282_v60  ;;  %v15571_v29 = vand.u32 2147483647, %v15568_v25  ;;  %v2418_v2 = vor.u32 %v2417_v5, %v2416_v41  ;;  %8974 = vmatmul.msk.f32.gmra.mxu1 %vm5487_vm0, %v5676_v0 }
 0x1bb   : > { %v11309_v48 = vor.u32 %v2405_v33, %v2404_v47  ;;  %v11311_v16 = vor.u32 %v2408_v1, %v2407_v39  ;;  %v11313_v24 = vor.u32 %v2411_v3, %v2410_v13  ;;  %vm2422_vm3 = vcmp.lt.s32.totalorder %v15572_v28, 4 }
 0x1bc   : > { %v2394_v19 = vand.u32 8388607, %v15571_v29  ;;  %vm8875_vm11 = vcmp.lt.s32.totalorder %v8874_v7, 0  ;;  %vm2020_vm8 = vc.u32 %v11267_v11, %v11272_v35  ;;  %v2290_v4 = vshll.u32 %v11290_v45, 16 }
 0x1bd   : > { %v2428_v12 = vsel %vm2422_vm3, %v2415_v37, 920167782  ;;  %v15573_v29 = vand.u32 2147483647, %v15560_v23  ;;  %v2021_v1 = vadd.s32 1, %v2017_v26  ;;  %v2286_v3 = vmul.u32 %v2284_v6, %v2282_v60 }
 0x1be   : > { %v11328_v15 = vmul.u32 %v2284_v6, %v2283_v30  ;;  %v2306_v41 = vand.u32 65535, %v11248_v63  ;;  %v2312_v5 = vshll.u32 %v11305_v43, 16  ;;  %vm2419_vm7 = vcmp.lt.s32.totalorder %v15572_v28, 1 }
 0x1bf   : > { %vm11324_vm6 = vcmp.le.f32.partialorder %v15573_v29, 0.7853982  ;;  %vm2421_vm9 = vcmp.lt.s32.totalorder %v15572_v28, 3  ;;  %v2432_v0 = vsel %vm2422_vm3, %v2418_v2, 1326507024  ;;  %v2395_v47 = vor.u32 8388608, %v2394_v19 }
 0x1c0   : > { %v2427_v39 = vsel %vm2419_vm7, %v11309_v48, %v11311_v16  ;;  %v2429_v6 = vsel %vm2421_vm9, %v11313_v24, %v2428_v12  ;;  %v2431_v13 = vsel %vm2419_vm7, %v11311_v16, %v11313_v24  ;;  %v11348_v29 = vsel %vm8875_vm11, 0, %v8874_v7 }
 0x1c1   : > { %vm2294_vm13 = vc.u32 %v2286_v3, %v2290_v4  ;;  %v2296_v2 = vadd.s32 %v2290_v4, %v2286_v3  ;;  %v2433_v19 = vsel %vm2421_vm9, %v2415_v37, %v2432_v0  ;;  %v2022_v21 = vsel %vm2020_vm8, %v2021_v1, %v2017_v26  ;;  %v5678_v3 = vpop.permute.xlu2 %5677 }
 0x1c2   : > { %v2308_v25 = vmul.u32 %v2306_v41, %v2282_v60  ;;  %v11355_v22 = vmul.u32 %v2306_v41, %v2283_v30  ;;  %vm2420_vm1 = vcmp.lt.s32.totalorder %v15572_v28, 2  ;;  %v2018_v12 = vmul.u32 %v10972_v20, %v11262_v9  ;;  %8975 = vmatmul.msk.f32.gmra.mxu1 %vm5487_vm0, %v5678_v3 }
 0x1c3   : > { %v2292_v7 = vshll.u32 %v11328_v15, 16  ;;  %v11363_v4 = vsel %vm2420_vm1, %v2427_v39, %v2429_v6  ;;  %v11367_v37 = vsel %vm2420_vm1, %v2431_v13, %v2433_v19  ;;  %v2295_v26 = vsel %vm2294_vm13, 1, %v15447_v38 }
 0x1c4   : > { %vm2316_vm11 = vc.u32 %v2308_v25, %v2312_v5  ;;  %v11370_v60 = vadd.s32 %v2312_v5, %v2308_v25  ;;  %v11372_v1 = vshll.u32 %v2395_v47, 8  ;;  %v1885_v20 = vsub.s32 4294967266, %v11348_v29 }
 0x1c5   : > { %v11375_v9 = vadd.s32 %v2022_v21, %v2018_v12  ;;  %v15576_v41 = vshrl.u32 %v11222_v8, 16  ;;  %vm2298_vm8 = vc.u32 %v2296_v2, %v2292_v7  ;;  %v11381_v39 = vadd.f32 1.0, %v11226_v14 }
 0x1c6   : > { %v15314_v6 = vshll.u32 %v11355_v22, 16  ;;  %v15313_v25 = vshrl.u32 %v11367_v37, 16  ;;  %v2461_v5 = vshrl.u32 %v11363_v4, 16  ;;  %v11390_v21 = vsel %vm11324_vm6, %v15560_v23, %v11257_v61 }
 0x1c7   : > { %v2289_v0 = vmul.u32 %v15576_v41, %v2283_v30  ;;  %15577 = vst [vmem:[#allocation40_spill] sm:$0xff] %v11381_v39  ;;  %v1881_v8 = vsub.s32 32, %v11348_v29  ;;  %v2317_v13 = vsel %vm2316_vm11, 1, %v15447_v38  ;;  %v2299_v14 = vsel %vm2298_vm8, 1, %v15447_v38 }
 0x1c8   : > { %15578 = vst [vmem:[#allocation39_spill] sm:$0xff] %v11390_v21  ;;  %v15579_v2 = vshrl.u32 %v11248_v63, 16  ;;  %vm2320_vm13 = vc.u32 %v11370_v60, %v15314_v6  ;;  %v2436_v12 = vand.u32 65535, %v11372_v1  ;;  %v11403_v61 = vmul.f32 %v11236_v53, %v10933_v42 }
 0x1c9   : > { %v2297_v47 = vadd.s32 %v2295_v26, %v2289_v0  ;;  %v1865_v7 = vadd.s32 %v10923_v52, %v10899_v32  ;;  %v1886_v3 = vadd.s32 127, %v1885_v20  ;;  %v2024_v26 = vadd.s32 536870912, %v11375_v9  ;;  %v5680_v20 = vpop.permute.xlu0 %5679 }
 0x1ca   : > { %v2311_v19 = vmul.u32 %v15579_v2, %v2283_v30  ;;  %15580 = vst [vmem:[#allocation38_spill] sm:$0xff] %v11403_v61  ;;  %v11410_v63 = vmul.u32 %v15313_v25, %v2436_v12  ;;  %v2460_v30 = vand.u32 65535, %v11363_v4  ;;  %v11413_v0 = vmul.u32 %v2461_v5, %v2436_v12  ;;  %8976 = vmatmul.msk.f32.gmra.mxu1 %vm5487_vm0, %v5680_v20 }
 0x1cb   : > { %v11417_v2 = vmul.f32 %v11390_v21, %v11390_v21  ;;  %v1883_v42 = vshrl.u32 %v1865_v7, %v1881_v8  ;;  %v2301_v53 = vadd.s32 %v2299_v14, %v2297_v47  ;;  %v2321_v32 = vsel %vm2320_vm13, 1, %v15447_v38 }
 0x1cc   : > { %v2319_v41 = vadd.s32 %v2317_v13, %v2311_v19  ;;  %v2437_v13 = vshrl.u32 %v11372_v1, 16  ;;  %v2438_v19 = vand.u32 65535, %v11367_v37  ;;  %v2466_v25 = vshll.u32 %v11413_v0, 16 }
 0x1cd   : > { %v1882_v4 = vshll.u32 %v11079_v58, %v11348_v29  ;;  %v1887_v6 = vshll.u32 %v1886_v3, 23  ;;  %v11426_v23 = vshrl.u32 %v2024_v26, 30  ;;  %v2291_v8 = vshrl.u32 %v11290_v45, 16 }
 0x1ce   : > { %v2323_v47 = vadd.s32 %v2321_v32, %v2319_v41  ;;  %v2444_v14 = vshll.u32 %v11410_v63, 16  ;;  %v2462_v7 = vmul.u32 %v2460_v30, %v2436_v12  ;;  %v11431_v52 = vmul.u32 %v2460_v30, %v2437_v13 }
 0x1cf   : > { %15581 = vst [vmem:[#allocation62_spill] sm:$0xff] %v11426_v23  ;;  %v11435_v27 = vmul.f32 -0.001358992, %v11417_v2  ;;  %v11437_v46 = vor.u32 %v1883_v42, %v1882_v4  ;;  %v2302_v58 = vadd.s32 %v2301_v53, %v2291_v8  ;;  %v2313_v29 = vshrl.u32 %v11305_v43, 16 }
 0x1d0   : > { %v2440_v3 = vmul.u32 %v2438_v19, %v2436_v12  ;;  %vm2470_vm11 = vc.u32 %v2462_v7, %v2466_v25  ;;  %v11440_v45 = vadd.s32 %v2466_v25, %v2462_v7  ;;  %v11442_v26 = vor.u32 4788187, %v1887_v6 }
 0x1d1   : > { %v2249_v41 = vshrl.u32 %v15449_v54, %v11040_v36  ;;  %v2293_v30 = vshrl.u32 %v11328_v15, 16  ;;  %v11447_v32 = vmul.u32 %v2438_v19, %v2437_v13  ;;  %v2026_v20 = vshll.u32 %v11426_v23, 30  ;;  %v15582_v19 = vld [vmem:[#allocation31_spill] sm:$0xff] }
 0x1d2   : > { %v2324_v42 = vadd.s32 %v2323_v47, %v2313_v29  ;;  %vm2448_vm0 = vc.u32 %v2440_v3, %v2444_v14  ;;  %v15321_v53 = vshll.u32 %v11431_v52, 16  ;;  %v2270_v43 = vsel %vm2268_vm15, %v11172_v34, 2102212464 }
 0x1d3   : > { %v11454_v25 = vadd.s32 %v2302_v58, %v2293_v30  ;;  %v2450_v6 = vadd.s32 %v2444_v14, %v2440_v3  ;;  %v2471_v12 = vsel %vm2470_vm11, 1, %v15447_v38  ;;  %v2315_v36 = vshrl.u32 %v11355_v22, 16 }
 0x1d4   : > { %v2465_v15 = vmul.u32 %v2461_v5, %v2437_v13  ;;  %vm2474_vm8 = vc.u32 %v11440_v45, %v15321_v53  ;;  %v15320_v4 = vand.u32 2147483647, %v15582_v19  ;;  %v2269_v8 = vsel %vm2265_vm12, %v2249_v41, %v11184_v44  ;;  %v15585_v44 = vld [vmem:[#allocation37_spill] sm:$0xff] }
 0x1d5   : > { %v15583_v34 = vshll.u32 %v11355_v22, 16  ;;  %v2446_v14 = vshll.u32 %v11447_v32, 16  ;;  %v2449_v7 = vsel %vm2448_vm0, 1, %v15447_v38  ;;  %v2271_v5 = vsel %vm2267_vm2, %v11170_v17, %v2270_v43 }
 0x1d6   : > { %v2325_v58 = vadd.s32 %v2324_v42, %v2315_v36  ;;  %v15584_v29 = vshrl.u32 %v11367_v37, 16  ;;  %v2473_v30 = vadd.s32 %v2471_v12, %v2465_v15  ;;  %v2475_v22 = vsel %vm2474_vm8, 1, %v15447_v38 }
 0x1d7   : > { %v11468_v47 = vadd.s32 %v11370_v60, %v15583_v34  ;;  %vm2452_vm12 = vc.u32 %v2450_v6, %v2446_v14  ;;  %v560_v60 = vshrl.u32 %v15455_v40, %v15585_v44  ;;  %v546_v34 = vand.u32 8388607, %v15320_v4 }
 0x1d8   : > { %v2443_v3 = vmul.u32 %v15584_v29, %v2437_v13  ;;  %v563_v17 = vshrl.u32 %v15453_v10, %v15585_v44  ;;  %v566_v37 = vshrl.u32 %v15444_v56, %v15585_v44  ;;  %v15586_v13 = vld [vmem:[#allocation26_spill] sm:$0xff]  ;;  %v569_v12 = vshrl.u32 %v15445_v49, %v15585_v44 }
 0x1d9   : > { %vm2328_vm15 = vc.u32 %v11454_v25, %v11468_v47  ;;  %v559_v42 = vshll.u32 %v15454_v18, %v15586_v13  ;;  %v562_v43 = vshll.u32 %v15455_v40, %v15586_v13  ;;  %v568_v6 = vshll.u32 %v15444_v56, %v15586_v13 }
 0x1da   : > { %v2451_v41 = vadd.s32 %v2449_v7, %v2443_v3  ;;  %v2329_v36 = vadd.s32 1, %v2325_v58  ;;  %v2453_v15 = vsel %vm2452_vm12, 1, %v15447_v38  ;;  %v2477_v14 = vadd.s32 %v2475_v22, %v2473_v30 }
 0x1db   : > { %v565_v7 = vshll.u32 %v15453_v10, %v15586_v13  ;;  %v557_v29 = vshrl.u32 %v15454_v18, %v15585_v44  ;;  %v11501_v3 = vor.u32 %v560_v60, %v559_v42  ;;  %v11503_v4 = vor.u32 %v563_v17, %v562_v43  ;;  %v15587_v18 = vld [vmem:[#allocation36_spill] sm:$0xff] }
 0x1dc   : > { %v570_v21 = vor.u32 %v569_v12, %v568_v6  ;;  %v11506_v53 = vsub.s32 %v11375_v9, %v2026_v20  ;;  %v2272_v23 = vsel %vm2266_vm14, %v2269_v8, %v2271_v5  ;;  %v547_v19 = vor.u32 8388608, %v546_v34 }
 0x1dd   : > { %v567_v49 = vor.u32 %v566_v37, %v565_v7  ;;  %v2455_v30 = vadd.s32 %v2453_v15, %v2451_v41  ;;  %v2467_v22 = vshrl.u32 %v11413_v0, 16  ;;  %v556_v10 = vshll.u32 %v15449_v54, %v15586_v13 }
 0x1de   : > { %vm574_vm2 = vcmp.lt.s32.totalorder %v15587_v18, 4  ;;  %v2330_v60 = vsel %vm2328_vm15, %v2329_v36, %v2325_v58  ;;  %v2445_v9 = vshrl.u32 %v11410_v63, 16  ;;  %vm571_vm13 = vcmp.lt.s32.totalorder %v15587_v18, 1 }
 0x1df   : > { %v584_v51 = vsel %vm574_vm2, %v570_v21, 1326507024  ;;  %v2478_v20 = vadd.s32 %v2477_v14, %v2467_v22  ;;  %v11521_v8 = vor.u32 %v557_v29, %v556_v10  ;;  %vm573_vm14 = vcmp.lt.s32.totalorder %v15587_v18, 3 }
 0x1e0   : > { %v583_v0 = vsel %vm571_vm13, %v11501_v3, %v11503_v4  ;;  %vm3925_vm11 = vcmp.eq.s32.totalorder %v11074_v62, 0  ;;  %vm2028_vm0 = vcmp.lt.s32.totalorder %v11506_v53, 0  ;;  %v2326_v63 = vmul.u32 %v11228_v31, %v2272_v23 }
 0x1e1   : > { %v585_v5 = vsel %vm573_vm14, %v567_v49, %v584_v51  ;;  %v11533_v21 = vshll.u32 %v547_v19, 8  ;;  %v2456_v10 = vadd.s32 %v2455_v30, %v2445_v9  ;;  %v2469_v58 = vshrl.u32 %v11431_v52, 16 }
 0x1e2   : > { %vm572_vm8 = vcmp.lt.s32.totalorder %v15587_v18, 2  ;;  %v580_v41 = vsel %vm574_vm2, %v567_v49, 920167782  ;;  %v2029_v34 = vsub.s32 0, %v11506_v53  ;;  %v11540_v17 = vadd.s32 %v2330_v60, %v2326_v63 }
 0x1e3   : > { %v2403_v23 = vshrl.u32 %v15449_v54, %v15569_v50  ;;  %v586_v31 = vsel %vm572_vm8, %v583_v0, %v585_v5  ;;  %v2424_v19 = vsel %vm2422_vm3, %v11313_v24, 2102212464  ;;  %v2447_v37 = vshrl.u32 %v11447_v32, 16 }
 0x1e4   : > { %v2479_v13 = vadd.s32 %v2478_v20, %v2469_v58  ;;  %v579_v49 = vsel %vm571_vm13, %v11521_v8, %v11501_v3  ;;  %v581_v42 = vsel %vm573_vm14, %v11503_v4, %v580_v41  ;;  %v588_v50 = vand.u32 65535, %v11533_v21 }
 0x1e5   : > { %v590_v43 = vand.u32 65535, %v586_v31  ;;  %v591_v6 = vshrl.u32 %v586_v31, 16  ;;  %v1889_v12 = vand.u32 2147483647, %v11442_v26  ;;  %v1891_v24 = vcvt.s32.f32 %v11437_v46 }
 0x1e6   : > { %v11560_v36 = vadd.s32 %v2456_v10, %v2447_v37  ;;  %v589_v32 = vshrl.u32 %v11533_v21, 16  ;;  %v2030_v15 = vsel %vm2028_vm0, %v2029_v34, %v11506_v53  ;;  %v2332_v14 = vadd.s32 536870912, %v11540_v17 }
 0x1e7   : > { %v2423_v7 = vsel %vm2419_vm7, %v2403_v23, %v11309_v48  ;;  %v11570_v29 = vmul.u32 %v591_v6, %v588_v50  ;;  %vm3928_vm3 = vcmp.eq.s32.totalorder %v11074_v62, 2  ;;  %v2425_v46 = vsel %vm2421_vm9, %v11311_v16, %v2424_v19 }
 0x1e8   : > { %v15588_v26 = vshll.u32 %v11431_v52, 16  ;;  %v582_v22 = vsel %vm572_vm8, %v579_v49, %v581_v42  ;;  %v11583_v60 = vmul.u32 %v590_v43, %v589_v32  ;;  %vm3924_vm7 = vcmp.lt.s32.totalorder %v11074_v62, 2 }
 0x1e9   : > { %v1599_v48 = vmul.f32 -0.00019511016, %v11417_v2  ;;  %v2483_v9 = vadd.s32 1, %v2479_v13  ;;  %v592_v51 = vmul.u32 %v590_v43, %v588_v50  ;;  %v596_v20 = vshll.u32 %v11570_v29, 16 }
 0x1ea   : > { %v11579_v30 = vadd.s32 %v11440_v45, %v15588_v26  ;;  %v15589_v16 = vxor.u32 2147483648, %v11403_v61  ;;  %v1892_v45 = vmul.f32 %v1891_v24, %v1889_v12  ;;  %v2031_v0 = vclz %v2030_v15 }
 0x1eb   : > { %v11595_v63 = vshrl.u32 %v2332_v14, 30  ;;  %v2426_v5 = vsel %vm2420_vm1, %v2423_v7, %v2425_v46  ;;  %vm600_vm15 = vc.u32 %v592_v51, %v596_v20  ;;  %v613_v10 = vshrl.u32 %v582_v22, 16  ;;  %v15590_v14 = vld [vmem:[#allocation23_spill] sm:$0xff] }
 0x1ec   : > { %v3927_v52 = vsel %vm3925_vm11, %v11381_v39, %v15589_v16  ;;  %vm2482_vm9 = vc.u32 %v11560_v36, %v11579_v30  ;;  %v595_v58 = vmul.u32 %v591_v6, %v589_v32  ;;  %v598_v41 = vshll.u32 %v11583_v60, 16 }
 0x1ed   : > { %v601_v34 = vsel %vm600_vm15, 1, %v15447_v38  ;;  %v602_v23 = vadd.s32 %v596_v20, %v592_v51  ;;  %v1593_v31 = vadd.f32 0.041655596, %v11435_v27  ;;  %v1600_v19 = vadd.f32 0.008332121, %v1599_v48 }
 0x1ee   : > { %v2484_v37 = vsel %vm2482_vm9, %v2483_v9, %v2479_v13  ;;  %v612_v49 = vand.u32 65535, %v582_v22  ;;  %v1893_v42 = vxor.u32 2147483648, %v1892_v45  ;;  %v2480_v43 = vmul.u32 %v11372_v1, %v2426_v5  ;;  %v9477_v1 = vld [vmem:[%s15186_s4 + $0x38] sm:$0xff] }
 0x1ef   : > { %v603_v12 = vadd.s32 %v601_v34, %v595_v58  ;;  %vm604_vm12 = vc.u32 %v602_v23, %v598_v41  ;;  %v8877_v28 = vadd.s32 4294967294, %v2031_v0  ;;  %v2334_v24 = vshll.u32 %v11595_v63, 30 }
 0x1f0   : > { %v605_v6 = vsel %vm604_vm12, 1, %v15447_v38  ;;  %v615_v15 = vmul.u32 %v613_v10, %v588_v50  ;;  %v15591_v7 = vand.u32 2147483647, %v15590_v14  ;;  %vm1773_vm11 = vcmp.lt.s32.totalorder %v15590_v14, 0 }
 0x1f1   : > { %v11612_v27 = vadd.s32 %v2484_v37, %v2480_v43  ;;  %v11617_v13 = vadd.s32 1, %v9477_v1  ;;  %v15595_v26 = vxor.u32 2147483648, %v11381_v39  ;;  %v11627_v48 = vsel %vm11324_vm6, 0, %v11243_v59 }
 0x1f2   : > { %vm11607_vm1 = vcmp.le.f32.partialorder %v15591_v7, 0.7853982  ;;  %15596 = vst [vmem:[#allocation26_spill] sm:$0xff] %v11627_v48  ;;  %v1594_v9 = vmul.f32 %v1593_v31, %v11417_v2  ;;  %v616_v51 = vmul.u32 %v612_v49, %v589_v32  ;;  %v607_v16 = vadd.s32 %v605_v6, %v603_v12 }
 0x1f3   : > { %15594 = vst [vmem:[#allocation37_spill] sm:$0xff] %v11617_v13  ;;  %v3930_v22 = vsel %vm3928_vm3, %v15595_v26, %v11403_v61  ;;  %6035 = vperm.xlu1 %9131, %v11617_v13   ;;  %v614_v0 = vmul.u32 %v612_v49, %v588_v50  ;;  %v618_v5 = vshll.u32 %v615_v15, 16  ;;  %vm15387_vm0 = vweird.f32 %v9975_v55 }
 0x1f4   : > { %v3931_v20 = vsel %vm3924_vm7, %v3927_v52, %v3930_v22  ;;  %v1601_v58 = vmul.f32 %v1600_v19, %v11417_v2  ;;  %v1894_v33 = vsel %vm1773_vm11, %v1893_v42, %v1892_v45  ;;  %vm8878_vm6 = vcmp.lt.s32.totalorder %v8877_v28, 0 }
 0x1f5   : > { %v11638_v59 = vsub.s32 %v11540_v17, %v2334_v24  ;;  %v2486_v41 = vadd.s32 536870912, %v11612_v27  ;;  %v597_v62 = vshrl.u32 %v11570_v29, 16  ;;  %v617_v52 = vmul.u32 %v613_v10, %v589_v32 }
 0x1f6   : > { %vm622_vm3 = vc.u32 %v614_v0, %v618_v5  ;;  %v1595_v34 = vadd.f32 -0.4999988, %v1594_v9  ;;  %v620_v50 = vshll.u32 %v616_v51, 16  ;;  %v624_v31 = vadd.s32 %v618_v5, %v614_v0 }
 0x1f7   : > { %v623_v23 = vsel %vm622_vm3, 1, %v15447_v38  ;;  %v1895_v19 = vsub.s32 4, %v11042_v57  ;;  %v11647_v45 = vsel %vm11607_vm1, %v15590_v14, %v1894_v33  ;;  %v608_v17 = vadd.s32 %v607_v16, %v597_v62 }
 0x1f8   : > { %v625_v37 = vadd.s32 %v623_v23, %v617_v52  ;;  %v11649_v49 = vsel %vm8878_vm6, 0, %v8877_v28  ;;  %v2337_v29 = vsub.s32 0, %v11638_v59  ;;  %v576_v32 = vsel %vm574_vm2, %v11503_v4, 2102212464 }
 0x1f9   : > { %vm626_vm7 = vc.u32 %v624_v31, %v620_v50  ;;  %v11655_v10 = vshrl.u32 %v2486_v41, 30  ;;  %v555_v42 = vshrl.u32 %v15449_v54, %v15585_v44  ;;  %v599_v43 = vshrl.u32 %v11583_v60, 16 }
 0x1fa   : > { %v627_v12 = vsel %vm626_vm7, 1, %v15447_v38  ;;  %v1602_v24 = vadd.f32 -0.16666654, %v1601_v58  ;;  %vm2336_vm9 = vcmp.lt.s32.totalorder %v11638_v59, 0  ;;  %v619_v28 = vshrl.u32 %v615_v15, 16 }
 0x1fb   : > { %15597 = vst [vmem:[#allocation36_spill] sm:$0xff] %v11655_v10  ;;  %v629_v6 = vadd.s32 %v627_v12, %v625_v37  ;;  %v2039_v7 = vsub.s32 4294967266, %v11649_v49  ;;  %v575_v4 = vsel %vm571_vm13, %v555_v42, %v11521_v8  ;;  %v577_v1 = vsel %vm573_vm14, %v11501_v3, %v576_v32 }
 0x1fc   : > { %v11669_v44 = vadd.s32 %v608_v17, %v599_v43  ;;  %v15598_v60 = vmov 1   ;;  %v1896_v26 = vsel %vm1773_vm11, %v1895_v19, %v11042_v57  ;;  %v11677_v15 = vmul.f32 %v11647_v45, %v11647_v45 }
 0x1fd   : > { %9135 = vset.pattern.permute.xlu1 %v15598_v60  ;;  %v621_v22 = vshrl.u32 %v616_v51, 16  ;;  %v630_v9 = vadd.s32 %v629_v6, %v619_v28  ;;  %v11681_v8 = vsel %vm15387_vm0, nan, %v3931_v20  ;;  %v2338_v3 = vsel %vm2336_vm9, %v2337_v29, %v11638_v59  ;;  %v15604_v29 = vld [vmem:[#allocation53_spill] sm:$0xff] }
 0x1fe   : > { %15599 = vst [vmem:[#allocation23_spill] sm:$0xff] %v11681_v8  ;;  %v2488_v16 = vshll.u32 %v11655_v10, 30  ;;  %v11685_v0 = vadd.s32 %v624_v31, %v620_v50  ;;  %v11688_v5 = vmul.f32 %v1595_v34, %v11417_v2  ;;  %v11691_v57 = vmul.f32 %v1602_v24, %v11417_v2  ;;  %v15601_v34 = vld [vmem:[#allocation58_spill] sm:$0xff] }
 0x1ff   : > { %v578_v51 = vsel %vm572_vm8, %v575_v4, %v577_v1  ;;  %v631_v58 = vadd.s32 %v630_v9, %v621_v22  ;;  %v11697_v20 = vsel %vm11607_vm1, 0, %v1896_v26  ;;  %v2019_v33 = vadd.s32 %v11272_v35, %v11267_v11  ;;  %v15602_v31 = vld [vmem:[#allocation30_spill] sm:$0xff] }
 0x200   : > { %15600 = vst [vmem:[#allocation63_spill] sm:$0xff] %v11697_v20  ;;  %v2040_v41 = vadd.s32 127, %v2039_v7  ;;  %vm634_vm2 = vc.u32 %v11669_v44, %v11685_v0  ;;  %v1900_v62 = vmul.f32 -0.001358992, %v11677_v15  ;;  %v2339_v52 = vclz %v2338_v3 }
 0x201   : > { %v635_v2 = vadd.s32 1, %v631_v58  ;;  %v2722_v18 = vshrl.u32 %v15444_v56, %v15601_v34  ;;  %v2035_v50 = vsub.s32 32, %v11649_v49  ;;  %v11708_v46 = vsub.s32 %v11612_v27, %v2488_v16 }
 0x202   : > { %v632_v23 = vmul.u32 %v11533_v21, %v578_v51  ;;  %v15328_v11 = vand.u32 2147483647, %v15602_v31  ;;  %v2716_v19 = vshrl.u32 %v15455_v40, %v15601_v34  ;;  %v15603_v17 = vmov 2102212464  }
 0x203   : > { %v636_v35 = vsel %vm634_vm2, %v635_v2, %v631_v58  ;;  %v2719_v37 = vshrl.u32 %v15603_v17, %v15601_v34  ;;  %v2721_v32 = vshll.u32 %v15603_v17, %v15604_v29  ;;  %v2041_v42 = vshll.u32 %v2040_v41, 23 }
 0x204   : > { %v637_v43 = vadd.s32 %v636_v35, %v632_v23  ;;  %v15605_v12 = vmov 2475754826   ;;  %v15606_v24 = vmov 1326507024   ;;  %v8883_v28 = vadd.s32 4294967294, %v2339_v52  ;;  %v15607_v52 = vld [vmem:[#allocation57_spill] sm:$0xff] }
 0x205   : > { %v2713_v27 = vshrl.u32 %v15605_v12, %v15601_v34  ;;  %v2725_v21 = vshrl.u32 %v15606_v24, %v15601_v34  ;;  %v2715_v6 = vshll.u32 %v15605_v12, %v15604_v29  ;;  %v2718_v7 = vshll.u32 %v15455_v40, %v15604_v29 }
 0x206   : > { %v2723_v4 = vor.u32 %v2722_v18, %v2721_v32  ;;  %v638_v1 = vadd.s32 536870912, %v637_v43  ;;  %v2702_v60 = vand.u32 8388607, %v15328_v11  ;;  %v2712_v26 = vshll.u32 %v15449_v54, %v15604_v29 }
 0x207   : > { %v2724_v22 = vshll.u32 %v15444_v56, %v15604_v29  ;;  %vm2490_vm13 = vcmp.lt.s32.totalorder %v11708_v46, 0  ;;  %v2491_v9 = vsub.s32 0, %v11708_v46  ;;  %v11734_v3 = vor.u32 %v2716_v19, %v2715_v6 }
 0x208   : > { %v11736_v16 = vor.u32 %v2719_v37, %v2718_v7  ;;  %v11738_v51 = vshrl.u32 %v638_v1, 30  ;;  %v11740_v58 = vor.u32 %v2713_v27, %v2712_v26  ;;  %vm2730_vm14 = vcmp.lt.s32.totalorder %v15607_v52, 4 }
 0x209   : > { %v2726_v41 = vor.u32 %v2725_v21, %v2724_v22  ;;  %v1907_v2 = vmul.f32 -0.00019511016, %v11677_v15  ;;  %v2036_v18 = vshll.u32 %v11506_v53, %v11649_v49  ;;  %v2037_v23 = vshrl.u32 %v2019_v33, %v2035_v50 }
 0x20a   : > { %v2736_v35 = vsel %vm2730_vm14, %v2723_v4, 920167782  ;;  %vm8884_vm8 = vcmp.lt.s32.totalorder %v8883_v28, 0  ;;  %v640_v19 = vshll.u32 %v11738_v51, 30  ;;  %v2703_v37 = vor.u32 8388608, %v2702_v60 }
 0x20b   : > { %vm2727_vm15 = vcmp.lt.s32.totalorder %v15607_v52, 1  ;;  %v2042_v29 = vor.u32 4788187, %v2041_v42  ;;  %v2492_v32 = vsel %vm2490_vm13, %v2491_v9, %v11708_v46  ;;  %vm2729_vm12 = vcmp.lt.s32.totalorder %v15607_v52, 3 }
 0x20c   : > { %v2739_v53 = vsel %vm2727_vm15, %v11734_v3, %v11736_v16  ;;  %v11758_v49 = vsub.s32 %v637_v43, %v640_v19  ;;  %v2735_v33 = vsel %vm2727_vm15, %v11740_v58, %v11734_v3  ;;  %v2737_v50 = vsel %vm2729_vm12, %v11736_v16, %v2736_v35 }
 0x20d   : > { %v2740_v42 = vsel %vm2730_vm14, %v2726_v41, 1326507024  ;;  %v2038_v27 = vor.u32 %v2037_v23, %v2036_v18  ;;  %v11769_v21 = vsel %vm8884_vm8, 0, %v8883_v28  ;;  %vm2728_vm1 = vcmp.lt.s32.totalorder %v15607_v52, 2 }
 0x20e   : > { %v2741_v43 = vsel %vm2729_vm12, %v2723_v4, %v2740_v42  ;;  %vm642_vm11 = vcmp.lt.s32.totalorder %v11758_v49, 0  ;;  %v643_v6 = vsub.s32 0, %v11758_v49  ;;  %v11778_v1 = vshll.u32 %v2703_v37, 8 }
 0x20f   : > { %v2742_v7 = vsel %vm2728_vm1, %v2739_v53, %v2741_v43  ;;  %v1901_v60 = vadd.f32 0.041655596, %v1900_v62  ;;  %v1908_v26 = vadd.f32 0.008332121, %v1907_v2  ;;  %v2493_v22 = vclz %v2492_v32 }
 0x210   : > { %v2738_v28 = vsel %vm2728_vm1, %v2735_v33, %v2737_v50  ;;  %v11783_v9 = vadd.f32 1.0, %v11691_v57  ;;  %v11786_v4 = vadd.s32 3, %v11697_v20  ;;  %v2043_v41 = vand.u32 2147483647, %v2042_v29 }
 0x211   : > { %v644_v18 = vsel %vm642_vm11, %v643_v6, %v11758_v49  ;;  %v2045_v23 = vcvt.s32.f32 %v2038_v27  ;;  %v2347_v35 = vsub.s32 4294967266, %v11769_v21  ;;  %v2746_v37 = vand.u32 65535, %v2742_v7 }
 0x212   : > { %v645_v19 = vclz %v644_v18  ;;  %v2744_v62 = vand.u32 65535, %v11778_v1  ;;  %v2745_v2 = vshrl.u32 %v11778_v1, 16  ;;  %v2747_v32 = vshrl.u32 %v2742_v7, 16 }
 0x213   : > { %v2769_v53 = vshrl.u32 %v2738_v28, 16  ;;  %v11793_v57 = vmul.f32 %v1901_v60, %v11677_v15  ;;  %v1909_v33 = vmul.f32 %v1908_v26, %v11677_v15  ;;  %v8886_v50 = vadd.s32 4294967294, %v2493_v22 }
 0x214   : > { %v8850_v29 = vadd.s32 4294967294, %v645_v19  ;;  %v2046_v42 = vmul.f32 %v2045_v23, %v2043_v41  ;;  %v11796_v43 = vmul.u32 %v2747_v32, %v2744_v62  ;;  %v11798_v27 = vmul.u32 %v2746_v37, %v2745_v2  ;;  %v15608_v19 = vld [vmem:[#allocation27_spill] sm:$0xff] }
 0x215   : > { %v2768_v6 = vand.u32 65535, %v2738_v28  ;;  %v2327_v18 = vadd.s32 %v11468_v47, %v11454_v25  ;;  %v2343_v11 = vsub.s32 32, %v11769_v21  ;;  %v2348_v7 = vadd.s32 127, %v2347_v35 }
 0x216   : > { %vm8851_vm6 = vcmp.lt.s32.totalorder %v8850_v29, 0  ;;  %v2748_v60 = vmul.u32 %v2746_v37, %v2744_v62  ;;  %v2752_v55 = vshll.u32 %v11796_v43, 16  ;;  %v2771_v26 = vmul.u32 %v2769_v53, %v2744_v62 }
 0x217   : > { %v648_v13 = vsel %vm8851_vm6, 0, %v8850_v29  ;;  %vm8887_vm3 = vcmp.lt.s32.totalorder %v8886_v50, 0  ;;  %v633_v22 = vadd.s32 %v11685_v0, %v11669_v44  ;;  %vm1927_vm7 = vcmp.lt.s32.totalorder %v15608_v19, 0 }
 0x218   : > { %v649_v41 = vsub.s32 32, %v648_v13  ;;  %v653_v23 = vsub.s32 4294967266, %v648_v13  ;;  %v650_v28 = vshll.u32 %v11758_v49, %v648_v13  ;;  %v2754_v25 = vshll.u32 %v11798_v27, 16 }
 0x219   : > { %vm2756_vm9 = vc.u32 %v2748_v60, %v2752_v55  ;;  %v11809_v47 = vmul.u32 %v2768_v6, %v2745_v2  ;;  %v2758_v8 = vadd.s32 %v2752_v55, %v2748_v60  ;;  %v2349_v39 = vshll.u32 %v2348_v7, 23 }
 0x21a   : > { %v651_v35 = vshrl.u32 %v633_v22, %v649_v41  ;;  %v654_v37 = vadd.s32 127, %v653_v23  ;;  %v2757_v29 = vsel %vm2756_vm9, 1, %v15447_v38  ;;  %v2751_v61 = vmul.u32 %v2747_v32, %v2745_v2  ;;  %v11816_v22 = vpop.permute.xlu0 %5974 }
 0x21b   : > { %v2770_v20 = vmul.u32 %v2768_v6, %v2744_v62  ;;  %v2774_v44 = vshll.u32 %v2771_v26, 16  ;;  %v11813_v0 = vsel %vm8887_vm3, 0, %v8886_v50  ;;  %vm2760_vm2 = vc.u32 %v2758_v8, %v2754_v25  ;;  %15609 = vst [vmem:[#allocation58_spill] sm:$0xff] %v11816_v22 }
 0x21c   : > { %v652_v31 = vor.u32 %v651_v35, %v650_v28  ;;  %v655_v48 = vshll.u32 %v654_v37, 23  ;;  %v2759_v13 = vadd.s32 %v2757_v29, %v2751_v61  ;;  %v2776_v49 = vshll.u32 %v11809_v47, 16 }
 0x21d   : > { %vm2778_vm13 = vc.u32 %v2770_v20, %v2774_v44  ;;  %v2780_v10 = vadd.s32 %v2774_v44, %v2770_v20  ;;  %v2047_v41 = vxor.u32 2147483648, %v2046_v42  ;;  %v2761_v55 = vsel %vm2760_vm2, 1, %v15447_v38 }
 0x21e   : > { %v656_v23 = vor.u32 4788187, %v655_v48  ;;  %v2773_v32 = vmul.u32 %v2769_v53, %v2745_v2  ;;  %v2345_v62 = vshrl.u32 %v2327_v18, %v2343_v11  ;;  %v2501_v6 = vsub.s32 4294967266, %v11813_v0 }
 0x21f   : > { %v2779_v50 = vsel %vm2778_vm13, 1, %v15447_v38  ;;  %vm2782_vm8 = vc.u32 %v2780_v10, %v2776_v49  ;;  %v659_v8 = vcvt.s32.f32 %v652_v31  ;;  %v11822_v28 = vadd.f32 -0.16666654, %v1909_v33 }
 0x220   : > { %v657_v7 = vand.u32 2147483647, %v656_v23  ;;  %v2781_v61 = vadd.s32 %v2779_v50, %v2773_v32  ;;  %v2783_v60 = vsel %vm2782_vm8, 1, %v15447_v38  ;;  %v15610_v20 = vand.u32 2147483647, %v15608_v19  ;;  %v15613_v32 = vld [vmem:[#allocation31_spill] sm:$0xff] }
 0x221   : > { %v2344_v11 = vshll.u32 %v11638_v59, %v11769_v21  ;;  %v2350_v2 = vor.u32 4788187, %v2349_v39  ;;  %v2763_v53 = vadd.s32 %v2761_v55, %v2759_v13  ;;  %v2048_v18 = vsel %vm1927_vm7, %v2047_v41, %v2046_v42 }
 0x222   : > { %vm11826_vm11 = vcmp.le.f32.partialorder %v15610_v20, 0.7853982  ;;  %v2497_v31 = vsub.s32 32, %v11813_v0  ;;  %v660_v25 = vmul.f32 %v659_v8, %v657_v7  ;;  %v2785_v35 = vadd.s32 %v2783_v60, %v2781_v61  ;;  %v11858_v8 = vpop.permute.xlu0 %5989 }
 0x223   : > { %v2346_v33 = vor.u32 %v2345_v62, %v2344_v11  ;;  %v2502_v37 = vadd.s32 127, %v2501_v6  ;;  %v2753_v29 = vshrl.u32 %v11796_v43, 16  ;;  %v2775_v44 = vshrl.u32 %v2771_v26, 16  ;;  %15617 = vst [vmem:[#allocation53_spill] sm:$0xff] %v11858_v8 }
 0x224   : > { %v2481_v23 = vadd.s32 %v11579_v30, %v11560_v36  ;;  %v15614_v50 = vand.u32 2147483647, %v15613_v32  ;;  %vm541_vm3 = vcmp.lt.s32.totalorder %v15613_v32, 0  ;;  %v661_v59 = vxor.u32 2147483648, %v660_v25 }
 0x225   : > { %v2351_v21 = vand.u32 2147483647, %v2350_v2  ;;  %v663_v42 = vsub.s32 4, %v11738_v51  ;;  %v2764_v13 = vadd.s32 %v2763_v53, %v2753_v29  ;;  %v2786_v41 = vadd.s32 %v2785_v35, %v2775_v44  ;;  %v15619_v44 = vld [vmem:[#allocation43_spill] sm:$0xff] }
 0x226   : > { %vm11840_vm6 = vcmp.le.f32.partialorder %v15614_v50, 0.7853982  ;;  %v2499_v55 = vshrl.u32 %v2481_v23, %v2497_v31  ;;  %v662_v43 = vsel %vm541_vm3, %v661_v59, %v660_v25  ;;  %v2711_v36 = vshrl.u32 %v15449_v54, %v15601_v34  ;;  %v15618_v25 = vld [vmem:[#allocation15_spill] sm:$0xff]  ;;  %v15620_v59 = vld [vmem:[#allocation28_spill] sm:$0xff] }
 0x227   : > { %v2732_v30 = vsel %vm2730_vm14, %v11736_v16, 2102212464  ;;  %v2503_v26 = vshll.u32 %v2502_v37, 23  ;;  %v665_v62 = vsel %vm11840_vm6, %v15613_v32, %v662_v43  ;;  %v2755_v6 = vshrl.u32 %v11798_v27, 16 }
 0x228   : > { %v2777_v7 = vshrl.u32 %v11809_v47, 16  ;;  %v2353_v61 = vcvt.s32.f32 %v2346_v33  ;;  %v2498_v60 = vshll.u32 %v11708_v46, %v11813_v0  ;;  %v667_v34 = vmul.f32 %v665_v62, %v665_v62 }
 0x229   : > { %v2731_v16 = vsel %vm2727_vm15, %v2711_v36, %v11740_v58  ;;  %v664_v20 = vsel %vm541_vm3, %v663_v42, %v11738_v51  ;;  %v2733_v27 = vsel %vm2729_vm12, %v11734_v3, %v2732_v30  ;;  %v11871_v47 = vadd.s32 %v2764_v13, %v2755_v6 }
 0x22a   : > { %v2787_v11 = vadd.s32 %v2786_v41, %v2777_v7  ;;  %v11876_v46 = vsel %vm11826_vm11, %v15608_v19, %v2048_v18  ;;  %v11878_v0 = vmul.f32 %v2353_v61, %v2351_v21  ;;  %v668_v2 = vmul.f32 -0.001358992, %v667_v34 }
 0x22b   : > { %v675_v58 = vmul.f32 -0.00019511016, %v667_v34  ;;  %v11880_v53 = vor.u32 %v2499_v55, %v2498_v60  ;;  %v11882_v31 = vor.u32 4788187, %v2503_v26  ;;  %v11884_v51 = vadd.s32 %v2780_v10, %v2776_v49  ;;  %v11921_v60 = vpop.permute.xlu0 %6014 }
 0x22c   : > { %v15343_v3 = vand.u32 2147483647, %v15618_v25  ;;  %v11889_v35 = vsel %vm11840_vm6, 0, %v664_v20  ;;  %v669_v33 = vadd.f32 0.041655596, %v668_v2  ;;  %v2734_v18 = vsel %vm2728_vm1, %v2731_v16, %v2733_v27  ;;  %15621 = vst [vmem:[#allocation57_spill] sm:$0xff] %v11921_v60 }
 0x22d   : > { %v676_v37 = vadd.f32 0.008332121, %v675_v58  ;;  %vm2790_vm14 = vc.u32 %v11871_v47, %v11884_v51  ;;  %v2791_v29 = vadd.s32 1, %v2787_v11  ;;  %v2870_v23 = vshrl.u32 %v15455_v40, %v15619_v44 }
 0x22e   : > { %v2876_v10 = vshrl.u32 %v15444_v56, %v15619_v44  ;;  %v670_v49 = vmul.f32 %v669_v33, %v667_v34  ;;  %v2873_v39 = vshrl.u32 %v15603_v17, %v15619_v44  ;;  %v2875_v21 = vshll.u32 %v15603_v17, %v15620_v59  ;;  %v15622_v33 = vld [vmem:[#allocation42_spill] sm:$0xff] }
 0x22f   : > { %v677_v50 = vmul.f32 %v676_v37, %v667_v34  ;;  %v2856_v52 = vand.u32 8388607, %v15343_v3  ;;  %v2867_v42 = vshrl.u32 %v15605_v12, %v15619_v44  ;;  %v2869_v13 = vshll.u32 %v15605_v12, %v15620_v59 }
 0x230   : > { %v2879_v41 = vshrl.u32 %v15606_v24, %v15619_v44  ;;  %v671_v55 = vadd.f32 -0.4999988, %v670_v49  ;;  %v2872_v36 = vshll.u32 %v15455_v40, %v15620_v59  ;;  %v2877_v30 = vor.u32 %v2876_v10, %v2875_v21  ;;  %v15623_v21 = vld [vmem:[#allocation25_spill] sm:$0xff] }
 0x231   : > { %v678_v43 = vadd.f32 -0.16666654, %v677_v50  ;;  %v2788_v26 = vmul.u32 %v11778_v1, %v2734_v18  ;;  %v2792_v6 = vsel %vm2790_vm14, %v2791_v29, %v2787_v11  ;;  %v2866_v7 = vshll.u32 %v15449_v54, %v15620_v59 }
 0x232   : > { %v2878_v61 = vshll.u32 %v15444_v56, %v15620_v59  ;;  %v672_v16 = vmul.f32 %v671_v55, %v667_v34  ;;  %v11923_v27 = vor.u32 %v2870_v23, %v2869_v13  ;;  %v11925_v2 = vor.u32 %v2873_v39, %v2872_v36  ;;  %v15624_v55 = vld [vmem:[#allocation47_spill] sm:$0xff] }
 0x233   : > { %v679_v20 = vmul.f32 %v678_v43, %v667_v34  ;;  %vm682_vm15 = vweird.f32 %v15613_v32  ;;  %v2857_v1 = vor.u32 8388608, %v2856_v52  ;;  %v11928_v58 = vor.u32 %v2867_v42, %v2866_v7 }
 0x234   : > { %v2880_v11 = vor.u32 %v2879_v41, %v2878_v61  ;;  %vm2884_vm12 = vcmp.lt.s32.totalorder %v15622_v33, 4  ;;  %v11931_v37 = vadd.f32 1.0, %v672_v16  ;;  %v11933_v29 = vadd.s32 %v2792_v6, %v2788_v26  ;;  %v15628_v16 = vld [vmem:[#allocation16_spill] sm:$0xff] }
 0x235   : > { %v680_v18 = vadd.f32 1.0, %v679_v20  ;;  %v2890_v34 = vsel %vm2884_vm12, %v2877_v30, 920167782  ;;  %v2505_v23 = vand.u32 2147483647, %v11882_v31  ;;  %v2507_v10 = vcvt.s32.f32 %v11880_v53 }
 0x236   : > { %v683_v49 = vand.u32 3, %v11889_v35  ;;  %vm2881_vm1 = vcmp.lt.s32.totalorder %v15622_v33, 1  ;;  %v15344_v39 = vxor.u32 2147483648, %v11931_v37  ;;  %vm2883_vm9 = vcmp.lt.s32.totalorder %v15622_v33, 3 }
 0x237   : > { %v11941_v50 = vmul.f32 %v680_v18, %v665_v62  ;;  %v2893_v59 = vsel %vm2881_vm1, %v11923_v27, %v11925_v2  ;;  %vm2235_vm2 = vcmp.lt.s32.totalorder %v15623_v21, 0  ;;  %v2889_v53 = vsel %vm2881_vm1, %v11928_v58, %v11923_v27 }
 0x238   : > { %v2891_v62 = vsel %vm2883_vm9, %v11925_v2, %v2890_v34  ;;  %v2894_v31 = vsel %vm2884_vm12, %v2880_v11, 1326507024  ;;  %v11959_v52 = vshll.u32 %v2857_v1, 8  ;;  %v2794_v13 = vadd.s32 536870912, %v11933_v29  ;;  %v11985_v34 = vpop.permute.xlu0 %6023 }
 0x239   : > { %v15345_v42 = vxor.u32 2147483648, %v11941_v50  ;;  %vm2882_vm13 = vcmp.lt.s32.totalorder %v15622_v33, 2  ;;  %v2895_v41 = vsel %vm2883_vm9, %v2877_v30, %v2894_v31  ;;  %vm685_vm8 = vcmp.eq.s32.totalorder %v683_v49, 0  ;;  %15629 = vst [vmem:[#allocation31_spill] sm:$0xff] %v11985_v34 }
 0x23a   : > { %vm688_vm6 = vcmp.eq.s32.totalorder %v683_v49, 2  ;;  %v1145_v43 = vand.u32 3, %v15624_v55  ;;  %v2896_v36 = vsel %vm2882_vm13, %v2893_v59, %v2895_v41  ;;  %vm684_vm3 = vcmp.lt.s32.totalorder %v683_v49, 2  ;;  %v15630_v55 = vld [vmem:[#allocation50_spill] sm:$0xff] }
 0x23b   : > { %v687_v26 = vsel %vm685_vm8, %v11931_v37, %v15345_v42  ;;  %v690_v6 = vsel %vm688_vm6, %v15344_v39, %v11941_v50  ;;  %v2892_v7 = vsel %vm2882_vm13, %v2889_v53, %v2891_v62  ;;  %v15625_v30 = vand.u32 2147483647, %v15623_v21 }
 0x23c   : > { %vm2389_vm10 = vcmp.lt.s32.totalorder %v15628_v16, 0  ;;  %v691_v20 = vsel %vm684_vm3, %v687_v26, %v690_v6  ;;  %v2898_v1 = vand.u32 65535, %v11959_v52  ;;  %v2900_v11 = vand.u32 65535, %v2896_v36  ;;  %v15632_v26 = vld [vmem:[#allocation49_spill] sm:$0xff] }
 0x23d   : > { %vm11979_vm14 = vcmp.le.f32.partialorder %v15625_v30, 0.7853982  ;;  %v2901_v18 = vshrl.u32 %v2896_v36, 16  ;;  %v2355_v49 = vxor.u32 2147483648, %v11878_v0  ;;  %v2508_v59 = vmul.f32 %v2507_v10, %v2505_v23 }
 0x23e   : > { %v11990_v53 = vsel %vm682_vm15, nan, %v691_v20  ;;  %v11992_v62 = vshrl.u32 %v2794_v13, 30  ;;  %vm1147_vm8 = vcmp.eq.s32.totalorder %v1145_v43, 0  ;;  %vm1150_vm6 = vcmp.eq.s32.totalorder %v1145_v43, 2 }
 0x23f   : > { %5794 = vrot.lane.b32.xlu1 %v11990_v53, %s9534_s21  ;;  %v2899_v31 = vshrl.u32 %v11959_v52, 16  ;;  %v2903_v41 = vmul.u32 %v2901_v18, %v2898_v1  ;;  %vm1146_vm3 = vcmp.lt.s32.totalorder %v1145_v43, 2  ;;  %v15631_v36 = vxor.u32 2147483648, %v15630_v55 }
 0x240   : > { %v15633_v10 = vxor.u32 2147483648, %v15632_v26  ;;  %v2923_v13 = vshrl.u32 %v2892_v7, 16  ;;  %v15634_v30 = vand.u32 2147483647, %v15628_v16  ;;  %v2902_v39 = vmul.u32 %v2900_v11, %v2898_v1 }
 0x241   : > { %v1149_v23 = vsel %vm1147_vm8, %v15632_v26, %v15631_v36  ;;  %v2904_v42 = vmul.u32 %v2900_v11, %v2899_v31  ;;  %v2906_v8 = vshll.u32 %v2903_v41, 16  ;;  %v2356_v43 = vsel %vm2235_vm2, %v2355_v49, %v11878_v0  ;;  %v15638_v49 = vld [vmem:[#allocation56_spill] sm:$0xff] }
 0x242   : > { %v1152_v6 = vsel %vm1150_vm6, %v15633_v10, %v15630_v55  ;;  %vm12005_vm4 = vcmp.le.f32.partialorder %v15634_v30, 0.7853982  ;;  %v2509_v36 = vxor.u32 2147483648, %v2508_v59  ;;  %v2796_v34 = vshll.u32 %v11992_v62, 30  ;;  %v9478_v10 = vld [vmem:[%s9621_s18 + $0x18] sm:$0xff] }
 0x243   : > { %v1153_v3 = vsel %vm1146_vm3, %v1149_v23, %v1152_v6  ;;  %v2905_v30 = vmul.u32 %v2901_v18, %v2899_v31  ;;  %vm2910_vm8 = vc.u32 %v2902_v39, %v2906_v8  ;;  %v2922_v60 = vand.u32 65535, %v2892_v7 }
 0x244   : > { %v1154_v55 = vsel %vm1144_vm5, nan, %v1153_v3  ;;  %v12018_v23 = vmul.f32 %v11876_v46, %v11876_v46  ;;  %v2908_v11 = vshll.u32 %v2904_v42, 16  ;;  %v2911_v6 = vsel %vm2910_vm8, 1, %v15447_v38 }
 0x245   : > { %v5604_v22 = vmul.f32 %v9478_v10, %v1154_v55  ;;  %v2912_v24 = vadd.s32 %v2906_v8, %v2902_v39  ;;  %v1911_v0 = vmul.f32 %v11822_v28, %v11677_v15  ;;  %v2913_v3 = vadd.s32 %v2911_v6, %v2905_v30 }
 0x246   : > { %v2925_v26 = vmul.u32 %v2923_v13, %v2898_v1  ;;  %v12029_v7 = vsel %vm11979_vm14, %v15623_v21, %v2356_v43  ;;  %v2510_v18 = vsel %vm2389_vm10, %v2509_v36, %v2508_v59  ;;  %v12034_v10 = vsub.s32 %v11933_v29, %v2796_v34  ;;  %v12040_v43 = vpop.permute.xlu0 %6032 }
 0x247   : > { %v12024_v56 = vadd.f32 %v15638_v49, %v5604_v22  ;;  %vm2914_vm5 = vc.u32 %v2912_v24, %v2908_v11  ;;  %5800 = vrot.lane.b32.xlu1 %v1154_v55, %s9534_s21  ;;  %v2924_v22 = vmul.u32 %v2922_v60, %v2898_v1  ;;  %v2926_v8 = vmul.u32 %v2922_v60, %v2899_v31 }
 0x248   : > { %v2915_v28 = vsel %vm2914_vm5, 1, %v15447_v38  ;;  %v2928_v39 = vshll.u32 %v2925_v26, 16  ;;  %v2054_v30 = vmul.f32 -0.001358992, %v12018_v23  ;;  %v2061_v6 = vmul.f32 -0.00019511016, %v12018_v23 }
 0x249   : > { %15639 = vst [vmem:[#allocation15_spill] sm:$0xff] %v12024_v56  ;;  %v2907_v49 = vshrl.u32 %v2903_v41, 16  ;;  %v2917_v56 = vadd.s32 %v2915_v28, %v2913_v3  ;;  %v2927_v59 = vmul.u32 %v2923_v13, %v2899_v31  ;;  %v2930_v36 = vshll.u32 %v2926_v8, 16 }
 0x24a   : > { %15640 = vst [vmem:[#allocation43_spill] sm:$0xff] %v12040_v43  ;;  %vm2932_vm6 = vc.u32 %v2924_v22, %v2928_v39  ;;  %v2934_v29 = vadd.s32 %v2928_v39, %v2924_v22  ;;  %v12044_v24 = vmul.f32 %v12029_v7, %v12029_v7  ;;  %v12049_v60 = vsel %vm12005_vm4, %v15628_v16, %v2510_v18 }
 0x24b   : > { %v2918_v1 = vadd.s32 %v2917_v56, %v2907_v49  ;;  %v2933_v34 = vsel %vm2932_vm6, 1, %v15447_v38  ;;  %v2799_v55 = vsub.s32 0, %v12034_v10  ;;  %v2886_v31 = vsel %vm2884_vm12, %v11925_v2, 2102212464 }
 0x24c   : > { %v2935_v41 = vadd.s32 %v2933_v34, %v2927_v59  ;;  %vm2936_vm3 = vc.u32 %v2934_v29, %v2930_v36  ;;  %vm2798_vm8 = vcmp.lt.s32.totalorder %v12034_v10, 0  ;;  %v2865_v13 = vshrl.u32 %v15449_v54, %v15619_v44 }
 0x24d   : > { %v2909_v11 = vshrl.u32 %v2904_v42, 16  ;;  %v2937_v3 = vsel %vm2936_vm3, 1, %v15447_v38  ;;  %v1903_v56 = vadd.f32 -0.4999988, %v11793_v57  ;;  %v2062_v18 = vadd.f32 0.008332121, %v2061_v6 }
 0x24e   : > { %v2929_v28 = vshrl.u32 %v2925_v26, 16  ;;  %v2939_v22 = vadd.s32 %v2937_v3, %v2935_v41  ;;  %v12063_v39 = vmul.f32 %v12049_v60, %v12049_v60  ;;  %v2885_v2 = vsel %vm2881_vm1, %v2865_v13, %v11928_v58  ;;  %v15642_v58 = vld [vmem:[#allocation39_spill] sm:$0xff] }
 0x24f   : > { %v2887_v44 = vsel %vm2883_vm9, %v11923_v27, %v2886_v31  ;;  %v12071_v42 = vadd.s32 %v2918_v1, %v2909_v11  ;;  %v2369_v49 = vmul.f32 -0.00019511016, %v12044_v24  ;;  %v2800_v57 = vsel %vm2798_vm8, %v2799_v55, %v12034_v10  ;;  %v452_v55 = vpop.permute.xlu0 %451  ;;  %v15644_v11 = vld [vmem:[#allocation62_spill] sm:$0xff] }
 0x250   : > { %v2931_v26 = vshrl.u32 %v2926_v8, 16  ;;  %v2940_v6 = vadd.s32 %v2939_v22, %v2929_v28  ;;  %v12076_v59 = vadd.f32 1.0, %v11688_v5  ;;  %v1912_v34 = vadd.f32 1.0, %v1911_v0 }
 0x251   : > { %v2055_v41 = vadd.f32 0.041655596, %v2054_v30  ;;  %v12078_v3 = vadd.s32 %v2934_v29, %v2930_v36  ;;  %v12082_v13 = vmul.f32 %v11783_v9, %v15642_v58  ;;  %v2063_v27 = vmul.f32 %v2062_v18, %v12018_v23 }
 0x252   : > { %15641 = vst [vmem:[#allocation28_spill] sm:$0xff] %v12076_v59  ;;  %v2888_v1 = vsel %vm2882_vm13, %v2885_v2, %v2887_v44  ;;  %v2941_v31 = vadd.s32 %v2940_v6, %v2931_v26  ;;  %v12088_v8 = vand.u32 3, %v11786_v4  ;;  %v2523_v5 = vmul.f32 -0.00019511016, %v12063_v39  ;;  %v15645_v44 = vld [vmem:[#allocation11_spill] sm:$0xff] }
 0x253   : > { %15643 = vst [vmem:[#allocation42_spill] sm:$0xff] %v12082_v13  ;;  %v2801_v0 = vclz %v2800_v57  ;;  %vm2944_vm12 = vc.u32 %v12071_v42, %v12078_v3  ;;  %v1904_v30 = vmul.f32 %v1903_v56, %v11677_v15  ;;  %v2362_v9 = vmul.f32 -0.001358992, %v12044_v24 }
 0x254   : > { %v2370_v36 = vadd.f32 0.008332121, %v2369_v49  ;;  %v2945_v29 = vadd.s32 1, %v2941_v31  ;;  %v12096_v33 = vmul.f32 %v1912_v34, %v11647_v45  ;;  %v2049_v18 = vsub.s32 4, %v15644_v11 }
 0x255   : > { %v2056_v4 = vmul.f32 %v2055_v41, %v12018_v23  ;;  %v2942_v28 = vmul.u32 %v11959_v52, %v2888_v1  ;;  %v2064_v22 = vadd.f32 -0.16666654, %v2063_v27  ;;  %v2357_v2 = vsub.s32 4, %v11595_v63 }
 0x256   : > { %v509_v57 = vmul.f32 %v15645_v44, %v452_v55  ;;  %v2946_v26 = vsel %vm2944_vm12, %v2945_v29, %v2941_v31  ;;  %v2524_v56 = vadd.f32 0.008332121, %v2523_v5  ;;  %v8892_v49 = vadd.s32 4294967294, %v2801_v0  ;;  %v12111_v31 = vpop.f32.mrf.mxu0 }
 0x257   : > { %v2947_v6 = vadd.s32 %v2946_v26, %v2942_v28  ;;  %v12105_v34 = vadd.f32 1.0, %v1904_v30  ;;  %v2363_v58 = vadd.f32 0.041655596, %v2362_v9  ;;  %v2371_v41 = vmul.f32 %v2370_v36, %v12044_v24  ;;  %15646 = vst [vmem:[#allocation25_spill] sm:$0xff] %v12111_v31  ;;  %v15647_v30 = vld [vmem:[#allocation29_spill] sm:$0xff]  ;;  %v15693_v31 = vld [vmem:[#allocation22_spill] sm:$0xff] }
 0x258   : > { %v15349_v52 = vxor.u32 2147483648, %v12096_v33  ;;  %vm4389_vm1 = vcmp.lt.s32.totalorder %v12088_v8, 2  ;;  %vm4390_vm9 = vcmp.eq.s32.totalorder %v12088_v8, 0  ;;  %v2057_v27 = vadd.f32 -0.4999988, %v2056_v4 }
 0x259   : > { %v2948_v1 = vadd.s32 536870912, %v2947_v6  ;;  %v2050_v5 = vsel %vm1927_vm7, %v2049_v18, %v15644_v11  ;;  %v2065_v55 = vmul.f32 %v2064_v22, %v12018_v23  ;;  %v2358_v0 = vsel %vm2235_vm2, %v2357_v2, %v11595_v63 }
 0x25a   : > { %v12121_v9 = vadd.f32 %v509_v57, %v15647_v30  ;;  %v2516_v36 = vmul.f32 -0.001358992, %v12063_v39  ;;  %v2525_v29 = vmul.f32 %v2524_v56, %v12063_v39  ;;  %vm8893_vm13 = vcmp.lt.s32.totalorder %v8892_v49, 0  ;;  %v472_v57 = vpop.permute.xlu0 %471 }
 0x25b   : > { %v12125_v4 = vshrl.u32 %v2948_v1, 30  ;;  %vm1914_vm5 = vweird.f32 %v15590_v14  ;;  %v15350_v11 = vxor.u32 2147483648, %v12105_v34  ;;  %vm4393_vm7 = vcmp.eq.s32.totalorder %v12088_v8, 2 }
 0x25c   : > { %v2364_v18 = vmul.f32 %v2363_v58, %v12044_v24  ;;  %v2372_v28 = vadd.f32 -0.16666654, %v2371_v41  ;;  %v4392_v63 = vsel %vm4390_vm9, %v12105_v34, %v15349_v52  ;;  %v12138_v22 = vsel %vm11826_vm11, 0, %v2050_v5  ;;  %v15649_v41 = vld [vmem:[#allocation36_spill] sm:$0xff] }
 0x25d   : > { %15648 = vst [vmem:[#allocation47_spill] sm:$0xff] %v12138_v22  ;;  %v2058_v2 = vmul.f32 %v2057_v27, %v12018_v23  ;;  %v2950_v26 = vshll.u32 %v12125_v4, 30  ;;  %v2066_v56 = vadd.f32 1.0, %v2065_v55  ;;  %v12144_v58 = vsel %vm11979_vm14, 0, %v2358_v0 }
 0x25e   : > { %v2511_v1 = vsub.s32 4, %v15649_v41  ;;  %v2804_v30 = vsel %vm8893_vm13, 0, %v8892_v49  ;;  %v2517_v15 = vadd.f32 0.041655596, %v2516_v36  ;;  %v2526_v45 = vadd.f32 -0.16666654, %v2525_v29 }
 0x25f   : > { %v850_v52 = vand.u32 2139095040, %v12121_v9  ;;  %v2951_v48 = vsub.s32 %v2947_v6, %v2950_v26  ;;  %v4395_v23 = vsel %vm4393_vm7, %v15350_v11, %v12096_v33  ;;  %v2365_v27 = vadd.f32 -0.4999988, %v2364_v18  ;;  %v12168_v11 = vpop.f32.mrf.mxu0 }
 0x260   : > { %v2373_v5 = vmul.f32 %v2372_v28, %v12044_v24  ;;  %v514_v61 = vmul.f32 %v15645_v44, %v472_v57  ;;  %v12155_v55 = vadd.f32 1.0, %v2058_v2  ;;  %v2809_v0 = vsub.s32 4294967266, %v2804_v30  ;;  %15652 = vst [vmem:[#allocation18_spill] sm:$0xff] %v12168_v11 }
 0x261   : > { %vm2952_vm11 = vcmp.lt.s32.totalorder %v2951_v48, 0  ;;  %v2953_v49 = vsub.s32 0, %v2951_v48  ;;  %v4396_v36 = vsel %vm4389_vm1, %v4392_v63, %v4395_v23  ;;  %v12160_v6 = vmul.f32 %v2066_v56, %v11876_v46  ;;  %v15653_v23 = vld [vmem:[#allocation32_spill] sm:$0xff] }
 0x262   : > { %15650 = vst [vmem:[#allocation50_spill] sm:$0xff] %v12155_v55  ;;  %v4852_v29 = vadd.s32 3, %v12144_v58  ;;  %v2512_v18 = vsel %vm2389_vm10, %v2511_v1, %v15649_v41  ;;  %v2518_v28 = vmul.f32 %v2517_v15, %v12063_v39  ;;  %v2527_v2 = vmul.f32 %v2526_v45, %v12063_v39 }
 0x263   : > { %15651 = vst [vmem:[#allocation49_spill] sm:$0xff] %v12160_v6  ;;  %v851_v57 = vshrl.u32 %v850_v52, 23  ;;  %v2954_v26 = vsel %vm2952_vm11, %v2953_v49, %v2951_v48  ;;  %v2366_v8 = vmul.f32 %v2365_v27, %v12044_v24  ;;  %v2374_v63 = vadd.f32 1.0, %v2373_v5 }
 0x264   : > { %v12172_v46 = vadd.f32 %v514_v61, %v15653_v23  ;;  %v2955_v56 = vclz %v2954_v26  ;;  %v12176_v43 = vsel %vm1914_vm5, nan, %v4396_v36  ;;  %v2805_v15 = vsub.s32 32, %v2804_v30  ;;  %v15656_v26 = vld [vmem:[#allocation24_spill] sm:$0xff] }
 0x265   : > { %15654 = vst [vmem:[#allocation56_spill] sm:$0xff] %v12176_v43  ;;  %v2810_v1 = vadd.s32 127, %v2809_v0  ;;  %v12180_v52 = vand.u32 3, %v4852_v29  ;;  %v12184_v24 = vsel %vm12005_vm4, 0, %v2512_v18  ;;  %v2519_v5 = vadd.f32 -0.4999988, %v2518_v28 }
 0x266   : > { %15655 = vst [vmem:[#allocation39_spill] sm:$0xff] %v12184_v24  ;;  %v8895_v27 = vadd.s32 4294967294, %v2955_v56  ;;  %v2528_v61 = vadd.f32 1.0, %v2527_v2  ;;  %v8855_v49 = vadd.s32 4294967169, %v851_v57  ;;  %v2789_v36 = vadd.s32 %v11884_v51, %v11871_v47  ;;  %v15657_v56 = vld [vmem:[#allocation26_spill] sm:$0xff] }
 0x267   : > { %vm15384_vm10 = vweird.f32 %v15656_v26  ;;  %v12189_v23 = vadd.f32 1.0, %v2366_v8  ;;  %v12192_v0 = vmul.f32 %v2374_v63, %v12029_v7  ;;  %v1620_v29 = vand.u32 2139095040, %v12172_v46 }
 0x268   : > { %vm8896_vm2 = vcmp.lt.s32.totalorder %v8895_v27, 0  ;;  %v2807_v20 = vshrl.u32 %v2789_v36, %v2805_v15  ;;  %v2811_v18 = vshll.u32 %v2810_v1, 23  ;;  %v1607_v28 = vand.u32 3, %v15657_v56 }
 0x269   : > { %v2958_v41 = vsel %vm8896_vm2, 0, %v8895_v27  ;;  %v2943_v2 = vadd.s32 %v12078_v3, %v12071_v42  ;;  %v3147_v51 = vadd.s32 3, %v11889_v35  ;;  %v2520_v8 = vmul.f32 %v2519_v5, %v12063_v39  ;;  %v12207_v3 = vpop.f32.mrf.mxu0 }
 0x26a   : > { %v2959_v57 = vsub.s32 32, %v2958_v41  ;;  %v2963_v47 = vsub.s32 4294967266, %v2958_v41  ;;  %v12201_v7 = vmul.f32 %v2528_v61, %v12049_v60  ;;  %v12203_v63 = vadd.s32 1, %v8855_v49  ;;  %15659 = vst [vmem:[#allocation11_spill] sm:$0xff] %v12207_v3 }
 0x26b   : > { %v2806_v15 = vshll.u32 %v12034_v10, %v2804_v30  ;;  %v1621_v1 = vshrl.u32 %v1620_v29, 23  ;;  %v2960_v27 = vshll.u32 %v2951_v48, %v2958_v41  ;;  %v2812_v56 = vor.u32 4788187, %v2811_v18  ;;  %v484_v29 = vpop.permute.xlu0 %483 }
 0x26c   : > { %15658 = vst [vmem:[#allocation62_spill] sm:$0xff] %v12201_v7  ;;  %v2961_v36 = vshrl.u32 %v2943_v2, %v2959_v57  ;;  %v2964_v45 = vadd.s32 127, %v2963_v47  ;;  %vm1609_vm4 = vcmp.eq.s32.totalorder %v1607_v28, 0  ;;  %v2069_v42 = vand.u32 3, %v12138_v22 }
 0x26d   : > { %v2808_v11 = vor.u32 %v2807_v20, %v2806_v15  ;;  %vm1612_vm14 = vcmp.eq.s32.totalorder %v1607_v28, 2  ;;  %v3148_v60 = vand.u32 3, %v3147_v51  ;;  %v12209_v5 = vadd.f32 1.0, %v2520_v8 }
 0x26e   : > { %v2962_v35 = vor.u32 %v2961_v36, %v2960_v27  ;;  %v2965_v39 = vshll.u32 %v2964_v45, 23  ;;  %vm1608_vm6 = vcmp.lt.s32.totalorder %v1607_v28, 2  ;;  %v15661_v10 = vxor.u32 2147483648, %v12082_v13  ;;  %v9479_v36 = vld [vmem:[%s9621_s18] sm:$0xff] }
 0x26f   : > { %15660 = vst [vmem:[#allocation29_spill] sm:$0xff] %v12209_v5  ;;  %v15662_v48 = vxor.u32 2147483648, %v12076_v59  ;;  %vm15383_vm3 = vweird.f32 %v15608_v19  ;;  %v15352_v61 = vxor.u32 2147483648, %v12201_v7  ;;  %v8870_v49 = vadd.s32 4294967169, %v1621_v1 }
 0x270   : > { %v1611_v30 = vsel %vm1609_vm4, %v12076_v59, %v15661_v10  ;;  %v2966_v45 = vor.u32 4788187, %v2965_v39  ;;  %vm858_vm8 = vcmp.gt.s32.totalorder %v12203_v63, 0  ;;  %v2813_v18 = vand.u32 2147483647, %v2812_v56 }
 0x271   : > { %v1614_v41 = vsel %vm1612_vm14, %v15662_v48, %v12082_v13  ;;  %v2815_v28 = vcvt.s32.f32 %v2808_v11  ;;  %vm2071_vm12 = vcmp.eq.s32.totalorder %v2069_v42, 0  ;;  %v2969_v47 = vcvt.s32.f32 %v2962_v35 }
 0x272   : > { %v1615_v20 = vsel %vm1608_vm6, %v1611_v30, %v1614_v41  ;;  %v2967_v57 = vand.u32 2147483647, %v2966_v45  ;;  %vm3150_vm1 = vcmp.eq.s32.totalorder %v3148_v60, 0  ;;  %vm3153_vm9 = vcmp.eq.s32.totalorder %v3148_v60, 2 }
 0x273   : > { %v12222_v2 = vsel %vm15384_vm10, nan, %v1615_v20  ;;  %v517_v51 = vmul.f32 %v15645_v44, %v484_v29  ;;  %v15664_v8 = vxor.u32 2147483648, %v12160_v6  ;;  %v15665_v11 = vxor.u32 2147483648, %v11941_v50  ;;  %v15670_v20 = vld [vmem:[#allocation48_spill] sm:$0xff] }
 0x274   : > { %15663 = vst [vmem:[#allocation36_spill] sm:$0xff] %v12222_v2  ;;  %5806 = vrot.lane.b32.xlu1 %v12222_v2, %s9534_s21  ;;  %v15666_v1 = vxor.u32 2147483648, %v11931_v37  ;;  %v5601_v35 = vmul.f32 %v9479_v36, %v11990_v53  ;;  %v2970_v39 = vmul.f32 %v2969_v47, %v2967_v57  ;;  %vm2074_vm13 = vcmp.eq.s32.totalorder %v2069_v42, 2 }
 0x275   : > { %v2073_v15 = vsel %vm2071_vm12, %v12155_v55, %v15664_v8  ;;  %v3152_v56 = vsel %vm3150_vm1, %v11931_v37, %v15665_v11  ;;  %vm3149_vm7 = vcmp.lt.s32.totalorder %v3148_v60, 2  ;;  %v2816_v10 = vmul.f32 %v2815_v28, %v2813_v18  ;;  %v15669_v60 = vld [vmem:[#allocation33_spill] sm:$0xff]  ;;  %v12255_v28 = vpop.f32.mrf.mxu0 }
 0x276   : > { %v3155_v27 = vsel %vm3153_vm9, %v15666_v1, %v11941_v50  ;;  %vm2070_vm11 = vcmp.lt.s32.totalorder %v2069_v42, 2  ;;  %v15667_v30 = vxor.u32 2147483648, %v12155_v55  ;;  %vm4855_vm2 = vcmp.eq.s32.totalorder %v12180_v52, 0  ;;  %15671 = vst [vmem:[#allocation33_spill] sm:$0xff] %v12255_v28  ;;  %v15696_v28 = vld [vmem:[#allocation17_spill] sm:$0xff] }
 0x277   : > { %v3156_v41 = vsel %vm3149_vm7, %v3152_v56, %v3155_v27  ;;  %vm4858_vm4 = vcmp.eq.s32.totalorder %v12180_v52, 2  ;;  %v2971_v29 = vxor.u32 2147483648, %v2970_v39  ;;  %v2531_v50 = vand.u32 3, %v12184_v24 }
 0x278   : > { %v2076_v48 = vsel %vm2074_vm13, %v15667_v30, %v12160_v6  ;;  %v12246_v53 = vsel %vm682_vm15, nan, %v3156_v41  ;;  %v12249_v45 = vadd.f32 %v517_v51, %v15669_v60  ;;  %vm2851_vm14 = vcmp.lt.s32.totalorder %v15618_v25, 0 }
 0x279   : > { %v2077_v37 = vsel %vm2070_vm11, %v2073_v15, %v2076_v48  ;;  %15668 = vst [vmem:[#allocation32_spill] sm:$0xff] %v12246_v53  ;;  %v2973_v42 = vsub.s32 4, %v12125_v4  ;;  %v5617_v18 = vmul.f32 %v15670_v20, %v12246_v53  ;;  %vm15379_vm6 = vweird.f32 %v15628_v16 }
 0x27a   : > { %v15351_v57 = vxor.u32 2147483648, %v12209_v5  ;;  %v1627_v47 = vadd.s32 1, %v8870_v49  ;;  %v15672_v32 = vand.u32 2147483647, %v15618_v25  ;;  %v2972_v51 = vsel %vm2851_vm14, %v2971_v29, %v2970_v39  ;;  %v15677_v39 = vld [vmem:[#allocation30_spill] sm:$0xff] }
 0x27b   : > { %v2817_v15 = vxor.u32 2147483648, %v2816_v10  ;;  %v12274_v56 = vsel %vm15383_vm3, nan, %v2077_v37  ;;  %v12276_v49 = vadd.f32 %v5617_v18, %v5601_v35  ;;  %v15354_v1 = vxor.u32 2147483648, %v12192_v0 }
 0x27c   : > { %vm12261_vm15 = vcmp.le.f32.partialorder %v15672_v32, 0.7853982  ;;  %15675 = vst [vmem:[#allocation48_spill] sm:$0xff] %v12274_v56  ;;  %v15353_v27 = vxor.u32 2147483648, %v12189_v23  ;;  %5812 = vrot.lane.b32.xlu1 %v12274_v56, %s9534_s21  ;;  %vm2533_vm12 = vcmp.eq.s32.totalorder %v2531_v50, 0  ;;  %vm2697_vm1 = vcmp.lt.s32.totalorder %v15677_v39, 0 }
 0x27d   : > { %v12270_v11 = vsel %vm12261_vm15, %v15618_v25, %v2972_v51  ;;  %15676 = vst [vmem:[#allocation64_spill] sm:$0xff] %v12276_v49  ;;  %v2082_v30 = vand.u32 2139095040, %v12249_v45  ;;  %v2974_v35 = vsel %vm2851_vm14, %v2973_v42, %v12125_v4  ;;  %v2535_v48 = vsel %vm2533_vm12, %v12209_v5, %v15352_v61 }
 0x27e   : > { %v2977_v36 = vmul.f32 %v12270_v11, %v12270_v11  ;;  %v859_v41 = vsel %vm858_vm8, %v12203_v63, 0  ;;  %vm2536_vm9 = vcmp.eq.s32.totalorder %v2531_v50, 2  ;;  %vm1628_vm13 = vcmp.gt.s32.totalorder %v1627_v47, 0 }
 0x27f   : > { %v2818_v60 = vsel %vm2697_vm1, %v2817_v15, %v2816_v10  ;;  %vm2532_vm7 = vcmp.lt.s32.totalorder %v2531_v50, 2  ;;  %v2538_v4 = vsel %vm2536_vm9, %v15351_v57, %v12201_v7  ;;  %v2976_v42 = vsel %vm12261_vm15, 0, %v2974_v35 }
 0x280   : > { %v2978_v29 = vmul.f32 -0.001358992, %v2977_v36  ;;  %v2985_v37 = vmul.f32 -0.00019511016, %v2977_v36  ;;  %v2539_v32 = vsel %vm2532_vm7, %v2535_v48, %v2538_v4  ;;  %vm4854_vm8 = vcmp.lt.s32.totalorder %v12180_v52, 2 }
 0x281   : > { %v4857_v63 = vsel %vm4855_vm2, %v12189_v23, %v15354_v1  ;;  %v4860_v10 = vsel %vm4858_vm4, %v15353_v27, %v12192_v0  ;;  %v2083_v50 = vshrl.u32 %v2082_v30, 23  ;;  %v1629_v8 = vsel %vm1628_vm13, %v1627_v47, 0  ;;  %v5577_v47 = vpop.f32.mrf.mxu0 }
 0x282   : > { %v2979_v20 = vadd.f32 0.041655596, %v2978_v29  ;;  %v2986_v18 = vadd.f32 0.008332121, %v2985_v37  ;;  %v15678_v51 = vand.u32 2147483647, %v15677_v39  ;;  %v4861_v30 = vsel %vm4854_vm8, %v4857_v63, %v4860_v10 }
 0x283   : > { %v12319_v29 = vand.u32 31, %v859_v41  ;;  %v5472_v4 = vadd.s32 3, %v2976_v42  ;;  %v12328_v52 = vsel %vm15379_vm6, nan, %v2539_v32  ;;  %vm15385_vm2 = vweird.f32 %v15623_v21 }
 0x284   : > { %vm12315_vm11 = vcmp.le.f32.partialorder %v15678_v51, 0.7853982  ;;  %v2980_v35 = vmul.f32 %v2979_v20, %v2977_v36  ;;  %v2987_v48 = vmul.f32 %v2986_v18, %v2977_v36  ;;  %15681 = vst [vmem:[#allocation30_spill] sm:$0xff] %v12328_v52  ;;  %5818 = vrot.lane.b32.xlu1 %v12328_v52, %s9534_s21  ;;  %v12334_v18 = vmul.f32 %v5577_v47, %v12176_v43 }
 0x285   : > { %v12324_v37 = vsel %vm12315_vm11, %v15677_v39, %v2818_v60  ;;  %v12337_v60 = vand.u32 31, %v1629_v8  ;;  %v8879_v61 = vadd.s32 4294967169, %v2083_v50  ;;  %v12347_v27 = vshrl.u32 %v859_v41, 5 }
 0x286   : > { %v2981_v51 = vadd.f32 -0.4999988, %v2980_v35  ;;  %v2988_v57 = vadd.f32 -0.16666654, %v2987_v48  ;;  %v12341_v32 = vmul.f32 %v12324_v37, %v12324_v37  ;;  %v2993_v35 = vand.u32 3, %v2976_v42 }
 0x287   : > { %v12345_v48 = vsel %vm15385_vm2, nan, %v4861_v30  ;;  %v862_v47 = vsub.s32 32, %v12319_v29  ;;  %v5473_v1 = vand.u32 3, %v5472_v4  ;;  %v12350_v20 = vshrl.u32 %v1629_v8, 5 }
 0x288   : > { %v2982_v63 = vmul.f32 %v2981_v51, %v2977_v36  ;;  %v2989_v10 = vmul.f32 %v2988_v57, %v2977_v36  ;;  %v15682_v16 = vand.u32 2147483647, %v12121_v9  ;;  %v12355_v51 = vsub.s32 32, %v12337_v60 }
 0x289   : > { %v2819_v57 = vsub.s32 4, %v11992_v62  ;;  %v12358_v36 = vadd.s32 1, %v8879_v61  ;;  %vm2992_vm4 = vweird.f32 %v15618_v25  ;;  %v2824_v41 = vmul.f32 -0.001358992, %v12341_v32 }
 0x28a   : > { %v2983_v52 = vadd.f32 1.0, %v2982_v63  ;;  %v2990_v50 = vadd.f32 1.0, %v2989_v10  ;;  %v854_v56 = vand.u32 8388607, %v15682_v16  ;;  %vm2994_vm14 = vcmp.lt.s32.totalorder %v2993_v35, 2 }
 0x28b   : > { %vm5474_vm15 = vcmp.lt.s32.totalorder %v5473_v1, 2  ;;  %vm5478_vm12 = vcmp.eq.s32.totalorder %v5473_v1, 2  ;;  %vm2995_vm9 = vcmp.eq.s32.totalorder %v2993_v35, 0  ;;  %vm2998_vm13 = vcmp.eq.s32.totalorder %v2993_v35, 2 }
 0x28c   : > { %v2991_v42 = vmul.f32 %v2990_v50, %v12270_v11  ;;  %v2999_v8 = vxor.u32 2147483648, %v2983_v52  ;;  %vm5475_vm7 = vcmp.eq.s32.totalorder %v5473_v1, 0  ;;  %v855_v30 = vor.u32 8388608, %v854_v56 }
 0x28d   : > { %v864_v61 = vshll.u32 %v15449_v54, %v12319_v29  ;;  %v867_v10 = vshll.u32 %v15605_v12, %v12319_v29  ;;  %v870_v11 = vshll.u32 %v15455_v40, %v12319_v29  ;;  %v865_v7 = vshrl.u32 %v15605_v12, %v862_v47 }
 0x28e   : > { %v2996_v16 = vxor.u32 2147483648, %v2991_v42  ;;  %v5480_v4 = vsel %vm5478_vm12, %v2999_v8, %v2991_v42  ;;  %v3000_v63 = vsel %vm2998_vm13, %v2999_v8, %v2991_v42  ;;  %v873_v19 = vshll.u32 %v15603_v17, %v12319_v29 }
 0x28f   : > { %v868_v42 = vshrl.u32 %v15455_v40, %v862_v47  ;;  %v871_v8 = vshrl.u32 %v15603_v17, %v862_v47  ;;  %v15685_v24 = vmov 920167782   ;;  %v2820_v1 = vsel %vm2697_vm1, %v2819_v57, %v11992_v62 }
 0x290   : > { %v5477_v50 = vsel %vm5475_vm7, %v2983_v52, %v2996_v16  ;;  %v2997_v5 = vsel %vm2995_vm9, %v2983_v52, %v2996_v16  ;;  %v866_v16 = vor.u32 %v865_v7, %v864_v61  ;;  %v874_v22 = vshrl.u32 %v15685_v24, %v862_v47 }
 0x291   : > { %v5481_v55 = vsel %vm5474_vm15, %v5477_v50, %v5480_v4  ;;  %v3001_v56 = vsel %vm2994_vm14, %v2997_v5, %v3000_v63  ;;  %v2831_v5 = vmul.f32 -0.00019511016, %v12341_v32  ;;  %v869_v35 = vor.u32 %v868_v42, %v867_v10 }
 0x292   : > { %v12378_v6 = vsel %vm2992_vm4, nan, %v5481_v55  ;;  %v12382_v52 = vsel %vm2992_vm4, nan, %v3001_v56  ;;  %v872_v4 = vor.u32 %v871_v8, %v870_v11  ;;  %v875_v55 = vor.u32 %v874_v22, %v873_v19 }
 0x293   : > { %15683 = vst [vmem:[#allocation65_spill] sm:$0xff] %v12378_v6  ;;  %5824 = vrot.lane.b32.xlu1 %v12382_v52, %s9534_s21  ;;  %v876_v25 = vshll.u32 %v15685_v24, %v12319_v29  ;;  %v15686_v63 = vmov 1326507024   ;;  %v12394_v7 = vshll.u32 %v855_v30, 8  ;;  %v2825_v61 = vadd.f32 0.041655596, %v2824_v41 }
 0x294   : > { %15684 = vst [vmem:[#allocation66_spill] sm:$0xff] %v12382_v52  ;;  %v877_v50 = vshrl.u32 %v15686_v63, %v862_v47  ;;  %vm2090_vm8 = vcmp.gt.s32.totalorder %v12358_v36, 0  ;;  %vm879_vm1 = vcmp.lt.s32.totalorder %v12347_v27, 1  ;;  %v863_v57 = vshrl.u32 %v15449_v54, %v862_v47 }
 0x295   : > { %vm882_vm4 = vcmp.lt.s32.totalorder %v12347_v27, 4  ;;  %v887_v19 = vsel %vm879_vm1, %v866_v16, %v869_v35  ;;  %vm881_vm14 = vcmp.lt.s32.totalorder %v12347_v27, 3  ;;  %v891_v10 = vsel %vm879_vm1, %v869_v35, %v872_v4 }
 0x296   : > { %v878_v56 = vor.u32 %v877_v50, %v876_v25  ;;  %v884_v22 = vsel %vm882_vm4, %v872_v4, 2102212464  ;;  %v888_v29 = vsel %vm882_vm4, %v875_v55, 920167782  ;;  %vm880_vm15 = vcmp.lt.s32.totalorder %v12347_v27, 2 }
 0x297   : > { %v889_v41 = vsel %vm881_vm14, %v872_v4, %v888_v29  ;;  %v896_v11 = vand.u32 65535, %v12394_v7  ;;  %v883_v42 = vsel %vm879_vm1, %v863_v57, %v866_v16  ;;  %v897_v25 = vshrl.u32 %v12394_v7, 16  ;;  %v15687_v4 = vld [vmem:[#allocation6_spill] sm:$0xff] }
 0x298   : > { %v892_v30 = vsel %vm882_vm4, %v878_v56, 1326507024  ;;  %v890_v8 = vsel %vm880_vm15, %v887_v19, %v889_v41  ;;  %v885_v50 = vsel %vm881_vm14, %v869_v35, %v884_v22  ;;  %v12411_v2 = vsel %vm12315_vm11, 0, %v2820_v1 }
 0x299   : > { %v893_v47 = vsel %vm881_vm14, %v875_v55, %v892_v30  ;;  %v920_v52 = vand.u32 65535, %v890_v8  ;;  %v921_v6 = vshrl.u32 %v890_v8, 16  ;;  %v12416_v16 = vsel %vm2090_vm8, %v12358_v36, 0 }
 0x29a   : > { %v894_v62 = vsel %vm880_vm15, %v891_v10, %v893_v47  ;;  %v12420_v35 = vmul.f32 %v2825_v61, %v12341_v32  ;;  %v2832_v56 = vadd.f32 0.008332121, %v2831_v5  ;;  %v12424_v15 = vsel %vm880_vm15, %v883_v42, %v885_v50 }
 0x29b   : > { %6061 = vperm.xlu1 %9135, %v15687_v4   ;;  %v898_v55 = vand.u32 65535, %v894_v62  ;;  %v899_v57 = vshrl.u32 %v894_v62, 16  ;;  %v923_v19 = vmul.u32 %v921_v6, %v896_v11  ;;  %v924_v22 = vmul.u32 %v920_v52, %v897_v25 }
 0x29c   : > { %v15688_v10 = vand.u32 2147483647, %v12172_v46  ;;  %v922_v30 = vmul.u32 %v920_v52, %v896_v11  ;;  %v925_v8 = vmul.u32 %v921_v6, %v897_v25  ;;  %v1634_v6 = vshll.u32 %v15449_v54, %v12337_v60  ;;  %v15689_v52 = vld [vmem:[#allocation8_spill] sm:$0xff] }
 0x29d   : > { %v901_v1 = vmul.u32 %v899_v57, %v896_v11  ;;  %v902_v29 = vmul.u32 %v898_v55, %v897_v25  ;;  %v900_v41 = vmul.u32 %v898_v55, %v896_v11  ;;  %v926_v62 = vshll.u32 %v923_v19, 16 }
 0x29e   : > { %v12428_v36 = vand.u32 8388607, %v15688_v10  ;;  %v903_v47 = vmul.u32 %v899_v57, %v897_v25  ;;  %v927_v4 = vshrl.u32 %v923_v19, 16  ;;  %v928_v5 = vshll.u32 %v924_v22, 16 }
 0x29f   : > { %v904_v61 = vshll.u32 %v901_v1, 16  ;;  %v905_v3 = vshrl.u32 %v901_v1, 16  ;;  %v929_v26 = vshrl.u32 %v924_v22, 16  ;;  %vm930_vm11 = vc.u32 %v922_v30, %v926_v62 }
 0x2a0   : > { %v932_v27 = vadd.s32 %v926_v62, %v922_v30  ;;  %v906_v42 = vshll.u32 %v902_v29, 16  ;;  %v931_v59 = vsel %vm930_vm11, 1, %v15447_v38  ;;  %v1635_v55 = vshrl.u32 %v15605_v12, %v12355_v51 }
 0x2a1   : > { %vm908_vm12 = vc.u32 %v900_v41, %v904_v61  ;;  %v910_v50 = vadd.s32 %v904_v61, %v900_v41  ;;  %v933_v13 = vadd.s32 %v931_v59, %v925_v8  ;;  %v1637_v22 = vshll.u32 %v15605_v12, %v12337_v60 }
 0x2a2   : > { %v909_v10 = vsel %vm908_vm12, 1, %v15447_v38  ;;  %vm934_vm9 = vc.u32 %v932_v27, %v928_v5  ;;  %v1638_v59 = vshrl.u32 %v15455_v40, %v12355_v51  ;;  %v12443_v41 = vor.u32 %v1635_v55, %v1634_v6 }
 0x2a3   : > { %6067 = vperm.xlu1 %9135, %v15689_v52   ;;  %v911_v11 = vadd.s32 %v909_v10, %v903_v47  ;;  %vm912_vm13 = vc.u32 %v910_v50, %v906_v42  ;;  %v935_v25 = vsel %vm934_vm9, 1, %v15447_v38  ;;  %v1640_v30 = vshll.u32 %v15455_v40, %v12337_v60 }
 0x2a4   : > { %v913_v57 = vsel %vm912_vm13, 1, %v15447_v38  ;;  %v937_v19 = vadd.s32 %v935_v25, %v933_v13  ;;  %v1641_v8 = vshrl.u32 %v15603_v17, %v12355_v51  ;;  %v12449_v47 = vor.u32 %v1638_v59, %v1637_v22 }
 0x2a5   : > { %v915_v1 = vadd.s32 %v913_v57, %v911_v11  ;;  %v1643_v13 = vshll.u32 %v15603_v17, %v12337_v60  ;;  %v1644_v61 = vshrl.u32 %v15685_v24, %v12355_v51  ;;  %v907_v42 = vshrl.u32 %v902_v29, 16 }
 0x2a6   : > { %v938_v62 = vadd.s32 %v937_v19, %v927_v4  ;;  %v1646_v10 = vshll.u32 %v15685_v24, %v12337_v60  ;;  %v1647_v6 = vshrl.u32 %v15686_v63, %v12355_v51  ;;  %v1625_v11 = vor.u32 8388608, %v12428_v36  ;;  %v15690_v60 = vld [vmem:[#allocation10_spill] sm:$0xff] }
 0x2a7   : > { %v916_v50 = vadd.s32 %v915_v1, %v905_v3  ;;  %v12460_v4 = vor.u32 %v1641_v8, %v1640_v30  ;;  %v1645_v25 = vor.u32 %v1644_v61, %v1643_v13  ;;  %v12464_v57 = vadd.s32 %v932_v27, %v928_v5 }
 0x2a8   : > { %v939_v52 = vadd.s32 %v938_v62, %v929_v26  ;;  %v1648_v19 = vor.u32 %v1647_v6, %v1646_v10  ;;  %vm1649_vm7 = vcmp.lt.s32.totalorder %v12350_v20, 1  ;;  %v2833_v3 = vmul.f32 %v2832_v56, %v12341_v32  ;;  %v496_v6 = vpop.permute.xlu0 %495 }
 0x2a9   : > { %v12462_v55 = vadd.s32 %v916_v50, %v907_v42  ;;  %vm1652_vm8 = vcmp.lt.s32.totalorder %v12350_v20, 4  ;;  %v1657_v26 = vsel %vm1649_vm7, %v12443_v41, %v12449_v47  ;;  %v940_v36 = vmul.u32 %v12394_v7, %v12424_v15 }
 0x2aa   : > { %v943_v29 = vadd.s32 1, %v939_v52  ;;  %vm1651_vm4 = vcmp.lt.s32.totalorder %v12350_v20, 3  ;;  %v1658_v56 = vsel %vm1652_vm8, %v1645_v25, 920167782  ;;  %vm1650_vm14 = vcmp.lt.s32.totalorder %v12350_v20, 2 }
 0x2ab   : > { %6076 = vperm.xlu1 %9135, %v15690_v60   ;;  %vm942_vm1 = vc.u32 %v12462_v55, %v12464_v57  ;;  %v1659_v27 = vsel %vm1651_vm4, %v12460_v4, %v1658_v56  ;;  %v1661_v7 = vsel %vm1649_vm7, %v12449_v47, %v12460_v4  ;;  %v1662_v59 = vsel %vm1652_vm8, %v1648_v19, 1326507024 }
 0x2ac   : > { %v944_v5 = vsel %vm942_vm1, %v943_v29, %v939_v52  ;;  %v1660_v22 = vsel %vm1650_vm14, %v1657_v26, %v1659_v27  ;;  %v12493_v1 = vshll.u32 %v1625_v11, 8  ;;  %v2827_v30 = vadd.f32 -0.4999988, %v12420_v35  ;;  %v15691_v35 = vld [vmem:[#allocation63_spill] sm:$0xff] }
 0x2ad   : > { %v945_v15 = vadd.s32 %v944_v5, %v940_v36  ;;  %v12497_v8 = vand.u32 31, %v12416_v16  ;;  %v1663_v62 = vsel %vm1651_vm4, %v1645_v25, %v1662_v59  ;;  %v1691_v13 = vshrl.u32 %v1660_v22, 16 }
 0x2ae   : > { %v2834_v61 = vadd.f32 -0.16666654, %v2833_v3  ;;  %v1664_v50 = vsel %vm1650_vm14, %v1661_v7, %v1663_v62  ;;  %v1666_v10 = vand.u32 65535, %v12493_v1  ;;  %v1667_v52 = vshrl.u32 %v12493_v1, 16 }
 0x2af   : > { %v946_v42 = vadd.s32 536870912, %v945_v15  ;;  %v1668_v11 = vand.u32 65535, %v1664_v50  ;;  %v1669_v19 = vshrl.u32 %v1664_v50, 16  ;;  %v1915_v29 = vand.u32 3, %v15691_v35 }
 0x2b0   : > { %v12507_v26 = vadd.s32 3, %v12411_v2  ;;  %v1690_v25 = vand.u32 65535, %v1660_v22  ;;  %v12511_v3 = vmul.u32 %v1691_v13, %v1666_v10  ;;  %v12514_v36 = vshrl.u32 %v12416_v16, 5 }
 0x2b1   : > { %v12509_v60 = vshrl.u32 %v946_v42, 30  ;;  %v12517_v56 = vsub.s32 32, %v12497_v8  ;;  %v1671_v5 = vmul.u32 %v1669_v19, %v1666_v10  ;;  %v1672_v27 = vmul.u32 %v1668_v11, %v1667_v52  ;;  %v15692_v42 = vld [vmem:[#allocation13_spill] sm:$0xff] }
 0x2b2   : > { %v12520_v7 = vmul.f32 %v2827_v30, %v12341_v32  ;;  %v12523_v59 = vmul.f32 %v2834_v61, %v12341_v32  ;;  %v520_v62 = vmul.f32 %v15645_v44, %v496_v6  ;;  %v1670_v50 = vmul.u32 %v1668_v11, %v1666_v10 }
 0x2b3   : > { %6101 = vperm.xlu1 %9135, %v15692_v42   ;;  %v948_v22 = vshll.u32 %v12509_v60, 30  ;;  %v1674_v16 = vshll.u32 %v1671_v5, 16  ;;  %v1696_v35 = vshll.u32 %v12511_v3, 16  ;;  %vm1916_vm15 = vcmp.lt.s32.totalorder %v1915_v29, 2  ;;  %v12536_v42 = vpop.f32.mrf.mxu1 }
 0x2b4   : > { %v1692_v49 = vmul.u32 %v1690_v25, %v1666_v10  ;;  %vm1917_vm11 = vcmp.eq.s32.totalorder %v1915_v29, 0  ;;  %vm1920_vm12 = vcmp.eq.s32.totalorder %v1915_v29, 2  ;;  %v1676_v30 = vshll.u32 %v1672_v27, 16  ;;  %15694 = vst [vmem:[#allocation6_spill] sm:$0xff] %v12536_v42 }
 0x2b5   : > { %v12529_v53 = vsub.s32 %v945_v15, %v948_v22  ;;  %vm1678_vm9 = vc.u32 %v1670_v50, %v1674_v16  ;;  %v1680_v32 = vadd.s32 %v1674_v16, %v1670_v50  ;;  %v1694_v61 = vmul.u32 %v1690_v25, %v1667_v52 }
 0x2b6   : > { %v12532_v44 = vadd.f32 %v520_v62, %v15693_v31  ;;  %v1673_v11 = vmul.u32 %v1669_v19, %v1667_v52  ;;  %v1679_v15 = vsel %vm1678_vm9, 1, %v15447_v38  ;;  %vm1700_vm6 = vc.u32 %v1692_v49, %v1696_v35 }
 0x2b7   : > { %vm950_vm13 = vcmp.lt.s32.totalorder %v12529_v53, 0  ;;  %v951_v6 = vsub.s32 0, %v12529_v53  ;;  %vm1682_vm1 = vc.u32 %v1680_v32, %v1676_v30  ;;  %v1702_v10 = vadd.s32 %v1696_v35, %v1692_v49 }
 0x2b8   : > { %v1633_v25 = vshrl.u32 %v15449_v54, %v12355_v51  ;;  %v1695_v50 = vmul.u32 %v1691_v13, %v1667_v52  ;;  %v15695_v31 = vxor.u32 2147483648, %v12096_v33  ;;  %v1681_v19 = vadd.s32 %v1679_v15, %v1673_v11 }
 0x2b9   : > { %v952_v22 = vsel %vm950_vm13, %v951_v6, %v12529_v53  ;;  %v1683_v42 = vsel %vm1682_vm1, 1, %v15447_v38  ;;  %v1698_v43 = vshll.u32 %v1694_v61, 16  ;;  %v1675_v35 = vshrl.u32 %v1671_v5, 16 }
 0x2ba   : > { %v1919_v62 = vsel %vm1917_vm11, %v12105_v34, %v15695_v31  ;;  %v953_v16 = vclz %v952_v22  ;;  %v1653_v49 = vsel %vm1649_vm7, %v1633_v25, %v12443_v41  ;;  %v1701_v51 = vsel %vm1700_vm6, 1, %v15447_v38 }
 0x2bb   : > { %6110 = vperm.xlu1 %9135, %v15696_v28   ;;  %v15697_v13 = vxor.u32 2147483648, %v12105_v34  ;;  %v1685_v32 = vadd.s32 %v1683_v42, %v1681_v19  ;;  %v1703_v6 = vadd.s32 %v1701_v51, %v1695_v50  ;;  %vm1704_vm11 = vc.u32 %v1702_v10, %v1698_v43  ;;  %v9480_v50 = vld [vmem:[%s9621_s18 + $0x40] sm:$0xff] }
 0x2bc   : > { %v8856_v30 = vadd.s32 4294967294, %v953_v16  ;;  %v1654_v28 = vsel %vm1652_vm8, %v12460_v4, 2102212464  ;;  %v1677_v11 = vshrl.u32 %v1672_v27, 16  ;;  %v1705_v41 = vsel %vm1704_vm11, 1, %v15447_v38  ;;  %v12570_v27 = vpop.f32.mrf.mxu1 }
 0x2bd   : > { %v1922_v52 = vsel %vm1920_vm12, %v15697_v13, %v12096_v33  ;;  %v1686_v15 = vadd.s32 %v1685_v32, %v1675_v35  ;;  %v1707_v22 = vadd.s32 %v1705_v41, %v1703_v6  ;;  %v941_v34 = vadd.s32 %v12464_v57, %v12462_v55  ;;  %15698 = vst [vmem:[#allocation8_spill] sm:$0xff] %v12570_v27 }
 0x2be   : > { %v1923_v5 = vsel %vm1916_vm15, %v1919_v62, %v1922_v52  ;;  %vm8857_vm6 = vcmp.lt.s32.totalorder %v8856_v30, 0  ;;  %v1697_v25 = vshrl.u32 %v12511_v3, 16  ;;  %v1655_v62 = vsel %vm1651_vm4, %v12449_v47, %v1654_v28 }
 0x2bf   : > { %v12563_v33 = vsel %vm1914_vm5, nan, %v1923_v5  ;;  %v956_v42 = vsel %vm8857_vm6, 0, %v8856_v30  ;;  %v12575_v14 = vadd.s32 %v1686_v15, %v1677_v11  ;;  %v1699_v16 = vshrl.u32 %v1694_v61, 16 }
 0x2c0   : > { %v5609_v4 = vmul.f32 %v9480_v50, %v12563_v33  ;;  %v957_v29 = vsub.s32 32, %v956_v42  ;;  %v961_v31 = vsub.s32 4294967266, %v956_v42  ;;  %v12577_v19 = vadd.s32 %v1702_v10, %v1698_v43 }
 0x2c1   : > { %v1708_v55 = vadd.s32 %v1707_v22, %v1697_v25  ;;  %v958_v3 = vshll.u32 %v12529_v53, %v956_v42  ;;  %v15381_v13 = vand.u32 2147483647, %v12249_v45  ;;  %v12585_v52 = vadd.f32 1.0, %v12523_v59 }
 0x2c2   : > { %v12580_v57 = vadd.f32 %v12334_v18, %v5609_v4  ;;  %v959_v35 = vshrl.u32 %v941_v34, %v957_v29  ;;  %v962_v51 = vadd.s32 127, %v961_v31  ;;  %v2544_v47 = vand.u32 2139095040, %v12532_v44 }
 0x2c3   : > { %v1656_v61 = vsel %vm1650_vm14, %v1653_v49, %v1655_v62  ;;  %v1709_v43 = vadd.s32 %v1708_v55, %v1699_v16  ;;  %vm849_vm5 = vcmp.lt.s32.totalorder %v12121_v9, 0  ;;  %vm1712_vm7 = vc.u32 %v12575_v14, %v12577_v19 }
 0x2c4   : > { %15699 = vst [vmem:[#allocation10_spill] sm:$0xff] %v12580_v57  ;;  %v960_v10 = vor.u32 %v959_v35, %v958_v3  ;;  %v963_v18 = vshll.u32 %v962_v51, 23  ;;  %v971_v53 = vsub.s32 4, %v12509_v60  ;;  %v2100_v59 = vshrl.u32 %v15455_v40, %v12517_v56  ;;  %v12620_v62 = vpop.f32.mrf.mxu1 }
 0x2c5   : > { %v1713_v30 = vadd.s32 1, %v1709_v43  ;;  %v2103_v32 = vshrl.u32 %v15603_v17, %v12517_v56  ;;  %v1710_v20 = vmul.u32 %v12493_v1, %v1656_v61  ;;  %v2086_v49 = vand.u32 8388607, %v15381_v13 }
 0x2c6   : > { %v964_v6 = vor.u32 4788187, %v963_v18  ;;  %v2099_v28 = vshll.u32 %v15605_v12, %v12497_v8  ;;  %v967_v11 = vcvt.s32.f32 %v960_v10  ;;  %v2102_v5 = vshll.u32 %v15455_v40, %v12497_v8 }
 0x2c7   : > { %v1714_v41 = vsel %vm1712_vm7, %v1713_v30, %v1709_v43  ;;  %v2106_v15 = vshrl.u32 %v15685_v24, %v12517_v56  ;;  %v2108_v42 = vshll.u32 %v15685_v24, %v12497_v8  ;;  %v2109_v1 = vshrl.u32 %v15686_v63, %v12517_v56 }
 0x2c8   : > { %v965_v22 = vand.u32 2147483647, %v964_v6  ;;  %v1715_v34 = vadd.s32 %v1714_v41, %v1710_v20  ;;  %v972_v25 = vsel %vm849_vm5, %v971_v53, %v12509_v60  ;;  %v12614_v50 = vor.u32 %v2100_v59, %v2099_v28 }
 0x2c9   : > { %v12616_v4 = vor.u32 %v2103_v32, %v2102_v5  ;;  %v2105_v29 = vshll.u32 %v15603_v17, %v12497_v8  ;;  %v2097_v55 = vshrl.u32 %v15605_v12, %v12517_v56  ;;  %v2110_v3 = vor.u32 %v2109_v1, %v2108_v42 }
 0x2ca   : > { %v968_v31 = vmul.f32 %v967_v11, %v965_v22  ;;  %v1716_v16 = vadd.s32 536870912, %v1715_v34  ;;  %v15700_v35 = vand.u32 2147483647, %v12121_v9  ;;  %v2087_v60 = vor.u32 8388608, %v2086_v49 }
 0x2cb   : > { %v2096_v61 = vshll.u32 %v15449_v54, %v12497_v8  ;;  %v2107_v43 = vor.u32 %v2106_v15, %v2105_v29  ;;  %vm2111_vm4 = vcmp.lt.s32.totalorder %v12514_v36, 1  ;;  %vm2114_vm14 = vcmp.lt.s32.totalorder %v12514_v36, 4 }
 0x2cc   : > { %vm12626_vm8 = vcmp.le.f32.partialorder %v15700_v35, 0.7853982  ;;  %v969_v10 = vxor.u32 2147483648, %v968_v31  ;;  %v12632_v18 = vshrl.u32 %v1716_v16, 30  ;;  %v2545_v53 = vshrl.u32 %v2544_v47, 23 }
 0x2cd   : > { %v974_v30 = vsel %vm12626_vm8, 0, %v972_v25  ;;  %v2123_v59 = vsel %vm2111_vm4, %v12614_v50, %v12616_v4  ;;  %v2124_v8 = vsel %vm2114_vm14, %v2110_v3, 1326507024  ;;  %v12647_v20 = vor.u32 %v2097_v55, %v2096_v61  ;;  %v12683_v61 = vpop.f32.mrf.mxu1 }
 0x2ce   : > { %v970_v32 = vsel %vm849_vm5, %v969_v10, %v968_v31  ;;  %v1718_v6 = vshll.u32 %v12632_v18, 30  ;;  %vm2113_vm15 = vcmp.lt.s32.totalorder %v12514_v36, 3  ;;  %vm15386_vm12 = vcmp.lt.s32.totalorder %v12514_v36, 2  ;;  %15703 = vst [vmem:[#allocation63_spill] sm:$0xff] %v12683_v61 }
 0x2cf   : > { %v12653_v47 = vsel %vm12626_vm8, %v12121_v9, %v970_v32  ;;  %v2125_v49 = vsel %vm2113_vm15, %v2107_v43, %v2124_v8  ;;  %v12658_v28 = vshll.u32 %v2087_v60, 8  ;;  %v2120_v5 = vsel %vm2114_vm14, %v2107_v43, 920167782 }
 0x2d0   : > { %v975_v11 = vmul.f32 %v12653_v47, %v12653_v47  ;;  %v12662_v41 = vsub.s32 %v1715_v34, %v1718_v6  ;;  %v2126_v15 = vsel %vm15386_vm12, %v2123_v59, %v2125_v49  ;;  %v8888_v22 = vadd.s32 4294967169, %v2545_v53  ;;  %v15704_v59 = vld [vmem:[#allocation21_spill] sm:$0xff] }
 0x2d1   : > { %v3457_v42 = vadd.s32 3, %v974_v30  ;;  %v12669_v1 = vshrl.u32 %v12658_v28, 16  ;;  %v2130_v25 = vand.u32 65535, %v2126_v15  ;;  %v2119_v34 = vsel %vm2111_vm4, %v12647_v20, %v12614_v50 }
 0x2d2   : > { %v976_v29 = vmul.f32 -0.001358992, %v975_v11  ;;  %v983_v31 = vmul.f32 -0.00019511016, %v975_v11  ;;  %vm1720_vm9 = vcmp.lt.s32.totalorder %v12662_v41, 0  ;;  %v1721_v16 = vsub.s32 0, %v12662_v41 }
 0x2d3   : > { %v2121_v55 = vsel %vm2113_vm15, %v12616_v4, %v2120_v5  ;;  %v12681_v3 = vand.u32 65535, %v12658_v28  ;;  %v2131_v35 = vshrl.u32 %v2126_v15, 16  ;;  %v12687_v10 = vmul.u32 %v2130_v25, %v12669_v1 }
 0x2d4   : > { %v977_v51 = vadd.f32 0.041655596, %v976_v29  ;;  %v984_v60 = vadd.f32 0.008332121, %v983_v31  ;;  %v1722_v43 = vsel %vm1720_vm9, %v1721_v16, %v12662_v41  ;;  %v12689_v53 = vand.u32 3, %v974_v30 }
 0x2d5   : > { %v12692_v8 = vand.u32 3, %v15704_v59  ;;  %v1723_v32 = vclz %v1722_v43  ;;  %v12695_v6 = vmul.u32 %v2131_v35, %v12681_v3  ;;  %v12697_v49 = vadd.s32 1, %v8888_v22  ;;  %v12705_v59 = vpop.f32.mrf.mxu0 }
 0x2d6   : > { %v978_v5 = vmul.f32 %v977_v51, %v975_v11  ;;  %v985_v15 = vmul.f32 %v984_v60, %v975_v11  ;;  %v12701_v29 = vsel %vm15386_vm12, %v2119_v34, %v2121_v55  ;;  %v3458_v31 = vand.u32 3, %v3457_v42  ;;  %15705 = vst [vmem:[#allocation13_spill] sm:$0xff] %v12705_v59 }
 0x2d7   : > { %v8871_v16 = vadd.s32 4294967294, %v1723_v32  ;;  %v2132_v30 = vmul.u32 %v2130_v25, %v12681_v3  ;;  %v2136_v13 = vshll.u32 %v12695_v6, 16  ;;  %v1711_v22 = vadd.s32 %v12577_v19, %v12575_v14 }
 0x2d8   : > { %v979_v43 = vadd.f32 -0.4999988, %v978_v5  ;;  %v986_v57 = vadd.f32 -0.16666654, %v985_v15  ;;  %v2138_v51 = vshll.u32 %v12687_v10, 16  ;;  %vm993_vm13 = vcmp.eq.s32.totalorder %v12689_v53, 0 }
 0x2d9   : > { %vm8872_vm1 = vcmp.lt.s32.totalorder %v8871_v16, 0  ;;  %vm2140_vm11 = vc.u32 %v2132_v30, %v2136_v13  ;;  %v2142_v34 = vadd.s32 %v2136_v13, %v2132_v30  ;;  %v2153_v42 = vshrl.u32 %v12701_v29, 16 }
 0x2da   : > { %v980_v55 = vmul.f32 %v979_v43, %v975_v11  ;;  %v987_v25 = vmul.f32 %v986_v57, %v975_v11  ;;  %vm992_vm6 = vcmp.lt.s32.totalorder %v12689_v53, 2  ;;  %v1726_v60 = vsel %vm8872_vm1, 0, %v8871_v16 }
 0x2db   : > { %v2141_v32 = vsel %vm2140_vm11, 1, %v15447_v38  ;;  %vm990_vm5 = vweird.f32 %v12121_v9  ;;  %v1727_v5 = vsub.s32 32, %v1726_v60  ;;  %v1731_v14 = vsub.s32 4294967266, %v1726_v60 }
 0x2dc   : > { %v2135_v19 = vmul.u32 %v2131_v35, %v12669_v1  ;;  %v2152_v15 = vand.u32 65535, %v12701_v29  ;;  %v981_v59 = vadd.f32 1.0, %v980_v55  ;;  %v988_v61 = vadd.f32 1.0, %v987_v25  ;;  %v12724_v35 = vpop.f32.mrf.mxu1 }
 0x2dd   : > { %v1728_v13 = vshll.u32 %v12662_v41, %v1726_v60  ;;  %vm2144_vm7 = vc.u32 %v2142_v34, %v2138_v51  ;;  %vm1455_vm8 = vcmp.eq.s32.totalorder %v12692_v8, 0  ;;  %v1729_v57 = vshrl.u32 %v1711_v22, %v1727_v5 }
 0x2de   : > { %v1732_v11 = vadd.s32 127, %v1731_v14  ;;  %v2143_v16 = vadd.s32 %v2141_v32, %v2135_v19  ;;  %v12720_v30 = vmul.u32 %v2153_v42, %v12681_v3  ;;  %v989_v43 = vmul.f32 %v988_v61, %v12653_v47  ;;  %v12740_v14 = vpop.f32.mrf.mxu0 }
 0x2df   : > { %v997_v27 = vxor.u32 2147483648, %v981_v59  ;;  %vm996_vm9 = vcmp.eq.s32.totalorder %v12689_v53, 2  ;;  %v2145_v29 = vsel %vm2144_vm7, 1, %v15447_v38  ;;  %vm3459_vm1 = vcmp.lt.s32.totalorder %v3458_v31, 2 }
 0x2e0   : > { %vm3460_vm11 = vcmp.eq.s32.totalorder %v3458_v31, 0  ;;  %vm1458_vm3 = vcmp.eq.s32.totalorder %v12692_v8, 2  ;;  %v1730_v41 = vor.u32 %v1729_v57, %v1728_v13  ;;  %v1733_v22 = vshll.u32 %v1732_v11, 23 }
 0x2e1   : > { %v994_v51 = vxor.u32 2147483648, %v989_v43  ;;  %vm3463_vm10 = vcmp.eq.s32.totalorder %v3458_v31, 2  ;;  %vm1454_vm2 = vcmp.lt.s32.totalorder %v12692_v8, 2  ;;  %vm1619_vm12 = vcmp.lt.s32.totalorder %v12172_v46, 0  ;;  %v9481_v31 = vld [vmem:[%s9621_s18 + $0x10] sm:$0xff] }
 0x2e2   : > { %v2137_v47 = vshrl.u32 %v12695_v6, 16  ;;  %v2158_v61 = vshll.u32 %v12720_v30, 16  ;;  %v15706_v34 = vand.u32 2147483647, %v12172_v46  ;;  %v1734_v25 = vor.u32 4788187, %v1733_v22 }
 0x2e3   : > { %v2147_v60 = vadd.s32 %v2145_v29, %v2143_v16  ;;  %v2154_v32 = vmul.u32 %v2152_v15, %v12681_v3  ;;  %v2156_v5 = vmul.u32 %v2152_v15, %v12669_v1  ;;  %v3462_v19 = vsel %vm3460_vm11, %v981_v59, %v994_v51 }
 0x2e4   : > { %vm12734_vm0 = vcmp.le.f32.partialorder %v15706_v34, 0.7853982  ;;  %v3465_v6 = vsel %vm3463_vm10, %v997_v27, %v989_v43  ;;  %v995_v13 = vsel %vm993_vm13, %v981_v59, %v994_v51  ;;  %v998_v57 = vsel %vm996_vm9, %v997_v27, %v989_v43  ;;  %v15709_v59 = vld [vmem:[#allocation35_spill] sm:$0xff] }
 0x2e5   : > { %v3466_v11 = vsel %vm3459_vm1, %v3462_v19, %v3465_v6  ;;  %v999_v16 = vsel %vm992_vm6, %v995_v13, %v998_v57  ;;  %v1735_v3 = vand.u32 2147483647, %v1734_v25  ;;  %v1737_v29 = vcvt.s32.f32 %v1730_v41  ;;  %v15710_v25 = vld [vmem:[#allocation38_spill] sm:$0xff]  ;;  %v15712_v19 = vld [vmem:[#allocation40_spill] sm:$0xff] }
 0x2e6   : > { %v3467_v15 = vsel %vm990_vm5, nan, %v3466_v11  ;;  %v1000_v22 = vsel %vm990_vm5, nan, %v999_v16  ;;  %v2157_v34 = vmul.u32 %v2153_v42, %v12669_v1  ;;  %vm2162_vm10 = vc.u32 %v2154_v32, %v2158_v61 }
 0x2e7   : > { %v5619_v51 = vmul.f32 %v15709_v59, %v3467_v15  ;;  %v5860_v27 = vmul.f32 %v12620_v62, %v3467_v15  ;;  %5798 = vrot.lane.b32.xlu0 %v1000_v22, %s9534_s21  ;;  %v5603_v53 = vmul.f32 %v9481_v31, %v1000_v22  ;;  %v1738_v43 = vmul.f32 %v1737_v29, %v1735_v3  ;;  %v5745_v29 = vpop.f32.mrf.mxu1 }
 0x2e8   : > { %v15711_v41 = vxor.u32 2147483648, %v15710_v25  ;;  %v2160_v9 = vshll.u32 %v2156_v5, 16  ;;  %v2163_v13 = vsel %vm2162_vm10, 1, %v15447_v38  ;;  %v2164_v1 = vadd.s32 %v2158_v61, %v2154_v32 }
 0x2e9   : > { %v12765_v42 = vadd.f32 %v5619_v51, %v5603_v53  ;;  %5894 = vrot.lane.b32.xlu1 %v5860_v27, %s9534_s21  ;;  %v1739_v62 = vxor.u32 2147483648, %v1738_v43  ;;  %v2148_v57 = vadd.s32 %v2147_v60, %v2137_v47  ;;  %v2165_v11 = vadd.s32 %v2163_v13, %v2157_v34  ;;  %v15715_v51 = vld [vmem:[#allocation23_spill] sm:$0xff]  ;;  %v5586_v53 = vpop.f32.mrf.mxu0 }
 0x2ea   : > { %v1457_v6 = vsel %vm1455_vm8, %v15712_v19, %v15711_v41  ;;  %v15714_v16 = vxor.u32 2147483648, %v15712_v19  ;;  %v2095_v15 = vshrl.u32 %v15449_v54, %v12517_v56  ;;  %v2116_v61 = vsel %vm2114_vm14, %v12616_v4, 2102212464 }
 0x2eb   : > { %15713 = vst [vmem:[#allocation22_spill] sm:$0xff] %v12765_v42  ;;  %vm2166_vm13 = vc.u32 %v2164_v1, %v2160_v9  ;;  %v1740_v47 = vsel %vm1619_vm12, %v1739_v62, %v1738_v43  ;;  %v2139_v60 = vshrl.u32 %v12687_v10, 16  ;;  %v2159_v4 = vshrl.u32 %v12720_v30, 16  ;;  %v15716_v43 = vld [vmem:[#allocation20_spill] sm:$0xff] }
 0x2ec   : > { %v1460_v3 = vsel %vm1458_vm3, %v15714_v16, %v15710_v25  ;;  %v2167_v22 = vsel %vm2166_vm13, 1, %v15447_v38  ;;  %v12787_v34 = vsel %vm12734_vm0, %v12172_v46, %v1740_v47  ;;  %v2115_v56 = vsel %vm2111_vm4, %v2095_v15, %v12647_v20 }
 0x2ed   : > { %v1461_v32 = vsel %vm1454_vm2, %v1457_v6, %v1460_v3  ;;  %v2169_v8 = vadd.s32 %v2167_v22, %v2165_v11  ;;  %v1745_v59 = vmul.f32 %v12787_v34, %v12787_v34  ;;  %v5863_v27 = vmul.f32 %v5745_v29, %v15715_v51 }
 0x2ee   : > { %v2117_v10 = vsel %vm2113_vm15, %v12614_v50, %v2116_v61  ;;  %v12799_v31 = vadd.s32 %v2148_v57, %v2139_v60  ;;  %vm15717_vm3 = vweird.f32 %v15716_v43  ;;  %v1741_v20 = vsub.s32 4, %v12632_v18 }
 0x2ef   : > { %v12803_v25 = vsel %vm15717_vm3, nan, %v1461_v32  ;;  %v2161_v30 = vshrl.u32 %v2156_v5, 16  ;;  %v2170_v41 = vadd.s32 %v2169_v8, %v2159_v4  ;;  %v1746_v19 = vmul.f32 -0.001358992, %v1745_v59 }
 0x2f0   : > { %5804 = vrot.lane.b32.xlu0 %v12803_v25, %s9534_s21  ;;  %v1753_v6 = vmul.f32 -0.00019511016, %v1745_v59  ;;  %v12808_v13 = vadd.s32 %v2164_v1, %v2160_v9  ;;  %v2377_v50 = vand.u32 3, %v12144_v58  ;;  %v5628_v62 = vmul.f32 %v5586_v53, %v12345_v48 }
 0x2f1   : > { %v12814_v57 = vmul.f32 %v12585_v52, %v12324_v37  ;;  %vm15718_vm2 = vcmp.lt.s32.totalorder %v12514_v36, 2  ;;  %v2171_v5 = vadd.s32 %v2170_v41, %v2161_v30  ;;  %vm2552_vm4 = vcmp.gt.s32.totalorder %v12697_v49, 0  ;;  %5900 = vrot.lane.b32.xlu1 %v5863_v27, %s9534_s21  ;;  %v12845_v53 = vpop.f32.mrf.mxu0 }
 0x2f2   : > { %v2118_v11 = vsel %vm15718_vm2, %v2115_v56, %v2117_v10  ;;  %v1747_v16 = vadd.f32 0.041655596, %v1746_v19  ;;  %v1754_v3 = vadd.f32 0.008332121, %v1753_v6  ;;  %vm2174_vm14 = vc.u32 %v12799_v31, %v12808_v13 }
 0x2f3   : > { %v12823_v58 = vadd.f32 1.0, %v12520_v7  ;;  %v5318_v9 = vand.u32 3, %v12507_v26  ;;  %v1742_v37 = vsel %vm1619_vm12, %v1741_v20, %v12632_v18  ;;  %v2175_v36 = vadd.s32 1, %v2171_v5 }
 0x2f4   : > { %v1748_v52 = vmul.f32 %v1747_v16, %v1745_v59  ;;  %v1755_v1 = vmul.f32 %v1754_v3, %v1745_v59  ;;  %v2172_v29 = vmul.u32 %v12658_v28, %v2118_v11  ;;  %vm2379_vm15 = vcmp.eq.s32.totalorder %v2377_v50, 0 }
 0x2f5   : > { %v2842_v15 = vxor.u32 2147483648, %v12814_v57  ;;  %v2553_v61 = vsel %vm2552_vm4, %v12697_v49, 0  ;;  %v2176_v32 = vsel %vm2174_vm14, %v2175_v36, %v2171_v5  ;;  %v15719_v7 = vxor.u32 2147483648, %v12192_v0 }
 0x2f6   : > { %v1749_v26 = vadd.f32 -0.4999988, %v1748_v52  ;;  %v1756_v60 = vadd.f32 -0.16666654, %v1755_v1  ;;  %v2177_v22 = vadd.s32 %v2176_v32, %v2172_v29  ;;  %vm2382_vm6 = vcmp.eq.s32.totalorder %v2377_v50, 2 }
 0x2f7   : > { %v2381_v47 = vsel %vm2379_vm15, %v12189_v23, %v15719_v7  ;;  %v12837_v18 = vsel %vm12734_vm0, 0, %v1742_v37  ;;  %vm2378_vm12 = vcmp.lt.s32.totalorder %v2377_v50, 2  ;;  %v15720_v28 = vxor.u32 2147483648, %v12189_v23 }
 0x2f8   : > { %v2541_v49 = vand.u32 2147483647, %v12532_v44  ;;  %v1750_v4 = vmul.f32 %v1749_v26, %v1745_v59  ;;  %v1757_v8 = vmul.f32 %v1756_v60, %v1745_v59  ;;  %5810 = vrot.lane.b32.xlu0 %v12563_v33, %s9534_s21  ;;  %v2178_v27 = vadd.s32 536870912, %v2177_v22  ;;  %v9482_v59 = vld [vmem:[%s9621_s18 + $0x58] sm:$0xff] }
 0x2f9   : > { %v2384_v56 = vsel %vm2382_vm6, %v15720_v28, %v12192_v0  ;;  %v2845_v55 = vxor.u32 2147483648, %v12823_v58  ;;  %vm5320_vm0 = vcmp.eq.s32.totalorder %v5318_v9, 0  ;;  %v2555_v43 = vand.u32 31, %v2553_v61 }
 0x2fa   : > { %v2385_v10 = vsel %vm2378_vm12, %v2381_v47, %v2384_v56  ;;  %vm15721_vm5 = vweird.f32 %v15623_v21  ;;  %v12850_v20 = vadd.f32 1.0, %v1750_v4  ;;  %v1758_v0 = vadd.f32 1.0, %v1757_v8  ;;  %v12895_v56 = vpop.f32.mrf.mxu0 }
 0x2fb   : > { %v2386_v23 = vsel %vm15721_vm5, nan, %v2385_v10  ;;  %v12852_v30 = vshrl.u32 %v2178_v27, 30  ;;  %v5322_v33 = vsel %vm5320_vm0, %v12823_v58, %v2842_v15  ;;  %v1761_v19 = vand.u32 3, %v12837_v18 }
 0x2fc   : > { %v5612_v41 = vmul.f32 %v9482_v59, %v2386_v23  ;;  %v2548_v6 = vand.u32 8388607, %v2541_v49  ;;  %vm2838_vm7 = vweird.f32 %v15677_v39  ;;  %vm5323_vm8 = vcmp.eq.s32.totalorder %v5318_v9, 2 }
 0x2fd   : > { %v12863_v21 = vmul.f32 %v1758_v0, %v12787_v34  ;;  %v1767_v50 = vxor.u32 2147483648, %v12850_v20  ;;  %v2180_v11 = vshll.u32 %v12852_v30, 30  ;;  %vm5319_vm9 = vcmp.lt.s32.totalorder %v5318_v9, 2 }
 0x2fe   : > { %v5325_v5 = vsel %vm5323_vm8, %v2845_v55, %v12814_v57  ;;  %v12870_v16 = vsub.s32 32, %v2555_v43  ;;  %v12872_v3 = vadd.f32 %v5628_v62, %v5612_v41  ;;  %vm1760_vm1 = vweird.f32 %v12172_v46 }
 0x2ff   : > { %v5326_v37 = vsel %vm5319_vm9, %v5322_v33, %v5325_v5  ;;  %v1764_v36 = vxor.u32 2147483648, %v12863_v21  ;;  %v2181_v34 = vsub.s32 %v2177_v22, %v2180_v11  ;;  %vm1762_vm11 = vcmp.lt.s32.totalorder %v1761_v19, 2 }
 0x300   : > { %15722 = vst [vmem:[#allocation17_spill] sm:$0xff] %v12872_v3  ;;  %vm1763_vm10 = vcmp.eq.s32.totalorder %v1761_v19, 0  ;;  %vm1766_vm13 = vcmp.eq.s32.totalorder %v1761_v19, 2  ;;  %v2549_v52 = vor.u32 8388608, %v2548_v6  ;;  %5816 = vrot.lane.b32.xlu0 %v2386_v23, %s9534_s21  ;;  %v2558_v32 = vshll.u32 %v15449_v54, %v2555_v43 }
 0x301   : > { %v1765_v9 = vsel %vm1763_vm10, %v12850_v20, %v1764_v36  ;;  %v1768_v1 = vsel %vm1766_vm13, %v1767_v50, %v12863_v21  ;;  %vm2182_vm3 = vcmp.lt.s32.totalorder %v2181_v34, 0  ;;  %v2183_v62 = vsub.s32 0, %v2181_v34 }
 0x302   : > { %v1769_v29 = vsel %vm1762_vm11, %v1765_v9, %v1768_v1  ;;  %v2559_v7 = vshrl.u32 %v15605_v12, %v12870_v16  ;;  %v2562_v47 = vshrl.u32 %v15455_v40, %v12870_v16  ;;  %v12888_v26 = vshrl.u32 %v2553_v61, 5 }
 0x303   : > { %v12892_v60 = vsel %vm1760_vm1, nan, %v1769_v29  ;;  %v2184_v22 = vsel %vm2182_vm3, %v2183_v62, %v2181_v34  ;;  %v2561_v28 = vshll.u32 %v15605_v12, %v2555_v43  ;;  %v2564_v27 = vshll.u32 %v15455_v40, %v2555_v43 }
 0x304   : > { %5808 = vrot.lane.b32.xlu2 %v12892_v60, %s9534_s21  ;;  %v2185_v4 = vclz %v2184_v22  ;;  %v2560_v8 = vor.u32 %v2559_v7, %v2558_v32  ;;  %v12900_v10 = vshll.u32 %v2549_v52, 8  ;;  %v2565_v23 = vshrl.u32 %v15603_v17, %v12870_v16 }
 0x305   : > { %v12902_v61 = vor.u32 %v2562_v47, %v2561_v28  ;;  %v2567_v0 = vshll.u32 %v15603_v17, %v2555_v43  ;;  %v2568_v12 = vshrl.u32 %v15685_v24, %v12870_v16  ;;  %v12911_v59 = vsel %vm2838_vm7, nan, %v5326_v37 }
 0x306   : > { %v8880_v41 = vadd.s32 4294967294, %v2185_v4  ;;  %v2570_v33 = vshll.u32 %v15685_v24, %v2555_v43  ;;  %v2571_v40 = vshrl.u32 %v15686_v63, %v12870_v16  ;;  %v2173_v19 = vadd.s32 %v12808_v13, %v12799_v31  ;;  %v5595_v4 = vpop.f32.mrf.mxu0 }
 0x307   : > { %v2566_v6 = vor.u32 %v2565_v23, %v2564_v27  ;;  %v2569_v11 = vor.u32 %v2568_v12, %v2567_v0  ;;  %v12919_v17 = vand.u32 3, %v12411_v2  ;;  %vm2573_vm4 = vcmp.lt.s32.totalorder %v12888_v26, 1 }
 0x308   : > { %vm8881_vm2 = vcmp.lt.s32.totalorder %v8880_v41, 0  ;;  %v2572_v5 = vor.u32 %v2571_v40, %v2570_v33  ;;  %vm2576_vm14 = vcmp.lt.s32.totalorder %v12888_v26, 4  ;;  %v2581_v24 = vsel %vm2573_vm4, %v2560_v8, %v12902_v61 }
 0x309   : > { %v2188_v37 = vsel %vm8881_vm2, 0, %v8880_v41  ;;  %v2582_v63 = vsel %vm2576_vm14, %v2569_v11, 920167782  ;;  %v2590_v31 = vand.u32 65535, %v12900_v10  ;;  %vm2574_vm15 = vcmp.lt.s32.totalorder %v12888_v26, 2 }
 0x30a   : > { %v2189_v13 = vsub.s32 32, %v2188_v37  ;;  %v2193_v43 = vsub.s32 4294967266, %v2188_v37  ;;  %vm2575_vm6 = vcmp.lt.s32.totalorder %v12888_v26, 3  ;;  %v2190_v2 = vshll.u32 %v2181_v34, %v2188_v37 }
 0x30b   : > { %v2583_v52 = vsel %vm2575_vm6, %v2566_v6, %v2582_v63  ;;  %v2585_v9 = vsel %vm2573_vm4, %v12902_v61, %v2566_v6  ;;  %v2586_v1 = vsel %vm2576_vm14, %v2572_v5, 1326507024  ;;  %v2591_v47 = vshrl.u32 %v12900_v10, 16 }
 0x30c   : > { %v2191_v62 = vshrl.u32 %v2173_v19, %v2189_v13  ;;  %v2194_v29 = vadd.s32 127, %v2193_v43  ;;  %v2584_v32 = vsel %vm2574_vm15, %v2581_v24, %v2583_v52  ;;  %v2587_v7 = vsel %vm2575_vm6, %v2569_v11, %v2586_v1 }
 0x30d   : > { %v2588_v34 = vsel %vm2574_vm15, %v2585_v9, %v2587_v7  ;;  %v2614_v22 = vand.u32 65535, %v2584_v32  ;;  %v2615_v28 = vshrl.u32 %v2584_v32, 16  ;;  %v12946_v41 = vmul.f32 %v5595_v4, %v12911_v59 }
 0x30e   : > { %v2192_v27 = vor.u32 %v2191_v62, %v2190_v2  ;;  %v2195_v23 = vshll.u32 %v2194_v29, 23  ;;  %v2592_v0 = vand.u32 65535, %v2588_v34  ;;  %v2593_v12 = vshrl.u32 %v2588_v34, 16 }
 0x30f   : > { %v2557_v33 = vshrl.u32 %v15449_v54, %v12870_v16  ;;  %v2617_v40 = vmul.u32 %v2615_v28, %v2590_v31  ;;  %v15723_v19 = vand.u32 2147483647, %v12249_v45  ;;  %vm2081_vm0 = vcmp.lt.s32.totalorder %v12249_v45, 0 }
 0x310   : > { %v2196_v5 = vor.u32 4788187, %v2195_v23  ;;  %v2618_v37 = vmul.u32 %v2614_v22, %v2591_v47  ;;  %vm2841_vm5 = vcmp.eq.s32.totalorder %v12919_v17, 0  ;;  %v2578_v63 = vsel %vm2576_vm14, %v2566_v6, 2102212464 }
 0x311   : > { %vm12952_vm12 = vcmp.le.f32.partialorder %v15723_v19, 0.7853982  ;;  %v2577_v24 = vsel %vm2573_vm4, %v2557_v33, %v2560_v8  ;;  %v2595_v54 = vmul.u32 %v2593_v12, %v2590_v31  ;;  %v2596_v16 = vmul.u32 %v2592_v0, %v2591_v47 }
 0x312   : > { %vm2844_vm8 = vcmp.eq.s32.totalorder %v12919_v17, 2  ;;  %v2197_v13 = vand.u32 2147483647, %v2196_v5  ;;  %v2199_v43 = vcvt.s32.f32 %v2192_v27  ;;  %v2616_v2 = vmul.u32 %v2614_v22, %v2590_v31 }
 0x313   : > { %v2620_v52 = vshll.u32 %v2617_v40, 16  ;;  %vm2840_vm9 = vcmp.lt.s32.totalorder %v12919_v17, 2  ;;  %v2594_v9 = vmul.u32 %v2592_v0, %v2590_v31  ;;  %v2597_v1 = vmul.u32 %v2593_v12, %v2591_v47 }
 0x314   : > { %v2598_v62 = vshll.u32 %v2595_v54, 16  ;;  %v2619_v29 = vmul.u32 %v2615_v28, %v2591_v47  ;;  %v2200_v32 = vmul.f32 %v2199_v43, %v2197_v13  ;;  %v2622_v7 = vshll.u32 %v2618_v37, 16 }
 0x315   : > { %vm2624_vm11 = vc.u32 %v2616_v2, %v2620_v52  ;;  %v2626_v8 = vadd.s32 %v2620_v52, %v2616_v2  ;;  %v2600_v34 = vshll.u32 %v2596_v16, 16  ;;  %v2579_v31 = vsel %vm2575_vm6, %v12902_v61, %v2578_v63 }
 0x316   : > { %vm2602_vm10 = vc.u32 %v2594_v9, %v2598_v62  ;;  %v2604_v6 = vadd.s32 %v2598_v62, %v2594_v9  ;;  %v2625_v4 = vsel %vm2624_vm11, 1, %v15447_v38  ;;  %v2201_v23 = vxor.u32 2147483648, %v2200_v32 }
 0x317   : > { %v2603_v27 = vsel %vm2602_vm10, 1, %v15447_v38  ;;  %v2627_v22 = vadd.s32 %v2625_v4, %v2619_v29  ;;  %vm2628_vm13 = vc.u32 %v2626_v8, %v2622_v7  ;;  %v2621_v33 = vshrl.u32 %v2617_v40, 16 }
 0x318   : > { %v2605_v0 = vadd.s32 %v2603_v27, %v2597_v1  ;;  %vm2606_vm3 = vc.u32 %v2604_v6, %v2600_v34  ;;  %v2629_v47 = vsel %vm2628_vm13, 1, %v15447_v38  ;;  %v2202_v28 = vsel %vm2081_vm0, %v2201_v23, %v2200_v32  ;;  %v12994_v6 = vld [vmem:[%s9621_s18 + $0x70] sm:$0xff] }
 0x319   : > { %v2607_v12 = vsel %vm2606_vm3, 1, %v15447_v38  ;;  %v2631_v19 = vadd.s32 %v2629_v47, %v2627_v22  ;;  %v2205_v5 = vsel %vm12952_vm12, %v12249_v45, %v2202_v28  ;;  %v2599_v13 = vshrl.u32 %v2595_v54, 16 }
 0x31a   : > { %v2609_v43 = vadd.s32 %v2607_v12, %v2605_v0  ;;  %v2843_v61 = vsel %vm2841_vm5, %v12823_v58, %v2842_v15  ;;  %v2207_v63 = vmul.f32 %v2205_v5, %v2205_v5  ;;  %v2623_v2 = vshrl.u32 %v2618_v37, 16 }
 0x31b   : > { %v2632_v52 = vadd.s32 %v2631_v19, %v2621_v33  ;;  %v2846_v38 = vsel %vm2844_vm8, %v2845_v55, %v12814_v57  ;;  %v2580_v40 = vsel %vm2574_vm15, %v2577_v24, %v2579_v31  ;;  %v2601_v54 = vshrl.u32 %v2596_v16, 16 }
 0x31c   : > { %v2610_v9 = vadd.s32 %v2609_v43, %v2599_v13  ;;  %v2847_v1 = vsel %vm2840_vm9, %v2843_v61, %v2846_v38  ;;  %v2208_v62 = vmul.f32 -0.001358992, %v2207_v63  ;;  %v2215_v15 = vmul.f32 -0.00019511016, %v2207_v63  ;;  %v15728_v61 = vld [vmem:[#allocation41_spill] sm:$0xff] }
 0x31d   : > { %v2633_v29 = vadd.s32 %v2632_v52, %v2623_v2  ;;  %v2848_v37 = vsel %vm2838_vm7, nan, %v2847_v1  ;;  %v2203_v32 = vsub.s32 4, %v12852_v30  ;;  %v2630_v34 = vadd.s32 %v2626_v8, %v2622_v7 }
 0x31e   : > { %v2611_v58 = vadd.s32 %v2610_v9, %v2601_v54  ;;  %v5615_v57 = vmul.f32 %v12994_v6, %v2848_v37  ;;  %5822 = vrot.lane.b32.xlu0 %v2848_v37, %s9534_s21  ;;  %v2209_v55 = vadd.f32 0.041655596, %v2208_v62  ;;  %v2216_v26 = vadd.f32 0.008332121, %v2215_v15  ;;  %v15729_v9 = vld [vmem:[#allocation12_spill] sm:$0xff] }
 0x31f   : > { %v2637_v17 = vadd.s32 1, %v2633_v29  ;;  %v2634_v24 = vmul.u32 %v12900_v10, %v2580_v40  ;;  %v2204_v7 = vsel %vm2081_vm0, %v2203_v32, %v12852_v30  ;;  %v3302_v2 = vadd.s32 3, %v15728_v61  ;;  %v13058_v61 = vld [vmem:[%s9621_s18 + $0x38] sm:$0xff] }
 0x320   : > { %vm2636_vm2 = vc.u32 %v2611_v58, %v2630_v34  ;;  %v13000_v16 = vadd.f32 %v12946_v41, %v5615_v57  ;;  %v2210_v39 = vmul.f32 %v2209_v55, %v2207_v63  ;;  %v2217_v4 = vmul.f32 %v2216_v26, %v2207_v63  ;;  %v15727_v41 = vld [vmem:[#allocation7_spill] sm:$0xff]  ;;  %v15730_v57 = vld [vmem:[#allocation46_spill] sm:$0xff]  ;;  %v15732_v26 = vld [vmem:[#allocation45_spill] sm:$0xff] }
 0x321   : > { %v2638_v23 = vsel %vm2636_vm2, %v2637_v17, %v2633_v29  ;;  %v13007_v0 = vsel %vm12952_vm12, 0, %v2204_v7  ;;  %vm2222_vm6 = vweird.f32 %v12249_v45  ;;  %v3303_v1 = vand.u32 3, %v3302_v2  ;;  %v13035_v29 = vpop.f32.mrf.mxu1 }
 0x322   : > { %15726 = vst [vmem:[#allocation21_spill] sm:$0xff] %v13000_v16  ;;  %v2639_v8 = vadd.s32 %v2638_v23, %v2634_v24  ;;  %v2211_v27 = vadd.f32 -0.4999988, %v2210_v39  ;;  %v2218_v22 = vadd.f32 -0.16666654, %v2217_v4  ;;  %v2223_v19 = vand.u32 3, %v13007_v0 }
 0x323   : > { %v4232_v32 = vadd.s32 3, %v12837_v18  ;;  %vm3305_vm12 = vcmp.eq.s32.totalorder %v3303_v1, 0  ;;  %v15731_v55 = vxor.u32 2147483648, %v15730_v57  ;;  %v2635_v39 = vadd.s32 %v2630_v34, %v2611_v58 }
 0x324   : > { %v2640_v31 = vadd.s32 536870912, %v2639_v8  ;;  %v2212_v10 = vmul.f32 %v2211_v27, %v2207_v63  ;;  %v2219_v47 = vmul.f32 %v2218_v22, %v2207_v63  ;;  %vm2225_vm7 = vcmp.eq.s32.totalorder %v2223_v19, 0 }
 0x325   : > { %vm2228_vm4 = vcmp.eq.s32.totalorder %v2223_v19, 2  ;;  %vm2224_vm15 = vcmp.lt.s32.totalorder %v2223_v19, 2  ;;  %v3307_v17 = vsel %vm3305_vm12, %v15732_v26, %v15731_v55  ;;  %v4233_v7 = vand.u32 3, %v4232_v32  ;;  %v15740_v32 = vld [vmem:[#allocation52_spill] sm:$0xff] }
 0x326   : > { %v13009_v28 = vshrl.u32 %v2640_v31, 30  ;;  %6058 = vperm.xlu0 %9133, %v15727_v41   ;;  %v13012_v12 = vadd.f32 1.0, %v2212_v10  ;;  %v2220_v33 = vadd.f32 1.0, %v2219_v47  ;;  %vm3304_vm5 = vcmp.lt.s32.totalorder %v3303_v1, 2 }
 0x327   : > { %vm3308_vm8 = vcmp.eq.s32.totalorder %v3303_v1, 2  ;;  %v15734_v27 = vxor.u32 2147483648, %v15732_v26  ;;  %vm4235_vm9 = vcmp.eq.s32.totalorder %v4233_v7, 0  ;;  %vm4238_vm11 = vcmp.eq.s32.totalorder %v4233_v7, 2  ;;  %v15741_v26 = vld [vmem:[#allocation56_spill] sm:$0xff] }
 0x328   : > { %v2642_v30 = vshll.u32 %v13009_v28, 30  ;;  %v13016_v13 = vmul.f32 %v2220_v33, %v2205_v5  ;;  %v2229_v43 = vxor.u32 2147483648, %v13012_v12  ;;  %vm4234_vm10 = vcmp.lt.s32.totalorder %v4233_v7, 2 }
 0x329   : > { %v3310_v18 = vsel %vm3308_vm8, %v15734_v27, %v15730_v57  ;;  %v4237_v58 = vsel %vm4235_vm9, %v12850_v20, %v1764_v36  ;;  %v4240_v34 = vsel %vm4238_vm11, %v1767_v50, %v12863_v21  ;;  %v13051_v19 = vpop.f32.mrf.mxu1  ;;  %v5608_v2 = vmul.f32 %v13058_v61, %v12892_v60 }
 0x32a   : > { %v2643_v11 = vsub.s32 %v2639_v8, %v2642_v30  ;;  %v2226_v63 = vxor.u32 2147483648, %v13016_v13  ;;  %v2230_v5 = vsel %vm2228_vm4, %v2229_v43, %v13016_v13  ;;  %v15733_v8 = vld [vmem:[#allocation44_spill] sm:$0xff]  ;;  %v3311_v47 = vsel %vm3304_vm5, %v3307_v17, %v3310_v18  ;;  %v15735_v30 = vld [vmem:[#allocation14_spill] sm:$0xff] }
 0x32b   : > { %vm15736_vm13 = vweird.f32 %v15735_v30  ;;  %v4697_v60 = vadd.s32 3, %v13007_v0  ;;  %vm2543_vm3 = vcmp.lt.s32.totalorder %v12532_v44, 0  ;;  %v3767_v57 = vadd.s32 3, %v15740_v32 }
 0x32c   : > { %vm2644_vm14 = vcmp.lt.s32.totalorder %v2643_v11, 0  ;;  %v2645_v52 = vsub.s32 0, %v2643_v11  ;;  %v2227_v38 = vsel %vm2225_vm7, %v13012_v12, %v2226_v63 }
 0x32d   : > { %v2231_v40 = vsel %vm2224_vm15, %v2227_v38, %v2230_v5  ;;  %v4241_v38 = vsel %vm4234_vm10, %v4237_v58, %v4240_v34  ;;  %v15737_v5 = vld [vmem:[#allocation8_spill] sm:$0xff]  ;;  %v3768_v7 = vand.u32 3, %v3767_v57 }
 0x32e   : > { %v2646_v54 = vsel %vm2644_vm14, %v2645_v52, %v2643_v11  ;;  %6073 = vperm.xlu0 %9133, %v15729_v9   ;;  %v13031_v62 = vsel %vm2222_vm6, nan, %v2231_v40  ;;  %v13066_v20 = vsel %vm1760_vm1, nan, %v4241_v38  ;;  %v15738_v40 = vld [vmem:[#allocation33_spill] sm:$0xff]  ;;  %vm2542_vm1 = vcmp.le.f32.partialorder %v2541_v49, 0.7853982  ;;  %v15746_v38 = vld [vmem:[#allocation54_spill] sm:$0xff] }
 0x32f   : > { %v2647_v15 = vclz %v2646_v54  ;;  %5814 = vrot.lane.b32.xlu2 %v13031_v62, %s9534_s21  ;;  %v5624_v54 = vmul.f32 %v15738_v40, %v13066_v20  ;;  %vm3770_vm14 = vcmp.eq.s32.totalorder %v3768_v7, 0  ;;  %vm3769_vm15 = vcmp.lt.s32.totalorder %v3768_v7, 2 }
 0x330   : > { %vm3773_vm12 = vcmp.eq.s32.totalorder %v3768_v7, 2 }
 0x331   : > { %v8889_v37 = vadd.s32 4294967294, %v2647_v15  ;;  %v13071_v1 = vadd.f32 %v5624_v54, %v5608_v2  ;;  %v5754_v46 = vpop.f32.mrf.mxu1 }
 0x332   : > { %v5866_v17 = vmul.f32 %v5754_v46, %v15741_v26  ;;  %v15750_v46 = vld [vmem:[#allocation19_spill] sm:$0xff] }
 0x333   : > { %vm8890_vm0 = vcmp.lt.s32.totalorder %v8889_v37, 0  ;;  %15739 = vst [vmem:[#allocation35_spill] sm:$0xff] %v13071_v1 }
 0x334   : > { %v2650_v24 = vsel %vm8890_vm0, 0, %v8889_v37  ;;  %v2665_v37 = vsub.s32 4, %v13009_v28  ;;  %5906 = vrot.lane.b32.xlu1 %v5866_v17, %s9534_s21 }
 0x335   : > { %v2651_v4 = vsub.s32 32, %v2650_v24  ;;  %v2655_v23 = vsub.s32 4294967266, %v2650_v24  ;;  %v2652_v22 = vshll.u32 %v2643_v11, %v2650_v24  ;;  %v13055_v11 = vsel %vm15736_vm13, nan, %v3311_v47  ;;  %v13090_v47 = vpop.permute.xlu1 %5977 }
 0x336   : > { %6098 = vperm.xlu0 %9133, %v15733_v8   ;;  %v5859_v36 = vmul.f32 %v15737_v5, %v13055_v11  ;;  %15743 = vst [vmem:[#allocation38_spill] sm:$0xff] %v13090_v47  ;;  %vm2684_vm13 = vweird.f32 %v12532_v44 }
 0x337   : > { %v2653_v31 = vshrl.u32 %v2635_v39, %v2651_v4  ;;  %v2656_v10 = vadd.s32 127, %v2655_v23  ;;  %v4698_v39 = vand.u32 3, %v4697_v60  ;;  %v2666_v4 = vsel %vm2543_vm3, %v2665_v37, %v13009_v28  ;;  %v15742_v23 = vld [vmem:[#allocation60_spill] sm:$0xff] }
 0x338   : > { %v2668_v18 = vsel %vm2542_vm1, 0, %v2666_v4 }
 0x339   : > { %v2654_v41 = vor.u32 %v2653_v31, %v2652_v22  ;;  %v2657_v33 = vshll.u32 %v2656_v10, 23  ;;  %vm4699_vm2 = vcmp.lt.s32.totalorder %v4698_v39, 2  ;;  %vm4700_vm7 = vcmp.eq.s32.totalorder %v4698_v39, 0 }
 0x33a   : > { %vm4703_vm4 = vcmp.eq.s32.totalorder %v4698_v39, 2  ;;  %v4702_v31 = vsel %vm4700_vm7, %v13012_v12, %v2226_v63  ;;  %v5162_v2 = vadd.s32 3, %v2668_v18  ;;  %v15744_v63 = vld [vmem:[#allocation55_spill] sm:$0xff]  ;;  %v2685_v37 = vand.u32 3, %v2668_v18 }
 0x33b   : > { %v2658_v52 = vor.u32 4788187, %v2657_v33  ;;  %v2661_v50 = vcvt.s32.f32 %v2654_v41  ;;  %v4705_v28 = vsel %vm4703_vm4, %v2229_v43, %v13016_v13  ;;  %v13093_v41 = vld [vmem:[%s9621_s18 + $0x50] sm:$0xff]  ;;  %v13122_v18 = vld [vmem:[%s9621_s18 + $0x68] sm:$0xff] }
 0x33c   : > { %v4706_v10 = vsel %vm4699_vm2, %v4702_v31, %v4705_v28  ;;  %v5611_v33 = vmul.f32 %v13093_v41, %v13031_v62  ;;  %v15748_v62 = vxor.u32 2147483648, %v15746_v38  ;;  %vm2686_vm5 = vcmp.lt.s32.totalorder %v2685_v37, 2 }
 0x33d   : > { %v2659_v21 = vand.u32 2147483647, %v2658_v52  ;;  %v4707_v30 = vsel %vm2222_vm6, nan, %v4706_v10  ;;  %v15745_v52 = vxor.u32 2147483648, %v15744_v63  ;;  %vm15751_vm6 = vweird.f32 %v15750_v46  ;;  %v13112_v26 = vpop.permute.xlu1 %5983  ;;  %v15770_v46 = vld [vmem:[#allocation6_spill] sm:$0xff] }
 0x33e   : > { %5892 = vrot.lane.b32.xlu0 %v5859_v36, %s9534_s21  ;;  %v5627_v5 = vmul.f32 %v12740_v14, %v4707_v30  ;;  %v15747_v36 = vld [vmem:[#allocation37_spill] sm:$0xff]  ;;  %15752 = vst [vmem:[#allocation23_spill] sm:$0xff] %v13112_v26  ;;  %vm2687_vm8 = vcmp.eq.s32.totalorder %v2685_v37, 0  ;;  %vm2690_vm9 = vcmp.eq.s32.totalorder %v2685_v37, 2  ;;  %v5865_v31 = vmul.f32 %v13051_v19, %v13066_v20  ;;  %v15759_v20 = vld [vmem:[#allocation2_spill] sm:$0xff]  ;;  %v15769_v37 = vld [vmem:[#allocation32_spill] sm:$0xff] }
 0x33f   : > { %v2662_v9 = vmul.f32 %v2661_v50, %v2659_v21  ;;  %v3772_v12 = vsel %vm3770_vm14, %v15746_v38, %v15745_v52  ;;  %v3775_v21 = vsel %vm3773_vm12, %v15748_v62, %v15744_v63  ;;  %v15758_v52 = vld [vmem:[#allocation61_spill] sm:$0xff]  ;;  %v15760_v38 = vld [vmem:[#allocation64_spill] sm:$0xff]  ;;  %v13160_v62 = vpop.permute.xlu2 %5980 }
 0x340   : > { %v13107_v40 = vadd.f32 %v5627_v5, %v5611_v33  ;;  %v3776_v54 = vsel %vm3769_vm15, %v3772_v12, %v3775_v21  ;;  %v15755_v33 = vld [vmem:[#allocation9_spill] sm:$0xff]  ;;  %v13147_v12 = vmul.f32 %v15760_v38, %v15760_v38  ;;  %v15763_v5 = vld [vmem:[#allocation3_spill] sm:$0xff]  ;;  %15764 = vst [vmem:[#allocation45_spill] sm:$0xff] %v13160_v62 }
 0x341   : > { %v2663_v15 = vxor.u32 2147483648, %v2662_v9  ;;  %v3777_v14 = vsel %vm15751_vm6, nan, %v3776_v54  ;;  %v15766_v54 = vld [vmem:[#allocation4_spill] sm:$0xff] }
 0x342   : > { %15749 = vst [vmem:[#allocation40_spill] sm:$0xff] %v13107_v40 }
 0x343   : > { %v2664_v55 = vsel %vm2543_vm3, %v2663_v15, %v2662_v9  ;;  %v5163_v9 = vand.u32 3, %v5162_v2  ;;  %v15757_v2 = vld [vmem:[#allocation25_spill] sm:$0xff]  ;;  %vm6159_vm3 = vcmask 130048  }
 0x344   : > { %v2667_v24 = vsel %vm2542_vm1, %v12532_v44, %v2664_v55  ;;  %v5862_v55 = vmul.f32 %v12724_v35, %v3777_v14  ;;  %v5621_v63 = vmul.f32 %v15757_v2, %v3777_v14  ;;  %v5858_v14 = vmul.f32 %v15770_v46, %v15769_v37 }
 0x345   : > { %v2669_v0 = vmul.f32 %v2667_v24, %v2667_v24  ;;  %vm5168_vm0 = vcmp.eq.s32.totalorder %v5163_v9, 2  ;;  %vm5165_vm11 = vcmp.eq.s32.totalorder %v5163_v9, 0  ;;  %vm5164_vm10 = vcmp.lt.s32.totalorder %v5163_v9, 2  ;;  %v13132_v44 = vpop.permute.xlu1 %5992 }
 0x346   : > { %6107 = vperm.xlu0 %9133, %v15742_v23   ;;  %v13115_v23 = vpop.f32.mrf.mxu1  ;;  %15754 = vst [vmem:[#allocation7_spill] sm:$0xff] %v13132_v44 }
 0x347   : > { %v2670_v8 = vmul.f32 -0.001358992, %v2669_v0  ;;  %v2677_v27 = vmul.f32 -0.00019511016, %v2669_v0 }
 0x349   : > { %v2671_v49 = vadd.f32 0.041655596, %v2670_v8  ;;  %v2678_v22 = vadd.f32 0.008332121, %v2677_v27 }
 0x34b   : > { %v2672_v58 = vmul.f32 %v2671_v49, %v2669_v0  ;;  %v2679_v34 = vmul.f32 %v2678_v22, %v2669_v0 }
 0x34d   : > { %v2673_v13 = vadd.f32 -0.4999988, %v2672_v58  ;;  %v2680_v43 = vadd.f32 -0.16666654, %v2679_v34  ;;  %v13136_v34 = vpop.permute.xlu1 %6017 }
 0x34e   : > { %6116 = vperm.xlu0 %9133, %v15747_v36   ;;  %v5760_v10 = vpop.f32.mrf.mxu1  ;;  %15756 = vst [vmem:[#allocation41_spill] sm:$0xff] %v13136_v34  ;;  %v15816_v34 = vld [vmem:[#allocation66_spill] sm:$0xff] }
 0x34f   : > { %v2674_v50 = vmul.f32 %v2673_v13, %v2669_v0  ;;  %v2681_v45 = vmul.f32 %v2680_v43, %v2669_v0  ;;  %v5868_v58 = vmul.f32 %v5760_v10, %v4707_v30  ;;  %v6160_v30 = vsel %vm6159_vm3, %v13147_v12, 0.0  ;;  %v13188_v10 = vld [vmem:[%s9621_s18 + $0x30] sm:$0xff] }
 0x351   : > { %v2675_v60 = vadd.f32 1.0, %v2674_v50  ;;  %v2682_v15 = vadd.f32 1.0, %v2681_v45  ;;  %v15765_v50 = vld [vmem:[#allocation26_spill] sm:$0xff] }
 0x352   : > { %v4077_v45 = vadd.s32 3, %v15765_v50 }
 0x353   : > { %v2683_v32 = vmul.f32 %v2682_v15, %v2667_v24  ;;  %v2691_v57 = vxor.u32 2147483648, %v2675_v60  ;;  %v13168_v15 = vpop.permute.xlu2 %5986 }
 0x354   : > { %15768 = vst [vmem:[#allocation14_spill] sm:$0xff] %v13168_v15  ;;  %v15798_v15 = vld [vmem:[#allocation27_spill] sm:$0xff] }
 0x355   : > { %v2688_v17 = vxor.u32 2147483648, %v2683_v32  ;;  %v5170_v39 = vsel %vm5168_vm0, %v2691_v57, %v2683_v32  ;;  %v2692_v0 = vsel %vm2690_vm9, %v2691_v57, %v2683_v32  ;;  %v13153_v43 = vpop.permute.xlu1 %6026  ;;  %v15771_v32 = vld [vmem:[#allocation42_spill] sm:$0xff]  ;;  %vm15799_vm6 = vweird.f32 %v15798_v15 }
 0x356   : > { %5898 = vrot.lane.b32.xlu0 %v5862_v55, %s9534_s21  ;;  %15762 = vst [vmem:[#allocation46_spill] sm:$0xff] %v13153_v43  ;;  %v15772_v57 = vxor.u32 2147483648, %v15771_v32  ;;  %v15773_v55 = vld [vmem:[#allocation28_spill] sm:$0xff]  ;;  %v5763_v2 = vpop.f32.mrf.mxu1 }
 0x357   : > { %v2689_v4 = vsel %vm2687_vm8, %v2675_v60, %v2688_v17  ;;  %v5167_v24 = vsel %vm5165_vm11, %v2675_v60, %v2688_v17  ;;  %v4078_v60 = vand.u32 3, %v4077_v45 }
 0x358   : > { %v2693_v35 = vsel %vm2686_vm5, %v2689_v4, %v2692_v0  ;;  %v5171_v7 = vsel %vm5164_vm10, %v5167_v24, %v5170_v39  ;;  %v15774_v39 = vxor.u32 2147483648, %v15773_v55 }
 0x359   : > { %v2694_v8 = vsel %vm2684_vm13, nan, %v2693_v35  ;;  %v13118_v27 = vsel %vm2684_vm13, nan, %v5171_v7  ;;  %vm4080_vm1 = vcmp.eq.s32.totalorder %v4078_v60, 0  ;;  %vm4083_vm2 = vcmp.eq.s32.totalorder %v4078_v60, 2  ;;  %v15775_v35 = vld [vmem:[#allocation24_spill] sm:$0xff]  ;;  %v13219_v46 = vpop.permute.xlu0 %5798 }
 0x35a   : > { %5820 = vrot.lane.b32.xlu2 %v2694_v8, %s9534_s21  ;;  %v5614_v49 = vmul.f32 %v13122_v18, %v2694_v8  ;;  %v5630_v22 = vmul.f32 %v12895_v56, %v13118_v27  ;;  %v13140_v56 = vld [vmem:[%s9621_s18 + $0x20] sm:$0xff]  ;;  %v4082_v17 = vsel %vm4080_vm1, %v15773_v55, %v15772_v57  ;;  %vm4079_vm7 = vcmp.lt.s32.totalorder %v4078_v60, 2 }
 0x35b   : > { %v5605_v19 = vmul.f32 %v13140_v56, %v15758_v52  ;;  %v4085_v4 = vsel %vm4083_vm2, %v15774_v39, %v15771_v32  ;;  %vm15776_vm4 = vweird.f32 %v15775_v35  ;;  %v13183_v8 = vpop.permute.xlu2 %5995  ;;  %v5869_v52 = vmul.f32 %v5763_v2, %v12345_v48 }
 0x35c   : > { %v13129_v28 = vadd.f32 %v5630_v22, %v5614_v49  ;;  %v4086_v0 = vsel %vm4079_vm7, %v4082_v17, %v4085_v4  ;;  %15777 = vst [vmem:[#allocation8_spill] sm:$0xff] %v13183_v8  ;;  %v15778_v49 = vld [vmem:[#allocation5_spill] sm:$0xff]  ;;  %v15779_v22 = vld [vmem:[#allocation11_spill] sm:$0xff] }
 0x35d   : > { %v13149_v13 = vadd.f32 %v5621_v63, %v5605_v19  ;;  %v13166_v9 = vpop.permute.xlu1 %6035  ;;  %v4087_v7 = vsel %vm15776_vm4, nan, %v4086_v0  ;;  %v13194_v63 = vmul.f32 %v12765_v42, %v12765_v42 }
 0x35e   : > { %15753 = vst [vmem:[#allocation20_spill] sm:$0xff] %v13129_v28  ;;  %5904 = vrot.lane.b32.xlu0 %v5865_v31, %s9534_s21  ;;  %6161 = vadd.xlane.f32.xlu1 %v6160_v30  ;;  %v5623_v31 = vmul.f32 %v15779_v22, %v4087_v7  ;;  %v5864_v60 = vmul.f32 %v13035_v29, %v4087_v7  ;;  %v13223_v32 = vpop.f32.mrf.mxu1 }
 0x35f   : > { %15761 = vst [vmem:[#allocation12_spill] sm:$0xff] %v13149_v13  ;;  %v13158_v36 = vmul.f32 %v13149_v13, %v13149_v13  ;;  %v6166_v30 = vsel %vm6159_vm3, %v13194_v63, 0.0  ;;  %v13241_v7 = vmul.f32 %v13071_v1, %v13071_v1 }
 0x360   : > { %15767 = vst [vmem:[#allocation44_spill] sm:$0xff] %v13166_v9 }
 0x361   : > { %v6172_v21 = vsel %vm6159_vm3, %v13158_v36, 0.0  ;;  %15787 = vst [vmem:[#allocation55_spill] sm:$0xff] %v13241_v7 }
 0x362   : > { %6064 = vperm.xlu2 %9134, %v15755_v33   ;;  %v15780_v33 = vld [vmem:[#allocation36_spill] sm:$0xff]  ;;  %v13227_v55 = vpop.permute.xlu0 %5804 }
 0x363   : > { %v13207_v45 = vpop.permute.xlu2 %6020 }
 0x364   : > { %15784 = vst [vmem:[#allocation52_spill] sm:$0xff] %v13207_v45  ;;  %v15802_v45 = vld [vmem:[#allocation29_spill] sm:$0xff] }
 0x365   : > { %v13179_v24 = vpop.permute.xlu1 %5794 }
 0x366   : > { %5910 = vrot.lane.b32.xlu0 %v5868_v58, %s9534_s21  ;;  %6173 = vadd.xlane.f32.xlu1 %v6172_v21  ;;  %v5607_v58 = vmul.f32 %v13188_v10, %v15780_v33  ;;  %v15783_v21 = vld [vmem:[#allocation63_spill] sm:$0xff]  ;;  %v5769_v39 = vpop.f32.mrf.mxu1 }
 0x367   : > { %v5871_v29 = vmul.f32 %v5769_v39, %v13118_v27  ;;  %v15789_v33 = vld [vmem:[#allocation59_spill] sm:$0xff] }
 0x368   : > { %v13197_v19 = vadd.f32 %v5623_v31, %v5607_v58  ;;  %v13246_v31 = vld [vmem:[%s9621_s18 + $0x8] sm:$0xff] }
 0x369   : > { %v5602_v27 = vmul.f32 %v13246_v31, %v15789_v33  ;;  %v15790_v58 = vld [vmem:[#allocation47_spill] sm:$0xff] }
 0x36a   : > { %6070 = vperm.xlu2 %9134, %v15759_v20   ;;  %15781 = vst [vmem:[#allocation33_spill] sm:$0xff] %v13197_v19  ;;  %v13211_v48 = vmul.f32 %v13197_v19, %v13197_v19  ;;  %v13237_v35 = vpop.permute.xlu0 %5810  ;;  %v4542_v2 = vadd.s32 3, %v15790_v58  ;;  %v15792_v39 = vld [vmem:[#allocation39_spill] sm:$0xff]  ;;  %v15795_v58 = vld [vmem:[#allocation50_spill] sm:$0xff] }
 0x36d   : > { %v13199_v20 = vpop.permute.xlu1 %5800 }
 0x372   : > { %6095 = vperm.xlu2 %9134, %v15763_v5   ;;  %v15782_v5 = vld [vmem:[#allocation34_spill] sm:$0xff] }
 0x373   : > { %v5861_v50 = vmul.f32 %v15783_v21, %v15782_v5  ;;  %v13255_v5 = vpop.permute.xlu0 %5816  ;;  %v6181_v21 = vsel %vm6159_vm3, %v13241_v7, 0.0 }
 0x375   : > { %v13216_v37 = vpop.permute.xlu1 %5806 }
 0x37a   : > { %6104 = vperm.xlu2 %9134, %v15766_v54   ;;  %v6178_v54 = vsel %vm6159_vm3, %v13211_v48, 0.0 }
 0x37d   : > { %v13225_v57 = vpop.permute.xlu1 %5812 }
 0x37f   : > { %5912 = vrot.lane.b32.xlu1 %v5869_v52, %s9534_s21 }
 0x382   : > { %5890 = vrot.lane.b32.xlu2 %v5858_v14, %s9534_s21  ;;  %v13221_v14 = vpop.permute.xlu2 %6029 }
 0x383   : > { %15785 = vst [vmem:[#allocation56_spill] sm:$0xff] %v13221_v14 }
 0x385   : > { %v13233_v4 = vpop.permute.xlu1 %5818 }
 0x38a   : > { %6113 = vperm.xlu2 %9134, %v15778_v49   ;;  %v13229_v17 = vpop.permute.xlu2 %6055  ;;  %v15788_v49 = vld [vmem:[#allocation51_spill] sm:$0xff] }
 0x38b   : > { %15786 = vst [vmem:[#allocation60_spill] sm:$0xff] %v13229_v17  ;;  %v5618_v22 = vmul.f32 %v15788_v49, %v13055_v11  ;;  %v4543_v11 = vand.u32 3, %v4542_v2  ;;  %v15793_v49 = vld [vmem:[#allocation49_spill] sm:$0xff] }
 0x38c   : > { %v15794_v33 = vxor.u32 2147483648, %v15793_v49 }
 0x38d   : > { %v13251_v52 = vpop.permute.xlu1 %5824  ;;  %vm4545_vm14 = vcmp.eq.s32.totalorder %v4543_v11, 0  ;;  %vm4548_vm15 = vcmp.eq.s32.totalorder %v4543_v11, 2  ;;  %vm4544_vm12 = vcmp.lt.s32.totalorder %v4543_v11, 2 }
 0x38e   : > { %v4547_v9 = vsel %vm4545_vm14, %v15795_v58, %v15794_v33 }
 0x390   : > { %6167 = vadd.xlane.f32.xlu0 %v6166_v30  ;;  %v13284_v43 = vpop.permute.xlu0 %5822 }
 0x392   : > { %5896 = vrot.lane.b32.xlu2 %v5861_v50, %s9534_s21  ;;  %v13235_v0 = vpop.permute.xlu2 %5796  ;;  %v13259_v50 = vadd.f32 %v5618_v22, %v5602_v27 }
 0x394   : > { %15791 = vst [vmem:[#allocation54_spill] sm:$0xff] %v13259_v50 }
 0x395   : > { %v13273_v22 = vpop.permute.xlu1 %6061 }
 0x396   : > { %15796 = vst [vmem:[#allocation37_spill] sm:$0xff] %v13273_v22  ;;  %v15800_v22 = vld [vmem:[#allocation62_spill] sm:$0xff] }
 0x397   : > { %v15801_v11 = vxor.u32 2147483648, %v15800_v22 }
 0x398   : > { %6179 = vadd.xlane.f32.xlu0 %v6178_v54  ;;  %v13263_v54 = vmul.f32 %v13107_v40, %v13107_v40 }
 0x39a   : > { %5902 = vrot.lane.b32.xlu2 %v5864_v60, %s9534_s21  ;;  %v13253_v30 = vpop.permute.xlu2 %5802  ;;  %v13267_v60 = vmul.f32 %v13259_v50, %v13259_v50  ;;  %v6190_v2 = vsel %vm6159_vm3, %v13263_v54, 0.0 }
 0x3a2   : > { %v13275_v27 = vpop.permute.xlu2 %5808 }
 0x3a3   : > { %v5849_v19 = vmul.f32 %v13058_v61, %v13275_v27 }
 0x3a9   : > { %6182 = vadd.xlane.f32.xlu1 %v6181_v21  ;;  %v15797_v21 = vxor.u32 2147483648, %v15795_v58  ;;  %v15803_v58 = vld [vmem:[#allocation13_spill] sm:$0xff] }
 0x3ab   : > { %v4550_v8 = vsel %vm4548_vm15, %v15797_v21, %v15793_v49  ;;  %v13293_v21 = vld [vmem:[%s9621_s18 + $0x48] sm:$0xff] }
 0x3ac   : > { %5916 = vrot.lane.b32.xlu0 %v5871_v29, %s9534_s21  ;;  %v5007_v29 = vadd.s32 3, %v15792_v39  ;;  %v6163_v39 = vsel %vm6159_vm3, %v13267_v60, 0.0  ;;  %v4551_v44 = vsel %vm4544_vm12, %v4547_v9, %v4550_v8  ;;  %v15805_v8 = vxor.u32 2147483648, %v15802_v45 }
 0x3ad   : > { %v4552_v14 = vsel %vm15799_vm6, nan, %v4551_v44 }
 0x3ae   : > { %v5008_v33 = vand.u32 3, %v5007_v29  ;;  %v5626_v49 = vmul.f32 %v15803_v58, %v4552_v14  ;;  %v13300_v29 = vpop.permute.xlu1 %6067  ;;  %v15809_v58 = vld [vmem:[#allocation16_spill] sm:$0xff] }
 0x3af   : > { %15806 = vst [vmem:[#allocation19_spill] sm:$0xff] %v13300_v29  ;;  %vm15810_vm9 = vweird.f32 %v15809_v58  ;;  %v15815_v29 = vld [vmem:[#allocation65_spill] sm:$0xff] }
 0x3b0   : > { %vm5010_vm0 = vcmp.eq.s32.totalorder %v5008_v33, 0  ;;  %vm5013_vm5 = vcmp.eq.s32.totalorder %v5008_v33, 2  ;;  %vm5009_vm8 = vcmp.lt.s32.totalorder %v5008_v33, 2 }
 0x3b1   : > { %6191 = vadd.xlane.f32.xlu1 %v6190_v2  ;;  %v5012_v62 = vsel %vm5010_vm0, %v15802_v45, %v15801_v11  ;;  %v15804_v2 = vld [vmem:[#allocation48_spill] sm:$0xff]  ;;  %v5015_v15 = vsel %vm5013_vm5, %v15805_v8, %v15800_v22  ;;  %v13306_v11 = vpop.permute.xlu0 %6058  ;;  %v15811_v45 = vld [vmem:[#allocation30_spill] sm:$0xff] }
 0x3b2   : > { %v5610_v9 = vmul.f32 %v13293_v21, %v15804_v2  ;;  %v5016_v44 = vsel %vm5009_vm8, %v5012_v62, %v5015_v15  ;;  %15808 = vst [vmem:[#allocation25_spill] sm:$0xff] %v13306_v11  ;;  %v13315_v2 = vld [vmem:[%s9621_s18 + $0x60] sm:$0xff]  ;;  %v13335_v11 = vld [vmem:[%s9621_s18 + $0x78] sm:$0xff] }
 0x3b3   : > { %v13310_v40 = vsel %vm15810_vm9, nan, %v5016_v44  ;;  %v5613_v62 = vmul.f32 %v13315_v2, %v15811_v45  ;;  %v5616_v47 = vmul.f32 %v13335_v11, %v15816_v34 }
 0x3b4   : > { %v13304_v26 = vadd.f32 %v5626_v49, %v5610_v9  ;;  %v5629_v33 = vmul.f32 %v12845_v53, %v13310_v40  ;;  %v5598_v49 = vpop.f32.mrf.mxu0  ;;  %v5772_v53 = vpop.f32.mrf.mxu1 }
 0x3b5   : > { %v5632_v45 = vmul.f32 %v5598_v49, %v15815_v29 }
 0x3b6   : > { %15807 = vst [vmem:[#allocation9_spill] sm:$0xff] %v13304_v26  ;;  %v13321_v22 = vmul.f32 %v13304_v26, %v13304_v26  ;;  %v13323_v9 = vadd.f32 %v5629_v33, %v5613_v62  ;;  %v13325_v8 = vpop.permute.xlu1 %6076  ;;  %v5867_v33 = vmul.f32 %v13115_v23, %v4552_v14  ;;  %v5872_v62 = vmul.f32 %v5772_v53, %v12911_v59  ;;  %v9495_v26 = vld [vmem:[%s9621_s18] sm:$0xff] }
 0x3b7   : > { %15813 = vst [vmem:[#allocation2_spill] sm:$0xff] %v13325_v8  ;;  %v5842_v1 = vmul.f32 %v9495_v26, %v13179_v24  ;;  %v9496_v24 = vld [vmem:[%s9621_s18 + $0x18] sm:$0xff] }
 0x3b8   : > { %15812 = vst [vmem:[#allocation61_spill] sm:$0xff] %v13323_v9  ;;  %v6187_v44 = vsel %vm6159_vm3, %v13321_v22, 0.0  ;;  %v13343_v8 = vmul.f32 %v13323_v9, %v13323_v9  ;;  %v5845_v61 = vmul.f32 %v9496_v24, %v13199_v20 }
 0x3b9   : > { %v13331_v58 = vpop.permute.xlu0 %6073 }
 0x3ba   : > { %15814 = vst [vmem:[#allocation3_spill] sm:$0xff] %v13331_v58  ;;  %v6196_v49 = vsel %vm6159_vm3, %v13343_v8, 0.0 }
 0x3be   : > { %v13351_v34 = vpop.permute.xlu1 %6101 }
 0x3bf   : > { %15818 = vst [vmem:[#allocation4_spill] sm:$0xff] %v13351_v34 }
 0x3c1   : > { %v13355_v59 = vpop.permute.xlu0 %6098 }
 0x3c2   : > { %15820 = vst [vmem:[#allocation6_spill] sm:$0xff] %v13355_v59  ;;  %v13400_v59 = vmul.f32 %v13129_v28, %v13129_v28 }
 0x3c3   : > { %6164 = vadd.xlane.f32.xlu2 %v6163_v39  ;;  %v13302_v39 = vpop.permute.xlu2 %5814 }
 0x3c4   : > { %v5852_v27 = vmul.f32 %v13093_v41, %v13302_v39 }
 0x3ca   : > { %5918 = vrot.lane.b32.xlu1 %v5872_v62, %s9534_s21  ;;  %v9493_v62 = vld [vmem:[%s9621_s18 + $0x10] sm:$0xff] }
 0x3cb   : > { %v13327_v15 = vpop.permute.xlu2 %5820 }
 0x3d3   : > { %v13353_v23 = vpop.permute.xlu2 %6064 }
 0x3d4   : > { %15819 = vst [vmem:[#allocation32_spill] sm:$0xff] %v13353_v23 }
 0x3d6   : > { %6188 = vadd.xlane.f32.xlu0 %v6187_v44  ;;  %v13347_v44 = vadd.f32 %v5632_v45, %v5616_v47  ;;  %v13363_v47 = vpop.permute.xlu1 %6110 }
 0x3d7   : > { %15821 = vst [vmem:[#allocation42_spill] sm:$0xff] %v13363_v47  ;;  %v15827_v47 = vld [vmem:[#allocation18_spill] sm:$0xff] }
 0x3d8   : > { %15817 = vst [vmem:[#allocation26_spill] sm:$0xff] %v13347_v44  ;;  %v13359_v14 = vmul.f32 %v13347_v44, %v13347_v44 }
 0x3da   : > { %v6205_v53 = vsel %vm6159_vm3, %v13359_v14, 0.0 }
 0x3db   : > { %5908 = vrot.lane.b32.xlu2 %v5867_v33, %s9534_s21  ;;  %v13365_v45 = vpop.permute.xlu2 %6070  ;;  %v13367_v33 = vpop.permute.xlu0 %5892 }
 0x3dc   : > { %15822 = vst [vmem:[#allocation28_spill] sm:$0xff] %v13365_v45  ;;  %v5622_v45 = vmul.f32 %v15827_v47, %v15715_v51 }
 0x3de   : > { %6197 = vadd.xlane.f32.xlu0 %v6196_v49  ;;  %v5844_v49 = vmul.f32 %v9493_v62, %v13219_v46  ;;  %v5895_v58 = vpop.permute.xlu1 %5894  ;;  %v13388_v46 = vld [vmem:[%s9621_s18 + $0x28] sm:$0xff] }
 0x3e0   : > { %v13373_v23 = vadd.f32 %v5895_v58, %v5844_v49  ;;  %v5606_v58 = vmul.f32 %v13388_v46, %v12803_v25  ;;  %v15829_v49 = vld [vmem:[#allocation15_spill] sm:$0xff]  ;;  %v6199_v25 = vsel %vm6159_vm3, %v13400_v59, 0.0 }
 0x3e2   : > { %15824 = vst [vmem:[#allocation5_spill] sm:$0xff] %v13373_v23  ;;  %v13379_v9 = vmul.f32 %v13373_v23, %v13373_v23 }
 0x3e3   : > { %v13371_v34 = vpop.permute.xlu2 %6095  ;;  %v13375_v44 = vpop.permute.xlu0 %6107 }
 0x3e4   : > { %15823 = vst [vmem:[#allocation24_spill] sm:$0xff] %v13371_v34 }
 0x3e5   : > { %15825 = vst [vmem:[#allocation11_spill] sm:$0xff] %v13375_v44  ;;  %v13396_v44 = vmul.f32 %v15829_v49, %v15829_v49 }
 0x3e6   : > { %6206 = vadd.xlane.f32.xlu0 %v6205_v53 }
 0x3e7   : > { %v6169_v51 = vsel %vm6159_vm3, %v13396_v44, 0.0 }
 0x3eb   : > { %v13383_v53 = vpop.permute.xlu2 %6104  ;;  %v13392_v62 = vpop.permute.xlu0 %6116 }
 0x3ec   : > { %15826 = vst [vmem:[#allocation36_spill] sm:$0xff] %v13383_v53  ;;  %v13402_v53 = vadd.f32 %v5622_v45, %v5606_v58  ;;  %v5846_v45 = vmul.f32 %v13140_v56, %v13253_v30 }
 0x3ed   : > { %15828 = vst [vmem:[#allocation34_spill] sm:$0xff] %v13392_v62 }
 0x3ee   : > { %15830 = vst [vmem:[#allocation63_spill] sm:$0xff] %v13402_v53  ;;  %v13410_v62 = vmul.f32 %v13402_v53, %v13402_v53 }
 0x3f0   : > { %v6175_v28 = vsel %vm6159_vm3, %v13410_v62, 0.0 }
 0x3f3   : > { %v5891_v47 = vpop.permute.xlu2 %5890  ;;  %v5899_v34 = vpop.permute.xlu0 %5898 }
 0x3f4   : > { %6200 = vadd.xlane.f32.xlu1 %v6199_v25  ;;  %v13416_v58 = vadd.f32 %v5899_v34, %v5846_v45 }
 0x3f6   : > { %v13422_v25 = vmul.f32 %v13416_v58, %v13416_v58 }
 0x3fa   : > { %6455 = vrot.lane.b32.xlu0 %v13379_v9, %s9527_s19 }
 0x3fb   : > { %v5905_v17 = vpop.permute.xlu0 %5904 }
 0x3fc   : > { %v13432_v56 = vadd.f32 %v5905_v17, %v5849_v19  ;;  %v5870_v17 = vmul.f32 %v13223_v32, %v13310_v40 }
 0x3fe   : > { %v13440_v45 = vmul.f32 %v13432_v56, %v13432_v56 }
 0x402   : > { %6459 = vrot.lane.b32.xlu0 %v13422_v25, %s9527_s19 }
 0x403   : > { %v5911_v26 = vpop.permute.xlu0 %5910 }
 0x404   : > { %6170 = vadd.xlane.f32.xlu2 %v6169_v51  ;;  %v13418_v51 = vpop.permute.xlu2 %6113  ;;  %v13452_v19 = vadd.f32 %v5911_v26, %v5852_v27 }
 0x405   : > { %15831 = vst [vmem:[#allocation51_spill] sm:$0xff] %v13418_v51 }
 0x406   : > { %15834 = vst [vmem:[#allocation39_spill] sm:$0xff] %v13452_v19  ;;  %v13463_v41 = vmul.f32 %v13452_v19, %v13452_v19 }
 0x40a   : > { %6465 = vrot.lane.b32.xlu0 %v13440_v45, %s9527_s19 }
 0x40b   : > { %v13473_v32 = vpop.xlane.xlu0 %6167 }
 0x40c   : > { %6176 = vadd.xlane.f32.xlu2 %v6175_v28  ;;  %v13430_v28 = vadd.f32 %v5891_v47, %v5842_v1  ;;  %v5897_v30 = vpop.permute.xlu2 %5896  ;;  %v5848_v47 = vmul.f32 %v13188_v10, %v13216_v37  ;;  %v5855_v37 = vmul.f32 %v13122_v18, %v13327_v15  ;;  %v5901_v18 = vpop.permute.xlu1 %5900  ;;  %v15837_v15 = vld [vmem:[#allocation10_spill] sm:$0xff] }
 0x40d   : > { %v13450_v1 = vadd.f32 %v5897_v30, %v5845_v61 }
 0x40e   : > { %15832 = vst [vmem:[#allocation59_spill] sm:$0xff] %v13430_v28  ;;  %v13436_v34 = vmul.f32 %v13430_v28, %v13430_v28 }
 0x40f   : > { %15833 = vst [vmem:[#allocation47_spill] sm:$0xff] %v13450_v1  ;;  %v13459_v20 = vmul.f32 %v13450_v1, %v13450_v1 }
 0x410   : > { %6451 = vrot.lane.b32.xlu1 %v13436_v34, %s9527_s19 }
 0x412   : > { %6471 = vrot.lane.b32.xlu0 %v13463_v41, %s9527_s19 }
 0x413   : > { %v13481_v26 = vpop.xlane.xlu0 %6179 }
 0x414   : > { %v5903_v39 = vpop.permute.xlu2 %5902  ;;  %15835 = vst [vmem:[#allocation49_spill] sm:$0xff] %v13481_v26 }
 0x415   : > { %v13471_v40 = vadd.f32 %v5903_v39, %v5848_v47 }
 0x417   : > { %v13477_v30 = vmul.f32 %v13471_v40, %v13471_v40 }
 0x418   : > { %6457 = vrot.lane.b32.xlu1 %v13459_v20, %s9527_s19 }
 0x41e   : > { %v5917_v24 = vpop.permute.xlu0 %5916 }
 0x41f   : > { %v13487_v61 = vadd.f32 %v5917_v24, %v5855_v37  ;;  %v13507_v37 = vmul.f32 %v15837_v15, %v15837_v15  ;;  %v5907_v24 = vpop.permute.xlu1 %5906  ;;  %v5775_v15 = vpop.f32.mrf.mxu1 }
 0x420   : > { %6463 = vrot.lane.b32.xlu1 %v13477_v30, %s9527_s19  ;;  %v5873_v49 = vmul.f32 %v5775_v15, %v15815_v29  ;;  %v13542_v15 = vmul.f32 %v13000_v16, %v13000_v16 }
 0x421   : > { %v13491_v27 = vmul.f32 %v13487_v61, %v13487_v61 }
 0x423   : > { %6477 = vrot.lane.b32.xlu0 %v13491_v27, %s9527_s19 }
 0x424   : > { %5914 = vrot.lane.b32.xlu2 %v5870_v17, %s9534_s21  ;;  %v5851_v17 = vmul.f32 %v13293_v21, %v13225_v57  ;;  %v6184_v57 = vsel %vm6159_vm3, %v13507_v37, 0.0  ;;  %v13513_v21 = vmul.f32 %v12872_v3, %v12872_v3 }
 0x436   : > { %v13483_v10 = vpop.xlane.xlu2 %6164 }
 0x43e   : > { %v5909_v39 = vpop.permute.xlu2 %5908 }
 0x43f   : > { %v13497_v47 = vadd.f32 %v5909_v39, %v5851_v17  ;;  %v13515_v17 = vpop.xlane.xlu1 %6161  ;;  %v6193_v39 = vsel %vm6159_vm3, %v13513_v21, 0.0 }
 0x441   : > { %15836 = vst [vmem:[#allocation50_spill] sm:$0xff] %v13497_v47  ;;  %v13501_v51 = vmul.f32 %v13497_v47, %v13497_v47 }
 0x443   : > { %6469 = vrot.lane.b32.xlu1 %v13501_v51, %s9527_s19 }
 0x447   : > { %v13519_v53 = vpop.xlane.xlu1 %6173 }
 0x448   : > { %15838 = vst [vmem:[#allocation27_spill] sm:$0xff] %v13519_v53 }
 0x44d   : > { %6185 = vadd.xlane.f32.xlu2 %v6184_v57 }
 0x44f   : > { %v5913_v13 = vpop.permute.xlu1 %5912 }
 0x455   : > { %6194 = vadd.xlane.f32.xlu2 %v6193_v39  ;;  %v5854_v39 = vmul.f32 %v13315_v2, %v13233_v4  ;;  %v5843_v4 = vmul.f32 %v13246_v31, %v13235_v0  ;;  %v5856_v2 = vmul.f32 %v12994_v6, %v13284_v43  ;;  %v5847_v6 = vmul.f32 %v13388_v46, %v13227_v55  ;;  %v9498_v46 = vld [vmem:[%s9621_s18 + $0x58] sm:$0xff] }
 0x457   : > { %v13523_v42 = vpop.xlane.xlu1 %6182  ;;  %v13569_v43 = vadd.f32 %v5901_v18, %v5847_v6 }
 0x459   : > { %v6424_v31 = vmul.f32 %v13569_v43, %v13569_v43 }
 0x45f   : > { %v13527_v3 = vpop.xlane.xlu1 %6191 }
 0x460   : > { %15839 = vst [vmem:[#allocation62_spill] sm:$0xff] %v13527_v3 }
 0x467   : > { %v5919_v26 = vpop.permute.xlu1 %5918 }
 0x46d   : > { %5920 = vrot.lane.b32.xlu2 %v5873_v49, %s9534_s21 }
 0x46f   : > { %v13535_v53 = vpop.xlane.xlu1 %6200 }
 0x477   : > { %v13525_v57 = vpop.xlane.xlu2 %6170 }
 0x47f   : > { %v13529_v50 = vpop.xlane.xlu2 %6176 }
 0x482   : > { %v6452_v49 = vpop.permute.xlu1 %6451 }
 0x483   : > { %v6499_v3 = vsel %vm6159_vm3, %v6452_v49, 0.0 }
 0x484   : > { %6500 = vadd.xlane.f32.xlu0 %v6499_v3  ;;  %v13556_v3 = vadd.f32 %v5919_v26, %v5856_v2  ;;  %v5857_v2 = vmul.f32 %v13335_v11, %v13251_v52 }
 0x486   : > { %v6433_v0 = vmul.f32 %v13556_v3, %v13556_v3 }
 0x487   : > { %v5915_v38 = vpop.permute.xlu2 %5914 }
 0x488   : > { %v13533_v7 = vadd.f32 %v5915_v38, %v5854_v39  ;;  %v6202_v38 = vsel %vm6159_vm3, %v13542_v15, 0.0  ;;  %v13554_v39 = vadd.f32 %v13367_v33, %v5843_v4  ;;  %v9497_v33 = vld [vmem:[%s9621_s18 + $0x40] sm:$0xff] }
 0x48a   : > { %v6431_v29 = vmul.f32 %v13533_v7, %v13533_v7  ;;  %15840 = vst [vmem:[#allocation29_spill] sm:$0xff] %v13554_v39  ;;  %v13560_v49 = vmul.f32 %v13554_v39, %v13554_v39 }
 0x48c   : > { %6475 = vrot.lane.b32.xlu1 %v6431_v29, %s9527_s19 }
 0x496   : > { %6203 = vadd.xlane.f32.xlu2 %v6202_v38  ;;  %v5853_v38 = vmul.f32 %v9498_v46, %v13255_v5  ;;  %v13605_v46 = vpop.xlane.xlu0 %6188 }
 0x498   : > { %7734 = vrot.lane.b32.xlu0 %v13440_v45, %s9535_s27  ;;  %v5850_v45 = vmul.f32 %v9497_v33, %v13237_v35  ;;  %v13586_v18 = vadd.f32 %v5913_v13, %v5853_v38  ;;  %v6458_v33 = vpop.permute.xlu1 %6457 }
 0x49a   : > { %v13576_v26 = vadd.f32 %v5907_v24, %v5850_v45  ;;  %15842 = vst [vmem:[#allocation48_spill] sm:$0xff] %v13586_v18  ;;  %v6430_v35 = vmul.f32 %v13586_v18, %v13586_v18  ;;  %v6508_v45 = vsel %vm6159_vm3, %v6458_v33, 0.0 }
 0x49c   : > { %15841 = vst [vmem:[#allocation13_spill] sm:$0xff] %v13576_v26  ;;  %v13580_v55 = vmul.f32 %v13576_v26, %v13576_v26 }
 0x49e   : > { %v13609_v52 = vpop.xlane.xlu0 %6197 }
 0x4a0   : > { %7748 = vrot.lane.b32.xlu0 %v6433_v0, %s9535_s27  ;;  %v6464_v33 = vpop.permute.xlu1 %6463 }
 0x4a6   : > { %v13613_v11 = vpop.xlane.xlu0 %6206 }
 0x4a7   : > { %15843 = vst [vmem:[#allocation16_spill] sm:$0xff] %v13613_v11 }
 0x4ae   : > { %6453 = vrot.lane.b32.xlu2 %v13560_v49, %s9527_s19 }
 0x4b6   : > { %6461 = vrot.lane.b32.xlu2 %v6424_v31, %s9527_s19 }
 0x4be   : > { %6467 = vrot.lane.b32.xlu2 %v13580_v55, %s9527_s19 }
 0x4c0   : > { %v13588_v4 = vpop.xlane.xlu2 %6185 }
 0x4c6   : > { %6473 = vrot.lane.b32.xlu2 %v6430_v35, %s9527_s19 }
 0x4c8   : > { %v13593_v24 = vpop.xlane.xlu2 %6194 }
 0x4ca   : > { %6509 = vadd.xlane.f32.xlu0 %v6508_v45 }
 0x4ce   : > { %6479 = vrot.lane.b32.xlu2 %v6433_v0, %s9527_s19  ;;  %v6456_v0 = vpop.permute.xlu0 %6455 }
 0x4cf   : > { %v6505_v38 = vsel %vm6159_vm3, %v6456_v0, 0.0 }
 0x4d0   : > { %v5921_v5 = vpop.permute.xlu2 %5920 }
 0x4d1   : > { %v13598_v6 = vadd.f32 %v5921_v5, %v5857_v2 }
 0x4d3   : > { %v6434_v13 = vmul.f32 %v13598_v6, %v13598_v6 }
 0x4d5   : > { %6481 = vrot.lane.b32.xlu1 %v6434_v13, %s9527_s19 }
 0x4d6   : > { %v6460_v0 = vpop.permute.xlu0 %6459 }
 0x4dd   : > { %7750 = vrot.lane.b32.xlu1 %v6434_v13, %s9535_s27 }
 0x4de   : > { %7746 = vrot.lane.b32.xlu0 %v13491_v27, %s9535_s27  ;;  %v6517_v27 = vsel %vm6159_vm3, %v6464_v33, 0.0 }
 0x4e6   : > { %7726 = vrot.lane.b32.xlu0 %v13459_v20, %s9535_s27 }
 0x507   : > { %6506 = vadd.xlane.f32.xlu1 %v6505_v38 }
 0x509   : > { %v13616_v2 = vpop.xlane.xlu2 %6203 }
 0x510   : > { %6518 = vadd.xlane.f32.xlu0 %v6517_v27 }
 0x511   : > { %v6454_v5 = vpop.permute.xlu2 %6453 }
 0x512   : > { %v6502_v13 = vsel %vm6159_vm3, %v6454_v5, 0.0 }
 0x513   : > { %6503 = vadd.xlane.f32.xlu2 %v6502_v13 }
 0x519   : > { %v6462_v20 = vpop.permute.xlu2 %6461 }
 0x51a   : > { %v6514_v45 = vsel %vm6159_vm3, %v6462_v20, 0.0 }
 0x520   : > { %7730 = vrot.lane.b32.xlu1 %v6424_v31, %s9535_s27  ;;  %v6470_v31 = vpop.permute.xlu1 %6469 }
 0x524   : > { %7740 = vrot.lane.b32.xlu0 %v13463_v41, %s9535_s27 }
 0x528   : > { %7744 = vrot.lane.b32.xlu1 %v6431_v29, %s9535_s27  ;;  %v6511_v29 = vsel %vm6159_vm3, %v6460_v0, 0.0  ;;  %v6476_v38 = vpop.permute.xlu1 %6475 }
 0x52b   : > { %7732 = vrot.lane.b32.xlu2 %v13477_v30, %s9535_s27  ;;  %v6526_v30 = vsel %vm6159_vm3, %v6470_v31, 0.0 }
 0x52c   : > { %7720 = vrot.lane.b32.xlu0 %v13436_v34, %s9535_s27 }
 0x533   : > { %7728 = vrot.lane.b32.xlu2 %v13422_v25, %s9535_s27  ;;  %v6535_v25 = vsel %vm6159_vm3, %v6476_v38, 0.0 }
 0x547   : > { %v6482_v41 = vpop.permute.xlu1 %6481 }
 0x548   : > { %v6544_v5 = vsel %vm6159_vm3, %v6482_v41, 0.0 }
 0x54f   : > { %v7751_v34 = vpop.permute.xlu1 %7750 }
 0x550   : > { %v7813_v27 = vsel %vm6159_vm3, %v7751_v34, 0.0 }
 0x552   : > { %6515 = vadd.xlane.f32.xlu1 %v6514_v45 }
 0x556   : > { %6527 = vadd.xlane.f32.xlu0 %v6526_v30 }
 0x55c   : > { %6512 = vadd.xlane.f32.xlu2 %v6511_v29 }
 0x55e   : > { %6536 = vadd.xlane.f32.xlu0 %v6535_v25 }
 0x566   : > { %6545 = vadd.xlane.f32.xlu0 %v6544_v5 }
 0x56b   : > { %7724 = vrot.lane.b32.xlu1 %v13379_v9, %s9535_s27  ;;  %v6468_v9 = vpop.permute.xlu2 %6467 }
 0x56c   : > { %v6523_v25 = vsel %vm6159_vm3, %v6468_v9, 0.0 }
 0x56e   : > { %7814 = vadd.xlane.f32.xlu0 %v7813_v27 }
 0x573   : > { %7738 = vrot.lane.b32.xlu1 %v13501_v51, %s9535_s27  ;;  %v6474_v29 = vpop.permute.xlu2 %6473 }
 0x574   : > { %7742 = vrot.lane.b32.xlu2 %v6430_v35, %s9535_s27  ;;  %v13646_v35 = vld [vmem:[%s15188_s6] ss:$0 sm:$0xff] }
 0x57a   : > { %v6507_v13 = vpop.xlane.xlu1 %6506 }
 0x57b   : > { %v6549_v33 = vadd.f32 1e-06, %v6507_v13  ;;  %v6480_v41 = vpop.permute.xlu2 %6479  ;;  %v6466_v13 = vpop.permute.xlu0 %6465 }
 0x57c   : > { %7722 = vrot.lane.b32.xlu2 %v13560_v49, %s9535_s27  ;;  %v6520_v27 = vsel %vm6159_vm3, %v6466_v13, 0.0 }
 0x57d   : > { %9219 = vrsqrt.f32 %v6549_v33  ;;  %vm6589_vm10 = vweird.f32 %v6549_v33 }
 0x583   : > { %v9220_v20 = vpop.eup %9219  ;;  %v6472_v13 = vpop.permute.xlu0 %6471 }
 0x584   : > { %v6584_v45 = vmul.f32 %v9220_v20, %v6549_v33  ;;  %vm6590_vm11 = vweird.f32 %v9220_v20  ;;  %v6532_v33 = vsel %vm6159_vm3, %v6474_v29, 0.0 }
 0x585   : > { %vm6591_vm13 = vmor %vm6589_vm10, %vm6590_vm11 }
 0x586   : > { %v6585_v0 = vmul.f32 %v9220_v20, %v6584_v45  ;;  %v6504_v34 = vpop.xlane.xlu2 %6503 }
 0x587   : > { %v6548_v5 = vadd.f32 1e-06, %v6504_v34 }
 0x588   : > { %v6586_v31 = vmul.f32 0.5, %v6585_v0 }
 0x589   : > { %9221 = vrsqrt.f32 %v6548_v5  ;;  %vm6579_vm2 = vweird.f32 %v6548_v5 }
 0x58a   : > { %v6587_v51 = vsub.f32 1.5, %v6586_v31 }
 0x58c   : > { %v6588_v38 = vmul.f32 %v9220_v20, %v6587_v51 }
 0x58e   : > { %v6592_v30 = vsel %vm6591_vm13, %v9220_v20, %v6588_v38  ;;  %v6541_v20 = vsel %vm6159_vm3, %v6480_v41, 0.0 }
 0x58f   : > { %v6725_v49 = vmul.f32 %v13646_v35, %v6592_v30  ;;  %v9222_v45 = vpop.eup %9221 }
 0x590   : > { %v6574_v0 = vmul.f32 %v9222_v45, %v6548_v5  ;;  %vm6580_vm1 = vweird.f32 %v9222_v45 }
 0x591   : > { %6759 = vrot.lane.b32.xlu0 %v6725_v49, %s9534_s21  ;;  %vm6581_vm7 = vmor %vm6579_vm2, %vm6580_vm1 }
 0x592   : > { %v6575_v31 = vmul.f32 %v9222_v45, %v6574_v0  ;;  %v7731_v38 = vpop.permute.xlu1 %7730 }
 0x593   : > { %v7783_v30 = vsel %vm6159_vm3, %v7731_v38, 0.0 }
 0x594   : > { %v6576_v51 = vmul.f32 0.5, %v6575_v31 }
 0x596   : > { %v6577_v9 = vsub.f32 1.5, %v6576_v51 }
 0x598   : > { %v6578_v49 = vmul.f32 %v9222_v45, %v6577_v9 }
 0x59a   : > { %v6582_v29 = vsel %vm6581_vm7, %v9222_v45, %v6578_v49 }
 0x59b   : > { %v6724_v41 = vmul.f32 %v13646_v35, %v6582_v29  ;;  %v6529_v29 = vsel %vm6159_vm3, %v6472_v13, 0.0 }
 0x59d   : > { %6524 = vadd.xlane.f32.xlu1 %v6523_v25  ;;  %v13655_v25 = vpop.permute.xlu2 %7732 }
 0x5a5   : > { %6533 = vadd.xlane.f32.xlu1 %v6532_v33  ;;  %6521 = vadd.xlane.f32.xlu2 %v6520_v27  ;;  %v7729_v34 = vpop.permute.xlu2 %7728 }
 0x5ad   : > { %6542 = vadd.xlane.f32.xlu1 %v6541_v20  ;;  %v6478_v20 = vpop.permute.xlu0 %6477 }
 0x5b5   : > { %v6501_v38 = vpop.xlane.xlu0 %6500 }
 0x5bb   : > { %7784 = vadd.xlane.f32.xlu0 %v7783_v30 }
 0x5bd   : > { %7736 = vrot.lane.b32.xlu2 %v13580_v55, %s9535_s27  ;;  %v6547_v55 = vadd.f32 1e-06, %v6501_v38 }
 0x5bf   : > { %vm6569_vm6 = vweird.f32 %v6547_v55 }
 0x5c6   : > { %6757 = vrot.lane.b32.xlu1 %v6724_v41, %s9534_s21  ;;  %v7745_v41 = vpop.permute.xlu1 %7744 }
 0x5cf   : > { %v6513_v33 = vpop.xlane.xlu2 %6512 }
 0x5d0   : > { %v6551_v27 = vadd.f32 1e-06, %v6513_v33 }
 0x5d2   : > { %9223 = vrsqrt.f32 %v6551_v27  ;;  %vm6609_vm14 = vweird.f32 %v6551_v27 }
 0x5d3   : > { %9225 = vrsqrt.f32 %v6547_v55 }
 0x5d8   : > { %v9224_v0 = vpop.eup %9223 }
 0x5d9   : > { %v6604_v31 = vmul.f32 %v9224_v0, %v6551_v27  ;;  %vm6610_vm4 = vweird.f32 %v9224_v0  ;;  %v9226_v33 = vpop.eup %9225  ;;  %v6516_v27 = vpop.xlane.xlu1 %6515 }
 0x5da   : > { %vm6611_vm15 = vmor %vm6609_vm14, %vm6610_vm4  ;;  %v6564_v16 = vmul.f32 %v9226_v33, %v6547_v55  ;;  %vm6570_vm12 = vweird.f32 %v9226_v33 }
 0x5db   : > { %v6605_v51 = vmul.f32 %v9224_v0, %v6604_v31  ;;  %v7735_v31 = vpop.permute.xlu0 %7734  ;;  %vm6571_vm0 = vmor %vm6569_vm6, %vm6570_vm12 }
 0x5dc   : > { %v7789_v38 = vsel %vm6159_vm3, %v7735_v31, 0.0 }
 0x5dd   : > { %v6606_v9 = vmul.f32 0.5, %v6605_v51  ;;  %v6538_v51 = vsel %vm6159_vm3, %v6478_v20, 0.0  ;;  %v7780_v20 = vsel %vm6159_vm3, %v7729_v34, 0.0 }
 0x5df   : > { %v6607_v30 = vsub.f32 1.5, %v6606_v9  ;;  %v6552_v9 = vadd.f32 1e-06, %v6516_v27  ;;  %v7743_v27 = vpop.permute.xlu2 %7742 }
 0x5e1   : > { %v6608_v5 = vmul.f32 %v9224_v0, %v6607_v30  ;;  %9227 = vrsqrt.f32 %v6552_v9  ;;  %vm6619_vm8 = vweird.f32 %v6552_v9  ;;  %v7725_v34 = vpop.permute.xlu1 %7724 }
 0x5e3   : > { %v6612_v45 = vsel %vm6611_vm15, %v9224_v0, %v6608_v5  ;;  %v6565_v0 = vmul.f32 %v9226_v33, %v6564_v16  ;;  %v7749_v30 = vpop.permute.xlu0 %7748 }
 0x5e4   : > { %v6727_v49 = vmul.f32 %v13646_v35, %v6612_v45  ;;  %v7810_v13 = vsel %vm6159_vm3, %v7749_v30, 0.0 }
 0x5e5   : > { %v6566_v5 = vmul.f32 0.5, %v6565_v0 }
 0x5e6   : > { %6530 = vadd.xlane.f32.xlu2 %v6529_v29  ;;  %6763 = vrot.lane.b32.xlu0 %v6727_v49, %s9534_s21 }
 0x5e7   : > { %v6567_v45 = vsub.f32 1.5, %v6566_v5  ;;  %v9228_v49 = vpop.eup %9227  ;;  %v7804_v5 = vsel %vm6159_vm3, %v7745_v41, 0.0 }
 0x5e8   : > { %vm6620_vm5 = vweird.f32 %v9228_v49 }
 0x5e9   : > { %v6568_v29 = vmul.f32 %v9226_v33, %v6567_v45  ;;  %v7723_v45 = vpop.permute.xlu2 %7722  ;;  %vm6621_vm9 = vmor %vm6619_vm8, %vm6620_vm5 }
 0x5eb   : > { %v6572_v31 = vsel %vm6571_vm0, %v9226_v33, %v6568_v29  ;;  %v7774_v29 = vsel %vm6159_vm3, %v7725_v34, 0.0 }
 0x5ec   : > { %v6723_v16 = vmul.f32 %v13646_v35, %v6572_v31 }
 0x5ee   : > { %6539 = vadd.xlane.f32.xlu2 %v6538_v51  ;;  %v6614_v51 = vmul.f32 %v9228_v49, %v6552_v9 }
 0x5f0   : > { %7790 = vadd.xlane.f32.xlu1 %v7789_v38  ;;  %v6615_v38 = vmul.f32 %v9228_v49, %v6614_v51 }
 0x5f2   : > { %v6616_v0 = vmul.f32 0.5, %v6615_v38 }
 0x5f4   : > { %v6617_v30 = vsub.f32 1.5, %v6616_v0 }
 0x5f8   : > { %7811 = vadd.xlane.f32.xlu1 %v7810_v13  ;;  %v6618_v13 = vmul.f32 %v9228_v49, %v6617_v30 }
 0x5fa   : > { %v6622_v55 = vsel %vm6621_vm9, %v9228_v49, %v6618_v13  ;;  %v7786_v13 = vsel %vm6159_vm3, %v13655_v25, 0.0  ;;  %v7801_v25 = vsel %vm6159_vm3, %v7743_v27, 0.0 }
 0x5fb   : > { %v6728_v33 = vmul.f32 %v13646_v35, %v6622_v55 }
 0x600   : > { %7781 = vadd.xlane.f32.xlu1 %v7780_v20 }
 0x606   : > { %6755 = vrot.lane.b32.xlu2 %v6723_v16, %s9534_s21  ;;  %v6510_v16 = vpop.xlane.xlu0 %6509 }
 0x607   : > { %v6550_v30 = vadd.f32 1e-06, %v6510_v16 }
 0x609   : > { %vm6599_vm2 = vweird.f32 %v6550_v30 }
 0x610   : > { %7805 = vadd.xlane.f32.xlu0 %v7804_v5 }
 0x618   : > { %v6522_v20 = vpop.xlane.xlu2 %6521  ;;  %7775 = vadd.xlane.f32.xlu0 %v7774_v29  ;;  %v7739_v29 = vpop.permute.xlu1 %7738 }
 0x619   : > { %v6554_v51 = vadd.f32 1e-06, %v6522_v20  ;;  %6765 = vrot.lane.b32.xlu1 %v6728_v33, %s9534_s21  ;;  %v7747_v33 = vpop.permute.xlu0 %7746 }
 0x61b   : > { %9229 = vrsqrt.f32 %v6554_v51  ;;  %vm6639_vm10 = vweird.f32 %v6554_v51 }
 0x61c   : > { %9231 = vrsqrt.f32 %v6550_v30 }
 0x621   : > { %v9230_v31 = vpop.eup %9229  ;;  %v7727_v27 = vpop.permute.xlu0 %7726 }
 0x622   : > { %v6634_v41 = vmul.f32 %v9230_v31, %v6554_v51  ;;  %vm6640_vm11 = vweird.f32 %v9230_v31  ;;  %v9232_v55 = vpop.eup %9231  ;;  %v6525_v51 = vpop.xlane.xlu1 %6524 }
 0x623   : > { %vm6641_vm13 = vmor %vm6639_vm10, %vm6640_vm11  ;;  %v6594_v20 = vmul.f32 %v9232_v55, %v6550_v30  ;;  %vm6600_vm1 = vweird.f32 %v9232_v55 }
 0x624   : > { %v6635_v38 = vmul.f32 %v9230_v31, %v6634_v41  ;;  %v7807_v41 = vsel %vm6159_vm3, %v7747_v33, 0.0  ;;  %vm6601_vm7 = vmor %vm6599_vm2, %vm6600_vm1 }
 0x626   : > { %v6636_v0 = vmul.f32 0.5, %v6635_v38  ;;  %v6595_v38 = vmul.f32 %v9232_v55, %v6594_v20 }
 0x628   : > { %v6637_v9 = vsub.f32 1.5, %v6636_v0  ;;  %v6596_v16 = vmul.f32 0.5, %v6595_v38  ;;  %v6555_v0 = vadd.f32 1e-06, %v6525_v51 }
 0x62a   : > { %v6638_v5 = vmul.f32 %v9230_v31, %v6637_v9  ;;  %9233 = vrsqrt.f32 %v6555_v0  ;;  %vm6649_vm14 = vweird.f32 %v6555_v0 }
 0x62c   : > { %v6642_v49 = vsel %vm6641_vm13, %v9230_v31, %v6638_v5  ;;  %v6597_v31 = vsub.f32 1.5, %v6596_v16 }
 0x62d   : > { %v6730_v34 = vmul.f32 %v13646_v35, %v6642_v49  ;;  %v7771_v49 = vsel %vm6159_vm3, %v7723_v45, 0.0  ;;  %v6519_v45 = vpop.xlane.xlu0 %6518 }
 0x62e   : > { %v6598_v9 = vmul.f32 %v9232_v55, %v6597_v31  ;;  %v7795_v31 = vsel %vm6159_vm3, %v7739_v29, 0.0 }
 0x62f   : > { %7787 = vadd.xlane.f32.xlu2 %v7786_v13  ;;  %6769 = vrot.lane.b32.xlu0 %v6730_v34, %s9534_s21 }
 0x630   : > { %v9234_v5 = vpop.eup %9233  ;;  %v6602_v13 = vsel %vm6601_vm7, %v9232_v55, %v6598_v9 }
 0x631   : > { %v6644_v34 = vmul.f32 %v9234_v5, %v6555_v0  ;;  %v6726_v33 = vmul.f32 %v13646_v35, %v6602_v13  ;;  %vm6650_vm4 = vweird.f32 %v9234_v5 }
 0x632   : > { %vm6651_vm15 = vmor %vm6649_vm14, %vm6650_vm4 }
 0x633   : > { %v6645_v20 = vmul.f32 %v9234_v5, %v6644_v34 }
 0x635   : > { %v6646_v38 = vmul.f32 0.5, %v6645_v20  ;;  %v7741_v20 = vpop.permute.xlu0 %7740 }
 0x637   : > { %7808 = vadd.xlane.f32.xlu2 %v7807_v41  ;;  %v13683_v41 = vpop.permute.xlu2 %7736  ;;  %v6647_v51 = vsub.f32 1.5, %v6646_v38 }
 0x643   : > { %7802 = vadd.xlane.f32.xlu1 %v7801_v25  ;;  %v6648_v25 = vmul.f32 %v9234_v5, %v6647_v51 }
 0x645   : > { %v6652_v55 = vsel %vm6651_vm15, %v9234_v5, %v6648_v25  ;;  %v13688_v5 = vpop.permute.xlu0 %7720 }
 0x646   : > { %v6731_v34 = vmul.f32 %v13646_v35, %v6652_v55  ;;  %v6553_v55 = vadd.f32 1e-06, %v6519_v45  ;;  %v7798_v45 = vsel %vm6159_vm3, %v7741_v20, 0.0 }
 0x648   : > { %vm6629_vm10 = vweird.f32 %v6553_v55 }
 0x64b   : > { %7772 = vadd.xlane.f32.xlu1 %v7771_v49 }
 0x64f   : > { %6761 = vrot.lane.b32.xlu2 %v6726_v33, %s9534_s21 }
 0x659   : > { %v6531_v16 = vpop.xlane.xlu2 %6530  ;;  %7796 = vadd.xlane.f32.xlu0 %v7795_v31 }
 0x65a   : > { %v6557_v30 = vadd.f32 1e-06, %v6531_v16 }
 0x65c   : > { %9235 = vrsqrt.f32 %v6557_v30  ;;  %vm6669_vm6 = vweird.f32 %v6557_v30 }
 0x661   : > { %v6540_v9 = vpop.xlane.xlu2 %6539 }
 0x662   : > { %v9236_v49 = vpop.eup %9235  ;;  %v6560_v13 = vadd.f32 1e-06, %v6540_v9 }
 0x663   : > { %v6664_v33 = vmul.f32 %v9236_v49, %v6557_v30  ;;  %vm6670_vm12 = vweird.f32 %v9236_v49 }
 0x664   : > { %6771 = vrot.lane.b32.xlu1 %v6731_v34, %s9534_s21  ;;  %9237 = vrsqrt.f32 %v6560_v13  ;;  %vm6671_vm0 = vmor %vm6669_vm6, %vm6670_vm12  ;;  %v13692_v34 = vpop.xlane.xlu0 %6527  ;;  %vm6699_vm8 = vweird.f32 %v6560_v13 }
 0x665   : > { %v6665_v38 = vmul.f32 %v9236_v49, %v6664_v33  ;;  %9239 = vrsqrt.f32 %v6553_v55 }
 0x667   : > { %v6666_v29 = vmul.f32 0.5, %v6665_v38  ;;  %v7777_v38 = vsel %vm6159_vm3, %v7727_v27, 0.0 }
 0x669   : > { %v6667_v16 = vsub.f32 1.5, %v6666_v29  ;;  %v6534_v29 = vpop.xlane.xlu1 %6533 }
 0x66a   : > { %v9238_v31 = vpop.eup %9237 }
 0x66b   : > { %v6668_v51 = vmul.f32 %v9236_v49, %v6667_v16  ;;  %v6694_v9 = vmul.f32 %v9238_v31, %v6560_v13  ;;  %vm6700_vm5 = vweird.f32 %v9238_v31 }
 0x66c   : > { %vm6701_vm9 = vmor %vm6699_vm8, %vm6700_vm5 }
 0x66d   : > { %v6672_v0 = vsel %vm6671_vm0, %v9236_v49, %v6668_v51  ;;  %v6695_v11 = vmul.f32 %v9238_v31, %v6694_v9  ;;  %v9240_v49 = vpop.eup %9239 }
 0x66e   : > { %v6733_v25 = vmul.f32 %v13646_v35, %v6672_v0  ;;  %v6624_v16 = vmul.f32 %v9240_v49, %v6553_v55  ;;  %v13698_v0 = vpop.xlane.xlu0 %6536  ;;  %vm6630_vm11 = vweird.f32 %v9240_v49 }
 0x66f   : > { %v6696_v33 = vmul.f32 0.5, %v6695_v11  ;;  %v6558_v11 = vadd.f32 1e-06, %v6534_v29  ;;  %vm6631_vm13 = vmor %vm6629_vm10, %vm6630_vm11 }
 0x670   : > { %6775 = vrot.lane.b32.xlu0 %v6733_v25, %s9534_s21  ;;  %v6625_v27 = vmul.f32 %v9240_v49, %v6624_v16 }
 0x671   : > { %v6697_v30 = vsub.f32 1.5, %v6696_v33  ;;  %9241 = vrsqrt.f32 %v6558_v11  ;;  %v6543_v29 = vpop.xlane.xlu1 %6542  ;;  %vm6679_vm2 = vweird.f32 %v6558_v11 }
 0x672   : > { %v6626_v9 = vmul.f32 0.5, %v6625_v27  ;;  %v6561_v16 = vadd.f32 1e-06, %v6543_v29 }
 0x673   : > { %v6698_v51 = vmul.f32 %v9238_v31, %v6697_v30  ;;  %v6756_v30 = vpop.permute.xlu2 %6755 }
 0x674   : > { %v6803_v13 = vmul.f32 %v6756_v30, %v13430_v28  ;;  %9243 = vrsqrt.f32 %v6561_v16  ;;  %vm6709_vm14 = vweird.f32 %v6561_v16 }
 0x675   : > { %v6702_v25 = vsel %vm6701_vm9, %v9238_v31, %v6698_v51 }
 0x676   : > { %v13704_v33 = vpop.xlane.xlu0 %6545 }
 0x677   : > { %v9242_v20 = vpop.eup %9241 }
 0x678   : > { %7778 = vadd.xlane.f32.xlu2 %v7777_v38  ;;  %7416 = vrot.lane.b32.xlu0 %v13147_v12, %s9536_s30  ;;  %v6736_v12 = vmul.f32 %v13646_v35, %v6702_v25  ;;  %v6627_v38 = vsub.f32 1.5, %v6626_v9  ;;  %vm6680_vm1 = vweird.f32 %v9242_v20 }
 0x679   : > { %v6758_v29 = vpop.permute.xlu1 %6757  ;;  %vm6681_vm7 = vmor %vm6679_vm2, %vm6680_vm1 }
 0x67a   : > { %v6628_v31 = vmul.f32 %v9240_v49, %v6627_v38  ;;  %v9244_v30 = vpop.eup %9243 }
 0x67b   : > { %v6704_v55 = vmul.f32 %v9244_v30, %v6561_v16  ;;  %vm6710_vm4 = vweird.f32 %v9244_v30 }
 0x67c   : > { %v6632_v27 = vsel %vm6631_vm13, %v9240_v49, %v6628_v31  ;;  %vm6711_vm15 = vmor %vm6709_vm14, %vm6710_vm4 }
 0x67d   : > { %v6729_v9 = vmul.f32 %v13646_v35, %v6632_v27 }
 0x67e   : > { %v7815_v25 = vpop.xlane.xlu0 %7814 }
 0x680   : > { %7799 = vadd.xlane.f32.xlu2 %v7798_v45  ;;  %7434 = vrot.lane.b32.xlu0 %v13321_v22, %s9536_s30  ;;  %v7792_v45 = vsel %vm6159_vm3, %v13683_v41, 0.0  ;;  %v6674_v22 = vmul.f32 %v9242_v20, %v6558_v11  ;;  %v7831_v41 = vadd.f32 1e-06, %v7815_v25 }
 0x681   : > { %v7791_v25 = vpop.xlane.xlu1 %7790 }
 0x682   : > { %v6675_v51 = vmul.f32 %v9242_v20, %v6674_v22  ;;  %9245 = vrsqrt.f32 %v7831_v41  ;;  %v6705_v22 = vmul.f32 %v9244_v30, %v6704_v55  ;;  %vm7988_vm6 = vweird.f32 %v7831_v41 }
 0x688   : > { %6781 = vrot.lane.b32.xlu0 %v6736_v12, %s9534_s21  ;;  %v6676_v12 = vmul.f32 0.5, %v6675_v51  ;;  %v9246_v49 = vpop.eup %9245 }
 0x689   : > { %v7983_v51 = vmul.f32 %v9246_v49, %v7831_v41  ;;  %vm7989_vm12 = vweird.f32 %v9246_v49 }
 0x68a   : > { %v6677_v38 = vsub.f32 1.5, %v6676_v12  ;;  %vm7990_vm0 = vmor %vm7988_vm6, %vm7989_vm12 }
 0x68b   : > { %v7984_v12 = vmul.f32 %v9246_v49, %v7983_v51 }
 0x68d   : > { %v7985_v11 = vmul.f32 0.5, %v7984_v12 }
 0x68e   : > { %7793 = vadd.xlane.f32.xlu1 %v7792_v45  ;;  %v6678_v45 = vmul.f32 %v9242_v20, %v6677_v38 }
 0x690   : > { %6827 = vrot.lane.b32.xlu0 %v6803_v13, %s9527_s19  ;;  %v6682_v31 = vsel %vm6681_vm7, %v9242_v20, %v6678_v45  ;;  %v7986_v20 = vsub.f32 1.5, %v7985_v11  ;;  %v13722_v45 = vpop.permute.xlu0 %6759 }
 0x691   : > { %v6734_v27 = vmul.f32 %v13646_v35, %v6682_v31 }
 0x698   : > { %6767 = vrot.lane.b32.xlu2 %v6729_v9, %s9534_s21  ;;  %7436 = vrot.lane.b32.xlu0 %v13263_v54, %s9536_s30  ;;  %v6706_v54 = vmul.f32 0.5, %v6705_v22  ;;  %v7823_v9 = vadd.f32 1e-06, %v7791_v25  ;;  %v7987_v25 = vmul.f32 %v9246_v49, %v7986_v20 }
 0x69a   : > { %v6707_v38 = vsub.f32 1.5, %v6706_v54  ;;  %9247 = vrsqrt.f32 %v7823_v9  ;;  %vm7908_vm8 = vweird.f32 %v7823_v9 }
 0x6a0   : > { %7424 = vrot.lane.b32.xlu0 %v13158_v36, %s9536_s30  ;;  %v6708_v36 = vmul.f32 %v9244_v30, %v6707_v38  ;;  %v9248_v51 = vpop.eup %9247 }
 0x6a1   : > { %v7903_v16 = vmul.f32 %v9248_v51, %v7823_v9  ;;  %vm7909_vm5 = vweird.f32 %v9248_v51 }
 0x6a2   : > { %v7788_v13 = vpop.xlane.xlu2 %7787  ;;  %v6712_v31 = vsel %vm6711_vm15, %v9244_v30, %v6708_v36  ;;  %v7991_v30 = vsel %vm7990_vm0, %v9246_v49, %v7987_v25  ;;  %v6559_v25 = vadd.f32 1e-06, %v13698_v0  ;;  %vm7910_vm9 = vmor %vm7908_vm8, %vm7909_vm5 }
 0x6a3   : > { %v7822_v55 = vadd.f32 1e-06, %v7788_v13  ;;  %v13729_v13 = vpop.xlane.xlu0 %7784  ;;  %v7904_v12 = vmul.f32 %v9248_v51, %v7903_v16  ;;  %v8007_v38 = vmul.f32 %v13646_v35, %v7991_v30  ;;  %v6804_v16 = vmul.f32 %v6758_v29, %v13554_v39 }
 0x6a4   : > { %vm6689_vm14 = vweird.f32 %v6559_v25 }
 0x6a5   : > { %9249 = vrsqrt.f32 %v7822_v55  ;;  %v7905_v36 = vmul.f32 0.5, %v7904_v12  ;;  %vm7898_vm13 = vweird.f32 %v7822_v55 }
 0x6a7   : > { %6777 = vrot.lane.b32.xlu1 %v6734_v27, %s9534_s21  ;;  %v6556_v27 = vadd.f32 1e-06, %v13692_v34 }
 0x6a9   : > { %9251 = vrsqrt.f32 %v6556_v27  ;;  %vm6659_vm2 = vweird.f32 %v6556_v27 }
 0x6aa   : > { %v13718_v28 = vpop.xlane.xlu2 %7808  ;;  %9253 = vrsqrt.f32 %v6559_v25 }
 0x6ab   : > { %v9250_v34 = vpop.eup %9249 }
 0x6ac   : > { %v7893_v20 = vmul.f32 %v9250_v34, %v7822_v55  ;;  %vm7899_vm11 = vweird.f32 %v9250_v34  ;;  %v6562_v55 = vadd.f32 1e-06, %v13704_v33 }
 0x6ad   : > { %vm7900_vm1 = vmor %vm7898_vm13, %vm7899_vm11 }
 0x6ae   : > { %v7894_v49 = vmul.f32 %v9250_v34, %v7893_v20  ;;  %9255 = vrsqrt.f32 %v6562_v55  ;;  %vm6719_vm6 = vweird.f32 %v6562_v55 }
 0x6af   : > { %7418 = vrot.lane.b32.xlu1 %v13267_v60, %s9536_s30  ;;  %v6737_v60 = vmul.f32 %v13646_v35, %v6712_v31  ;;  %v9252_v11 = vpop.eup %9251  ;;  %v7768_v31 = vsel %vm6159_vm3, %v13688_v5, 0.0 }
 0x6b0   : > { %v6654_v41 = vmul.f32 %v9252_v11, %v6556_v27  ;;  %v7895_v12 = vmul.f32 0.5, %v7894_v49  ;;  %v9254_v20 = vpop.eup %9253  ;;  %vm6660_vm10 = vweird.f32 %v9252_v11 }
 0x6b1   : > { %vm6661_vm7 = vmor %vm6659_vm2, %vm6660_vm10  ;;  %vm6690_vm4 = vweird.f32 %v9254_v20 }
 0x6b2   : > { %v6762_v22 = vpop.permute.xlu2 %6761  ;;  %vm6691_vm15 = vmor %vm6689_vm14, %vm6690_vm4 }
 0x6b3   : > { %v6806_v54 = vmul.f32 %v6762_v22, %v13450_v1  ;;  %v6764_v22 = vpop.permute.xlu0 %6763 }
 0x6b4   : > { %v6807_v27 = vmul.f32 %v6764_v22, %v13416_v58 }
 0x6b5   : > { %6833 = vrot.lane.b32.xlu0 %v6806_v54, %s9527_s19  ;;  %v7906_v54 = vsub.f32 1.5, %v7905_v36 }
 0x6b7   : > { %6783 = vrot.lane.b32.xlu1 %v6737_v60, %s9534_s21  ;;  %v6655_v60 = vmul.f32 %v9252_v11, %v6654_v41  ;;  %v7907_v30 = vmul.f32 %v9248_v51, %v7906_v54 }
 0x6b9   : > { %v7911_v36 = vsel %vm7910_vm9, %v9248_v51, %v7907_v30 }
 0x6ba   : > { %v7999_v29 = vmul.f32 %v13646_v35, %v7911_v36 }
 0x6bb   : > { %v13742_v5 = vpop.xlane.xlu0 %7805 }
 0x6bd   : > { %8054 = vrot.lane.b32.xlu0 %v8007_v38, %s9534_s21  ;;  %v7896_v38 = vsub.f32 1.5, %v7895_v12 }
 0x6bf   : > { %7422 = vrot.lane.b32.xlu1 %v13396_v44, %s9536_s30  ;;  %v6656_v44 = vmul.f32 0.5, %v6655_v60  ;;  %v7897_v41 = vmul.f32 %v9250_v34, %v7896_v38  ;;  %v7812_v38 = vpop.xlane.xlu1 %7811 }
 0x6c1   : > { %7769 = vadd.xlane.f32.xlu2 %v7768_v31  ;;  %v6657_v0 = vsub.f32 1.5, %v6656_v44  ;;  %v6684_v31 = vmul.f32 %v9254_v20, %v6559_v25  ;;  %v7901_v54 = vsel %vm7900_vm1, %v9250_v34, %v7897_v41 }
 0x6c2   : > { %v7998_v60 = vmul.f32 %v13646_v35, %v7901_v54 }
 0x6c3   : > { %v13746_v9 = vpop.xlane.xlu0 %7775  ;;  %v6685_v49 = vmul.f32 %v9254_v20, %v6684_v31 }
 0x6c5   : > { %7426 = vrot.lane.b32.xlu0 %v13410_v62, %s9536_s30  ;;  %v6658_v62 = vmul.f32 %v9252_v11, %v6657_v0  ;;  %v6686_v30 = vmul.f32 0.5, %v6685_v49  ;;  %v9256_v0 = vpop.eup %9255  ;;  %v7830_v49 = vadd.f32 1e-06, %v7812_v38 }
 0x6c6   : > { %v6714_v41 = vmul.f32 %v9256_v0, %v6562_v55  ;;  %vm6720_vm12 = vweird.f32 %v9256_v0 }
 0x6c7   : > { %6829 = vrot.lane.b32.xlu1 %v6804_v16, %s9527_s19  ;;  %v6662_v51 = vsel %vm6661_vm7, %v9252_v11, %v6658_v62  ;;  %v6687_v44 = vsub.f32 1.5, %v6686_v30  ;;  %9257 = vrsqrt.f32 %v7830_v49  ;;  %vm6721_vm0 = vmor %vm6719_vm6, %vm6720_vm12  ;;  %vm7978_vm8 = vweird.f32 %v7830_v49 }
 0x6c8   : > { %v6732_v16 = vmul.f32 %v13646_v35, %v6662_v51 }
 0x6c9   : > { %v6688_v34 = vmul.f32 %v9254_v20, %v6687_v44 }
 0x6cb   : > { %v6770_v12 = vpop.permute.xlu0 %6769  ;;  %v6692_v36 = vsel %vm6691_vm15, %v9254_v20, %v6688_v34 }
 0x6cc   : > { %v6810_v33 = vmul.f32 %v6770_v12, %v13432_v56  ;;  %v6735_v22 = vmul.f32 %v13646_v35, %v6692_v36 }
 0x6cd   : > { %v9258_v34 = vpop.eup %9257 }
 0x6ce   : > { %v7973_v38 = vmul.f32 %v9258_v34, %v7830_v49  ;;  %vm7979_vm5 = vweird.f32 %v9258_v34 }
 0x6cf   : > { %8038 = vrot.lane.b32.xlu1 %v7999_v29, %s9534_s21  ;;  %v13760_v29 = vpop.xlane.xlu1 %7781  ;;  %vm7980_vm9 = vmor %vm7978_vm8, %vm7979_vm5 }
 0x6d3   : > { %v13757_v11 = vpop.xlane.xlu0 %7796 }
 0x6d7   : > { %8036 = vrot.lane.b32.xlu1 %v7998_v60, %s9534_s21  ;;  %v6766_v54 = vpop.permute.xlu1 %6765 }
 0x6d9   : > { %6773 = vrot.lane.b32.xlu2 %v6732_v16, %s9534_s21 }
 0x6df   : > { %6835 = vrot.lane.b32.xlu1 %v6807_v27, %s9527_s19  ;;  %v13773_v16 = vpop.xlane.xlu1 %7802 }
 0x6e1   : > { %7432 = vrot.lane.b32.xlu2 %v13507_v37, %s9536_s30  ;;  %v6715_v37 = vmul.f32 %v9256_v0, %v6714_v41 }
 0x6e2   : > { %v6776_v62 = vpop.permute.xlu0 %6775 }
 0x6e3   : > { %v6813_v25 = vmul.f32 %v6776_v62, %v13452_v19  ;;  %v6716_v20 = vmul.f32 0.5, %v6715_v37 }
 0x6e5   : > { %v6717_v60 = vsub.f32 1.5, %v6716_v20 }
 0x6e7   : > { %6841 = vrot.lane.b32.xlu1 %v6810_v33, %s9527_s19  ;;  %v6718_v30 = vmul.f32 %v9256_v0, %v6717_v60  ;;  %v13780_v36 = vpop.xlane.xlu1 %7772  ;;  %v7974_v33 = vmul.f32 %v9258_v34, %v7973_v38 }
 0x6e9   : > { %6779 = vrot.lane.b32.xlu2 %v6735_v22, %s9534_s21  ;;  %v6722_v27 = vsel %vm6721_vm0, %v9256_v0, %v6718_v30  ;;  %v7975_v22 = vmul.f32 0.5, %v7974_v33  ;;  %v6805_v0 = vmul.f32 %v13722_v45, %v13373_v23 }
 0x6ea   : > { %v7417_v60 = vpop.permute.xlu0 %7416 }
 0x6eb   : > { %v13765_v31 = vpop.xlane.xlu2 %7778  ;;  %v7976_v55 = vsub.f32 1.5, %v7975_v22 }
 0x6ed   : > { %v7977_v62 = vmul.f32 %v9258_v34, %v7976_v55  ;;  %v7829_v55 = vadd.f32 1e-06, %v13718_v28 }
 0x6ef   : > { %6936 = vrot.lane.b32.xlu1 %v6813_v25, %s9527_s19  ;;  %v6772_v41 = vpop.permute.xlu1 %6771  ;;  %v7981_v25 = vsel %vm7980_vm9, %v9258_v34, %v7977_v62  ;;  %vm7968_vm2 = vweird.f32 %v7829_v55 }
 0x6f0   : > { %v6811_v33 = vmul.f32 %v6772_v41, %v13576_v26 }
 0x6f1   : > { %7420 = vrot.lane.b32.xlu2 %v13194_v63, %s9536_s30  ;;  %v6738_v63 = vmul.f32 %v13646_v35, %v6722_v27 }
 0x6f2   : > { %v13797_v38 = vpop.permute.xlu0 %7434 }
 0x6f3   : > { %v13771_v51 = vpop.xlane.xlu2 %7799 }
 0x6f9   : > { %7438 = vrot.lane.b32.xlu2 %v13513_v21, %s9536_s30  ;;  %v7821_v21 = vadd.f32 1e-06, %v13729_v13  ;;  %v7464_v13 = vsel %vm6159_vm3, %v7417_v60, 0.0  ;;  %v7820_v60 = vadd.f32 1e-06, %v13760_v29 }
 0x6fa   : > { %v6782_v62 = vpop.permute.xlu0 %6781 }
 0x6fb   : > { %v6768_v12 = vpop.permute.xlu2 %6767  ;;  %9259 = vrsqrt.f32 %v7821_v21  ;;  %vm7888_vm10 = vweird.f32 %v7821_v21  ;;  %vm7878_vm14 = vweird.f32 %v7820_v60 }
 0x6fc   : > { %v6809_v44 = vmul.f32 %v6768_v12, %v13471_v40  ;;  %9261 = vrsqrt.f32 %v7829_v55 }
 0x6fd   : > { %9263 = vrsqrt.f32 %v7820_v60 }
 0x6fe   : > { %6839 = vrot.lane.b32.xlu0 %v6809_v44, %s9527_s19  ;;  %v6808_v44 = vmul.f32 %v6766_v54, %v13569_v43 }
 0x701   : > { %6785 = vrot.lane.b32.xlu2 %v6738_v63, %s9534_s21  ;;  %v13788_v37 = vpop.xlane.xlu1 %7793  ;;  %v9260_v20 = vpop.eup %9259 }
 0x702   : > { %v7883_v30 = vmul.f32 %v9260_v20, %v7821_v21  ;;  %vm7889_vm11 = vweird.f32 %v9260_v20  ;;  %v9262_v41 = vpop.eup %9261  ;;  %v13812_v21 = vpop.permute.xlu0 %6827  ;;  %v13930_v19 = vadd.f32 1e-06, %v13788_v37 }
 0x703   : > { %vm7890_vm13 = vmor %vm7888_vm10, %vm7889_vm11  ;;  %v7963_v28 = vmul.f32 %v9262_v41, %v7829_v55  ;;  %vm7969_vm1 = vweird.f32 %v9262_v41 }
 0x704   : > { %v7884_v45 = vmul.f32 %v9260_v20, %v7883_v30  ;;  %vm7970_vm7 = vmor %vm7968_vm2, %vm7969_vm1 }
 0x705   : > { %v7964_v29 = vmul.f32 %v9262_v41, %v7963_v28 }
 0x706   : > { %v7885_v27 = vmul.f32 0.5, %v7884_v45 }
 0x708   : > { %v7886_v34 = vsub.f32 1.5, %v7885_v27  ;;  %v9264_v27 = vpop.eup %9263 }
 0x709   : > { %7440 = vrot.lane.b32.xlu2 %v13343_v8, %s9536_s30  ;;  %v8006_v8 = vmul.f32 %v13646_v35, %v7981_v25  ;;  %vm7879_vm4 = vweird.f32 %v9264_v27 }
 0x70a   : > { %v7887_v22 = vmul.f32 %v9260_v20, %v7886_v34  ;;  %v7873_v34 = vmul.f32 %v9264_v27, %v7820_v60  ;;  %vm7880_vm15 = vmor %vm7878_vm14, %vm7879_vm4 }
 0x70c   : > { %v7891_v54 = vsel %vm7890_vm13, %v9260_v20, %v7887_v22  ;;  %v7828_v20 = vadd.f32 1e-06, %v13742_v5  ;;  %v7874_v5 = vmul.f32 %v9264_v27, %v7873_v34 }
 0x70d   : > { %v7997_v25 = vmul.f32 %v13646_v35, %v7891_v54  ;;  %v13824_v54 = vpop.permute.xlu0 %7436 }
 0x70e   : > { %9265 = vrsqrt.f32 %v7828_v20  ;;  %vm7958_vm6 = vweird.f32 %v7828_v20 }
 0x711   : > { %6831 = vrot.lane.b32.xlu2 %v6805_v0, %s9527_s19 }
 0x715   : > { %v13830_v34 = vpop.permute.xlu0 %7424 }
 0x719   : > { %v6778_v12 = vpop.permute.xlu1 %6777  ;;  %8052 = vrot.lane.b32.xlu2 %v8006_v8, %s9534_s21  ;;  %7465 = vadd.xlane.f32.xlu1 %v7464_v13 }
 0x71a   : > { %v6814_v13 = vmul.f32 %v6778_v12, %v13586_v18  ;;  %v7965_v12 = vmul.f32 0.5, %v7964_v29 }
 0x71c   : > { %v7966_v22 = vsub.f32 1.5, %v7965_v12 }
 0x71e   : > { %v7967_v26 = vmul.f32 %v9262_v41, %v7966_v22 }
 0x721   : > { %v7419_v63 = vpop.permute.xlu1 %7418  ;;  %6837 = vrot.lane.b32.xlu2 %v6808_v44, %s9527_s19  ;;  %v6816_v44 = vmul.f32 %v6782_v62, %v13487_v61  ;;  %v7875_v62 = vmul.f32 0.5, %v7874_v5 }
 0x722   : > { %v7467_v49 = vsel %vm6159_vm3, %v7419_v63, 0.0 }
 0x723   : > { %7468 = vadd.xlane.f32.xlu1 %v7467_v49 }
 0x729   : > { %v13801_v0 = vpop.permute.xlu1 %6783  ;;  %6932 = vrot.lane.b32.xlu2 %v6811_v33, %s9527_s19 }
 0x731   : > { %v13806_v8 = vpop.permute.xlu1 %7422  ;;  %8034 = vrot.lane.b32.xlu2 %v7997_v25, %s9534_s21  ;;  %v9266_v25 = vpop.eup %9265 }
 0x732   : > { %vm7959_vm12 = vweird.f32 %v9266_v25 }
 0x733   : > { %vm7960_vm0 = vmor %vm7958_vm6, %vm7959_vm12 }
 0x734   : > { %v13809_v30 = vpop.xlane.xlu2 %7769 }
 0x739   : > { %v13815_v45 = vpop.permute.xlu1 %6829  ;;  %6938 = vrot.lane.b32.xlu2 %v6814_v13, %s9527_s19  ;;  %v7953_v13 = vmul.f32 %v9266_v25, %v7828_v20  ;;  %v13855_v20 = vadd.f32 1e-06, %v13773_v16 }
 0x73b   : > { %vm7948_vm2 = vweird.f32 %v13855_v20 }
 0x73c   : > { %v6774_v63 = vpop.permute.xlu2 %6773  ;;  %6942 = vrot.lane.b32.xlu1 %v6816_v44, %s9527_s19  ;;  %v7876_v44 = vsub.f32 1.5, %v7875_v62 }
 0x73d   : > { %v6812_v49 = vmul.f32 %v6774_v63, %v13497_v47  ;;  %v7954_v63 = vmul.f32 %v9266_v25, %v7953_v13  ;;  %v13837_v13 = vpop.permute.xlu0 %6833 }
 0x73e   : > { %v7877_v39 = vmul.f32 %v9264_v27, %v7876_v44 }
 0x73f   : > { %6934 = vrot.lane.b32.xlu0 %v6812_v49, %s9527_s19  ;;  %v7971_v49 = vsel %vm7970_vm7, %v9262_v41, %v7967_v26  ;;  %v7955_v5 = vmul.f32 0.5, %v7954_v63 }
 0x740   : > { %v8005_v47 = vmul.f32 %v13646_v35, %v7971_v49  ;;  %v7881_v62 = vsel %vm7880_vm15, %v9264_v27, %v7877_v39 }
 0x741   : > { %v13822_v33 = vpop.permute.xlu1 %8038  ;;  %v7956_v22 = vsub.f32 1.5, %v7955_v5  ;;  %v7996_v41 = vmul.f32 %v13646_v35, %v7881_v62 }
 0x743   : > { %v7957_v44 = vmul.f32 %v9266_v25, %v7956_v22 }
 0x744   : > { %v7433_v28 = vpop.permute.xlu2 %7432 }
 0x745   : > { %v7961_v39 = vsel %vm7960_vm0, %v9266_v25, %v7957_v44  ;;  %v13851_v5 = vpop.permute.xlu0 %8054 }
 0x746   : > { %v8004_v63 = vmul.f32 %v13646_v35, %v7961_v39  ;;  %v13875_v39 = vadd.f32 1e-06, %v13771_v51  ;;  %v13887_v51 = vadd.f32 1e-06, %v13515_v17 }
 0x747   : > { %7442 = vrot.lane.b32.xlu0 %v13400_v59, %s9536_s30  ;;  %v7819_v59 = vadd.f32 1e-06, %v13765_v31 }
 0x748   : > { %vm7938_vm6 = vweird.f32 %v13875_v39 }
 0x749   : > { %v13828_v29 = vpop.permute.xlu1 %8036  ;;  %9267 = vrsqrt.f32 %v7819_v59  ;;  %vm7868_vm8 = vweird.f32 %v7819_v59 }
 0x74c   : > { %v6780_v12 = vpop.permute.xlu2 %6779 }
 0x74d   : > { %v6815_v35 = vmul.f32 %v6780_v12, %v13533_v7 }
 0x74f   : > { %8050 = vrot.lane.b32.xlu0 %v8005_v47, %s9534_s21  ;;  %v13844_v47 = vadd.f32 1e-06, %v13746_v9  ;;  %v9268_v60 = vpop.eup %9267  ;;  %v7488_v9 = vsel %vm6159_vm3, %v7433_v28, 0.0  ;;  %v13870_v28 = vadd.f32 1e-06, %v13757_v11 }
 0x750   : > { %v7863_v49 = vmul.f32 %v9268_v60, %v7819_v59  ;;  %vm7869_vm5 = vweird.f32 %v9268_v60 }
 0x751   : > { %v13835_v55 = vpop.permute.xlu1 %6835  ;;  %9269 = vrsqrt.f32 %v13844_v47  ;;  %vm7870_vm9 = vmor %vm7868_vm8, %vm7869_vm5  ;;  %vm7858_vm10 = vweird.f32 %v13844_v47  ;;  %vm7928_vm15 = vweird.f32 %v13870_v28 }
 0x752   : > { %v7864_v22 = vmul.f32 %v9268_v60, %v7863_v49  ;;  %9271 = vrsqrt.f32 %v13855_v20 }
 0x753   : > { %9273 = vrsqrt.f32 %v13870_v28 }
 0x754   : > { %v13839_v26 = vpop.permute.xlu2 %7420  ;;  %v7865_v16 = vmul.f32 0.5, %v7864_v22  ;;  %9275 = vrsqrt.f32 %v13875_v39 }
 0x755   : > { %9277 = vrsqrt.f32 %v13887_v51 }
 0x757   : > { %8032 = vrot.lane.b32.xlu0 %v7996_v41, %s9534_s21  ;;  %v13858_v25 = vpop.eup %9269  ;;  %v7491_v41 = vsel %vm6159_vm3, %v13797_v38, 0.0 }
 0x758   : > { %v7853_v44 = vmul.f32 %v13858_v25, %v13844_v47  ;;  %v13878_v49 = vpop.eup %9271  ;;  %vm7859_vm11 = vweird.f32 %v13858_v25 }
 0x759   : > { %v6842_v31 = vpop.permute.xlu1 %6841  ;;  %v7943_v11 = vmul.f32 %v13878_v49, %v13855_v20  ;;  %vm7860_vm13 = vmor %vm7858_vm10, %vm7859_vm11  ;;  %vm7949_vm1 = vweird.f32 %v13878_v49 }
 0x75a   : > { %8985 = vmatpush.xpose.msk.msra.mxu2 %vm6159_vm3, %v6842_v31  ;;  %v13872_v31 = vpop.permute.xlu0 %7426  ;;  %v7854_v12 = vmul.f32 %v13858_v25, %v7853_v44  ;;  %v13895_v44 = vpop.eup %9273  ;;  %vm7950_vm7 = vmor %vm7948_vm2, %vm7949_vm1 }
 0x75b   : > { %v13898_v23 = vpop.eup %9275  ;;  %vm7929_vm4 = vweird.f32 %v13895_v44 }
 0x75c   : > { %v13847_v27 = vpop.permute.xlu2 %7438  ;;  %vm7939_vm14 = vweird.f32 %v13898_v23  ;;  %vm13985_vm12 = vmor %vm7928_vm15, %vm7929_vm4  ;;  %vm7918_vm15 = vweird.f32 %v13930_v19 }
 0x75d   : > { %vm7940_vm0 = vmor %vm7938_vm6, %vm7939_vm14 }
 0x75f   : > { %8048 = vrot.lane.b32.xlu0 %v8004_v63, %s9534_s21  ;;  %v7866_v63 = vsub.f32 1.5, %v7865_v16 }
 0x761   : > { %v7867_v22 = vmul.f32 %v9268_v60, %v7866_v63 }
 0x762   : > { %7489 = vadd.xlane.f32.xlu2 %v7488_v9  ;;  %v7855_v9 = vmul.f32 0.5, %v7854_v12  ;;  %v7944_v12 = vmul.f32 %v13878_v49, %v7943_v11  ;;  %v7933_v11 = vmul.f32 %v13898_v23, %v13875_v39 }
 0x763   : > { %v7871_v63 = vsel %vm7870_vm9, %v9268_v60, %v7867_v22  ;;  %v13917_v22 = vadd.f32 1e-06, %v13483_v10  ;;  %vm6230_vm9 = vweird.f32 %v13887_v51 }
 0x764   : > { %v13860_v62 = vpop.permute.xlu2 %6785  ;;  %v7856_v16 = vsub.f32 1.5, %v7855_v9  ;;  %v7945_v9 = vmul.f32 0.5, %v7944_v12  ;;  %v7934_v18 = vmul.f32 %v13898_v23, %v7933_v11 }
 0x766   : > { %7492 = vadd.xlane.f32.xlu1 %v7491_v41  ;;  %v13892_v41 = vadd.f32 1e-06, %v13809_v30  ;;  %v13909_v30 = vld [vmem:[%s15188_s6] ss:$0 sm:$0xff]  ;;  %v7857_v60 = vmul.f32 %v13858_v25, %v7856_v16  ;;  %v13926_v16 = vpop.eup %9277  ;;  %v7946_v10 = vsub.f32 1.5, %v7945_v9 }
 0x767   : > { %6940 = vrot.lane.b32.xlu0 %v6815_v35, %s9527_s19  ;;  %v7995_v59 = vmul.f32 %v13909_v30, %v7871_v63  ;;  %v6817_v63 = vmul.f32 %v13801_v0, %v13556_v3  ;;  %v6225_v0 = vmul.f32 %v13926_v16, %v13887_v51  ;;  %vm6231_vm5 = vweird.f32 %v13926_v16 }
 0x768   : > { %9279 = vrsqrt.f32 %v13892_v41  ;;  %v7861_v47 = vsel %vm7860_vm13, %v13858_v25, %v7857_v60  ;;  %v7947_v25 = vmul.f32 %v13878_v49, %v7946_v10  ;;  %v7935_v60 = vmul.f32 0.5, %v7934_v18  ;;  %vm14018_vm11 = vmor %vm6230_vm9, %vm6231_vm5 }
 0x769   : > { %9281 = vrsqrt.f32 %v13917_v22  ;;  %v7994_v9 = vmul.f32 %v13909_v30, %v7861_v47  ;;  %vm7838_vm10 = vweird.f32 %v13892_v41 }
 0x76a   : > { %v7936_v18 = vsub.f32 1.5, %v7935_v60 }
 0x76c   : > { %v13881_v38 = vpop.permute.xlu2 %7440 }
 0x76f   : > { %7428 = vrot.lane.b32.xlu0 %v13211_v48, %s9536_s30  ;;  %v7923_v48 = vmul.f32 %v13895_v44, %v13870_v28 }
 0x770   : > { %v6840_v35 = vpop.permute.xlu0 %6839 }
 0x771   : > { %8986 = vmatpush.xpose.msk.msra.mxu2 %vm6159_vm3, %v6840_v35  ;;  %v13922_v35 = vadd.f32 1e-06, %v13780_v36  ;;  %v7924_v12 = vmul.f32 %v13895_v44, %v7923_v48  ;;  %v13935_v36 = vpop.eup %9279 }
 0x772   : > { %v7833_v11 = vmul.f32 %v13935_v36, %v13892_v41  ;;  %vm7839_vm8 = vweird.f32 %v13935_v36 }
 0x773   : > { %9283 = vrsqrt.f32 %v13922_v35  ;;  %v7925_v37 = vmul.f32 0.5, %v7924_v12  ;;  %v13955_v12 = vadd.f32 1e-06, %v13473_v32  ;;  %vm7840_vm13 = vmor %vm7838_vm10, %vm7839_vm8  ;;  %vm7848_vm4 = vweird.f32 %v13922_v35 }
 0x774   : > { %v13901_v17 = vpop.permute.xlu2 %6831  ;;  %9285 = vrsqrt.f32 %v13930_v19  ;;  %v7834_v1 = vmul.f32 %v13935_v36, %v7833_v11 }
 0x775   : > { %v7926_v10 = vsub.f32 1.5, %v7925_v37  ;;  %9287 = vrsqrt.f32 %v13955_v12  ;;  %vm6250_vm8 = vweird.f32 %v13955_v12 }
 0x777   : > { %8030 = vrot.lane.b32.xlu0 %v7995_v59, %s9534_s21  ;;  %v6818_v59 = vmul.f32 %v13860_v62, %v13598_v6  ;;  %v13958_v62 = vpop.eup %9281  ;;  %v7927_v37 = vmul.f32 %v13895_v44, %v7926_v10 }
 0x778   : > { %v6235_v11 = vmul.f32 %v13958_v62, %v13917_v22 }
 0x779   : > { %v13960_v47 = vpop.eup %9283  ;;  %v7931_v39 = vsel %vm13985_vm12, %v13895_v44, %v7927_v37  ;;  %vm6240_vm12 = vweird.f32 %v13917_v22 }
 0x77a   : > { %6944 = vrot.lane.b32.xlu2 %v6817_v63, %s9527_s19  ;;  %v6226_v63 = vmul.f32 %v13926_v16, %v6225_v0  ;;  %v13966_v0 = vpop.eup %9285  ;;  %vm7849_vm1 = vweird.f32 %v13960_v47 }
 0x77b   : > { %v13996_v28 = vpop.eup %9287  ;;  %vm7919_vm2 = vweird.f32 %v13966_v0  ;;  %vm7850_vm14 = vmor %vm7848_vm4, %vm7849_vm1 }
 0x77c   : > { %v13941_v48 = vpop.permute.xlu2 %8052  ;;  %v6227_v32 = vmul.f32 0.5, %v6226_v63  ;;  %vm7920_vm6 = vmor %vm7918_vm15, %vm7919_vm2  ;;  %vm6251_vm5 = vweird.f32 %v13996_v28 }
 0x77d   : > { %vm6252_vm9 = vmor %vm6250_vm8, %vm6251_vm5 }
 0x77e   : > { %v6228_v63 = vsub.f32 1.5, %v6227_v32 }
 0x77f   : > { %6946 = vrot.lane.b32.xlu0 %v6818_v59, %s9527_s19  ;;  %8028 = vrot.lane.b32.xlu1 %v7994_v9, %s9534_s21  ;;  %v7951_v59 = vsel %vm7950_vm7, %v13878_v49, %v7947_v25  ;;  %v7843_v9 = vmul.f32 %v13960_v47, %v13922_v35  ;;  %v7913_v49 = vmul.f32 %v13966_v0, %v13930_v19  ;;  %v7835_v25 = vmul.f32 0.5, %v7834_v1 }
 0x780   : > { %v8003_v60 = vmul.f32 %v13909_v30, %v7951_v59  ;;  %vm6241_vm7 = vweird.f32 %v13958_v62 }
 0x781   : > { %v7844_v1 = vmul.f32 %v13960_v47, %v7843_v9  ;;  %v7836_v59 = vsub.f32 1.5, %v7835_v25  ;;  %v8001_v9 = vmul.f32 %v13909_v30, %v7931_v39 }
 0x782   : > { %7444 = vrot.lane.b32.xlu2 %v13542_v15, %s9536_s30  ;;  %v7937_v15 = vmul.f32 %v13898_v23, %v7936_v18  ;;  %v13991_v18 = vadd.f32 1e-06, %v13525_v57  ;;  %v6236_v57 = vmul.f32 %v13958_v62, %v6235_v11 }
 0x783   : > { %v7837_v37 = vmul.f32 %v13935_v36, %v7836_v59 }
 0x784   : > { %v6838_v20 = vpop.permute.xlu2 %6837  ;;  %v7941_v32 = vsel %vm7940_vm0, %v13898_v23, %v7937_v15  ;;  %9289 = vrsqrt.f32 %v13991_v18  ;;  %v6237_v15 = vmul.f32 0.5, %v6236_v57  ;;  %vm6242_vm0 = vmor %vm6240_vm12, %vm6241_vm7  ;;  %vm6260_vm10 = vweird.f32 %v13991_v18 }
 0x785   : > { %8987 = vmatpush.xpose.msk.msra.mxu2 %vm6159_vm3, %v6838_v20  ;;  %v6229_v20 = vmul.f32 %v13926_v16, %v6228_v63  ;;  %v8002_v23 = vmul.f32 %v13909_v30, %v7941_v32 }
 0x786   : > { %v6238_v41 = vsub.f32 1.5, %v6237_v15 }
 0x787   : > { %8046 = vrot.lane.b32.xlu0 %v8003_v60, %s9534_s21  ;;  %7446 = vrot.lane.b32.xlu1 %v13359_v14, %s9536_s30  ;;  %v7914_v14 = vmul.f32 %v13966_v0, %v7913_v49  ;;  %v7845_v60 = vmul.f32 0.5, %v7844_v1  ;;  %v6233_v51 = vsel %vm14018_vm11, %v13926_v16, %v6229_v20  ;;  %v7841_v1 = vsel %vm7840_vm13, %v13935_v36, %v7837_v37 }
 0x788   : > { %v6387_v16 = vmul.f32 %v13909_v30, %v6233_v51  ;;  %v6239_v36 = vmul.f32 %v13958_v62, %v6238_v41  ;;  %v14057_v20 = vadd.f32 1e-06, %v13529_v50 }
 0x789   : > { %8988 = vmatpush.xpose.msk.msra.mxu2 %vm6159_vm3, %v13835_v55  ;;  %v6245_v55 = vmul.f32 %v13996_v28, %v13955_v12  ;;  %v7915_v44 = vmul.f32 0.5, %v7914_v14  ;;  %v7846_v63 = vsub.f32 1.5, %v7845_v60 }
 0x78a   : > { %v14033_v14 = vpop.eup %9289  ;;  %v6243_v22 = vsel %vm6242_vm0, %v13958_v62, %v6239_v36  ;;  %v15851_v62 = vld [vmem:[#allocation49_spill] sm:$0xff] }
 0x78b   : > { %v6246_v11 = vmul.f32 %v13996_v28, %v6245_v55  ;;  %v7916_v10 = vsub.f32 1.5, %v7915_v44  ;;  %v7847_v32 = vmul.f32 %v13960_v47, %v7846_v63  ;;  %v6255_v57 = vmul.f32 %v14033_v14, %v13991_v18  ;;  %v15850_v55 = vld [vmem:[#allocation64_spill] sm:$0xff] }
 0x78c   : > { %v6403_v35 = vmul.f32 %v6387_v16, %v15850_v55  ;;  %v6388_v50 = vmul.f32 %v13909_v30, %v6243_v22  ;;  %v6214_v49 = vadd.f32 1e-06, %v15851_v62  ;;  %vm6261_vm11 = vweird.f32 %v14033_v14 }
 0x78d   : > { %8989 = vmatpush.xpose.msk.msra.mxu2 %vm6159_vm3, %v13837_v13  ;;  %v15848_v13 = vld [vmem:[#allocation27_spill] sm:$0xff]  ;;  %v6247_v59 = vmul.f32 0.5, %v6246_v11  ;;  %v7917_v39 = vmul.f32 %v13966_v0, %v7916_v10  ;;  %v6256_v19 = vmul.f32 %v14033_v14, %v6255_v57  ;;  %vm6262_vm13 = vmor %vm6260_vm10, %vm6261_vm11 }
 0x78e   : > { %v14024_v25 = vadd.f32 1e-06, %v15848_v13  ;;  %v15852_v13 = vld [vmem:[#allocation54_spill] sm:$0xff] }
 0x78f   : > { %8044 = vrot.lane.b32.xlu0 %v8002_v23, %s9534_s21  ;;  %8042 = vrot.lane.b32.xlu1 %v8001_v9, %s9534_s21  ;;  %v7851_v23 = vsel %vm7850_vm14, %v13960_v47, %v7847_v32  ;;  %v7921_v9 = vsel %vm7920_vm6, %v13966_v0, %v7917_v39  ;;  %v6248_v44 = vsub.f32 1.5, %v6247_v59  ;;  %v6257_v15 = vmul.f32 0.5, %v6256_v19  ;;  %v15853_v32 = vld [vmem:[#allocation22_spill] sm:$0xff]  ;;  %v15854_v19 = vld [vmem:[#allocation15_spill] sm:$0xff] }
 0x790   : > { %9291 = vrsqrt.f32 %v14024_v25  ;;  %v8000_v37 = vmul.f32 %v13909_v30, %v7921_v9  ;;  %v6404_v51 = vmul.f32 %v6388_v50, %v15852_v13  ;;  %v6215_v59 = vadd.f32 1e-06, %v13523_v42 }
 0x791   : > { %8990 = vmatpush.xpose.msk.msra.mxu2 %vm6159_vm3, %v13901_v17  ;;  %v7992_v17 = vmul.f32 %v13909_v30, %v7841_v1  ;;  %9293 = vrsqrt.f32 %v14057_v20  ;;  %v6249_v0 = vmul.f32 %v13996_v28, %v6248_v44  ;;  %v6258_v63 = vsub.f32 1.5, %v6257_v15 }
 0x792   : > { %9295 = vrsqrt.f32 %v6214_v49  ;;  %vm6270_vm2 = vweird.f32 %v14024_v25  ;;  %v7473_v44 = vsel %vm6159_vm3, %v13806_v8, 0.0  ;;  %vm6280_vm14 = vweird.f32 %v14057_v20 }
 0x793   : > { %v6253_v10 = vsel %vm6252_vm9, %v13996_v28, %v6249_v0  ;;  %v6259_v16 = vmul.f32 %v14033_v14, %v6258_v63  ;;  %v7470_v28 = vsel %vm6159_vm3, %v13839_v26, 0.0  ;;  %9297 = vrsqrt.f32 %v6215_v59 }
 0x794   : > { %v6389_v41 = vmul.f32 %v13909_v30, %v6253_v10  ;;  %v7476_v8 = vsel %vm6159_vm3, %v13830_v34, 0.0  ;;  %vm6290_vm6 = vweird.f32 %v6214_v49  ;;  %vm6300_vm8 = vweird.f32 %v6215_v59 }
 0x795   : > { %8991 = vmatpush.xpose.msk.msra.mxu2 %vm6159_vm3, %v13815_v45  ;;  %v15849_v45 = vld [vmem:[#allocation55_spill] sm:$0xff] }
 0x796   : > { %v9292_v60 = vpop.eup %9291  ;;  %v6405_v39 = vmul.f32 %v6389_v41, %v15853_v32 }
 0x797   : > { %7430 = vrot.lane.b32.xlu0 %v15849_v45, %s9536_s30  ;;  %8024 = vrot.lane.b32.xlu1 %v7992_v17, %s9534_s21  ;;  %v6265_v47 = vmul.f32 %v9292_v60, %v14024_v25  ;;  %v9294_v1 = vpop.eup %9293  ;;  %v6263_v45 = vsel %vm6262_vm13, %v14033_v14, %v6259_v16  ;;  %vm6271_vm1 = vweird.f32 %v9292_v60 }
 0x798   : > { %v6275_v12 = vmul.f32 %v9294_v1, %v14057_v20  ;;  %vm6272_vm7 = vmor %vm6270_vm2, %vm6271_vm1  ;;  %vm6281_vm4 = vweird.f32 %v9294_v1 }
 0x799   : > { %8992 = vmatpush.xpose.msk.msra.mxu2 %vm6159_vm3, %v13812_v21  ;;  %v7993_v21 = vmul.f32 %v13909_v30, %v7851_v23  ;;  %v6266_v11 = vmul.f32 %v9292_v60, %v6265_v47  ;;  %v6390_v23 = vmul.f32 %v13909_v30, %v6263_v45  ;;  %vm6282_vm15 = vmor %vm6280_vm14, %vm6281_vm4  ;;  %v7494_v45 = vsel %vm6159_vm3, %v13824_v54, 0.0 }
 0x79a   : > { %v6276_v57 = vmul.f32 %v9294_v1, %v6275_v12  ;;  %v15856_v12 = vld [vmem:[#allocation63_spill] sm:$0xff]  ;;  %v7479_v54 = vsel %vm6159_vm3, %v13872_v31, 0.0  ;;  %v6937_v31 = vpop.permute.xlu1 %6936 }
 0x79b   : > { %v6267_v17 = vmul.f32 0.5, %v6266_v11  ;;  %v6406_v14 = vmul.f32 %v6390_v23, %v15854_v19  ;;  %v15857_v23 = vld [vmem:[#allocation33_spill] sm:$0xff] }
 0x79c   : > { %8993 = vmatmul.msk.f32.vlgmr.msra.gmra.mxu2 %vm6159_vm3, %v6403_v35  ;;  %v9296_v35 = vpop.eup %9295  ;;  %v6277_v9 = vmul.f32 0.5, %v6276_v57 }
 0x79d   : > { %v6268_v36 = vsub.f32 1.5, %v6267_v17  ;;  %v6285_v42 = vmul.f32 %v9296_v35, %v6214_v49  ;;  %v9298_v50 = vpop.eup %9297  ;;  %vm6291_vm12 = vweird.f32 %v9296_v35 }
 0x79e   : > { %v6295_v0 = vmul.f32 %v9298_v50, %v6215_v59  ;;  %vm6292_vm0 = vmor %vm6290_vm6, %vm6291_vm12  ;;  %vm6301_vm5 = vweird.f32 %v9298_v50  ;;  %v8079_v59 = vmul.f32 %v13822_v33, %v13432_v56  ;;  %v8087_v33 = vmul.f32 %v13851_v5, %v13598_v6 }
 0x79f   : > { %8026 = vrot.lane.b32.xlu0 %v7993_v21, %s9534_s21  ;;  %8040 = vrot.lane.b32.xlu1 %v8000_v37, %s9534_s21  ;;  %v6269_v18 = vmul.f32 %v9292_v60, %v6268_v36  ;;  %v6286_v22 = vmul.f32 %v9296_v35, %v6285_v42  ;;  %v6278_v21 = vsub.f32 1.5, %v6277_v9  ;;  %vm6302_vm9 = vmor %vm6300_vm8, %vm6301_vm5  ;;  %v14117_v9 = vpop.permute.xlu2 %6932  ;;  %s14977_s21 = scalar_lea.vmem %s15189_s7, %s9601_s10  ;;  %s9540_s10 = smov 16  }
 0x7a1   : > { %v6273_v37 = vsel %vm6272_vm7, %v9292_v60, %v6269_v18  ;;  %v6287_v15 = vmul.f32 0.5, %v6286_v22  ;;  %v6279_v25 = vmul.f32 %v9294_v1, %v6278_v21  ;;  %v6296_v60 = vmul.f32 %v9298_v50, %v6295_v0 }
 0x7a2   : > { %v6391_v47 = vmul.f32 %v13909_v30, %v6273_v37  ;;  %v8086_v21 = vmul.f32 %v13941_v48, %v13556_v3  ;;  %v6216_v0 = vadd.f32 1e-06, %v13588_v4  ;;  %v14140_v48 = vpop.xlane.xlu1 %7465 }
 0x7a3   : > { %v6288_v63 = vsub.f32 1.5, %v6287_v15  ;;  %v6283_v10 = vsel %vm6282_vm15, %v9294_v1, %v6279_v25  ;;  %v6297_v17 = vmul.f32 0.5, %v6296_v60  ;;  %v7497_v1 = vsel %vm6159_vm3, %v13847_v27, 0.0 }
 0x7a4   : > { %8994 = vmatmul.msk.f32.gmra.mxu2 %vm6159_vm3, %v6404_v51  ;;  %v15855_v51 = vld [vmem:[#allocation12_spill] sm:$0xff]  ;;  %v6392_v41 = vmul.f32 %v13909_v30, %v6283_v10  ;;  %v7500_v27 = vsel %vm6159_vm3, %v13881_v38, 0.0  ;;  %9299 = vrsqrt.f32 %v6216_v0  ;;  %vm6310_vm10 = vweird.f32 %v6216_v0 }
 0x7a5   : > { %v6407_v11 = vmul.f32 %v6391_v47, %v15855_v51  ;;  %v6289_v16 = vmul.f32 %v9296_v35, %v6288_v63 }
 0x7a7   : > { %v6293_v34 = vsel %vm6292_vm0, %v9296_v35, %v6289_v16  ;;  %v8035_v37 = vpop.permute.xlu2 %8034 }
 0x7a8   : > { %v6393_v36 = vmul.f32 %v13909_v30, %v6293_v34 }
 0x7aa   : > { %v6409_v18 = vmul.f32 %v6393_v36, %v15857_v23  ;;  %v9300_v4 = vpop.eup %9299  ;;  %v14153_v5 = vpop.xlane.xlu1 %7468 }
 0x7ab   : > { %7471 = vadd.xlane.f32.xlu2 %v7470_v28  ;;  %v6408_v28 = vmul.f32 %v6392_v41, %v15856_v12  ;;  %vm6311_vm11 = vweird.f32 %v9300_v4 }
 0x7ac   : > { %8995 = vmatmul.msk.f32.gmra.mxu2 %vm6159_vm3, %v6405_v39  ;;  %v6298_v39 = vsub.f32 1.5, %v6297_v17  ;;  %v14163_v17 = vadd.f32 1e-06, %v13593_v24  ;;  %vm6312_vm13 = vmor %vm6310_vm10, %vm6311_vm11 }
 0x7ae   : > { %v6299_v57 = vmul.f32 %v9298_v50, %v6298_v39 }
 0x7af   : > { %v6939_v47 = vpop.permute.xlu2 %6938 }
 0x7b0   : > { %v6303_v35 = vsel %vm6302_vm9, %v9298_v50, %v6299_v57  ;;  %v8077_v50 = vmul.f32 %v8035_v37, %v13569_v43  ;;  %v8078_v43 = vmul.f32 %v13828_v29, %v13471_v40  ;;  %v6305_v40 = vmul.f32 %v9300_v4, %v6216_v0 }
 0x7b1   : > { %v14092_v26 = vpop.permute.xlu0 %6934  ;;  %v6394_v42 = vmul.f32 %v13909_v30, %v6303_v35  ;;  %v14172_v57 = vadd.f32 1e-06, %v13609_v52 }
 0x7b2   : > { %v6306_v63 = vmul.f32 %v9300_v4, %v6305_v40  ;;  %v15865_v40 = vld [vmem:[#allocation60_spill] sm:$0xff] }
 0x7b3   : > { %7474 = vadd.xlane.f32.xlu2 %v7473_v44 }
 0x7b4   : > { %8996 = vmatmul.msk.f32.gmra.mxu2 %vm6159_vm3, %v6406_v14  ;;  %v15858_v14 = vld [vmem:[#allocation35_spill] sm:$0xff] }
 0x7b5   : > { %v6410_v22 = vmul.f32 %v6394_v42, %v15858_v14 }
 0x7b9   : > { %v14100_v62 = vpop.permute.xlu0 %7442 }
 0x7bb   : > { %7477 = vadd.xlane.f32.xlu2 %v7476_v8 }
 0x7bc   : > { %8997 = vmatmul.msk.f32.gmra.mxu2 %vm6159_vm3, %v6407_v11  ;;  %v15859_v11 = vld [vmem:[#allocation62_spill] sm:$0xff] }
 0x7bd   : > { %v6218_v60 = vadd.f32 1e-06, %v15859_v11 }
 0x7bf   : > { %vm6330_vm14 = vweird.f32 %v6218_v60 }
 0x7c1   : > { %v8051_v20 = vpop.permute.xlu0 %8050 }
 0x7c2   : > { %v8085_v3 = vmul.f32 %v8051_v20, %v13487_v61  ;;  %v6217_v61 = vadd.f32 1e-06, %v13605_v46  ;;  %v6943_v46 = vpop.permute.xlu1 %6942 }
 0x7c4   : > { %8998 = vmatmul.msk.f32.gmra.mxu2 %vm6159_vm3, %v6408_v28  ;;  %9301 = vrsqrt.f32 %v6217_v61  ;;  %vm6320_vm2 = vweird.f32 %v6217_v61 }
 0x7c5   : > { %9303 = vrsqrt.f32 %v6218_v60 }
 0x7c6   : > { %9305 = vrsqrt.f32 %v14163_v17 }
 0x7c7   : > { %9307 = vrsqrt.f32 %v14172_v57 }
 0x7c9   : > { %7498 = vadd.xlane.f32.xlu1 %v7497_v1  ;;  %7495 = vadd.xlane.f32.xlu0 %v7494_v45  ;;  %v8033_v49 = vpop.permute.xlu0 %8032 }
 0x7ca   : > { %v8076_v15 = vmul.f32 %v8033_v49, %v13416_v58  ;;  %v9302_v10 = vpop.eup %9301 }
 0x7cb   : > { %v6315_v41 = vmul.f32 %v9302_v10, %v6217_v61  ;;  %v14165_v28 = vpop.eup %9303  ;;  %vm6321_vm1 = vweird.f32 %v9302_v10 }
 0x7cc   : > { %8999 = vmatmul.msk.f32.gmra.mxu2 %vm6159_vm3, %v6409_v18  ;;  %v6325_v39 = vmul.f32 %v14165_v28, %v6218_v60  ;;  %v14175_v49 = vpop.eup %9305  ;;  %vm6322_vm7 = vmor %vm6320_vm2, %vm6321_vm1  ;;  %vm6331_vm4 = vweird.f32 %v14165_v28 }
 0x7cd   : > { %v6316_v16 = vmul.f32 %v9302_v10, %v6315_v41  ;;  %v6335_v52 = vmul.f32 %v14175_v49, %v14163_v17  ;;  %v14190_v37 = vpop.eup %9307  ;;  %vm14218_vm12 = vmor %vm6330_vm14, %vm6331_vm4  ;;  %vm6341_vm10 = vweird.f32 %v14175_v49  ;;  %vm7029_vm14 = vcmask 523264  }
 0x7ce   : > { %v6326_v24 = vmul.f32 %v14165_v28, %v6325_v39  ;;  %v15869_v39 = vld [vmem:[#allocation41_spill] sm:$0xff] }
 0x7cf   : > { %v6317_v34 = vmul.f32 0.5, %v6316_v16 }
 0x7d0   : > { %v6327_v35 = vmul.f32 0.5, %v6326_v24  ;;  %v9537_v24 = vmov -1e+09  }
 0x7d1   : > { %7501 = vadd.xlane.f32.xlu0 %v7500_v27  ;;  %7480 = vadd.xlane.f32.xlu1 %v7479_v54  ;;  %v8049_v44 = vpop.permute.xlu0 %8048  ;;  %v6318_v1 = vsub.f32 1.5, %v6317_v34  ;;  %v14186_v27 = vadd.f32 1e-06, %v13535_v53  ;;  %v15860_v54 = vld [vmem:[#allocation10_spill] sm:$0xff] }
 0x7d2   : > { %v8084_v58 = vmul.f32 %v8049_v44, %v13533_v7  ;;  %v6307_v7 = vmul.f32 0.5, %v6306_v63  ;;  %v6336_v44 = vmul.f32 %v14175_v49, %v6335_v52  ;;  %v14199_v53 = vld [vmem:[%s15187_s5 + $0x1] ss:$0 sm:$0xff]  ;;  %v15874_v52 = vld [vmem:[#allocation40_spill] sm:$0xff] }
 0x7d3   : > { %8134 = vrot.lane.b32.xlu2 %v8079_v59, %s9535_s27  ;;  %v6319_v42 = vmul.f32 %v9302_v10, %v6318_v1  ;;  %v6328_v59 = vsub.f32 1.5, %v6327_v35  ;;  %9309 = vrsqrt.f32 %v14186_v27  ;;  %vm6078_vm6 = vcmp.ge.s32.totalorder %v14199_v53, %v15865_v40  ;;  %v15866_v63 = vld [vmem:[#allocation58_spill] sm:$0xff]  ;;  %v15876_v40 = vld [vmem:[#allocation17_spill] sm:$0xff] }
 0x7d4   : > { %9000 = vmatmul.msk.f32.gmra.mxu2 %vm6159_vm3, %v6410_v22  ;;  %v6308_v20 = vsub.f32 1.5, %v6307_v7 }
 0x7d5   : > { %v14148_v6 = vpop.xlane.xlu2 %7489 }
 0x7d6   : > { %v6309_v36 = vmul.f32 %v9300_v4, %v6308_v20 }
 0x7d8   : > { %v6313_v45 = vsel %vm6312_vm13, %v9300_v4, %v6309_v36  ;;  %v14223_v4 = vadd.f32 1e-06, %v13616_v2  ;;  %v15867_v2 = vld [vmem:[#allocation24_spill] sm:$0xff] }
 0x7d9   : > { %v6941_v38 = vpop.permute.xlu0 %6940  ;;  %v6395_v18 = vmul.f32 %v13909_v30, %v6313_v45  ;;  %v14232_v60 = vpop.eup %9309  ;;  %vm6118_vm5 = vcmp.le.s32.totalorder %v14199_v53, %v15867_v2  ;;  %v15871_v45 = vld [vmem:[#allocation16_spill] sm:$0xff] }
 0x7da   : > { %9311 = vrsqrt.f32 %v14223_v4  ;;  %v6355_v7 = vmul.f32 %v14232_v60, %v14186_v27 }
 0x7db   : > { %8253 = vrot.lane.b32.xlu2 %v8086_v21, %s9535_s27  ;;  %v6323_v21 = vsel %vm6322_vm7, %v9302_v10, %v6319_v42  ;;  %vm6340_vm7 = vweird.f32 %v14163_v17 }
 0x7dc   : > { %vm14266_vm4 = vmor %vm6340_vm7, %vm6341_vm10  ;;  %vm6360_vm10 = vweird.f32 %v14186_v27 }
 0x7dd   : > { %v6945_v29 = vpop.permute.xlu2 %6944 }
 0x7e1   : > { %v14132_v56 = vpop.permute.xlu0 %7428 }
 0x7e2   : > { %v7482_v10 = vsel %vm6159_vm3, %v14132_v56, 0.0  ;;  %v15870_v56 = vld [vmem:[#allocation25_spill] sm:$0xff] }
 0x7e3   : > { %8130 = vrot.lane.b32.xlu2 %v8077_v50, %s9535_s27  ;;  %v6345_v50 = vmul.f32 %v14190_v37, %v14172_v57  ;;  %vm6079_vm2 = vcmp.ge.s32.totalorder %v14199_v53, %v15870_v56 }
 0x7e5   : > { %8255 = vrot.lane.b32.xlu0 %v8087_v33, %s9535_s27  ;;  %v7445_v22 = vpop.permute.xlu2 %7444  ;;  %v6337_v33 = vmul.f32 0.5, %v6336_v44 }
 0x7e7   : > { %v6338_v11 = vsub.f32 1.5, %v6337_v33 }
 0x7e9   : > { %v14143_v25 = vpop.permute.xlu0 %8030  ;;  %v6339_v16 = vmul.f32 %v14175_v49, %v6338_v11 }
 0x7ea   : > { %8251 = vrot.lane.b32.xlu1 %v8085_v3, %s9535_s27  ;;  %v14212_v3 = vld [vmem:[%s15187_s5] ss:$0 sm:$0xff] }
 0x7eb   : > { %8128 = vrot.lane.b32.xlu2 %v8076_v15, %s9535_s27  ;;  %v7503_v15 = vsel %vm6159_vm3, %v14100_v62, 0.0  ;;  %vm5997_vm0 = vcmp.ge.s32.totalorder %v14212_v3, %v15866_v63  ;;  %vm6038_vm1 = vcmp.le.s32.totalorder %v14212_v3, %v15869_v39 }
 0x7ed   : > { %8132 = vrot.lane.b32.xlu0 %v8078_v43, %s9535_s27  ;;  %v15861_v43 = vld [vmem:[#allocation57_spill] sm:$0xff] }
 0x7ee   : > { %vm6037_vm15 = vcmp.le.s32.totalorder %v14212_v3, %v15861_v43 }
 0x7ef   : > { %vm6045_vm8 = vmand %vm5997_vm0, %vm6037_vm15 }
 0x7f0   : > { %vm6086_vm9 = vmand %vm6045_vm8, %vm6078_vm6  ;;  %vm6350_vm8 = vweird.f32 %v14172_v57 }
 0x7f1   : > { %v6947_v8 = vpop.permute.xlu0 %6946  ;;  %vm6126_vm11 = vmand %vm6086_vm9, %vm6118_vm5  ;;  %vm6351_vm5 = vweird.f32 %v14190_v37 }
 0x7f2   : > { %9001 = vmatpush.xpose.msk.msra.mxu3 %vm6159_vm3, %v6947_v8  ;;  %v14261_v1 = vsel %vm6126_vm11, 0.0, %v9537_v24  ;;  %vm6352_vm9 = vmor %vm6350_vm8, %vm6351_vm5  ;;  %vm6361_vm11 = vweird.f32 %v14232_v60  ;;  %vm6370_vm5 = vweird.f32 %v14223_v4 }
 0x7f3   : > { %8249 = vrot.lane.b32.xlu2 %v8084_v58, %s9535_s27  ;;  %v15864_v58 = vld [vmem:[#allocation9_spill] sm:$0xff] }
 0x7f6   : > { %9002 = vmatpush.xpose.msk.msra.mxu3 %vm6159_vm3, %v6945_v29  ;;  %v6346_v29 = vmul.f32 %v14190_v37, %v6345_v50 }
 0x7f8   : > { %v6347_v41 = vmul.f32 0.5, %v6346_v29 }
 0x7f9   : > { %v14207_v0 = vpop.permute.xlu0 %8046 }
 0x7fa   : > { %9003 = vmatpush.xpose.msk.msra.mxu3 %vm6159_vm3, %v6943_v46  ;;  %v6348_v17 = vsub.f32 1.5, %v6347_v41 }
 0x7fe   : > { %9004 = vmatpush.xpose.msk.msra.mxu3 %vm6159_vm3, %v6941_v38  ;;  %v7506_v38 = vsel %vm6159_vm3, %v7445_v22, 0.0  ;;  %v6343_v22 = vsel %vm14266_vm4, %v14175_v49, %v6339_v16 }
 0x7ff   : > { %v6398_v49 = vmul.f32 %v13909_v30, %v6343_v22 }
 0x801   : > { %v14256_v34 = vpop.permute.xlu0 %8044  ;;  %v6414_v29 = vmul.f32 %v6398_v49, %v15876_v40  ;;  %v15882_v49 = vld [vmem:[#allocation36_spill] sm:$0xff] }
 0x802   : > { %9005 = vmatpush.xpose.msk.msra.mxu3 %vm6159_vm3, %v6939_v47  ;;  %v14205_v47 = vpop.xlane.xlu1 %7492  ;;  %vm6121_vm4 = vcmp.le.s32.totalorder %v14199_v53, %v15882_v49  ;;  %v15888_v49 = vld [vmem:[#allocation26_spill] sm:$0xff] }
 0x806   : > { %9006 = vmatpush.xpose.msk.msra.mxu3 %vm6159_vm3, %v6937_v31  ;;  %v6329_v31 = vmul.f32 %v14165_v28, %v6328_v59  ;;  %v6356_v59 = vmul.f32 %v14232_v60, %v6355_v7 }
 0x808   : > { %v6333_v62 = vsel %vm14218_vm12, %v14165_v28, %v6329_v31  ;;  %v15868_v28 = vld [vmem:[#allocation38_spill] sm:$0xff]  ;;  %v6349_v31 = vmul.f32 %v14190_v37, %v6348_v17  ;;  %v6357_v50 = vmul.f32 0.5, %v6356_v59  ;;  %v15880_v17 = vld [vmem:[#allocation32_spill] sm:$0xff] }
 0x809   : > { %v6397_v46 = vmul.f32 %v13909_v30, %v6333_v62  ;;  %vm5998_vm13 = vcmp.ge.s32.totalorder %v14212_v3, %v15868_v28  ;;  %v7431_v63 = vpop.permute.xlu0 %7430 }
 0x80a   : > { %9007 = vmatpush.xpose.msk.msra.mxu3 %vm6159_vm3, %v14092_v26  ;;  %v6411_v26 = vmul.f32 %v6395_v18, %v15860_v54  ;;  %v14247_v20 = vpop.permute.xlu1 %8028  ;;  %v14264_v18 = vadd.f32 1e-06, %v15871_v45  ;;  %vm6046_vm12 = vmand %vm5998_vm13, %vm6038_vm1  ;;  %v6358_v11 = vsub.f32 1.5, %v6357_v50  ;;  %v6353_v57 = vsel %vm6352_vm9, %v14190_v37, %v6349_v31  ;;  %v15878_v45 = vld [vmem:[#allocation23_spill] sm:$0xff]  ;;  %v15883_v31 = vld [vmem:[#allocation48_spill] sm:$0xff] }
 0x80b   : > { %vm6087_vm6 = vmand %vm6046_vm12, %vm6079_vm2  ;;  %v7485_v16 = vsel %vm6159_vm3, %v7431_v63, 0.0  ;;  %v6399_v28 = vmul.f32 %v13909_v30, %v6353_v57  ;;  %vm6000_vm13 = vcmp.ge.s32.totalorder %v14212_v3, %v15878_v45  ;;  %vm6081_vm2 = vcmp.ge.s32.totalorder %v14199_v53, %v15880_v17 }
 0x80c   : > { %9313 = vrsqrt.f32 %v14264_v18  ;;  %v6359_v39 = vmul.f32 %v14232_v60, %v6358_v11  ;;  %vm6362_vm1 = vmor %vm6360_vm10, %vm6361_vm11  ;;  %v8083_v50 = vmul.f32 %v14207_v0, %v15883_v31  ;;  %vm6380_vm11 = vweird.f32 %v14264_v18 }
 0x80e   : > { %9008 = vmatpush.xpose.msk.msra.mxu3 %vm6159_vm3, %v14117_v9  ;;  %v6396_v9 = vmul.f32 %v13909_v30, %v6323_v21  ;;  %v14278_v21 = vpop.eup %9311  ;;  %v6363_v27 = vsel %vm6362_vm1, %v14232_v60, %v6359_v39 }
 0x80f   : > { %v6365_v33 = vmul.f32 %v14278_v21, %v14223_v4 }
 0x810   : > { %v6412_v8 = vmul.f32 %v6396_v9, %v15864_v58 }
 0x811   : > { %9009 = vmatmul.msk.f32.vlgmr.msra.gmra.mxu3 %vm6159_vm3, %v6411_v26  ;;  %v6413_v26 = vmul.f32 %v6397_v46, %v15874_v52  ;;  %v6366_v62 = vmul.f32 %v14278_v21, %v6365_v33  ;;  %v15877_v46 = vld [vmem:[#allocation47_spill] sm:$0xff]  ;;  %v6400_v33 = vmul.f32 %v13909_v30, %v6363_v27 }
 0x812   : > { %v8075_v41 = vmul.f32 %v14143_v25, %v15877_v46 }
 0x813   : > { %v6367_v25 = vmul.f32 0.5, %v6366_v62  ;;  %v15884_v62 = vld [vmem:[#allocation20_spill] sm:$0xff] }
 0x814   : > { %7507 = vadd.xlane.f32.xlu1 %v7506_v38  ;;  %v15875_v38 = vld [vmem:[#allocation6_spill] sm:$0xff]  ;;  %v6416_v63 = vmul.f32 %v6400_v33, %v15884_v62 }
 0x815   : > { %vm6119_vm15 = vcmp.le.s32.totalorder %v14199_v53, %v15875_v38  ;;  %v6368_v22 = vsub.f32 1.5, %v6367_v25 }
 0x816   : > { %vm6127_vm0 = vmand %vm6087_vm6, %vm6119_vm15 }
 0x817   : > { %7504 = vadd.xlane.f32.xlu0 %v7503_v15  ;;  %v14301_v15 = vpop.permute.xlu1 %7446  ;;  %v14306_v61 = vsel %vm6127_vm0, 0.0, %v9537_v24  ;;  %v6369_v60 = vmul.f32 %v14278_v21, %v6368_v22  ;;  %vm6371_vm0 = vweird.f32 %v14278_v21 }
 0x818   : > { %vm6372_vm8 = vmor %vm6370_vm5, %vm6371_vm0 }
 0x819   : > { %9010 = vmatmul.msk.f32.gmra.mxu3 %vm6159_vm3, %v6412_v8 }
 0x81c   : > { %7483 = vadd.xlane.f32.xlu2 %v7482_v10  ;;  %v14314_v10 = vpop.eup %9313 }
 0x81d   : > { %v6375_v37 = vmul.f32 %v14314_v10, %v14264_v18  ;;  %vm6381_vm9 = vweird.f32 %v14314_v10 }
 0x81e   : > { %v14258_v36 = vpop.xlane.xlu2 %7471  ;;  %vm6382_vm10 = vmor %vm6380_vm11, %vm6381_vm9 }
 0x81f   : > { %v6900_v42 = vpop.f32.mrf.mxu2  ;;  %v6376_v59 = vmul.f32 %v14314_v10, %v6375_v37  ;;  %v14339_v38 = vpop.permute.xlu1 %8042 }
 0x820   : > { %v14273_v44 = vadd.f32 %v6900_v42, %v14261_v1  ;;  %v15879_v42 = vld [vmem:[#allocation61_spill] sm:$0xff] }
 0x821   : > { %9011 = vmatmul.msk.f32.gmra.mxu3 %vm6159_vm3, %v6413_v26  ;;  %v6415_v26 = vmul.f32 %v6399_v28, %v15879_v42 }
 0x822   : > { %v7030_v9 = vsel %vm7029_vm14, %v14273_v44, -inf }
 0x823   : > { %7031 = vmax.xlane.f32.xlu1 %v7030_v9  ;;  %v15881_v9 = vld [vmem:[#allocation31_spill] sm:$0xff] }
 0x824   : > { %vm6040_vm7 = vcmp.le.s32.totalorder %v14212_v3, %v15881_v9 }
 0x825   : > { %vm6048_vm15 = vmand %vm6000_vm13, %vm6040_vm7 }
 0x826   : > { %v14303_v43 = vpop.xlane.xlu2 %7474  ;;  %vm6089_vm12 = vmand %vm6048_vm15, %vm6081_vm2 }
 0x827   : > { %v6903_v8 = vpop.f32.mrf.mxu2  ;;  %vm6129_vm6 = vmand %vm6089_vm12, %vm6121_vm4  ;;  %v14366_v4 = vpop.permute.xlu1 %8024 }
 0x828   : > { %v14311_v2 = vadd.f32 %v6903_v8, %v14306_v61  ;;  %v6377_v8 = vmul.f32 0.5, %v6376_v59  ;;  %v14355_v11 = vsel %vm6129_vm6, 0.0, %v9537_v24 }
 0x829   : > { %9012 = vmatmul.msk.f32.gmra.mxu3 %vm6159_vm3, %v6414_v29 }
 0x82a   : > { %v7033_v7 = vsel %vm7029_vm14, %v14311_v2, -inf  ;;  %v6378_v57 = vsub.f32 1.5, %v6377_v8  ;;  %v15890_v8 = vld [vmem:[#allocation45_spill] sm:$0xff] }
 0x82b   : > { %7034 = vmax.xlane.f32.xlu2 %v7033_v7  ;;  %8126 = vrot.lane.b32.xlu0 %v8075_v41, %s9535_s27  ;;  %v6373_v41 = vsel %vm6372_vm8, %v14278_v21, %v6369_v60  ;;  %v15885_v7 = vld [vmem:[#allocation39_spill] sm:$0xff]  ;;  %v8027_v21 = vpop.permute.xlu0 %8026  ;;  %vm5999_vm13 = vcmp.ge.s32.totalorder %v14212_v3, %v15890_v8 }
 0x82c   : > { %7486 = vadd.xlane.f32.xlu1 %v7485_v16  ;;  %v8082_v16 = vmul.f32 %v14256_v34, %v15885_v7  ;;  %v6401_v39 = vmul.f32 %v13909_v30, %v6373_v41  ;;  %v6379_v37 = vmul.f32 %v14314_v10, %v6378_v57  ;;  %v15886_v34 = vld [vmem:[#allocation21_spill] sm:$0xff] }
 0x82d   : > { %v15894_v41 = vld [vmem:[#allocation13_spill] sm:$0xff] }
 0x82e   : > { %v14329_v56 = vpop.xlane.xlu2 %7477  ;;  %v6417_v25 = vmul.f32 %v6401_v39, %v15886_v34  ;;  %v6383_v45 = vsel %vm6382_vm10, %v14314_v10, %v6379_v37  ;;  %v15896_v39 = vld [vmem:[#allocation14_spill] sm:$0xff] }
 0x82f   : > { %v14333_v35 = vpop.f32.mrf.mxu2  ;;  %v6402_v59 = vmul.f32 %v13909_v30, %v6383_v45  ;;  %v8041_v22 = vpop.permute.xlu1 %8040  ;;  %v15891_v30 = vld [vmem:[#allocation52_spill] sm:$0xff]  ;;  %vm6001_vm0 = vcmp.ge.s32.totalorder %v14212_v3, %v15896_v39  ;;  %v15897_v37 = vld [vmem:[#allocation46_spill] sm:$0xff]  ;;  %v15900_v45 = vld [vmem:[#allocation19_spill] sm:$0xff] }
 0x830   : > { %vm6039_vm1 = vcmp.le.s32.totalorder %v14212_v3, %v15891_v30  ;;  %v8080_v7 = vmul.f32 %v8041_v22, %v15894_v41  ;;  %vm6041_vm5 = vcmp.le.s32.totalorder %v14212_v3, %v15897_v37  ;;  %vm6082_vm10 = vcmp.ge.s32.totalorder %v14199_v53, %v15900_v45  ;;  %v15901_v22 = vld [vmem:[#allocation11_spill] sm:$0xff] }
 0x831   : > { %9013 = vmatmul.msk.f32.gmra.mxu3 %vm6159_vm3, %v6415_v26  ;;  %v15887_v26 = vld [vmem:[#allocation5_spill] sm:$0xff]  ;;  %v6418_v18 = vmul.f32 %v6402_v59, %v15888_v49  ;;  %vm6047_vm4 = vmand %vm5999_vm13, %vm6039_vm1  ;;  %vm6122_vm1 = vcmp.le.s32.totalorder %v14199_v53, %v15901_v22  ;;  %v15903_v39 = vld [vmem:[#allocation7_spill] sm:$0xff] }
 0x832   : > { %v8074_v17 = vmul.f32 %v14247_v20, %v15887_v26  ;;  %v15889_v20 = vld [vmem:[#allocation29_spill] sm:$0xff]  ;;  %vm6049_vm13 = vmand %vm6001_vm0, %vm6041_vm5  ;;  %v15905_v37 = vld [vmem:[#allocation43_spill] sm:$0xff] }
 0x833   : > { %8247 = vrot.lane.b32.xlu0 %v8083_v50, %s9535_s27  ;;  %v8073_v33 = vmul.f32 %v8027_v21, %v15889_v20  ;;  %v15898_v21 = vld [vmem:[#allocation53_spill] sm:$0xff]  ;;  %vm6043_vm5 = vcmp.le.s32.totalorder %v14212_v3, %v15905_v37 }
 0x834   : > { %vm6002_vm8 = vcmp.ge.s32.totalorder %v14212_v3, %v15898_v21  ;;  %v15906_v21 = vld [vmem:[#allocation51_spill] sm:$0xff] }
 0x836   : > { %v8135_v29 = vpop.permute.xlu2 %8134 }
 0x837   : > { %v6909_v0 = vpop.f32.mrf.mxu2  ;;  %9033 = vmatpush.xpose.msk.msrb.mxu0 %vm6159_vm3, %v8135_v29 }
 0x838   : > { %v14360_v46 = vadd.f32 %v6909_v0, %v14355_v11  ;;  %v15892_v0 = vld [vmem:[#allocation37_spill] sm:$0xff] }
 0x839   : > { %9014 = vmatmul.msk.f32.gmra.mxu3 %vm6159_vm3, %v6416_v63  ;;  %vm6080_vm2 = vcmp.ge.s32.totalorder %v14199_v53, %v15892_v0  ;;  %v15893_v63 = vld [vmem:[#allocation4_spill] sm:$0xff] }
 0x83a   : > { %v7039_v28 = vsel %vm7029_vm14, %v14360_v46, -inf  ;;  %vm6120_vm7 = vcmp.le.s32.totalorder %v14199_v53, %v15893_v63  ;;  %vm6088_vm15 = vmand %vm6047_vm4, %vm6080_vm2 }
 0x83b   : > { %8245 = vrot.lane.b32.xlu0 %v8082_v16, %s9535_s27  ;;  %7040 = vmax.xlane.f32.xlu1 %v7039_v28  ;;  %v15895_v28 = vld [vmem:[#allocation56_spill] sm:$0xff]  ;;  %vm6128_vm6 = vmand %vm6088_vm15, %vm6120_vm7 }
 0x83c   : > { %v14382_v27 = vpop.xlane.xlu0 %7495  ;;  %v14386_v31 = vpop.xlane.xlu1 %7498  ;;  %vm6042_vm12 = vcmp.le.s32.totalorder %v14212_v3, %v15895_v28  ;;  %v14419_v26 = vsel %vm6128_vm6, 0.0, %v9537_v24  ;;  %vm6090_vm4 = vmand %vm6049_vm13, %vm6082_vm10  ;;  %v7520_v28 = vadd.f32 1e-06, %v14148_v6  ;;  %vm6003_vm6 = vcmp.ge.s32.totalorder %v14212_v3, %v15903_v39 }
 0x83d   : > { %vm6050_vm11 = vmand %vm6002_vm8, %vm6042_vm12  ;;  %v7521_v6 = vadd.f32 1e-06, %v14205_v47 }
 0x83e   : > { %v8254_v9 = vpop.permute.xlu2 %8253  ;;  %vm6130_vm15 = vmand %vm6090_vm4, %vm6122_vm1  ;;  %vm7614_vm4 = vweird.f32 %v7520_v28 }
 0x83f   : > { %v6912_v16 = vpop.f32.mrf.mxu2  ;;  %v14436_v8 = vsel %vm6130_vm15, 0.0, %v9537_v24  ;;  %vm6051_vm8 = vmand %vm6003_vm6, %vm6043_vm5  ;;  %vm7624_vm6 = vweird.f32 %v7521_v6 }
 0x840   : > { %v14439_v30 = vadd.f32 %v6912_v16, %v14436_v8  ;;  %v7509_v16 = vsel %vm6159_vm3, %v14301_v15, 0.0 }
 0x841   : > { %9015 = vmatmul.msk.f32.gmra.mxu3 %vm6159_vm3, %v6417_v25  ;;  %v15899_v25 = vld [vmem:[#allocation28_spill] sm:$0xff] }
 0x842   : > { %vm6083_vm9 = vcmp.ge.s32.totalorder %v14199_v53, %v15899_v25  ;;  %v7042_v63 = vsel %vm7029_vm14, %v14439_v30, -inf }
 0x843   : > { %8124 = vrot.lane.b32.xlu2 %v8074_v17, %s9535_s27  ;;  %vm6091_vm7 = vmand %vm6050_vm11, %vm6083_vm9  ;;  %vm6124_vm9 = vcmp.le.s32.totalorder %v14199_v53, %v15906_v21 }
 0x844   : > { %v14388_v10 = vpop.xlane.xlu0 %7501  ;;  %v14396_v60 = vpop.xlane.xlu1 %7480 }
 0x846   : > { %v8131_v50 = vpop.permute.xlu2 %8130 }
 0x849   : > { %9016 = vmatmul.msk.f32.gmra.mxu3 %vm6159_vm3, %v6418_v18  ;;  %v15902_v18 = vld [vmem:[#allocation42_spill] sm:$0xff] }
 0x84a   : > { %vm6123_vm2 = vcmp.le.s32.totalorder %v14199_v53, %v15902_v18 }
 0x84b   : > { %vm6131_vm12 = vmand %vm6091_vm7, %vm6123_vm2 }
 0x84e   : > { %v8129_v57 = vpop.permute.xlu2 %8128 }
 0x854   : > { %8122 = vrot.lane.b32.xlu1 %v8073_v33, %s9535_s27  ;;  %v6915_v33 = vpop.f32.mrf.mxu2 }
 0x856   : > { %v8250_v20 = vpop.permute.xlu2 %8249 }
 0x857   : > { %v8256_v29 = vpop.permute.xlu0 %8255 }
 0x858   : > { %9049 = vmatpush.xpose.msk.msrb.mxu1 %vm6159_vm3, %v8256_v29  ;;  %v14442_v29 = vsel %vm6131_vm12, 0.0, %v9537_v24 }
 0x859   : > { %v14445_v0 = vadd.f32 %v6915_v33, %v14442_v29 }
 0x85b   : > { %v7045_v41 = vsel %vm7029_vm14, %v14445_v0, -inf }
 0x85c   : > { %8241 = vrot.lane.b32.xlu1 %v8080_v7, %s9535_s27  ;;  %9050 = vmatpush.xpose.msk.msrb.mxu1 %vm6159_vm3, %v8254_v9  ;;  %v8252_v17 = vpop.permute.xlu1 %8251  ;;  %v14425_v9 = vadd.f32 %v14333_v35, %v14419_v26  ;;  %v6918_v25 = vpop.f32.mrf.mxu2 }
 0x85e   : > { %v7036_v35 = vsel %vm7029_vm14, %v14425_v9, -inf }
 0x85f   : > { %v8133_v59 = vpop.permute.xlu0 %8132 }
 0x860   : > { %9034 = vmatpush.xpose.msk.msrb.mxu0 %vm6159_vm3, %v8133_v59  ;;  %9051 = vmatpush.xpose.msk.msrb.mxu1 %vm6159_vm3, %v8252_v17 }
 0x864   : > { %9035 = vmatpush.xpose.msk.msrb.mxu0 %vm6159_vm3, %v8131_v50  ;;  %9052 = vmatpush.xpose.msk.msrb.mxu1 %vm6159_vm3, %v8250_v20  ;;  %v7512_v50 = vadd.f32 1e-06, %v14140_v48  ;;  %v15904_v48 = vld [vmem:[#allocation3_spill] sm:$0xff]  ;;  %v15907_v20 = vld [vmem:[#allocation50_spill] sm:$0xff] }
 0x865   : > { %7037 = vmax.xlane.f32.xlu0 %v7036_v35  ;;  %vm6084_vm0 = vcmp.ge.s32.totalorder %v14199_v53, %v15904_v48  ;;  %v8081_v35 = vmul.f32 %v14339_v38, %v15907_v20 }
 0x866   : > { %9315 = vrsqrt.f32 %v7512_v50  ;;  %vm6092_vm11 = vmand %vm6051_vm8, %vm6084_vm0  ;;  %vm7534_vm1 = vweird.f32 %v7512_v50 }
 0x867   : > { %9317 = vrsqrt.f32 %v7520_v28  ;;  %vm6132_vm10 = vmand %vm6092_vm11, %vm6124_vm9 }
 0x868   : > { %9036 = vmatpush.xpose.msk.msrb.mxu0 %vm6159_vm3, %v8129_v57  ;;  %v14466_v59 = vsel %vm6132_vm10, 0.0, %v9537_v24  ;;  %9319 = vrsqrt.f32 %v7521_v6 }
 0x869   : > { %v14469_v22 = vadd.f32 %v6918_v25, %v14466_v59  ;;  %v14482_v25 = vld [vmem:[%s15188_s6] ss:$0 sm:$0xff] }
 0x86b   : > { %v7048_v47 = vsel %vm7029_vm14, %v14469_v22, -inf }
 0x86c   : > { %7043 = vmax.xlane.f32.xlu2 %v7042_v63  ;;  %v9316_v7 = vpop.eup %9315 }
 0x86d   : > { %7046 = vmax.xlane.f32.xlu0 %v7045_v41  ;;  %v7529_v57 = vmul.f32 %v9316_v7, %v7512_v50  ;;  %v9318_v45 = vpop.eup %9317  ;;  %vm7535_vm13 = vweird.f32 %v9316_v7 }
 0x86e   : > { %v7609_v18 = vmul.f32 %v9318_v45, %v7520_v28  ;;  %v9320_v41 = vpop.eup %9319  ;;  %vm7536_vm2 = vmor %vm7534_vm1, %vm7535_vm13  ;;  %vm7615_vm7 = vweird.f32 %v9318_v45 }
 0x86f   : > { %v7530_v15 = vmul.f32 %v9316_v7, %v7529_v57  ;;  %v7619_v48 = vmul.f32 %v9320_v41, %v7521_v6  ;;  %v15908_v57 = vld [vmem:[#allocation59_spill] sm:$0xff]  ;;  %vm7616_vm15 = vmor %vm7614_vm4, %vm7615_vm7  ;;  %vm7625_vm12 = vweird.f32 %v9320_v41 }
 0x870   : > { %v7610_v63 = vmul.f32 %v9318_v45, %v7609_v18  ;;  %v8072_v37 = vmul.f32 %v14366_v4, %v15908_v57  ;;  %vm7626_vm0 = vmor %vm7624_vm6, %vm7625_vm12 }
 0x871   : > { %v7531_v17 = vmul.f32 0.5, %v7530_v15  ;;  %v7620_v15 = vmul.f32 %v9320_v41, %v7619_v48 }
 0x872   : > { %v7611_v39 = vmul.f32 0.5, %v7610_v63 }
 0x873   : > { %v7532_v33 = vsub.f32 1.5, %v7531_v17  ;;  %v7621_v50 = vmul.f32 0.5, %v7620_v15  ;;  %v7517_v15 = vadd.f32 1e-06, %v14396_v60 }
 0x874   : > { %v7612_v38 = vsub.f32 1.5, %v7611_v39  ;;  %v7514_v39 = vadd.f32 1e-06, %v14258_v36 }
 0x875   : > { %7510 = vadd.xlane.f32.xlu0 %v7509_v16  ;;  %v7533_v16 = vmul.f32 %v9316_v7, %v7532_v33  ;;  %vm7584_vm12 = vweird.f32 %v7517_v15 }
 0x876   : > { %v7613_v18 = vmul.f32 %v9318_v45, %v7612_v38  ;;  %9321 = vrsqrt.f32 %v7514_v39  ;;  %vm7554_vm7 = vweird.f32 %v7514_v39 }
 0x877   : > { %v7537_v21 = vsel %vm7536_vm2, %v9316_v7, %v7533_v16  ;;  %9323 = vrsqrt.f32 %v7517_v15 }
 0x878   : > { %v7688_v17 = vmul.f32 %v14482_v25, %v7537_v21  ;;  %v7617_v33 = vsel %vm7616_vm15, %v9318_v45, %v7613_v18 }
 0x87a   : > { %v7704_v20 = vmul.f32 %v7688_v17, %v15850_v55  ;;  %v7696_v55 = vmul.f32 %v14482_v25, %v7617_v33 }
 0x87c   : > { %v7712_v45 = vmul.f32 %v7696_v55, %v15860_v54  ;;  %v9322_v36 = vpop.eup %9321  ;;  %v15909_v55 = vld [vmem:[#allocation8_spill] sm:$0xff] }
 0x87d   : > { %vm6004_vm5 = vcmp.ge.s32.totalorder %v14212_v3, %v15909_v55  ;;  %vm7555_vm2 = vweird.f32 %v9322_v36 }
 0x87e   : > { %vm7556_vm4 = vmor %vm7554_vm7, %vm7555_vm2 }
 0x884   : > { %8243 = vrot.lane.b32.xlu2 %v8081_v35, %s9535_s27 }
 0x886   : > { %7049 = vmax.xlane.f32.xlu1 %v7048_v47  ;;  %v7622_v47 = vsub.f32 1.5, %v7621_v50  ;;  %v7549_v50 = vmul.f32 %v9322_v36, %v7514_v39 }
 0x887   : > { %v14507_v6 = vpop.xlane.xlu1 %7507 }
 0x888   : > { %v7623_v28 = vmul.f32 %v9320_v41, %v7622_v47  ;;  %v7550_v60 = vmul.f32 %v9322_v36, %v7549_v50 }
 0x88a   : > { %v14487_v7 = vpop.xlane.xlu0 %7504 }
 0x88c   : > { %8120 = vrot.lane.b32.xlu2 %v8072_v37, %s9535_s27  ;;  %v7627_v37 = vsel %vm7626_vm0, %v9320_v41, %v7623_v28  ;;  %v15910_v28 = vld [vmem:[#allocation44_spill] sm:$0xff] }
 0x88d   : > { %v7697_v38 = vmul.f32 %v14482_v25, %v7627_v37  ;;  %vm6044_vm8 = vcmp.le.s32.totalorder %v14212_v3, %v15910_v28  ;;  %v15911_v37 = vld [vmem:[#allocation2_spill] sm:$0xff] }
 0x88e   : > { %vm6085_vm9 = vcmp.ge.s32.totalorder %v14199_v53, %v15911_v37  ;;  %vm6052_vm10 = vmand %vm6004_vm5, %vm6044_vm8 }
 0x88f   : > { %v14492_v63 = vpop.xlane.xlu2 %7483  ;;  %v7713_v54 = vmul.f32 %v7697_v38, %v15864_v58  ;;  %v15912_v38 = vld [vmem:[#allocation34_spill] sm:$0xff]  ;;  %vm6093_vm13 = vmand %vm6052_vm10, %vm6085_vm9 }
 0x890   : > { %vm6125_vm11 = vcmp.le.s32.totalorder %v14199_v53, %v15912_v38 }
 0x891   : > { %vm6133_vm1 = vmand %vm6093_vm13, %vm6125_vm11 }
 0x894   : > { %8096 = vrot.lane.b32.xlu2 %v7704_v20, %s9536_s30  ;;  %v7005_v4 = vpop.f32.mrf.mxu3  ;;  %v7513_v20 = vadd.f32 1e-06, %v14153_v5 }
 0x895   : > { %v14490_v35 = vadd.f32 %v7005_v4, %v14261_v1  ;;  %v9324_v4 = vpop.eup %9323 }
 0x896   : > { %v14516_v33 = vpop.xlane.xlu1 %7031  ;;  %9325 = vrsqrt.f32 %v7513_v20  ;;  %v7579_v5 = vmul.f32 %v9324_v4, %v7517_v15  ;;  %vm7585_vm15 = vweird.f32 %v9324_v4  ;;  %vm7544_vm5 = vweird.f32 %v7513_v20 }
 0x897   : > { %v7054_v16 = vsel %vm7029_vm14, %v14490_v35, -inf  ;;  %vm7586_vm6 = vmor %vm7584_vm12, %vm7585_vm15 }
 0x898   : > { %7055 = vmax.xlane.f32.xlu0 %v7054_v16 }
 0x89c   : > { %v14498_v48 = vpop.f32.mrf.mxu3  ;;  %v9326_v3 = vpop.eup %9325 }
 0x89d   : > { %v8127_v57 = vpop.permute.xlu0 %8126  ;;  %v7539_v55 = vmul.f32 %v9326_v3, %v7513_v20  ;;  %vm7545_vm0 = vweird.f32 %v9326_v3  ;;  %v14554_v15 = vadd.f32 %v14498_v48, %v14306_v61 }
 0x89e   : > { %v14501_v21 = vpop.xlane.xlu2 %7034  ;;  %9037 = vmatpush.xpose.msk.msrb.mxu0 %vm6159_vm3, %v8127_v57  ;;  %v7551_v57 = vmul.f32 0.5, %v7550_v60  ;;  %v14535_v60 = vsel %vm6133_vm1, 0.0, %v9537_v24  ;;  %vm7546_vm8 = vmor %vm7544_vm5, %vm7545_vm0 }
 0x89f   : > { %8217 = vrot.lane.b32.xlu1 %v7712_v45, %s9536_s30  ;;  %v14532_v50 = vpop.xlane.xlu1 %7486 }
 0x8a4   : > { %v14509_v17 = vpop.f32.mrf.mxu3 }
 0x8a5   : > { %v8248_v18 = vpop.permute.xlu0 %8247 }
 0x8a6   : > { %v8125_v41 = vpop.permute.xlu2 %8124  ;;  %9053 = vmatpush.xpose.msk.msrb.mxu1 %vm6159_vm3, %v8248_v18  ;;  %v7552_v18 = vsub.f32 1.5, %v7551_v57 }
 0x8a7   : > { %8219 = vrot.lane.b32.xlu1 %v7713_v54, %s9536_s30  ;;  %9038 = vmatpush.xpose.msk.msrb.mxu0 %vm6159_vm3, %v8125_v41  ;;  %v7580_v54 = vmul.f32 %v9324_v4, %v7579_v5  ;;  %v6921_v41 = vpop.f32.mrf.mxu2  ;;  %v7540_v5 = vmul.f32 %v9326_v3, %v7539_v55 }
 0x8a8   : > { %v14538_v28 = vadd.f32 %v6921_v41, %v14535_v60 }
 0x8ac   : > { %v7014_v47 = vpop.f32.mrf.mxu3 }
 0x8ad   : > { %v14519_v16 = vadd.f32 %v7014_v47, %v14355_v11  ;;  %v8246_v58 = vpop.permute.xlu0 %8245  ;;  %v7553_v47 = vmul.f32 %v9322_v36, %v7552_v18  ;;  %v7541_v18 = vmul.f32 0.5, %v7540_v5 }
 0x8ae   : > { %9054 = vmatpush.xpose.msk.msrb.mxu1 %vm6159_vm3, %v8246_v58  ;;  %v7581_v58 = vmul.f32 0.5, %v7580_v54  ;;  %v14542_v37 = vpop.xlane.xlu1 %7040  ;;  %v7515_v54 = vadd.f32 1e-06, %v14303_v43 }
 0x8af   : > { %v7063_v45 = vsel %vm7029_vm14, %v14519_v16, -inf  ;;  %v7557_v53 = vsel %vm7556_vm4, %v9322_v36, %v7553_v47  ;;  %v7542_v41 = vsub.f32 1.5, %v7541_v18 }
 0x8b0   : > { %7064 = vmax.xlane.f32.xlu0 %v7063_v45  ;;  %v7582_v57 = vsub.f32 1.5, %v7581_v58  ;;  %v7051_v45 = vsel %vm7029_vm14, %v14538_v28, -inf  ;;  %v7690_v24 = vmul.f32 %v14482_v25, %v7557_v53  ;;  %9327 = vrsqrt.f32 %v7515_v54 }
 0x8b1   : > { %v7543_v55 = vmul.f32 %v9326_v3, %v7542_v41  ;;  %v7516_v53 = vadd.f32 1e-06, %v14329_v56  ;;  %vm7564_vm11 = vweird.f32 %v7515_v54 }
 0x8b2   : > { %v7583_v38 = vmul.f32 %v9324_v4, %v7582_v57  ;;  %v7706_v39 = vmul.f32 %v7690_v24, %v15853_v32 }
 0x8b3   : > { %v7547_v32 = vsel %vm7546_vm8, %v9326_v3, %v7543_v55  ;;  %9329 = vrsqrt.f32 %v7516_v53  ;;  %vm7574_vm1 = vweird.f32 %v7516_v53 }
 0x8b4   : > { %v7587_v36 = vsel %vm7586_vm6, %v9324_v4, %v7583_v38  ;;  %v7689_v5 = vmul.f32 %v14482_v25, %v7547_v32  ;;  %v14562_v18 = vpop.f32.mrf.mxu3 }
 0x8b5   : > { %v7693_v47 = vmul.f32 %v14482_v25, %v7587_v36 }
 0x8b6   : > { %v9328_v57 = vpop.eup %9327 }
 0x8b7   : > { %v7709_v43 = vmul.f32 %v7693_v47, %v15856_v12  ;;  %v7559_v4 = vmul.f32 %v9328_v57, %v7515_v54  ;;  %v7705_v12 = vmul.f32 %v7689_v5, %v15852_v13  ;;  %vm7565_vm9 = vweird.f32 %v9328_v57 }
 0x8b8   : > { %vm7566_vm10 = vmor %vm7564_vm11, %vm7565_vm9  ;;  %v7526_v47 = vadd.f32 1e-06, %v14507_v6 }
 0x8b9   : > { %v7560_v56 = vmul.f32 %v9328_v57, %v7559_v4  ;;  %v9330_v20 = vpop.eup %9329 }
 0x8ba   : > { %v7569_v3 = vmul.f32 %v9330_v20, %v7516_v53  ;;  %9331 = vrsqrt.f32 %v7526_v47  ;;  %vm7575_vm13 = vweird.f32 %v9330_v20  ;;  %vm7674_vm4 = vweird.f32 %v7526_v47 }
 0x8bb   : > { %v7561_v24 = vmul.f32 0.5, %v7560_v56  ;;  %vm7576_vm2 = vmor %vm7574_vm1, %vm7575_vm13 }
 0x8bc   : > { %v7570_v48 = vmul.f32 %v9330_v20, %v7569_v3  ;;  %v14567_v13 = vpop.f32.mrf.mxu3 }
 0x8bd   : > { %7052 = vmax.xlane.f32.xlu2 %v7051_v45  ;;  %v7057_v45 = vsel %vm7029_vm14, %v14554_v15, -inf  ;;  %v7562_v38 = vsub.f32 1.5, %v7561_v24 }
 0x8be   : > { %v7571_v36 = vmul.f32 0.5, %v7570_v48 }
 0x8c0   : > { %v7572_v55 = vsub.f32 1.5, %v7571_v36 }
 0x8c2   : > { %v7573_v32 = vmul.f32 %v9330_v20, %v7572_v55  ;;  %v14588_v55 = vadd.f32 %v14509_v17, %v14419_v26 }
 0x8c4   : > { %8100 = vrot.lane.b32.xlu0 %v7706_v39, %s9536_s30  ;;  %v7563_v39 = vmul.f32 %v9328_v57, %v7562_v38  ;;  %v7577_v5 = vsel %vm7576_vm2, %v9330_v20, %v7573_v32  ;;  %v7023_v24 = vpop.f32.mrf.mxu3 }
 0x8c5   : > { %v7692_v56 = vmul.f32 %v14482_v25, %v7577_v5  ;;  %v14579_v20 = vadd.f32 %v7023_v24, %v14466_v59 }
 0x8c6   : > { %v8123_v58 = vpop.permute.xlu1 %8122 }
 0x8c7   : > { %9039 = vmatpush.xpose.msk.msrb.mxu0 %vm6159_vm3, %v8123_v58  ;;  %v7567_v58 = vsel %vm7566_vm10, %v9328_v57, %v7563_v39  ;;  %v7522_v57 = vadd.f32 1e-06, %v14382_v27  ;;  %v7708_v3 = vmul.f32 %v7692_v56, %v15855_v51  ;;  %v7523_v27 = vadd.f32 1e-06, %v14386_v31 }
 0x8c8   : > { %v7072_v48 = vsel %vm7029_vm14, %v14579_v20, -inf }
 0x8c9   : > { %9333 = vrsqrt.f32 %v7522_v57  ;;  %vm7634_vm6 = vweird.f32 %v7522_v57  ;;  %vm7644_vm8 = vweird.f32 %v7523_v27 }
 0x8ca   : > { %9335 = vrsqrt.f32 %v7523_v27 }
 0x8cc   : > { %8106 = vrot.lane.b32.xlu0 %v7709_v43, %s9536_s30  ;;  %v7691_v43 = vmul.f32 %v14482_v25, %v7567_v58 }
 0x8ce   : > { %v7707_v54 = vmul.f32 %v7691_v43, %v15854_v19  ;;  %v8242_v6 = vpop.permute.xlu1 %8241  ;;  %v14591_v43 = vadd.f32 1e-06, %v14388_v10 }
 0x8d0   : > { %9337 = vrsqrt.f32 %v14591_v43  ;;  %vm7654_vm10 = vweird.f32 %v14591_v43 }
 0x8d1   : > { %7058 = vmax.xlane.f32.xlu1 %v7057_v45  ;;  %v9332_v45 = vpop.eup %9331 }
 0x8d2   : > { %v9334_v39 = vpop.eup %9333  ;;  %vm7675_vm7 = vweird.f32 %v9332_v45 }
 0x8d3   : > { %v7629_v58 = vmul.f32 %v9334_v39, %v7522_v57  ;;  %vm7676_vm15 = vmor %vm7674_vm4, %vm7675_vm7  ;;  %vm7635_vm12 = vweird.f32 %v9334_v39 }
 0x8d4   : > { %vm7636_vm0 = vmor %vm7634_vm6, %vm7635_vm12 }
 0x8d5   : > { %8098 = vrot.lane.b32.xlu2 %v7705_v12, %s9536_s30  ;;  %v7669_v12 = vmul.f32 %v9332_v45, %v7526_v47  ;;  %v7630_v31 = vmul.f32 %v9334_v39, %v7629_v58 }
 0x8d7   : > { %v7670_v19 = vmul.f32 %v9332_v45, %v7669_v12 }
 0x8d8   : > { %v14612_v57 = vpop.xlane.xlu0 %7037 }
 0x8d9   : > { %v7671_v38 = vmul.f32 0.5, %v7670_v19 }
 0x8db   : > { %v7672_v51 = vsub.f32 1.5, %v7671_v38 }
 0x8dd   : > { %v7673_v32 = vmul.f32 %v9332_v45, %v7672_v51  ;;  %v9501_v51 = vld [vmem:[%s9621_s18 + $0x38] sm:$0xff] }
 0x8df   : > { %v14564_v41 = vpop.xlane.xlu2 %7043  ;;  %v7677_v56 = vsel %vm7676_vm15, %v9332_v45, %v7673_v32  ;;  %v7525_v45 = vadd.f32 1e-06, %v14487_v7  ;;  %v7519_v7 = vadd.f32 1e-06, %v14532_v50 }
 0x8e0   : > { %v7702_v17 = vmul.f32 %v14482_v25, %v7677_v56 }
 0x8e1   : > { %9339 = vrsqrt.f32 %v7525_v45  ;;  %vm7664_vm2 = vweird.f32 %v7525_v45  ;;  %vm7604_vm15 = vweird.f32 %v7519_v7 }
 0x8e2   : > { %9341 = vrsqrt.f32 %v7519_v7 }
 0x8e7   : > { %v8244_v4 = vpop.permute.xlu2 %8243 }
 0x8e8   : > { %9055 = vmatpush.xpose.msk.msrb.mxu1 %vm6159_vm3, %v8244_v4  ;;  %v7060_v4 = vsel %vm7029_vm14, %v14588_v55, -inf }
 0x8ea   : > { %8102 = vrot.lane.b32.xlu1 %v7707_v54, %s9536_s30  ;;  %v9336_v54 = vpop.eup %9335 }
 0x8eb   : > { %v7639_v5 = vmul.f32 %v9336_v54, %v7523_v27  ;;  %v9338_v24 = vpop.eup %9337  ;;  %vm7645_vm5 = vweird.f32 %v9336_v54  ;;  %v14622_v27 = vadd.f32 %v14562_v18, %v14436_v8 }
 0x8ec   : > { %9056 = vmatpush.xpose.msk.msrb.mxu1 %vm6159_vm3, %v8242_v6  ;;  %v7631_v6 = vmul.f32 0.5, %v7630_v31  ;;  %v7649_v47 = vmul.f32 %v9338_v24, %v14591_v43  ;;  %v9502_v31 = vld [vmem:[%s9621_s18 + $0x78] sm:$0xff]  ;;  %vm7646_vm9 = vmor %vm7644_vm8, %vm7645_vm5  ;;  %v9340_v56 = vpop.eup %9339  ;;  %vm7655_vm11 = vweird.f32 %v9338_v24 }
 0x8ed   : > { %v7640_v12 = vmul.f32 %v9336_v54, %v7639_v5  ;;  %v14605_v32 = vpack.i.bf16 %v9502_v31, %v9501_v51  ;;  %vm7656_vm13 = vmor %vm7654_vm10, %vm7655_vm11  ;;  %v14632_v51 = vpop.xlane.xlu0 %7046  ;;  %vm7665_vm1 = vweird.f32 %v9340_v56 }
 0x8ee   : > { %v7632_v10 = vsub.f32 1.5, %v7631_v6  ;;  %v7650_v58 = vmul.f32 %v9338_v24, %v7649_v47  ;;  %vm7666_vm7 = vmor %vm7664_vm2, %vm7665_vm1 }
 0x8ef   : > { %v8121_v53 = vpop.permute.xlu2 %8120 }
 0x8f0   : > { %9040 = vmatpush.xpose.msk.msrb.mxu0 %vm6159_vm3, %v8121_v53  ;;  %v7718_v53 = vmul.f32 %v7702_v17, %v15886_v34  ;;  %v7633_v19 = vmul.f32 %v9334_v39, %v7632_v10  ;;  %v7651_v5 = vmul.f32 0.5, %v7650_v58  ;;  %v9503_v10 = vld [vmem:[%s9621_s18] sm:$0xff] }
 0x8f2   : > { %8104 = vrot.lane.b32.xlu1 %v7708_v3, %s9536_s30  ;;  %v7641_v3 = vmul.f32 0.5, %v7640_v12  ;;  %v7652_v12 = vsub.f32 1.5, %v7651_v5 }
 0x8f4   : > { %v7653_v47 = vmul.f32 %v9338_v24, %v7652_v12 }
 0x8f6   : > { %7073 = vmax.xlane.f32.xlu0 %v7072_v48  ;;  %v7642_v48 = vsub.f32 1.5, %v7641_v3  ;;  %v7657_v58 = vsel %vm7656_vm13, %v9338_v24, %v7653_v47 }
 0x8f7   : > { %v8097_v36 = vpop.permute.xlu2 %8096  ;;  %v7700_v31 = vmul.f32 %v14482_v25, %v7657_v58 }
 0x8f8   : > { %9041 = vmatmul.msk.f32.vlgmr.msrb.gmra.mxu0 %vm6159_vm3, %v8097_v36  ;;  %v7637_v36 = vsel %vm7636_vm0, %v9334_v39, %v7633_v19  ;;  %v7659_v19 = vmul.f32 %v9340_v56, %v7525_v45 }
 0x8f9   : > { %v14599_v38 = vpop.xlane.xlu1 %7049  ;;  %v7698_v34 = vmul.f32 %v14482_v25, %v7637_v36  ;;  %v9342_v36 = vpop.eup %9341 }
 0x8fa   : > { %vm7605_vm4 = vweird.f32 %v9342_v36 }
 0x8fb   : > { %v7714_v39 = vmul.f32 %v7698_v34, %v15874_v52  ;;  %vm7606_vm12 = vmor %vm7604_vm15, %vm7605_vm4 }
 0x8fe   : > { %7061 = vmax.xlane.f32.xlu2 %v7060_v4  ;;  %v7643_v4 = vmul.f32 %v9336_v54, %v7642_v48  ;;  %v7660_v48 = vmul.f32 %v9340_v56, %v7659_v19 }
 0x900   : > { %v7647_v17 = vsel %vm7646_vm9, %v9336_v54, %v7643_v4  ;;  %v7066_v54 = vsel %vm7029_vm14, %v14622_v27, -inf  ;;  %v7661_v34 = vmul.f32 0.5, %v7660_v48  ;;  %v7599_v4 = vmul.f32 %v9342_v36, %v7519_v7 }
 0x901   : > { %v7699_v50 = vmul.f32 %v14482_v25, %v7647_v17  ;;  %v7518_v7 = vadd.f32 1e-06, %v14492_v63 }
 0x902   : > { %v7662_v5 = vsub.f32 1.5, %v7661_v34  ;;  %v7600_v43 = vmul.f32 %v9342_v36, %v7599_v4 }
 0x903   : > { %v7715_v18 = vmul.f32 %v7699_v50, %v15876_v40  ;;  %vm7594_vm0 = vweird.f32 %v7518_v7 }
 0x904   : > { %v7663_v17 = vmul.f32 %v9340_v56, %v7662_v5  ;;  %v7601_v40 = vmul.f32 0.5, %v7600_v43 }
 0x906   : > { %v7667_v24 = vsel %vm7666_vm7, %v9340_v56, %v7663_v17  ;;  %v7602_v12 = vsub.f32 1.5, %v7601_v40 }
 0x908   : > { %v7603_v50 = vmul.f32 %v9342_v36, %v7602_v12 }
 0x90a   : > { %8229 = vrot.lane.b32.xlu0 %v7718_v53, %s9536_s30  ;;  %v9504_v53 = vld [vmem:[%s9621_s18 + $0x40] sm:$0xff] }
 0x90b   : > { %v14618_v3 = vpack.i.bf16 %v9504_v53, %v9503_v10  ;;  %v7701_v10 = vmul.f32 %v14482_v25, %v7667_v24 }
 0x90d   : > { %v7717_v47 = vmul.f32 %v7701_v10, %v15884_v62 }
 0x911   : > { %v8218_v6 = vpop.permute.xlu1 %8217 }
 0x912   : > { %9137 = vrot.lane.b32.xlu0 %v14605_v32, %s9538_s16  ;;  %9057 = vmatmul.msk.f32.vlgmr.msrb.gmra.mxu1 %vm6159_vm3, %v8218_v6  ;;  %v7716_v6 = vmul.f32 %v7700_v31, %v15879_v42 }
 0x916   : > { %8221 = vrot.lane.b32.xlu2 %v7714_v39, %s9536_s30  ;;  %v7511_v39 = vpop.xlane.xlu0 %7510 }
 0x917   : > { %v7527_v58 = vadd.f32 1e-06, %v7511_v39 }
 0x919   : > { %v8220_v52 = vpop.permute.xlu1 %8219  ;;  %vm7684_vm9 = vweird.f32 %v7527_v58 }
 0x91a   : > { %9172 = vrot.lane.b32.xlu0 %v14618_v3, %s9538_s16  ;;  %9058 = vmatmul.msk.f32.gmra.mxu1 %vm6159_vm3, %v8220_v52  ;;  %v7607_v52 = vsel %vm7606_vm12, %v9342_v36, %v7603_v50  ;;  %v7026_v50 = vpop.f32.mrf.mxu3 }
 0x91b   : > { %v7695_v56 = vmul.f32 %v14482_v25, %v7607_v52 }
 0x91c   : > { %7067 = vmax.xlane.f32.xlu1 %v7066_v54 }
 0x91e   : > { %8223 = vrot.lane.b32.xlu2 %v7715_v18, %s9536_s30  ;;  %v7056_v53 = vpop.xlane.xlu0 %7055  ;;  %v7711_v18 = vmul.f32 %v7695_v56, %v15858_v14  ;;  %v14658_v14 = vadd.f32 %v14567_v13, %v14442_v29 }
 0x91f   : > { %v7086_v42 = vsub.f32 %v14490_v35, %v7056_v53 }
 0x920   : > { %v7069_v4 = vsel %vm7029_vm14, %v14658_v14, -inf }
 0x921   : > { %v7110_v45 = vmul.f32 1.442695, %v7086_v42 }
 0x923   : > { %9343 = vpow2.f32 %v7110_v45 }
 0x924   : > { %9345 = vrsqrt.f32 %v7518_v7 }
 0x925   : > { %9347 = vrsqrt.f32 %v7527_v58 }
 0x926   : > { %8225 = vrot.lane.b32.xlu2 %v7716_v6, %s9536_s30  ;;  %v14645_v54 = vpop.xlane.xlu0 %7064 }
 0x929   : > { %v14651_v35 = vpop.eup %9343 }
 0x92a   : > { %v7150_v36 = vsel %vm7029_vm14, %v14651_v35, 0.0  ;;  %v9346_v31 = vpop.eup %9345 }
 0x92b   : > { %v7589_v34 = vmul.f32 %v9346_v31, %v7518_v7  ;;  %v9348_v5 = vpop.eup %9347  ;;  %vm7595_vm6 = vweird.f32 %v9346_v31 }
 0x92c   : > { %v7679_v6 = vmul.f32 %v9348_v5, %v7527_v58  ;;  %vm7596_vm5 = vmor %vm7594_vm0, %vm7595_vm6  ;;  %vm7685_vm8 = vweird.f32 %v9348_v5 }
 0x92d   : > { %v7590_v63 = vmul.f32 %v9346_v31, %v7589_v34  ;;  %vm7686_vm11 = vmor %vm7684_vm9, %vm7685_vm8  ;;  %v9506_v34 = vld [vmem:[%s9621_s18 + $0x70] sm:$0xff] }
 0x92e   : > { %v7680_v24 = vmul.f32 %v9348_v5, %v7679_v6 }
 0x92f   : > { %v7591_v43 = vmul.f32 0.5, %v7590_v63 }
 0x930   : > { %v14639_v19 = vpop.xlane.xlu2 %7052  ;;  %v7681_v12 = vmul.f32 0.5, %v7680_v24  ;;  %v9509_v24 = vld [vmem:[%s9621_s18 + $0x10] sm:$0xff] }
 0x931   : > { %v7592_v40 = vsub.f32 1.5, %v7591_v43  ;;  %v7078_v43 = vsub.f32 %v14273_v44, %v14516_v33 }
 0x932   : > { %v7682_v53 = vsub.f32 1.5, %v7681_v12 }
 0x933   : > { %v7593_v39 = vmul.f32 %v9346_v31, %v7592_v40  ;;  %v7094_v40 = vmul.f32 1.442695, %v7078_v43 }
 0x934   : > { %v7683_v52 = vmul.f32 %v9348_v5, %v7682_v53 }
 0x935   : > { %8227 = vrot.lane.b32.xlu1 %v7717_v47, %s9536_s30  ;;  %v7597_v13 = vsel %vm7596_vm5, %v9346_v31, %v7593_v39  ;;  %v14667_v47 = vadd.f32 %v7026_v50, %v14535_v60  ;;  %v9505_v31 = vld [vmem:[%s9621_s18 + $0x30] sm:$0xff]  ;;  %9349 = vpow2.f32 %v7094_v40  ;;  %v9516_v40 = vld [vmem:[%s9621_s18 + $0x48] sm:$0xff] }
 0x936   : > { %v8101_v62 = vpop.permute.xlu0 %8100  ;;  %v7694_v42 = vmul.f32 %v14482_v25, %v7597_v13  ;;  %v14681_v63 = vpack.i.bf16 %v9506_v34, %v9505_v31  ;;  %v9510_v39 = vld [vmem:[%s9621_s18 + $0x50] sm:$0xff]  ;;  %v9513_v31 = vld [vmem:[%s9621_s18 + $0x18] sm:$0xff] }
 0x937   : > { %v14697_v12 = vpack.i.bf16 %v9510_v39, %v9509_v24 }
 0x938   : > { %v8099_v48 = vpop.permute.xlu2 %8098  ;;  %v7710_v56 = vmul.f32 %v7694_v42, %v15857_v23 }
 0x939   : > { %9042 = vmatmul.msk.f32.gmra.mxu0 %vm6159_vm3, %v8099_v48  ;;  %v7687_v48 = vsel %vm7686_vm11, %v9348_v5, %v7683_v52 }
 0x93a   : > { %v7703_v7 = vmul.f32 %v14482_v25, %v7687_v48 }
 0x93b   : > { %v14703_v44 = vpop.eup %9349 }
 0x93c   : > { %v7126_v13 = vsel %vm7029_vm14, %v14703_v44, 0.0 }
 0x93d   : > { %8110 = vrot.lane.b32.xlu1 %v7711_v18, %s9536_s30  ;;  %v7075_v18 = vsel %vm7029_vm14, %v14667_v47, -inf }
 0x941   : > { %9043 = vmatmul.msk.f32.gmra.mxu0 %vm6159_vm3, %v8101_v62  ;;  %v8107_v62 = vpop.permute.xlu0 %8106 }
 0x944   : > { %7151 = vadd.xlane.f32.xlu0 %v7150_v36  ;;  %v14662_v17 = vpop.xlane.xlu1 %7058  ;;  %v7719_v36 = vmul.f32 %v7703_v7, %v15888_v49  ;;  %v9508_v49 = vld [vmem:[%s9621_s18 + $0x60] sm:$0xff]  ;;  %v9512_v7 = vld [vmem:[%s9621_s18 + $0x68] sm:$0xff] }
 0x94f   : > { %7070 = vmax.xlane.f32.xlu2 %v7069_v4  ;;  %v9507_v4 = vld [vmem:[%s9621_s18 + $0x20] sm:$0xff] }
 0x950   : > { %v14688_v5 = vpack.i.bf16 %v9508_v49, %v9507_v4 }
 0x95c   : > { %v8103_v10 = vpop.permute.xlu1 %8102 }
 0x95d   : > { %9044 = vmatmul.msk.f32.gmra.mxu0 %vm6159_vm3, %v8103_v10 }
 0x964   : > { %v8105_v45 = vpop.permute.xlu1 %8104 }
 0x965   : > { %9045 = vmatmul.msk.f32.gmra.mxu0 %vm6159_vm3, %v8105_v45 }
 0x967   : > { %8108 = vrot.lane.b32.xlu2 %v7710_v56, %s9536_s30  ;;  %7076 = vmax.xlane.f32.xlu1 %v7075_v18  ;;  %v7079_v56 = vsub.f32 %v14311_v2, %v14501_v21  ;;  %v9511_v18 = vld [vmem:[%s9621_s18 + $0x28] sm:$0xff]  ;;  %v9514_v2 = vld [vmem:[%s9621_s18 + $0x58] sm:$0xff] }
 0x968   : > { %v14730_v21 = vpack.i.bf16 %v9514_v2, %v9513_v31 }
 0x969   : > { %v14714_v52 = vpop.xlane.xlu0 %7073  ;;  %v7096_v48 = vmul.f32 1.442695, %v7079_v56  ;;  %v7080_v56 = vsub.f32 %v14425_v9, %v14612_v57 }
 0x96b   : > { %9351 = vpow2.f32 %v7096_v48  ;;  %v7098_v48 = vmul.f32 1.442695, %v7080_v56 }
 0x96d   : > { %9046 = vmatmul.msk.f32.gmra.mxu0 %vm6159_vm3, %v8107_v62  ;;  %v14721_v62 = vpack.i.bf16 %v9512_v7, %v9511_v18  ;;  %v7087_v18 = vsub.f32 %v14554_v15, %v14662_v17  ;;  %v7089_v15 = vsub.f32 %v14519_v16, %v14645_v54 }
 0x96f   : > { %8231 = vrot.lane.b32.xlu2 %v7719_v36, %s9536_s30  ;;  %v7112_v7 = vmul.f32 1.442695, %v7087_v18 }
 0x971   : > { %v7062_v58 = vpop.xlane.xlu2 %7061  ;;  %v14732_v34 = vpop.eup %9351 }
 0x972   : > { %v7129_v4 = vsel %vm7029_vm14, %v14732_v34, 0.0 }
 0x979   : > { %v8222_v23 = vpop.permute.xlu2 %8221 }
 0x97a   : > { %9059 = vmatmul.msk.f32.gmra.mxu1 %vm6159_vm3, %v8222_v23  ;;  %v14726_v23 = vpop.f32.mrf.mxu0 }
 0x97c   : > { %v8230_v36 = vpop.permute.xlu0 %8229 }
 0x980   : > { %9142 = vrot.lane.b32.xlu1 %v14681_v63, %s9538_s16 }
 0x981   : > { %v8224_v25 = vpop.permute.xlu2 %8223 }
 0x982   : > { %9060 = vmatmul.msk.f32.gmra.mxu1 %vm6159_vm3, %v8224_v25  ;;  %v7088_v25 = vsub.f32 %v14588_v55, %v7062_v58 }
 0x984   : > { %v7114_v43 = vmul.f32 1.442695, %v7088_v25  ;;  %v7081_v25 = vsub.f32 %v14360_v46, %v14542_v37 }
 0x986   : > { %9353 = vpow2.f32 %v7114_v43  ;;  %v7100_v17 = vmul.f32 1.442695, %v7081_v25  ;;  %v7116_v43 = vmul.f32 1.442695, %v7089_v15 }
 0x987   : > { %9355 = vpow2.f32 %v7098_v48  ;;  %v7082_v48 = vsub.f32 %v14439_v30, %v14564_v41 }
 0x988   : > { %9152 = vrot.lane.b32.xlu1 %v14688_v5, %s9538_s16  ;;  %9357 = vpow2.f32 %v7112_v7 }
 0x989   : > { %v8226_v6 = vpop.permute.xlu2 %8225  ;;  %9359 = vpow2.f32 %v7100_v17 }
 0x98a   : > { %9061 = vmatmul.msk.f32.gmra.mxu1 %vm6159_vm3, %v8226_v6  ;;  %v9515_v6 = vld [vmem:[%s9621_s18 + $0x8] sm:$0xff]  ;;  %9361 = vpow2.f32 %v7116_v43  ;;  %v7083_v43 = vsub.f32 %v14445_v0, %v14632_v51  ;;  %s9539_s18 = smov 48  }
 0x98b   : > { %v14741_v24 = vpack.i.bf16 %v9516_v40, %v9515_v6 }
 0x98c   : > { %v7104_v0 = vmul.f32 1.442695, %v7083_v43 }
 0x98f   : > { %v14699_v10 = vpop.f32.mrf.mxu1  ;;  %v14712_v42 = vpop.xlane.xlu1 %7067 }
 0x990   : > { %9162 = vrot.lane.b32.xlu1 %v14697_v12, %s9538_s16 }
 0x997   : > { %v8309_v33 = vpop.f32.mrf.mxu1 }
 0x998   : > { %v14708_v53 = vadd.f32 %v8309_v33, %v14306_v61  ;;  %7127 = vadd.xlane.f32.xlu2 %v7126_v13  ;;  %v14752_v33 = vpop.eup %9353 }
 0x999   : > { %v7156_v13 = vsel %vm7029_vm14, %v14752_v33, 0.0 }
 0x99a   : > { %v8357_v50 = vsel %vm7029_vm14, %v14708_v53, -inf }
 0x99b   : > { %8358 = vmax.xlane.f32.xlu0 %v8357_v50 }
 0x9a7   : > { %v8228_v45 = vpop.permute.xlu1 %8227 }
 0x9a8   : > { %9062 = vmatmul.msk.f32.gmra.mxu1 %vm6159_vm3, %v8228_v45 }
 0x9b0   : > { %9147 = vrot.lane.b32.xlu2 %v14721_v62, %s9538_s16  ;;  %9063 = vmatmul.msk.f32.gmra.mxu1 %vm6159_vm3, %v8230_v36  ;;  %v14763_v36 = vpop.eup %9355 }
 0x9b1   : > { %v7132_v31 = vsel %vm7029_vm14, %v14763_v36, 0.0  ;;  %v14767_v2 = vpop.eup %9357 }
 0x9b2   : > { %v7153_v9 = vsel %vm7029_vm14, %v14767_v2, 0.0  ;;  %v14787_v56 = vpop.eup %9359 }
 0x9b3   : > { %v7135_v7 = vsel %vm7029_vm14, %v14787_v56, 0.0 }
 0x9b6   : > { %v8188_v49 = vpop.f32.mrf.mxu0 }
 0x9b7   : > { %v14744_v39 = vadd.f32 %v8188_v49, %v14306_v61  ;;  %v8111_v61 = vpop.permute.xlu1 %8110 }
 0x9b8   : > { %9157 = vrot.lane.b32.xlu2 %v14730_v21, %s9538_s16 }
 0x9b9   : > { %v8333_v55 = vsel %vm7029_vm14, %v14744_v39, -inf }
 0x9ba   : > { %7130 = vadd.xlane.f32.xlu1 %v7129_v4 }
 0x9be   : > { %v8191_v4 = vpop.f32.mrf.mxu0 }
 0x9bf   : > { %v14778_v49 = vadd.f32 %v8191_v4, %v14419_v26 }
 0x9c0   : > { %9167 = vrot.lane.b32.xlu2 %v14741_v24, %s9538_s16 }
 0x9c1   : > { %v8336_v37 = vsel %vm7029_vm14, %v14778_v49, -inf }
 0x9c2   : > { %v14750_v58 = vpop.xlane.xlu2 %7070  ;;  %8334 = vmax.xlane.f32.xlu1 %v8333_v55  ;;  %v9138_v55 = vpop.permute.xlu0 %9137 }
 0x9c3   : > { %v9139_v16 = vunpack.i.l.bf16 %v9138_v55  ;;  %v9140_v54 = vunpack.i.h.bf16 %v9138_v55 }
 0x9c5   : > { %7262 = vmatpush.msrb.mxu2 %v9139_v16  ;;  %7351 = vmatpush.msrb.mxu3 %v9140_v54 }
 0x9ca   : > { %v8109_v50 = vpop.permute.xlu2 %8108  ;;  %7157 = vadd.xlane.f32.xlu1 %v7156_v13 }
 0x9cb   : > { %9047 = vmatmul.msk.f32.gmra.mxu0 %vm6159_vm3, %v8109_v50 }
 0x9d2   : > { %v8232_v45 = vpop.permute.xlu2 %8231 }
 0x9d3   : > { %9048 = vmatmul.msk.f32.gmra.mxu0 %vm6159_vm3, %v8111_v61  ;;  %9064 = vmatmul.msk.f32.gmra.mxu1 %vm6159_vm3, %v8232_v45 }
 0x9da   : > { %v14775_v57 = vpop.xlane.xlu1 %7076  ;;  %v8194_v6 = vpop.f32.mrf.mxu0 }
 0x9db   : > { %v14800_v15 = vadd.f32 %v8194_v6, %v14355_v11 }
 0x9e2   : > { %v8197_v25 = vpop.f32.mrf.mxu0 }
 0x9e9   : > { %7133 = vadd.xlane.f32.xlu2 %v7132_v31  ;;  %v7090_v31 = vsub.f32 %v14622_v27, %v14712_v42  ;;  %v8339_v42 = vsel %vm7029_vm14, %v14800_v15, -inf }
 0x9ea   : > { %v8200_v55 = vpop.f32.mrf.mxu0 }
 0x9eb   : > { %v7118_v17 = vmul.f32 1.442695, %v7090_v31  ;;  %v14821_v54 = vadd.f32 %v8200_v55, %v14442_v29 }
 0x9f1   : > { %7154 = vadd.xlane.f32.xlu2 %v7153_v9  ;;  %v7102_v9 = vmul.f32 1.442695, %v7082_v48 }
 0x9f2   : > { %v9143_v50 = vpop.permute.xlu1 %9142 }
 0x9f3   : > { %v9144_v61 = vunpack.i.l.bf16 %v9143_v50  ;;  %v9145_v45 = vunpack.i.h.bf16 %v9143_v50  ;;  %9363 = vpow2.f32 %v7102_v9  ;;  %v7084_v9 = vsub.f32 %v14469_v22, %v14599_v38 }
 0x9f4   : > { %9365 = vpow2.f32 %v7118_v17 }
 0x9f5   : > { %7263 = vmatpush.msrb.mxu2 %v9144_v61  ;;  %7352 = vmatpush.msrb.mxu3 %v9145_v45  ;;  %9367 = vpow2.f32 %v7104_v0  ;;  %v7085_v61 = vsub.f32 %v14538_v28, %v14639_v19  ;;  %v14831_v45 = vpop.permute.xlu0 %9172 }
 0x9f7   : > { %v8312_v40 = vpop.f32.mrf.mxu1  ;;  %v7108_v17 = vmul.f32 1.442695, %v7085_v61 }
 0x9f8   : > { %v14781_v46 = vadd.f32 %v8312_v40, %v14419_v26  ;;  %v14789_v26 = vpop.eup %9361  ;;  %v7092_v40 = vsub.f32 %v14579_v20, %v14714_v52  ;;  %v7091_v52 = vsub.f32 %v14658_v14, %v14750_v58  ;;  %v14838_v14 = vadd.f32 %v8197_v25, %v14436_v8 }
 0x9f9   : > { %8337 = vmax.xlane.f32.xlu2 %v8336_v37  ;;  %v7159_v4 = vsel %vm7029_vm14, %v14789_v26, 0.0  ;;  %v14818_v51 = vpop.eup %9363  ;;  %v7106_v25 = vmul.f32 1.442695, %v7084_v9 }
 0x9fa   : > { %v8360_v13 = vsel %vm7029_vm14, %v14781_v46, -inf  ;;  %v7122_v16 = vmul.f32 1.442695, %v7092_v40  ;;  %v14823_v20 = vpop.eup %9365  ;;  %v7138_v50 = vsel %vm7029_vm14, %v14818_v51, 0.0 }
 0x9fb   : > { %8361 = vmax.xlane.f32.xlu1 %v8360_v13  ;;  %v9153_v13 = vpop.permute.xlu1 %9152  ;;  %v7162_v48 = vsel %vm7029_vm14, %v14823_v20, 0.0 }
 0x9fc   : > { %9369 = vpow2.f32 %v7122_v16  ;;  %v9154_v28 = vunpack.i.l.bf16 %v9153_v13  ;;  %v9155_v19 = vunpack.i.h.bf16 %v9153_v13 }
 0x9fd   : > { %v7152_v40 = vpop.xlane.xlu0 %7151 }
 0x9ff   : > { %v8315_v18 = vpop.f32.mrf.mxu1 }
 0xa00   : > { %v14803_v30 = vadd.f32 %v8315_v18, %v14355_v11  ;;  %v8345_v18 = vsel %vm7029_vm14, %v14821_v54, -inf }
 0xa01   : > { %7136 = vadd.xlane.f32.xlu2 %v7135_v7  ;;  %v7120_v7 = vmul.f32 1.442695, %v7091_v52 }
 0xa02   : > { %v8363_v6 = vsel %vm7029_vm14, %v14803_v30, -inf }
 0xa03   : > { %7160 = vadd.xlane.f32.xlu1 %v7159_v4  ;;  %9371 = vpow2.f32 %v7120_v7 }
 0xa04   : > { %9373 = vpow2.f32 %v7108_v17 }
 0xa05   : > { %9375 = vpow2.f32 %v7106_v25 }
 0xa06   : > { %9377 = vrcp.f32 %v7152_v40 }
 0xa07   : > { %v8318_v41 = vpop.f32.mrf.mxu1 }
 0xa08   : > { %v14808_v27 = vadd.f32 %v8318_v41, %v14436_v8  ;;  %v14842_v41 = vpop.eup %9367  ;;  %v8342_v8 = vsel %vm7029_vm14, %v14838_v14, -inf }
 0xa09   : > { %8340 = vmax.xlane.f32.xlu2 %v8339_v42  ;;  %v14844_v43 = vpop.eup %9369  ;;  %v9163_v42 = vpop.permute.xlu1 %9162  ;;  %v7141_v22 = vsel %vm7029_vm14, %v14842_v41, 0.0 }
 0xa0a   : > { %v8366_v11 = vsel %vm7029_vm14, %v14808_v27, -inf  ;;  %v7168_v38 = vsel %vm7029_vm14, %v14844_v43, 0.0  ;;  %v9164_v0 = vunpack.i.l.bf16 %v9163_v42  ;;  %v9165_v16 = vunpack.i.h.bf16 %v9163_v42  ;;  %v14852_v52 = vpop.eup %9371 }
 0xa0b   : > { %v7128_v37 = vpop.xlane.xlu2 %7127  ;;  %8367 = vmax.xlane.f32.xlu0 %v8366_v11  ;;  %8364 = vmax.xlane.f32.xlu1 %v8363_v6  ;;  %v14854_v13 = vpop.eup %9373 }
 0xa0c   : > { %9379 = vrcp.f32 %v7128_v37  ;;  %v7147_v61 = vsel %vm7029_vm14, %v14854_v13, 0.0  ;;  %v9175_v37 = vunpack.i.h.bf16 %v14831_v45 }
 0xa11   : > { %7139 = vadd.xlane.f32.xlu2 %v7138_v50  ;;  %v7165_v50 = vsel %vm7029_vm14, %v14852_v52, 0.0 }
 0xa13   : > { %v9148_v58 = vpop.permute.xlu2 %9147  ;;  %7163 = vadd.xlane.f32.xlu1 %v7162_v48  ;;  %8346 = vmax.xlane.f32.xlu0 %v8345_v18  ;;  %v14860_v48 = vpop.eup %9375 }
 0xa14   : > { %v9149_v31 = vunpack.i.l.bf16 %v9148_v58  ;;  %v9150_v4 = vunpack.i.h.bf16 %v9148_v58  ;;  %v9378_v7 = vpop.eup %9377 }
 0xa15   : > { %v7198_v42 = vmul.f32 %v9378_v7, %v14651_v35  ;;  %v7093_v35 = vsub.f32 %v14667_v47, %v14775_v57 }
 0xa16   : > { %7264 = vmatpush.msrb.mxu2 %v9149_v31  ;;  %7353 = vmatpush.msrb.mxu3 %v9150_v4  ;;  %v9174_v4 = vunpack.i.l.bf16 %v14831_v45 }
 0xa18   : > { %7265 = vmatpush.msrb.mxu2 %v9154_v28  ;;  %7354 = vmatpush.msrb.mxu3 %v9155_v19  ;;  %v9380_v28 = vpop.eup %9379 }
 0xa19   : > { %8343 = vmax.xlane.f32.xlu2 %v8342_v8  ;;  %v7144_v8 = vsel %vm7029_vm14, %v14860_v48, 0.0  ;;  %v7190_v25 = vmul.f32 %v9380_v28, %v14703_v44 }
 0xa1b   : > { %v9158_v11 = vpop.permute.xlu2 %9157  ;;  %7142 = vadd.xlane.f32.xlu1 %v7141_v22  ;;  %7169 = vadd.xlane.f32.xlu0 %v7168_v38 }
 0xa1c   : > { %v9159_v6 = vunpack.i.l.bf16 %v9158_v11  ;;  %v9160_v55 = vunpack.i.h.bf16 %v9158_v11  ;;  %v7124_v11 = vmul.f32 1.442695, %v7093_v35 }
 0xa1e   : > { %7266 = vmatpush.msrb.mxu2 %v9159_v6  ;;  %7355 = vmatpush.msrb.mxu3 %v9160_v55 }
 0xa20   : > { %7267 = vmatpush.msrb.mxu2 %v9164_v0  ;;  %7356 = vmatpush.msrb.mxu3 %v9165_v16 }
 0xa21   : > { %7166 = vadd.xlane.f32.xlu2 %v7165_v50 }
 0xa23   : > { %v9168_v18 = vpop.permute.xlu2 %9167  ;;  %7148 = vadd.xlane.f32.xlu0 %v7147_v61 }
 0xa24   : > { %v9169_v58 = vunpack.i.l.bf16 %v9168_v18  ;;  %v9170_v31 = vunpack.i.h.bf16 %v9168_v18 }
 0xa25   : > { %v8321_v19 = vpop.f32.mrf.mxu1 }
 0xa26   : > { %v14865_v9 = vadd.f32 %v8321_v19, %v14442_v29  ;;  %7268 = vmatpush.msrb.mxu2 %v9169_v58  ;;  %7357 = vmatpush.msrb.mxu3 %v9170_v31 }
 0xa28   : > { %7269 = vmatpush.msrb.mxu2 %v9174_v4  ;;  %7358 = vmatpush.msrb.mxu3 %v9175_v37  ;;  %v8369_v17 = vsel %vm7029_vm14, %v14865_v9, -inf }
 0xa29   : > { %8370 = vmax.xlane.f32.xlu1 %v8369_v17  ;;  %7145 = vadd.xlane.f32.xlu2 %v7144_v8 }
 0xa2a   : > { %9017 = vmatmul.msk.f32.vlgmr.msrb.gmra.mxu2 %vm7029_vm14, %v7190_v25  ;;  %9025 = vmatmul.msk.f32.vlgmr.msrb.gmra.mxu3 %vm7029_vm14, %v7198_v42 }
 0xa2d   : > { %v7131_v29 = vpop.xlane.xlu1 %7130  ;;  %v8324_v45 = vpop.f32.mrf.mxu1 }
 0xa2e   : > { %9381 = vrcp.f32 %v7131_v29  ;;  %v14876_v22 = vadd.f32 %v8324_v45, %v14466_v59  ;;  %v14923_v45 = vadd.f32 %v14699_v10, %v14261_v1 }
 0xa2f   : > { %9383 = vpow2.f32 %v7124_v11 }
 0xa30   : > { %v8372_v38 = vsel %vm7029_vm14, %v14876_v22, -inf }
 0xa31   : > { %8373 = vmax.xlane.f32.xlu2 %v8372_v38  ;;  %v8354_v38 = vsel %vm7029_vm14, %v14923_v45, -inf }
 0xa34   : > { %v9382_v40 = vpop.eup %9381 }
 0xa35   : > { %v7191_v44 = vmul.f32 %v9382_v40, %v14732_v34  ;;  %v14891_v34 = vpop.eup %9383  ;;  %v8335_v18 = vpop.xlane.xlu1 %8334 }
 0xa36   : > { %v7171_v47 = vsel %vm7029_vm14, %v14891_v34, 0.0  ;;  %v8379_v58 = vsub.f32 %v14744_v39, %v8335_v18  ;;  %v8359_v40 = vpop.xlane.xlu0 %8358 }
 0xa37   : > { %9018 = vmatmul.msk.f32.gmra.mxu2 %vm7029_vm14, %v7191_v44 }
 0xa38   : > { %v8396_v4 = vmul.f32 1.442695, %v8379_v58 }
 0xa3d   : > { %v7158_v19 = vpop.xlane.xlu1 %7157 }
 0xa48   : > { %v8203_v6 = vpop.f32.mrf.mxu0 }
 0xa49   : > { %v14885_v55 = vadd.f32 %v8203_v6, %v14466_v59  ;;  %9177 = vrot.lane.b32.xlu2 %v14605_v32, %s9539_s18  ;;  %v8387_v6 = vsub.f32 %v14708_v53, %v8359_v40 }
 0xa4b   : > { %v8348_v0 = vsel %vm7029_vm14, %v14885_v55, -inf }
 0xa4c   : > { %8349 = vmax.xlane.f32.xlu1 %v8348_v0 }
 0xa50   : > { %v8206_v16 = vpop.f32.mrf.mxu0  ;;  %v8327_v57 = vpop.f32.mrf.mxu1 }
 0xa51   : > { %v14894_v50 = vadd.f32 %v8206_v16, %v14535_v60  ;;  %v14901_v32 = vadd.f32 %v8327_v57, %v14535_v60  ;;  %v8412_v16 = vmul.f32 1.442695, %v8387_v6 }
 0xa53   : > { %v8351_v59 = vsel %vm7029_vm14, %v14894_v50, -inf  ;;  %v8375_v61 = vsel %vm7029_vm14, %v14901_v32, -inf }
 0xa54   : > { %7172 = vadd.xlane.f32.xlu1 %v7171_v47  ;;  %8352 = vmax.xlane.f32.xlu0 %v8351_v59 }
 0xa5c   : > { %v7134_v7 = vpop.xlane.xlu2 %7133  ;;  %8376 = vmax.xlane.f32.xlu1 %v8375_v61 }
 0xa5d   : > { %9385 = vrcp.f32 %v7134_v7 }
 0xa63   : > { %v9386_v31 = vpop.eup %9385 }
 0xa64   : > { %v7155_v37 = vpop.xlane.xlu2 %7154  ;;  %v7192_v28 = vmul.f32 %v9386_v31, %v14763_v36 }
 0xa65   : > { %9387 = vrcp.f32 %v7155_v37 }
 0xa66   : > { %9019 = vmatmul.msk.f32.gmra.mxu2 %vm7029_vm14, %v7192_v28  ;;  %9389 = vpow2.f32 %v8396_v4 }
 0xa67   : > { %9391 = vrcp.f32 %v7158_v19 }
 0xa68   : > { %9182 = vrot.lane.b32.xlu0 %v14681_v63, %s9539_s18 }
 0xa6b   : > { %v9388_v60 = vpop.eup %9387 }
 0xa6c   : > { %v14910_v17 = vpop.xlane.xlu2 %8337  ;;  %v7199_v8 = vmul.f32 %v9388_v60, %v14767_v2  ;;  %v14913_v39 = vpop.eup %9389 }
 0xa6d   : > { %v9392_v36 = vpop.eup %9391  ;;  %v8429_v42 = vsel %vm7029_vm14, %v14913_v39, 0.0  ;;  %v8380_v6 = vsub.f32 %v14778_v49, %v14910_v17 }
 0xa6e   : > { %v14915_v25 = vpop.xlane.xlu1 %8361  ;;  %9026 = vmatmul.msk.f32.gmra.mxu3 %vm7029_vm14, %v7199_v8  ;;  %v7200_v63 = vmul.f32 %v9392_v36, %v14752_v33  ;;  %v14961_v8 = vadd.f32 %v14726_v23, %v14261_v1 }
 0xa6f   : > { %v8388_v1 = vsub.f32 %v14781_v46, %v14915_v25 }
 0xa72   : > { %8430 = vadd.xlane.f32.xlu2 %v8429_v42 }
 0xa74   : > { %v7137_v29 = vpop.xlane.xlu2 %7136 }
 0xa75   : > { %9393 = vrcp.f32 %v7137_v29  ;;  %9187 = vrot.lane.b32.xlu1 %v14721_v62, %s9539_s18 }
 0xa76   : > { %v7161_v2 = vpop.xlane.xlu1 %7160  ;;  %9027 = vmatmul.msk.f32.gmra.mxu3 %vm7029_vm14, %v7200_v63 }
 0xa77   : > { %9395 = vrcp.f32 %v7161_v2 }
 0xa7a   : > { %8355 = vmax.xlane.f32.xlu2 %v8354_v38 }
 0xa7b   : > { %v9394_v44 = vpop.eup %9393 }
 0xa7c   : > { %v14930_v35 = vpop.xlane.xlu2 %8340  ;;  %v7193_v33 = vmul.f32 %v9394_v44, %v14787_v56 }
 0xa7d   : > { %v9396_v10 = vpop.eup %9395  ;;  %9192 = vrot.lane.b32.xlu1 %v14688_v5, %s9539_s18 }
 0xa7e   : > { %v14935_v11 = vpop.xlane.xlu1 %8364  ;;  %9020 = vmatmul.msk.f32.gmra.mxu2 %vm7029_vm14, %v7193_v33  ;;  %v7201_v62 = vmul.f32 %v9396_v10, %v14789_v26  ;;  %v14941_v0 = vpop.xlane.xlu0 %8367 }
 0xa80   : > { %9028 = vmatmul.msk.f32.gmra.mxu3 %vm7029_vm14, %v7201_v62 }
 0xa84   : > { %v7140_v47 = vpop.xlane.xlu2 %7139 }
 0xa85   : > { %9397 = vrcp.f32 %v7140_v47 }
 0xa86   : > { %v7164_v56 = vpop.xlane.xlu1 %7163  ;;  %v14943_v5 = vpop.xlane.xlu0 %8346 }
 0xa87   : > { %9399 = vrcp.f32 %v7164_v56  ;;  %v8383_v33 = vsub.f32 %v14821_v54, %v14943_v5  ;;  %v8398_v56 = vmul.f32 1.442695, %v8380_v6 }
 0xa88   : > { %9401 = vpow2.f32 %v8412_v16 }
 0xa8b   : > { %v9398_v59 = vpop.eup %9397 }
 0xa8c   : > { %v8344_v57 = vpop.xlane.xlu2 %8343  ;;  %v7194_v61 = vmul.f32 %v9398_v59, %v14818_v51 }
 0xa8d   : > { %v9400_v18 = vpop.eup %9399  ;;  %v8382_v46 = vsub.f32 %v14838_v14, %v8344_v57  ;;  %v8404_v14 = vmul.f32 1.442695, %v8383_v33  ;;  %v8389_v57 = vsub.f32 %v14803_v30, %v14935_v11  ;;  %v8390_v11 = vsub.f32 %v14808_v27, %v14941_v0 }
 0xa8e   : > { %v14946_v26 = vpop.eup %9401  ;;  %v7143_v53 = vpop.xlane.xlu1 %7142  ;;  %9021 = vmatmul.msk.f32.gmra.mxu2 %vm7029_vm14, %v7194_v61  ;;  %v7202_v7 = vmul.f32 %v9400_v18, %v14823_v20 }
 0xa8f   : > { %9403 = vrcp.f32 %v7143_v53  ;;  %v8453_v58 = vsel %vm7029_vm14, %v14946_v26, 0.0  ;;  %v7170_v4 = vpop.xlane.xlu0 %7169  ;;  %v8402_v2 = vmul.f32 1.442695, %v8382_v46 }
 0xa90   : > { %9029 = vmatmul.msk.f32.gmra.mxu3 %vm7029_vm14, %v7202_v7 }
 0xa92   : > { %9202 = vrot.lane.b32.xlu2 %v14697_v12, %s9539_s18  ;;  %8454 = vadd.xlane.f32.xlu0 %v8453_v58 }
 0xa94   : > { %v7167_v31 = vpop.xlane.xlu2 %7166 }
 0xa95   : > { %v9404_v51 = vpop.eup %9403  ;;  %9405 = vrcp.f32 %v7167_v31  ;;  %v8418_v31 = vmul.f32 1.442695, %v8390_v11 }
 0xa96   : > { %v7195_v37 = vmul.f32 %v9404_v51, %v14842_v41  ;;  %9407 = vrcp.f32 %v7170_v4 }
 0xa97   : > { %v7149_v60 = vpop.xlane.xlu0 %7148 }
 0xa98   : > { %9022 = vmatmul.msk.f32.gmra.mxu2 %vm7029_vm14, %v7195_v37 }
 0xa9b   : > { %v9406_v28 = vpop.eup %9405 }
 0xa9c   : > { %v7146_v20 = vpop.xlane.xlu2 %7145  ;;  %v7203_v19 = vmul.f32 %v9406_v28, %v14852_v52  ;;  %v9408_v12 = vpop.eup %9407  ;;  %v8330_v52 = vsel %vm7029_vm14, %v14961_v8, -inf }
 0xa9d   : > { %9409 = vrcp.f32 %v7146_v20  ;;  %v7204_v42 = vmul.f32 %v9408_v12, %v14844_v43  ;;  %v8414_v43 = vmul.f32 1.442695, %v8388_v1 }
 0xa9e   : > { %9030 = vmatmul.msk.f32.gmra.mxu3 %vm7029_vm14, %v7203_v19  ;;  %9411 = vrcp.f32 %v7149_v60 }
 0xa9f   : > { %9413 = vpow2.f32 %v8414_v43 }
 0xaa0   : > { %9415 = vpow2.f32 %v8402_v2 }
 0xaa1   : > { %9417 = vpow2.f32 %v8404_v14 }
 0xaa2   : > { %9419 = vpow2.f32 %v8398_v56 }
 0xaa3   : > { %v9410_v36 = vpop.eup %9409 }
 0xaa4   : > { %v7196_v41 = vmul.f32 %v9410_v36, %v14860_v48  ;;  %v9412_v29 = vpop.eup %9411  ;;  %v14979_v23 = vpop.xlane.xlu2 %8373 }
 0xaa5   : > { %v14988_v44 = vpop.eup %9413 }
 0xaa6   : > { %9197 = vrot.lane.b32.xlu0 %v14730_v21, %s9539_s18  ;;  %9023 = vmatmul.msk.f32.gmra.mxu2 %vm7029_vm14, %v7196_v41  ;;  %v7197_v21 = vmul.f32 %v9412_v29, %v14854_v13  ;;  %v8371_v13 = vpop.xlane.xlu1 %8370  ;;  %v8456_v62 = vsel %vm7029_vm14, %v14988_v44, 0.0  ;;  %v14998_v16 = vpop.eup %9415 }
 0xaa7   : > { %9031 = vmatmul.msk.f32.gmra.mxu3 %vm7029_vm14, %v7204_v42  ;;  %8331 = vmax.xlane.f32.xlu1 %v8330_v52  ;;  %v8438_v59 = vsel %vm7029_vm14, %v14998_v16, 0.0  ;;  %v15007_v49 = vpop.eup %9417  ;;  %v8391_v27 = vsub.f32 %v14865_v9, %v8371_v13  ;;  %v8392_v9 = vsub.f32 %v14876_v22, %v14979_v23  ;;  %v8381_v42 = vsub.f32 %v14800_v15, %v14930_v35 }
 0xaa8   : > { %v8441_v18 = vsel %vm7029_vm14, %v15007_v49, 0.0  ;;  %v15014_v53 = vpop.eup %9419 }
 0xaa9   : > { %v8422_v52 = vmul.f32 1.442695, %v8392_v9  ;;  %v8400_v1 = vmul.f32 1.442695, %v8381_v42 }
 0xaac   : > { %v9178_v25 = vpop.permute.xlu2 %9177 }
 0xaad   : > { %v7271_v48 = vpop.f32.mrf.mxu2  ;;  %v7360_v63 = vpop.f32.mrf.mxu3  ;;  %v9180_v38 = vunpack.i.h.bf16 %v9178_v25  ;;  %v9179_v40 = vunpack.i.l.bf16 %v9178_v25 }
 0xaae   : > { %7384 = vst.msk [vmem:[%s14977_s21] sm:$0xff] %vm6159_vm3, %v7271_v48  ;;  %9024 = vmatmul.msk.f32.gmra.mxu2 %vm7029_vm14, %v7197_v21 }
 0xaaf   : > { %7392 = vst.msk [vmem:[%s14977_s21 + $0x40] sm:$0xff] %vm6159_vm3, %v7360_v63  ;;  %8562 = vmatpush.msra.mxu0 %v9179_v40  ;;  %8651 = vmatpush.msra.mxu1 %v9180_v38 }
 0xab0   : > { %9086 = vmatpush.msra.mxu2 %v9179_v40  ;;  %9094 = vmatpush.msra.mxu3 %v9180_v38 }
 0xaba   : > { %v7274_v10 = vpop.f32.mrf.mxu2 }
 0xabb   : > { %7385 = vst.msk [vmem:[%s14977_s21 + $0x8] sm:$0xff] %vm6159_vm3, %v7274_v10  ;;  %8457 = vadd.xlane.f32.xlu2 %v8456_v62 }
 0xabf   : > { %v8350_v47 = vpop.xlane.xlu1 %8349 }
 0xac0   : > { %9207 = vrot.lane.b32.xlu1 %v14741_v24, %s9539_s18  ;;  %v8384_v54 = vsub.f32 %v14885_v55, %v8350_v47  ;;  %v8416_v55 = vmul.f32 1.442695, %v8389_v57 }
 0xac2   : > { %v8406_v5 = vmul.f32 1.442695, %v8384_v54 }
 0xac3   : > { %8439 = vadd.xlane.f32.xlu2 %v8438_v59 }
 0xac7   : > { %v7173_v17 = vpop.xlane.xlu1 %7172  ;;  %v8353_v61 = vpop.xlane.xlu0 %8352 }
 0xac8   : > { %9421 = vrcp.f32 %v7173_v17  ;;  %9212 = vrot.lane.b32.xlu1 %v14618_v3, %s9539_s18  ;;  %v8385_v24 = vsub.f32 %v14894_v50, %v8353_v61  ;;  %v8432_v3 = vsel %vm7029_vm14, %v15014_v53, 0.0 }
 0xac9   : > { %9423 = vpow2.f32 %v8406_v5 }
 0xaca   : > { %v8408_v7 = vmul.f32 1.442695, %v8385_v24  ;;  %9425 = vpow2.f32 %v8416_v55 }
 0xacb   : > { %8442 = vadd.xlane.f32.xlu2 %v8441_v18 }
 0xacc   : > { %9427 = vpow2.f32 %v8408_v7 }
 0xacd   : > { %9429 = vpow2.f32 %v8418_v31 }
 0xace   : > { %v9422_v30 = vpop.eup %9421 }
 0xacf   : > { %v15018_v58 = vpop.eup %9423  ;;  %v7205_v50 = vmul.f32 %v9422_v30, %v14891_v34  ;;  %v8420_v34 = vmul.f32 1.442695, %v8391_v27  ;;  %v8377_v36 = vpop.xlane.xlu1 %8376 }
 0xad0   : > { %8433 = vadd.xlane.f32.xlu0 %v8432_v3  ;;  %v8444_v51 = vsel %vm7029_vm14, %v15018_v58, 0.0  ;;  %v15026_v4 = vpop.eup %9425  ;;  %v8393_v23 = vsub.f32 %v14901_v32, %v8377_v36 }
 0xad1   : > { %9032 = vmatmul.msk.f32.gmra.mxu3 %vm7029_vm14, %v7205_v50  ;;  %v8459_v37 = vsel %vm7029_vm14, %v15026_v4, 0.0  ;;  %9431 = vpow2.f32 %v8420_v34 }
 0xad2   : > { %v15029_v0 = vpop.eup %9427  ;;  %9433 = vpow2.f32 %v8422_v52  ;;  %v8424_v35 = vmul.f32 1.442695, %v8393_v23 }
 0xad3   : > { %8445 = vadd.xlane.f32.xlu2 %v8444_v51  ;;  %v8447_v28 = vsel %vm7029_vm14, %v15029_v0, 0.0  ;;  %v15035_v12 = vpop.eup %9429  ;;  %9435 = vpow2.f32 %v8400_v1 }
 0xad4   : > { %v8462_v41 = vsel %vm7029_vm14, %v15035_v12, 0.0  ;;  %9437 = vpow2.f32 %v8424_v35 }
 0xad7   : > { %v15043_v29 = vpop.eup %9431 }
 0xad8   : > { %8460 = vadd.xlane.f32.xlu0 %v8459_v37  ;;  %v8465_v22 = vsel %vm7029_vm14, %v15043_v29, 0.0  ;;  %v15052_v15 = vpop.eup %9433 }
 0xad9   : > { %v15054_v2 = vpop.eup %9435  ;;  %v8468_v40 = vsel %vm7029_vm14, %v15052_v15, 0.0 }
 0xada   : > { %v9183_v20 = vpop.permute.xlu0 %9182  ;;  %v8435_v14 = vsel %vm7029_vm14, %v15054_v2, 0.0 }
 0xadb   : > { %8448 = vadd.xlane.f32.xlu2 %v8447_v28  ;;  %v9185_v19 = vunpack.i.h.bf16 %v9183_v20  ;;  %v9184_v60 = vunpack.i.l.bf16 %v9183_v20 }
 0xadd   : > { %8563 = vmatpush.msra.mxu0 %v9184_v60  ;;  %9087 = vmatpush.msra.mxu2 %v9184_v60 }
 0xade   : > { %8652 = vmatpush.msra.mxu1 %v9185_v19  ;;  %9095 = vmatpush.msra.mxu3 %v9185_v19 }
 0xae0   : > { %8463 = vadd.xlane.f32.xlu0 %v8462_v41 }
 0xae5   : > { %v15045_v21 = vpop.xlane.xlu2 %8430 }
 0xae7   : > { %v9188_v43 = vpop.permute.xlu1 %9187 }
 0xae8   : > { %v9190_v48 = vunpack.i.h.bf16 %v9188_v43  ;;  %v9189_v63 = vunpack.i.l.bf16 %v9188_v43  ;;  %8466 = vadd.xlane.f32.xlu0 %v8465_v22 }
 0xae9   : > { %v7277_v46 = vpop.f32.mrf.mxu2 }
 0xaea   : > { %7386 = vst.msk [vmem:[%s14977_s21 + $0x10] sm:$0xff] %vm6159_vm3, %v7277_v46  ;;  %8564 = vmatpush.msra.mxu0 %v9189_v63  ;;  %9088 = vmatpush.msra.mxu2 %v9189_v63 }
 0xaeb   : > { %8653 = vmatpush.msra.mxu1 %v9190_v48  ;;  %9096 = vmatpush.msra.mxu3 %v9190_v48 }
 0xaed   : > { %v8356_v25 = vpop.xlane.xlu2 %8355 }
 0xaee   : > { %v8386_v38 = vsub.f32 %v14923_v45, %v8356_v25  ;;  %v15063_v45 = vpop.eup %9437 }
 0xaef   : > { %v9193_v32 = vpop.permute.xlu1 %9192  ;;  %v8471_v54 = vsel %vm7029_vm14, %v15063_v45, 0.0 }
 0xaf0   : > { %v8410_v13 = vmul.f32 1.442695, %v8386_v38  ;;  %v9195_v33 = vunpack.i.h.bf16 %v9193_v32  ;;  %v9194_v10 = vunpack.i.l.bf16 %v9193_v32  ;;  %8469 = vadd.xlane.f32.xlu0 %v8468_v40 }
 0xaf1   : > { %v7363_v62 = vpop.f32.mrf.mxu3 }
 0xaf2   : > { %9439 = vpow2.f32 %v8410_v13  ;;  %7393 = vst.msk [vmem:[%s14977_s21 + $0x48] sm:$0xff] %vm6159_vm3, %v7363_v62  ;;  %8436 = vadd.xlane.f32.xlu1 %v8435_v14  ;;  %8565 = vmatpush.msra.mxu0 %v9194_v10 }
 0xaf3   : > { %9089 = vmatpush.msra.mxu2 %v9194_v10  ;;  %8654 = vmatpush.msra.mxu1 %v9195_v33 }
 0xaf4   : > { %9097 = vmatpush.msra.mxu3 %v9195_v33 }
 0xaf5   : > { %v9203_v24 = vpop.permute.xlu2 %9202 }
 0xaf6   : > { %v9205_v18 = vunpack.i.h.bf16 %v9203_v24  ;;  %v9204_v7 = vunpack.i.l.bf16 %v9203_v24 }
 0xaf8   : > { %v15065_v6 = vpop.eup %9439 }
 0xaf9   : > { %v7366_v47 = vpop.f32.mrf.mxu3  ;;  %v8450_v56 = vsel %vm7029_vm14, %v15065_v6, 0.0 }
 0xafa   : > { %7394 = vst.msk [vmem:[%s14977_s21 + $0x50] sm:$0xff] %vm6159_vm3, %v7366_v47  ;;  %8472 = vadd.xlane.f32.xlu1 %v8471_v54  ;;  %8451 = vadd.xlane.f32.xlu2 %v8450_v56 }
 0xb01   : > { %v7280_v59 = vpop.f32.mrf.mxu2 }
 0xb02   : > { %7387 = vst.msk [vmem:[%s14977_s21 + $0x18] sm:$0xff] %vm6159_vm3, %v7280_v59 }
 0xb03   : > { %v7369_v5 = vpop.f32.mrf.mxu3 }
 0xb04   : > { %7395 = vst.msk [vmem:[%s14977_s21 + $0x58] sm:$0xff] %vm6159_vm3, %v7369_v5 }
 0xb05   : > { %v8455_v57 = vpop.xlane.xlu0 %8454 }
 0xb11   : > { %v7283_v17 = vpop.f32.mrf.mxu2 }
 0xb12   : > { %7388 = vst.msk [vmem:[%s14977_s21 + $0x20] sm:$0xff] %vm6159_vm3, %v7283_v17 }
 0xb13   : > { %v7372_v61 = vpop.f32.mrf.mxu3 }
 0xb14   : > { %7396 = vst.msk [vmem:[%s14977_s21 + $0x60] sm:$0xff] %vm6159_vm3, %v7372_v61 }
 0xb18   : > { %v9198_v55 = vpop.permute.xlu0 %9197 }
 0xb19   : > { %v9200_v30 = vunpack.i.h.bf16 %v9198_v55  ;;  %v9199_v11 = vunpack.i.l.bf16 %v9198_v55 }
 0xb1a   : > { %v8332_v3 = vpop.xlane.xlu1 %8331 }
 0xb1b   : > { %v8378_v50 = vsub.f32 %v14961_v8, %v8332_v3  ;;  %v7286_v31 = vpop.f32.mrf.mxu2  ;;  %9090 = vmatpush.msra.mxu2 %v9199_v11  ;;  %9098 = vmatpush.msra.mxu3 %v9200_v30 }
 0xb1c   : > { %7389 = vst.msk [vmem:[%s14977_s21 + $0x28] sm:$0xff] %vm6159_vm3, %v7286_v31  ;;  %8566 = vmatpush.msra.mxu0 %v9199_v11  ;;  %8655 = vmatpush.msra.mxu1 %v9200_v30 }
 0xb1d   : > { %v8394_v51 = vmul.f32 1.442695, %v8378_v50  ;;  %9091 = vmatpush.msra.mxu2 %v9204_v7  ;;  %9099 = vmatpush.msra.mxu3 %v9205_v18 }
 0xb1e   : > { %8567 = vmatpush.msra.mxu0 %v9204_v7  ;;  %8656 = vmatpush.msra.mxu1 %v9205_v18 }
 0xb1f   : > { %9441 = vpow2.f32 %v8394_v51 }
 0xb20   : > { %9443 = vrcp.f32 %v15045_v21 }
 0xb21   : > { %v7375_v27 = vpop.f32.mrf.mxu3  ;;  %9445 = vrcp.f32 %v8455_v57 }
 0xb22   : > { %7397 = vst.msk [vmem:[%s14977_s21 + $0x68] sm:$0xff] %vm6159_vm3, %v7375_v27 }
 0xb25   : > { %v15086_v8 = vpop.eup %9441 }
 0xb26   : > { %v8426_v37 = vsel %vm7029_vm14, %v15086_v8, 0.0  ;;  %v9444_v36 = vpop.eup %9443 }
 0xb27   : > { %8427 = vadd.xlane.f32.xlu0 %v8426_v37  ;;  %v9446_v42 = vpop.eup %9445  ;;  %v8491_v22 = vmul.f32 %v9444_v36, %v14913_v39 }
 0xb28   : > { %v8499_v21 = vmul.f32 %v9446_v42, %v14946_v26 }
 0xb29   : > { %v7289_v34 = vpop.f32.mrf.mxu2 }
 0xb2a   : > { %7390 = vst.msk [vmem:[%s14977_s21 + $0x30] sm:$0xff] %vm6159_vm3, %v7289_v34  ;;  %v7378_v28 = vpop.f32.mrf.mxu3 }
 0xb2b   : > { %7398 = vst.msk [vmem:[%s14977_s21 + $0x70] sm:$0xff] %vm6159_vm3, %v7378_v28 }
 0xb2e   : > { %v8458_v41 = vpop.xlane.xlu2 %8457 }
 0xb2f   : > { %9447 = vrcp.f32 %v8458_v41 }
 0xb31   : > { %v7292_v20 = vpop.f32.mrf.mxu2 }
 0xb32   : > { %7391 = vst.msk [vmem:[%s14977_s21 + $0x38] sm:$0xff] %vm6159_vm3, %v7292_v20  ;;  %v9208_v19 = vpop.permute.xlu1 %9207 }
 0xb33   : > { %v9210_v60 = vunpack.i.h.bf16 %v9208_v19  ;;  %v9209_v9 = vunpack.i.l.bf16 %v9208_v19 }
 0xb35   : > { %9092 = vmatpush.msra.mxu2 %v9209_v9  ;;  %9100 = vmatpush.msra.mxu3 %v9210_v60  ;;  %v9448_v23 = vpop.eup %9447 }
 0xb36   : > { %8568 = vmatpush.msra.mxu0 %v9209_v9  ;;  %8657 = vmatpush.msra.mxu1 %v9210_v60  ;;  %v8500_v63 = vmul.f32 %v9448_v23, %v14988_v44  ;;  %v8440_v46 = vpop.xlane.xlu2 %8439 }
 0xb3a   : > { %v9213_v52 = vpop.permute.xlu1 %9212 }
 0xb3b   : > { %v9215_v1 = vunpack.i.h.bf16 %v9213_v52  ;;  %v9214_v43 = vunpack.i.l.bf16 %v9213_v52 }
 0xb3d   : > { %9093 = vmatpush.msra.mxu2 %v9214_v43  ;;  %9101 = vmatpush.msra.mxu3 %v9215_v1 }
 0xb3e   : > { %9066 = vmatmul.msk.f32.vlgmr.msra.gmra.mxu2 %vm7029_vm14, %v8491_v22  ;;  %9074 = vmatmul.msk.f32.vlgmr.msra.gmra.mxu3 %vm7029_vm14, %v8499_v21  ;;  %v8443_v25 = vpop.xlane.xlu2 %8442 }
 0xb3f   : > { %8569 = vmatpush.msra.mxu0 %v9214_v43  ;;  %8658 = vmatpush.msra.mxu1 %v9215_v1 }
 0xb43   : > { %v8434_v48 = vpop.xlane.xlu0 %8433 }
 0xb44   : > { %9449 = vrcp.f32 %v8434_v48 }
 0xb46   : > { %9075 = vmatmul.msk.f32.gmra.mxu3 %vm7029_vm14, %v8500_v63  ;;  %v8446_v33 = vpop.xlane.xlu2 %8445 }
 0xb4a   : > { %v9450_v39 = vpop.eup %9449 }
 0xb4b   : > { %v8461_v35 = vpop.xlane.xlu0 %8460  ;;  %v8492_v26 = vmul.f32 %v9450_v39, %v15014_v53 }
 0xb4c   : > { %9451 = vrcp.f32 %v8461_v35 }
 0xb4d   : > { %9067 = vmatmul.msk.f32.gmra.mxu2 %vm7029_vm14, %v8492_v26 }
 0xb52   : > { %v9452_v38 = vpop.eup %9451 }
 0xb53   : > { %v8464_v32 = vpop.xlane.xlu0 %8463  ;;  %v8501_v40 = vmul.f32 %v9452_v38, %v15026_v4  ;;  %v8449_v4 = vpop.xlane.xlu2 %8448 }
 0xb54   : > { %9453 = vrcp.f32 %v8464_v32  ;;  %v7381_v13 = vpop.f32.mrf.mxu3 }
 0xb55   : > { %7399 = vst.msk [vmem:[%s14977_s21 + $0x78] sm:$0xff] %vm6159_vm3, %v7381_v13  ;;  %9076 = vmatmul.msk.f32.gmra.mxu3 %vm7029_vm14, %v8501_v40  ;;  %vm8748_vm3 = vcmask 261248  }
 0xb5a   : > { %v9454_v44 = vpop.eup %9453 }
 0xb5b   : > { %v8467_v10 = vpop.xlane.xlu0 %8466  ;;  %v8502_v62 = vmul.f32 %v9454_v44, %v15035_v12 }
 0xb5c   : > { %9455 = vrcp.f32 %v8467_v10 }
 0xb5d   : > { %9077 = vmatmul.msk.f32.gmra.mxu3 %vm7029_vm14, %v8502_v62 }
 0xb62   : > { %v9456_v53 = vpop.eup %9455 }
 0xb63   : > { %v8470_v14 = vpop.xlane.xlu0 %8469  ;;  %v8503_v47 = vmul.f32 %v9456_v53, %v15043_v29 }
 0xb64   : > { %9457 = vrcp.f32 %v8470_v14 }
 0xb65   : > { %v8437_v54 = vpop.xlane.xlu1 %8436  ;;  %9078 = vmatmul.msk.f32.gmra.mxu3 %vm7029_vm14, %v8503_v47 }
 0xb66   : > { %9459 = vrcp.f32 %v8437_v54 }
 0xb67   : > { %9461 = vrcp.f32 %v8440_v46 }
 0xb6a   : > { %v9458_v56 = vpop.eup %9457 }
 0xb6b   : > { %v8504_v59 = vmul.f32 %v9458_v56, %v15052_v15 }
 0xb6c   : > { %v9460_v5 = vpop.eup %9459 }
 0xb6d   : > { %v8473_v57 = vpop.xlane.xlu1 %8472  ;;  %v8452_v12 = vpop.xlane.xlu2 %8451  ;;  %9079 = vmatmul.msk.f32.gmra.mxu3 %vm7029_vm14, %v8504_v59  ;;  %v8493_v17 = vmul.f32 %v9460_v5, %v15054_v2 }
 0xb6e   : > { %9463 = vrcp.f32 %v8473_v57  ;;  %v9462_v29 = vpop.eup %9461 }
 0xb6f   : > { %9465 = vrcp.f32 %v8452_v12  ;;  %9068 = vmatmul.msk.f32.gmra.mxu2 %vm7029_vm14, %v8493_v17  ;;  %v8494_v55 = vmul.f32 %v9462_v29, %v14998_v16 }
 0xb70   : > { %9467 = vrcp.f32 %v8443_v25 }
 0xb71   : > { %9469 = vrcp.f32 %v8446_v33 }
 0xb72   : > { %9471 = vrcp.f32 %v8449_v4 }
 0xb74   : > { %v9464_v61 = vpop.eup %9463 }
 0xb75   : > { %v9466_v24 = vpop.eup %9465  ;;  %v8505_v15 = vmul.f32 %v9464_v61, %v15063_v45 }
 0xb76   : > { %v8498_v18 = vmul.f32 %v9466_v24, %v15065_v6  ;;  %v9468_v2 = vpop.eup %9467 }
 0xb77   : > { %9069 = vmatmul.msk.f32.gmra.mxu2 %vm7029_vm14, %v8494_v55  ;;  %9080 = vmatmul.msk.f32.gmra.mxu3 %vm7029_vm14, %v8505_v15  ;;  %v8495_v7 = vmul.f32 %v9468_v2, %v15007_v49  ;;  %v9470_v30 = vpop.eup %9469 }
 0xb78   : > { %9073 = vmatmul.msk.f32.vlgmr.msra.gmra.mxu1 %vm7029_vm14, %v8498_v18  ;;  %v8496_v16 = vmul.f32 %v9470_v30, %v15018_v58  ;;  %v9472_v45 = vpop.eup %9471 }
 0xb79   : > { %v8497_v6 = vmul.f32 %v9472_v45, %v15029_v0 }
 0xb7f   : > { %9070 = vmatmul.msk.f32.gmra.mxu2 %vm7029_vm14, %v8495_v7 }
 0xb87   : > { %9071 = vmatmul.msk.f32.gmra.mxu2 %vm7029_vm14, %v8496_v16 }
 0xb8f   : > { %9072 = vmatmul.msk.f32.gmra.mxu2 %vm7029_vm14, %v8497_v6 }
 0xb9a   : > { %v8428_v11 = vpop.xlane.xlu0 %8427 }
 0xb9b   : > { %9473 = vrcp.f32 %v8428_v11 }
 0xba1   : > { %v9474_v3 = vpop.eup %9473 }
 0xba2   : > { %v8490_v50 = vmul.f32 %v9474_v3, %v15086_v8 }
 0xba4   : > { %9065 = vmatmul.msk.f32.vlgmr.msra.gmra.mxu0 %vm7029_vm14, %v8490_v50 }
 0xbc1   : > { %v8574_v49 = vpop.f32.mrf.mxu2  ;;  %v8663_v58 = vpop.f32.mrf.mxu3 }
 0xbc2   : > { %8702 = vrot.lane.b32.xlu0 %v8574_v49, %s9540_s10 }
 0xbc9   : > { %v8666_v51 = vpop.f32.mrf.mxu3 }
 0xbd0   : > { %v8577_v31 = vpop.f32.mrf.mxu2 }
 0xbd1   : > { %8704 = vrot.lane.b32.xlu2 %v8577_v31, %s9540_s10 }
 0xbd8   : > { %v8669_v0 = vpop.f32.mrf.mxu3 }
 0xbe0   : > { %v8672_v8 = vpop.f32.mrf.mxu3 }
 0xbe8   : > { %v8675_v20 = vpop.f32.mrf.mxu3 }
 0xbf0   : > { %v8678_v60 = vpop.f32.mrf.mxu3 }
 0xbf2   : > { %v8580_v27 = vpop.f32.mrf.mxu2 }
 0xbf3   : > { %8706 = vrot.lane.b32.xlu0 %v8580_v27, %s9540_s10 }
 0xbf5   : > { %v8660_v37 = vpop.f32.mrf.mxu1 }
 0xbfa   : > { %v8583_v34 = vpop.f32.mrf.mxu2  ;;  %v8681_v36 = vpop.f32.mrf.mxu3 }
 0xbfb   : > { %8716 = vrot.lane.b32.xlu0 %v8660_v37, %s9540_s10 }
 0xc02   : > { %v8586_v28 = vpop.f32.mrf.mxu2 }
 0xc03   : > { %8710 = vrot.lane.b32.xlu0 %v8586_v28, %s9540_s10 }
 0xc0a   : > { %v8589_v19 = vpop.f32.mrf.mxu2 }
 0xc0b   : > { %8722 = vrot.lane.b32.xlu0 %v8669_v0, %s9540_s10  ;;  %8712 = vrot.lane.b32.xlu2 %v8589_v19, %s9540_s10 }
 0xc12   : > { %v8592_v42 = vpop.f32.mrf.mxu2 }
 0xc13   : > { %8728 = vrot.lane.b32.xlu0 %v8678_v60, %s9540_s10  ;;  %8718 = vrot.lane.b32.xlu2 %v8663_v58, %s9540_s10 }
 0xc1b   : > { %8724 = vrot.lane.b32.xlu2 %v8672_v8, %s9540_s10 }
 0xc21   : > { %v8571_v9 = vpop.f32.mrf.mxu0 }
 0xc22   : > { %8700 = vrot.lane.b32.xlu1 %v8571_v9, %s9540_s10 }
 0xc23   : > { %8730 = vrot.lane.b32.xlu2 %v8681_v36, %s9540_s10 }
 0xc2a   : > { %8708 = vrot.lane.b32.xlu1 %v8583_v34, %s9540_s10 }
 0xc2b   : > { %v8705_v41 = vpop.permute.xlu2 %8704 }
 0xc2c   : > { %8751 = vst.msk [vmem:[%s14977_s21 + $0x10] sm:$0xff] %vm8748_vm3, %v8705_v41 }
 0xc32   : > { %8714 = vrot.lane.b32.xlu1 %v8592_v42, %s9540_s10 }
 0xc34   : > { %v8703_v52 = vpop.permute.xlu0 %8702 }
 0xc35   : > { %8750 = vst.msk [vmem:[%s14977_s21 + $0x8] sm:$0xff] %vm8748_vm3, %v8703_v52 }
 0xc3a   : > { %8720 = vrot.lane.b32.xlu1 %v8666_v51, %s9540_s10 }
 0xc42   : > { %8726 = vrot.lane.b32.xlu1 %v8675_v20, %s9540_s10 }
 0xc65   : > { %v8707_v1 = vpop.permute.xlu0 %8706  ;;  %v8713_v43 = vpop.permute.xlu2 %8712 }
 0xc66   : > { %8752 = vst.msk [vmem:[%s14977_s21 + $0x18] sm:$0xff] %vm8748_vm3, %v8707_v1 }
 0xc67   : > { %8755 = vst.msk [vmem:[%s14977_s21 + $0x30] sm:$0xff] %vm8748_vm3, %v8713_v43 }
 0xc6d   : > { %v8717_v22 = vpop.permute.xlu0 %8716  ;;  %v8719_v21 = vpop.permute.xlu2 %8718 }
 0xc6e   : > { %8758 = vst.msk [vmem:[%s14977_s21 + $0x48] sm:$0xff] %vm8748_vm3, %v8719_v21 }
 0xc6f   : > { %8757 = vst.msk [vmem:[%s14977_s21 + $0x40] sm:$0xff] %vm8748_vm3, %v8717_v22 }
 0xc75   : > { %v8711_v23 = vpop.permute.xlu0 %8710  ;;  %v8725_v39 = vpop.permute.xlu2 %8724 }
 0xc76   : > { %8754 = vst.msk [vmem:[%s14977_s21 + $0x28] sm:$0xff] %vm8748_vm3, %v8711_v23 }
 0xc77   : > { %8761 = vst.msk [vmem:[%s14977_s21 + $0x60] sm:$0xff] %vm8748_vm3, %v8725_v39 }
 0xc7d   : > { %v8723_v48 = vpop.permute.xlu0 %8722  ;;  %v8731_v25 = vpop.permute.xlu2 %8730 }
 0xc7e   : > { %8760 = vst.msk [vmem:[%s14977_s21 + $0x58] sm:$0xff] %vm8748_vm3, %v8723_v48 }
 0xc7f   : > { %8764 = vst.msk [vmem:[%s14977_s21 + $0x78] sm:$0xff] %vm8748_vm3, %v8731_v25 }
 0xc85   : > { %v8729_v63 = vpop.permute.xlu0 %8728 }
 0xc86   : > { %8763 = vst.msk [vmem:[%s14977_s21 + $0x70] sm:$0xff] %vm8748_vm3, %v8729_v63 }
 0xc94   : > { %v8701_v46 = vpop.permute.xlu1 %8700 }
 0xc95   : > { %8749 = vst.msk [vmem:[%s14977_s21] sm:$0xff] %vm8748_vm3, %v8701_v46 }
 0xc9c   : > { %v8709_v35 = vpop.permute.xlu1 %8708 }
 0xc9d   : > { %8753 = vst.msk [vmem:[%s14977_s21 + $0x20] sm:$0xff] %vm8748_vm3, %v8709_v35 }
 0xca4   : > { %v8715_v26 = vpop.permute.xlu1 %8714 }
 0xca5   : > { %8756 = vst.msk [vmem:[%s14977_s21 + $0x38] sm:$0xff] %vm8748_vm3, %v8715_v26 }
 0xcac   : > { %v8721_v38 = vpop.permute.xlu1 %8720 }
 0xcad   : > { %8759 = vst.msk [vmem:[%s14977_s21 + $0x50] sm:$0xff] %vm8748_vm3, %v8721_v38 }
 0xcb4   : > { %v8727_v32 = vpop.permute.xlu1 %8726 }
 0xcb5   : > { %8762 = vst.msk [vmem:[%s14977_s21 + $0x68] sm:$0xff] %vm8748_vm3, %v8727_v32 }
 0xcb6 PF: > { %s17_s24 = sadd.s32 1, %s9523_s24  }
 0xcb7   : > { %p14_p4 = scmp.ge.s32.totalorder %s17_s24, 4  }
 0xcb9   :  { %16 = sbr.rel (!%p14_p4) target bundleno = 1 (0x1), region = 81 }

</bundles_post_ra>
